<compile_context>
chip_gen: v5e
topology: v5e:2x2
jax: 0.10.0
libtpu: 0.0.40
codegen_flags: <defaults>
</compile_context>

<pallas_src>
import numpy as np
import jax
import jax.numpy as jnp
from jax.experimental import pallas as pl
from jax.experimental.pallas import tpu as pltpu

# Linear(32*7*7, 128) pins the input to 28x28 (MNIST-like).
SP1 = 28 * 28        # 784  conv1 spatial positions
SP1P = 896           # 784 padded up to a lane multiple (7 * 128)
SP2 = 14 * 14        # 196  conv2 spatial positions
SP2P = 256           # 196 padded up to 2 * 128
SP3 = 7 * 7          # 49   spatial positions after pool2
SP3P = 128           # 49 padded up to one full lane tile
FC1_IN = 32 * SP3    # 1568 (PyTorch flatten size)
FC1_INP = 32 * SP3P  # 4096 (lane-aligned flatten size used inside the kernel)


# ---------------------- small structural constant arrays ----------------------

def _pool_selector(h, w, pad_rows, pad_cols):
    """[pad_rows, pad_cols] 0/1 matrix: output col r*(w//2)+c picks input row (2r)*w+2c."""
    ho, wo = h // 2, w // 2
    m = np.zeros((pad_rows, pad_cols), np.float32)
    for r in range(ho):
        for c in range(wo):
            m[(2 * r) * w + 2 * c, r * wo + c] = 1.0
    return m


def _edge_masks(h, w, pad_cols):
    """[9, pad_cols] 0/1 masks reproducing Conv2d zero padding for the 9 rolled taps."""
    m = np.zeros((9, pad_cols), np.float32)
    for kh in range(3):
        for kw in range(3):
            dh, dw = kh - 1, kw - 1
            t = kh * 3 + kw
            for r in range(h):
                for c in range(w):
                    if 0 <= r + dh < h and 0 <= c + dw < w:
                        m[t, r * w + c] = 1.0
    return m


# ------------------------------- fused kernel --------------------------------

def _fused_cnn_kernel(x_ref, w1_ref, b1_ref, s1_ref, w2_ref, msk_ref, b2_ref,
                      s2_ref, w3_ref, b3_ref, w4_ref, b4_ref, o_ref,
                      p2_scr, flat_scr):
    f32 = jnp.float32
    blk_b = x_ref.shape[0]

    for bi in range(blk_b):
        x = x_ref[bi]                                                # [9, 896]

        # conv1 (1->16, 3x3, pad=1) + ReLU: one [16,9]x[9,896] matmul.
        a1 = jnp.dot(w1_ref[...], x, preferred_element_type=f32) + b1_ref[...]
        a1 = jnp.maximum(a1, 0.0)                                    # [16, 896]

        # maxpool1 2x2: 3 lane rolls (XLU) + max (VPU) + ONE downsample selector
        # matmul.  Wraparound only pollutes lanes the selector discards.
        mx = a1
        for s in (1, 28, 29):
            mx = jnp.maximum(mx, pltpu.roll(a1, shift=SP1P - s, axis=1))
        p1 = jnp.dot(mx, s1_ref[...], preferred_element_type=f32)    # [16, 256] (cols>=196 are 0)

        # conv2 (16->32, 3x3, pad=1) + ReLU: 9 rolled taps, masked to reproduce the
        # zero padding, stacked on sublanes -> ONE [32,144]x[144,256] matmul.
        taps = []
        for kh in range(3):
            for kw in range(3):
                t = kh * 3 + kw
                s = (kh - 1) * 14 + (kw - 1)
                tap = p1 if s == 0 else pltpu.roll(p1, shift=(-s) % SP2P, axis=1)
                taps.append(tap * msk_ref[pl.ds(t, 1), :])
        taps = jnp.concatenate(taps, axis=0)                         # [144, 256]
        a2 = jnp.dot(w2_ref[...], taps, preferred_element_type=f32) + b2_ref[...]
        a2 = jnp.maximum(a2, 0.0)                                    # [32, 256]

        # maxpool2 2x2 (same roll trick) -> [32, 128] (cols >= 49 are exactly 0).
        mx = a2
        for s in (1, 14, 15):
            mx = jnp.maximum(mx, pltpu.roll(a2, shift=SP2P - s, axis=1))
        p2_scr[...] = jnp.dot(mx, s2_ref[...], preferred_element_type=f32)

        # flatten: channel c -> lanes [c*128, c*128+128) of row bi of the scratch.
        # Lane-aligned 128-wide copies; the 49->128 pad lanes are zero and w3 has
        # zero rows there, so the fc1 result is exact.
        for c in range(32):
            flat_scr[pl.ds(bi, 1), pl.ds(c * SP3P, SP3P)] = p2_scr[pl.ds(c, 1), :]

    # fc1 (1568 -> 128) + ReLU, batched over the whole block (B on the M dim).
    # Weight kept in bf16 (perf review); accumulation stays f32.
    flat = flat_scr[...].astype(jnp.bfloat16)                        # [blk_b, 4096]
    h1 = jnp.dot(flat, w3_ref[...], preferred_element_type=f32) + b3_ref[...]
    h1 = jnp.maximum(h1, 0.0)                                        # [blk_b, 128]

    # fc2 (128 -> 10)
    o_ref[...] = jnp.dot(h1, w4_ref[...], preferred_element_type=f32) + b4_ref[...]


# ------------------------------ params / wrapper ------------------------------

def init_params(key):
    ks = jax.random.split(key, 8)
    s = 0.05
    return {
        "w1": s * jax.random.normal(ks[0], (16, 1, 3, 3), jnp.float32),
        "b1": s * jax.random.normal(ks[1], (16,), jnp.float32),
        "w2": s * jax.random.normal(ks[2], (32, 16, 3, 3), jnp.float32),
        "b2": s * jax.random.normal(ks[3], (32,), jnp.float32),
        "w3": s * jax.random.normal(ks[4], (128, FC1_IN), jnp.float32),
        "b3": s * jax.random.normal(ks[5], (128,), jnp.float32),
        "w4": s * jax.random.normal(ks[6], (10, 128), jnp.float32),
        "b4": s * jax.random.normal(ks[7], (10,), jnp.float32),
    }


def prepare_kernel_params(params):
    """One-time re-layout of PyTorch-style params + small structural constants."""
    # fc1 weight: [128,1568] -> [c, p, n] -> lane-pad p 49->128 -> [4096,128] bf16.
    w3t = params["w3"].T.reshape(32, SP3, 128)
    w3k = jnp.pad(w3t, ((0, 0), (0, SP3P - SP3), (0, 0))).reshape(FC1_INP, 128)
    return {
        "w1k": params["w1"].reshape(16, 9),                                   # [16,9]
        "b1k": params["b1"].reshape(16, 1),
        # conv2 weight fused over taps: column index = tap*16 + in_channel.
        "w2k": jnp.transpose(params["w2"].reshape(32, 16, 9), (0, 2, 1)).reshape(32, 144),
        "b2k": params["b2"].reshape(32, 1),
        "w3k": w3k.astype(jnp.bfloat16),                                      # [4096,128]
        "b3k": params["b3"].reshape(1, 128),
        "w4k": params["w4"].T,                                                # [128,10]
        "b4k": params["b4"].reshape(1, 10),
        "s1": jnp.asarray(_pool_selector(28, 28, SP1P, SP2P)),                # [896,256]
        "s2": jnp.asarray(_pool_selector(14, 14, SP2P, SP3P)),                # [256,128]
        "msk": jnp.asarray(_edge_masks(14, 14, SP2P)),                        # [9,256]
    }


def _im2col_input(x):
    """[B,1,28,28] -> [B,9,896]: 3x3 zero-padded taps of the raw input, lane-padded."""
    B = x.shape[0]
    xp = jnp.pad(x, ((0, 0), (0, 0), (1, 1), (1, 1)))
    cols = [xp[:, 0, kh:kh + 28, kw:kw + 28] for kh in range(3) for kw in range(3)]
    xc = jnp.stack(cols, axis=1).reshape(B, 9, SP1)
    return jnp.pad(xc, ((0, 0), (0, 0), (0, SP1P - SP1)))


def _block_batch(B):
    if B <= 16:
        return B            # whole batch in one grid step
    for cand in (16, 8):
        if B % cand == 0:
            return cand
    return B


@jax.jit
def simple_cnn_forward(x, kp):
    B = x.shape[0]
    xcols = _im2col_input(x)
    blk_b = _block_batch(B)
    grid = (B // blk_b,)

    flops = 2 * B * (16 * 9 * SP1P + 16 * SP1P * SP2P + 32 * 144 * SP2P
                     + 32 * SP2P * SP3P + FC1_INP * 128 + 128 * 10)
    bytes_accessed = (4 * xcols.size + 4 * B * 10
                      + sum(int(v.size) * v.dtype.itemsize
                            for v in jax.tree_util.tree_leaves(kp)))

    # NOTE: all constant inputs use block index (0,0) for every grid step, so they
    # are only DMA'd once; constant footprint is ~2.1 MB (fits every chip's default
    # scoped VMEM even double-buffered), so no vmem_limit_bytes override is needed.
    out = pl.pallas_call(
        _fused_cnn_kernel,
        out_shape=jax.ShapeDtypeStruct((B, 10), jnp.float32),
        grid=grid,
        in_specs=[
            pl.BlockSpec((blk_b, 9, SP1P), lambda g: (g, 0, 0)),   # per-block input taps
            pl.BlockSpec((16, 9), lambda g: (0, 0)),               # w1
            pl.BlockSpec((16, 1), lambda g: (0, 0)),               # b1
            pl.BlockSpec((SP1P, SP2P), lambda g: (0, 0)),          # pool1 downsample selector
            pl.BlockSpec((32, 144), lambda g: (0, 0)),             # w2 (taps fused on K)
            pl.BlockSpec((9, SP2P), lambda g: (0, 0)),             # conv2 zero-pad edge masks
            pl.BlockSpec((32, 1), lambda g: (0, 0)),               # b2
            pl.BlockSpec((SP2P, SP3P), lambda g: (0, 0)),          # pool2 downsample selector
            pl.BlockSpec((FC1_INP, 128), lambda g: (0, 0)),        # w3 (bf16, lane-padded)
            pl.BlockSpec((1, 128), lambda g: (0, 0)),              # b3
            pl.BlockSpec((128, 10), lambda g: (0, 0)),             # w4
            pl.BlockSpec((1, 10), lambda g: (0, 0)),               # b4
        ],
        out_specs=pl.BlockSpec((blk_b, 10), lambda g: (g, 0)),
        scratch_shapes=[
            pltpu.VMEM((32, SP3P), jnp.float32),        # one image's pooled conv2 output
            pltpu.VMEM((blk_b, FC1_INP), jnp.float32),  # flattened fc1 inputs for the block
        ],
        compiler_params=pltpu.CompilerParams(
            # Only shard across TensorCores when each core still gets >=8 images
            # (grid > 1 implies blk_b >= 8 here); at small batch keep one core so
            # the resident constants are not duplicated (perf-review item).
            dimension_semantics=(("parallel",) if grid[0] > 1 else ("arbitrary",))),
        cost_estimate=pl.CostEstimate(flops=flops, transcendentals=0,
                                      bytes_accessed=bytes_accessed),
    )(xcols, kp["w1k"], kp["b1k"], kp["s1"], kp["w2k"], kp["msk"], kp["b2k"],
      kp["s2"], kp["w3k"], kp["b3k"], kp["w4k"], kp["b4k"])
    return out


# ---------------------------------- main --------------------------------------

if __name__ == "__main__":
    key = jax.random.PRNGKey(0)
    k_params, k_x = jax.random.split(key)
    params = init_params(k_params)
    kparams = prepare_kernel_params(params)   # one-time weight re-layout

    # Linear(32*7*7, 128) pins the spatial size to 28x28 (MNIST-like).
    x = jax.random.normal(k_x, (2, 1, 28, 28), jnp.float32)

    logits = simple_cnn_forward(x, kparams)
    jax.block_until_ready(logits)
    assert logits.shape == (2, 10) and logits.dtype == jnp.float32
    print("KERNEL_OK")
</pallas_src>

<mosaic_0001>
module attributes {stable_mosaic.version = 11 : i64} {
  func.func @_fused_cnn_kernel(%arg0: i32, %arg1: memref<2x9x896xf32, #tpu.memory_space<vmem>>, %arg2: memref<16x9xf32, #tpu.memory_space<vmem>>, %arg3: memref<16x1xf32, #tpu.memory_space<vmem>>, %arg4: memref<896x256xf32, #tpu.memory_space<vmem>>, %arg5: memref<32x144xf32, #tpu.memory_space<vmem>>, %arg6: memref<9x256xf32, #tpu.memory_space<vmem>>, %arg7: memref<32x1xf32, #tpu.memory_space<vmem>>, %arg8: memref<256x128xf32, #tpu.memory_space<vmem>>, %arg9: memref<4096x128xbf16, #tpu.memory_space<vmem>>, %arg10: memref<1x128xf32, #tpu.memory_space<vmem>>, %arg11: memref<128x10xf32, #tpu.memory_space<vmem>>, %arg12: memref<1x10xf32, #tpu.memory_space<vmem>>, %arg13: memref<2x10xf32, #tpu.memory_space<vmem>>, %arg14: memref<32x128xf32, #tpu.memory_space<vmem>>, %arg15: memref<2x4096xf32, #tpu.memory_space<vmem>>) attributes {dimension_semantics = [#tpu.dimension_semantics<arbitrary>], iteration_bounds = array<i64: 1>, scalar_prefetch = 0 : i64, scratch_operands = 2 : i64, tpu.core_type = #tpu.core_type<tc>, window_params = [{transform_indices = @transform_0, window_bounds = array<i64: 2, 9, 896>}, {pipeline_mode = #tpu.pipeline_mode<synchronous>, transform_indices = @transform_1, window_bounds = array<i64: 16, 9>}, {pipeline_mode = #tpu.pipeline_mode<synchronous>, transform_indices = @transform_2, window_bounds = array<i64: 16, 1>}, {pipeline_mode = #tpu.pipeline_mode<synchronous>, transform_indices = @transform_3, window_bounds = array<i64: 896, 256>}, {pipeline_mode = #tpu.pipeline_mode<synchronous>, transform_indices = @transform_4, window_bounds = array<i64: 32, 144>}, {pipeline_mode = #tpu.pipeline_mode<synchronous>, transform_indices = @transform_5, window_bounds = array<i64: 9, 256>}, {pipeline_mode = #tpu.pipeline_mode<synchronous>, transform_indices = @transform_6, window_bounds = array<i64: 32, 1>}, {pipeline_mode = #tpu.pipeline_mode<synchronous>, transform_indices = @transform_7, window_bounds = array<i64: 256, 128>}, {pipeline_mode = #tpu.pipeline_mode<synchronous>, transform_indices = @transform_8, window_bounds = array<i64: 4096, 128>}, {pipeline_mode = #tpu.pipeline_mode<synchronous>, transform_indices = @transform_9, window_bounds = array<i64: 1, 128>}, {pipeline_mode = #tpu.pipeline_mode<synchronous>, transform_indices = @transform_10, window_bounds = array<i64: 128, 10>}, {pipeline_mode = #tpu.pipeline_mode<synchronous>, transform_indices = @transform_11, window_bounds = array<i64: 1, 10>}, {transform_indices = @transform_12, window_bounds = array<i64: 2, 10>}]} {
    %c0 = arith.constant 0 : index
    %c0_0 = arith.constant 0 : index
    %c0_1 = arith.constant 0 : index
    %0 = vector.load %arg1[%c0, %c0_0, %c0_1] : memref<2x9x896xf32, #tpu.memory_space<vmem>>, vector<1x9x896xf32>
    %1 = vector.shape_cast %0 : vector<1x9x896xf32> to vector<9x896xf32>
    %c0_2 = arith.constant 0 : index
    %c0_3 = arith.constant 0 : index
    %2 = vector.load %arg2[%c0_2, %c0_3] : memref<16x9xf32, #tpu.memory_space<vmem>>, vector<16x9xf32>
    %cst = arith.constant dense<0.000000e+00> : vector<16x896xf32>
    %3 = tpu.matmul %2, %1, %cst {dimension_numbers = #tpu.dot_dimension_numbers<[1], [0], [0], [1], [0, 0, 1, 1], [], []>} : vector<16x9xf32>, vector<9x896xf32>, vector<16x896xf32> -> vector<16x896xf32>
    %c0_4 = arith.constant 0 : index
    %c0_5 = arith.constant 0 : index
    %4 = vector.load %arg3[%c0_4, %c0_5] : memref<16x1xf32, #tpu.memory_space<vmem>>, vector<16x1xf32>
    %5 = vector.broadcast %4 : vector<16x1xf32> to vector<16x896xf32>
    %6 = arith.addf %3, %5 : vector<16x896xf32>
    %cst_6 = arith.constant 0.000000e+00 : f32
    %7 = vector.broadcast %cst_6 : f32 to vector<16x896xf32>
    %8 = arith.maximumf %6, %7 : vector<16x896xf32>
    %c895_i32 = arith.constant 895 : i32
    %9 = tpu.dynamic_rotate %8 by %c895_i32 dim 1 : vector<16x896xf32>, i32 -> vector<16x896xf32>
    %10 = arith.maximumf %8, %9 : vector<16x896xf32>
    %c868_i32 = arith.constant 868 : i32
    %11 = tpu.dynamic_rotate %8 by %c868_i32 dim 1 : vector<16x896xf32>, i32 -> vector<16x896xf32>
    %12 = arith.maximumf %10, %11 : vector<16x896xf32>
    %c867_i32 = arith.constant 867 : i32
    %13 = tpu.dynamic_rotate %8 by %c867_i32 dim 1 : vector<16x896xf32>, i32 -> vector<16x896xf32>
    %14 = arith.maximumf %12, %13 : vector<16x896xf32>
    %c0_7 = arith.constant 0 : index
    %c0_8 = arith.constant 0 : index
    %15 = vector.load %arg4[%c0_7, %c0_8] : memref<896x256xf32, #tpu.memory_space<vmem>>, vector<896x256xf32>
    %cst_9 = arith.constant dense<0.000000e+00> : vector<16x256xf32>
    %16 = tpu.matmul %14, %15, %cst_9 {dimension_numbers = #tpu.dot_dimension_numbers<[1], [0], [0], [1], [0, 0, 1, 1], [], []>} : vector<16x896xf32>, vector<896x256xf32>, vector<16x256xf32> -> vector<16x256xf32>
    %c15_i32 = arith.constant 15 : i32
    %17 = tpu.dynamic_rotate %16 by %c15_i32 dim 1 : vector<16x256xf32>, i32 -> vector<16x256xf32>
    %c0_10 = arith.constant 0 : index
    %c0_11 = arith.constant 0 : index
    %18 = vector.load %arg6[%c0_10, %c0_11] : memref<9x256xf32, #tpu.memory_space<vmem>>, vector<1x256xf32>
    %19 = vector.broadcast %18 : vector<1x256xf32> to vector<16x256xf32>
    %20 = arith.mulf %17, %19 : vector<16x256xf32>
    %c14_i32 = arith.constant 14 : i32
    %21 = tpu.dynamic_rotate %16 by %c14_i32 dim 1 : vector<16x256xf32>, i32 -> vector<16x256xf32>
    %c1 = arith.constant 1 : index
    %c0_12 = arith.constant 0 : index
    %22 = vector.load %arg6[%c1, %c0_12] : memref<9x256xf32, #tpu.memory_space<vmem>>, vector<1x256xf32>
    %23 = vector.broadcast %22 : vector<1x256xf32> to vector<16x256xf32>
    %24 = arith.mulf %21, %23 : vector<16x256xf32>
    %c13_i32 = arith.constant 13 : i32
    %25 = tpu.dynamic_rotate %16 by %c13_i32 dim 1 : vector<16x256xf32>, i32 -> vector<16x256xf32>
    %c2 = arith.constant 2 : index
    %c0_13 = arith.constant 0 : index
    %26 = vector.load %arg6[%c2, %c0_13] : memref<9x256xf32, #tpu.memory_space<vmem>>, vector<1x256xf32>
    %27 = vector.broadcast %26 : vector<1x256xf32> to vector<16x256xf32>
    %28 = arith.mulf %25, %27 : vector<16x256xf32>
    %c1_i32 = arith.constant 1 : i32
    %29 = tpu.dynamic_rotate %16 by %c1_i32 dim 1 : vector<16x256xf32>, i32 -> vector<16x256xf32>
    %c3 = arith.constant 3 : index
    %c0_14 = arith.constant 0 : index
    %30 = vector.load %arg6[%c3, %c0_14] : memref<9x256xf32, #tpu.memory_space<vmem>>, vector<1x256xf32>
    %31 = vector.broadcast %30 : vector<1x256xf32> to vector<16x256xf32>
    %32 = arith.mulf %29, %31 : vector<16x256xf32>
    %c4 = arith.constant 4 : index
    %c0_15 = arith.constant 0 : index
    %33 = vector.load %arg6[%c4, %c0_15] : memref<9x256xf32, #tpu.memory_space<vmem>>, vector<1x256xf32>
    %34 = vector.broadcast %33 : vector<1x256xf32> to vector<16x256xf32>
    %35 = arith.mulf %16, %34 : vector<16x256xf32>
    %c255_i32 = arith.constant 255 : i32
    %36 = tpu.dynamic_rotate %16 by %c255_i32 dim 1 : vector<16x256xf32>, i32 -> vector<16x256xf32>
    %c5 = arith.constant 5 : index
    %c0_16 = arith.constant 0 : index
    %37 = vector.load %arg6[%c5, %c0_16] : memref<9x256xf32, #tpu.memory_space<vmem>>, vector<1x256xf32>
    %38 = vector.broadcast %37 : vector<1x256xf32> to vector<16x256xf32>
    %39 = arith.mulf %36, %38 : vector<16x256xf32>
    %c243_i32 = arith.constant 243 : i32
    %40 = tpu.dynamic_rotate %16 by %c243_i32 dim 1 : vector<16x256xf32>, i32 -> vector<16x256xf32>
    %c6 = arith.constant 6 : index
    %c0_17 = arith.constant 0 : index
    %41 = vector.load %arg6[%c6, %c0_17] : memref<9x256xf32, #tpu.memory_space<vmem>>, vector<1x256xf32>
    %42 = vector.broadcast %41 : vector<1x256xf32> to vector<16x256xf32>
    %43 = arith.mulf %40, %42 : vector<16x256xf32>
    %c242_i32 = arith.constant 242 : i32
    %44 = tpu.dynamic_rotate %16 by %c242_i32 dim 1 : vector<16x256xf32>, i32 -> vector<16x256xf32>
    %c7 = arith.constant 7 : index
    %c0_18 = arith.constant 0 : index
    %45 = vector.load %arg6[%c7, %c0_18] : memref<9x256xf32, #tpu.memory_space<vmem>>, vector<1x256xf32>
    %46 = vector.broadcast %45 : vector<1x256xf32> to vector<16x256xf32>
    %47 = arith.mulf %44, %46 : vector<16x256xf32>
    %c241_i32 = arith.constant 241 : i32
    %48 = tpu.dynamic_rotate %16 by %c241_i32 dim 1 : vector<16x256xf32>, i32 -> vector<16x256xf32>
    %c8 = arith.constant 8 : index
    %c0_19 = arith.constant 0 : index
    %49 = vector.load %arg6[%c8, %c0_19] : memref<9x256xf32, #tpu.memory_space<vmem>>, vector<1x256xf32>
    %50 = vector.broadcast %49 : vector<1x256xf32> to vector<16x256xf32>
    %51 = arith.mulf %48, %50 : vector<16x256xf32>
    %52 = tpu.concatenate %20, %24, %28, %32, %35, %39, %43, %47, %51 in 0 : vector<16x256xf32>, vector<16x256xf32>, vector<16x256xf32>, vector<16x256xf32>, vector<16x256xf32>, vector<16x256xf32>, vector<16x256xf32>, vector<16x256xf32>, vector<16x256xf32> -> vector<144x256xf32>
    %c0_20 = arith.constant 0 : index
    %c0_21 = arith.constant 0 : index
    %53 = vector.load %arg5[%c0_20, %c0_21] : memref<32x144xf32, #tpu.memory_space<vmem>>, vector<32x144xf32>
    %cst_22 = arith.constant dense<0.000000e+00> : vector<32x256xf32>
    %54 = tpu.matmul %53, %52, %cst_22 {dimension_numbers = #tpu.dot_dimension_numbers<[1], [0], [0], [1], [0, 0, 1, 1], [], []>} : vector<32x144xf32>, vector<144x256xf32>, vector<32x256xf32> -> vector<32x256xf32>
    %c0_23 = arith.constant 0 : index
    %c0_24 = arith.constant 0 : index
    %55 = vector.load %arg7[%c0_23, %c0_24] : memref<32x1xf32, #tpu.memory_space<vmem>>, vector<32x1xf32>
    %56 = vector.broadcast %55 : vector<32x1xf32> to vector<32x256xf32>
    %57 = arith.addf %54, %56 : vector<32x256xf32>
    %cst_25 = arith.constant 0.000000e+00 : f32
    %58 = vector.broadcast %cst_25 : f32 to vector<32x256xf32>
    %59 = arith.maximumf %57, %58 : vector<32x256xf32>
    %c255_i32_26 = arith.constant 255 : i32
    %60 = tpu.dynamic_rotate %59 by %c255_i32_26 dim 1 : vector<32x256xf32>, i32 -> vector<32x256xf32>
    %61 = arith.maximumf %59, %60 : vector<32x256xf32>
    %c242_i32_27 = arith.constant 242 : i32
    %62 = tpu.dynamic_rotate %59 by %c242_i32_27 dim 1 : vector<32x256xf32>, i32 -> vector<32x256xf32>
    %63 = arith.maximumf %61, %62 : vector<32x256xf32>
    %c241_i32_28 = arith.constant 241 : i32
    %64 = tpu.dynamic_rotate %59 by %c241_i32_28 dim 1 : vector<32x256xf32>, i32 -> vector<32x256xf32>
    %65 = arith.maximumf %63, %64 : vector<32x256xf32>
    %c0_29 = arith.constant 0 : index
    %c0_30 = arith.constant 0 : index
    %66 = vector.load %arg8[%c0_29, %c0_30] : memref<256x128xf32, #tpu.memory_space<vmem>>, vector<256x128xf32>
    %cst_31 = arith.constant dense<0.000000e+00> : vector<32x128xf32>
    %67 = tpu.matmul %65, %66, %cst_31 {dimension_numbers = #tpu.dot_dimension_numbers<[1], [0], [0], [1], [0, 0, 1, 1], [], []>} : vector<32x256xf32>, vector<256x128xf32>, vector<32x128xf32> -> vector<32x128xf32>
    %c0_32 = arith.constant 0 : index
    %c0_33 = arith.constant 0 : index
    %68 = vector.load %arg14[%c0_32, %c0_33] : memref<32x128xf32, #tpu.memory_space<vmem>>, vector<32x128xf32>
    tpu.vector_store %arg14[%c0_32, %c0_33], %67 {strides = array<i32>} : memref<32x128xf32, #tpu.memory_space<vmem>>, vector<32x128xf32>,
    %c0_34 = arith.constant 0 : index
    %c0_35 = arith.constant 0 : index
    %69 = vector.load %arg14[%c0_34, %c0_35] : memref<32x128xf32, #tpu.memory_space<vmem>>, vector<1x128xf32>
    %c0_36 = arith.constant 0 : index
    %c0_37 = arith.constant 0 : index
    %70 = vector.load %arg15[%c0_36, %c0_37] : memref<2x4096xf32, #tpu.memory_space<vmem>>, vector<1x128xf32>
    tpu.vector_store %arg15[%c0_36, %c0_37], %69 {strides = array<i32>} : memref<2x4096xf32, #tpu.memory_space<vmem>>, vector<1x128xf32>,
    %c1_38 = arith.constant 1 : index
    %c0_39 = arith.constant 0 : index
    %71 = vector.load %arg14[%c1_38, %c0_39] : memref<32x128xf32, #tpu.memory_space<vmem>>, vector<1x128xf32>
    %c0_40 = arith.constant 0 : index
    %c128 = arith.constant 128 : index
    %72 = vector.load %arg15[%c0_40, %c128] : memref<2x4096xf32, #tpu.memory_space<vmem>>, vector<1x128xf32>
    tpu.vector_store %arg15[%c0_40, %c128], %71 {strides = array<i32>} : memref<2x4096xf32, #tpu.memory_space<vmem>>, vector<1x128xf32>,
    %c2_41 = arith.constant 2 : index
    %c0_42 = arith.constant 0 : index
    %73 = vector.load %arg14[%c2_41, %c0_42] : memref<32x128xf32, #tpu.memory_space<vmem>>, vector<1x128xf32>
    %c0_43 = arith.constant 0 : index
    %c256 = arith.constant 256 : index
    %74 = vector.load %arg15[%c0_43, %c256] : memref<2x4096xf32, #tpu.memory_space<vmem>>, vector<1x128xf32>
    tpu.vector_store %arg15[%c0_43, %c256], %73 {strides = array<i32>} : memref<2x4096xf32, #tpu.memory_space<vmem>>, vector<1x128xf32>,
    %c3_44 = arith.constant 3 : index
    %c0_45 = arith.constant 0 : index
    %75 = vector.load %arg14[%c3_44, %c0_45] : memref<32x128xf32, #tpu.memory_space<vmem>>, vector<1x128xf32>
    %c0_46 = arith.constant 0 : index
    %c384 = arith.constant 384 : index
    %76 = vector.load %arg15[%c0_46, %c384] : memref<2x4096xf32, #tpu.memory_space<vmem>>, vector<1x128xf32>
    tpu.vector_store %arg15[%c0_46, %c384], %75 {strides = array<i32>} : memref<2x4096xf32, #tpu.memory_space<vmem>>, vector<1x128xf32>,
    %c4_47 = arith.constant 4 : index
    %c0_48 = arith.constant 0 : index
    %77 = vector.load %arg14[%c4_47, %c0_48] : memref<32x128xf32, #tpu.memory_space<vmem>>, vector<1x128xf32>
    %c0_49 = arith.constant 0 : index
    %c512 = arith.constant 512 : index
    %78 = vector.load %arg15[%c0_49, %c512] : memref<2x4096xf32, #tpu.memory_space<vmem>>, vector<1x128xf32>
    tpu.vector_store %arg15[%c0_49, %c512], %77 {strides = array<i32>} : memref<2x4096xf32, #tpu.memory_space<vmem>>, vector<1x128xf32>,
    %c5_50 = arith.constant 5 : index
    %c0_51 = arith.constant 0 : index
    %79 = vector.load %arg14[%c5_50, %c0_51] : memref<32x128xf32, #tpu.memory_space<vmem>>, vector<1x128xf32>
    %c0_52 = arith.constant 0 : index
    %c640 = arith.constant 640 : index
    %80 = vector.load %arg15[%c0_52, %c640] : memref<2x4096xf32, #tpu.memory_space<vmem>>, vector<1x128xf32>
    tpu.vector_store %arg15[%c0_52, %c640], %79 {strides = array<i32>} : memref<2x4096xf32, #tpu.memory_space<vmem>>, vector<1x128xf32>,
    %c6_53 = arith.constant 6 : index
    %c0_54 = arith.constant 0 : index
    %81 = vector.load %arg14[%c6_53, %c0_54] : memref<32x128xf32, #tpu.memory_space<vmem>>, vector<1x128xf32>
    %c0_55 = arith.constant 0 : index
    %c768 = arith.constant 768 : index
    %82 = vector.load %arg15[%c0_55, %c768] : memref<2x4096xf32, #tpu.memory_space<vmem>>, vector<1x128xf32>
    tpu.vector_store %arg15[%c0_55, %c768], %81 {strides = array<i32>} : memref<2x4096xf32, #tpu.memory_space<vmem>>, vector<1x128xf32>,
    %c7_56 = arith.constant 7 : index
    %c0_57 = arith.constant 0 : index
    %83 = vector.load %arg14[%c7_56, %c0_57] : memref<32x128xf32, #tpu.memory_space<vmem>>, vector<1x128xf32>
    %c0_58 = arith.constant 0 : index
    %c896 = arith.constant 896 : index
    %84 = vector.load %arg15[%c0_58, %c896] : memref<2x4096xf32, #tpu.memory_space<vmem>>, vector<1x128xf32>
    tpu.vector_store %arg15[%c0_58, %c896], %83 {strides = array<i32>} : memref<2x4096xf32, #tpu.memory_space<vmem>>, vector<1x128xf32>,
    %c8_59 = arith.constant 8 : index
    %c0_60 = arith.constant 0 : index
    %85 = vector.load %arg14[%c8_59, %c0_60] : memref<32x128xf32, #tpu.memory_space<vmem>>, vector<1x128xf32>
    %c0_61 = arith.constant 0 : index
    %c1024 = arith.constant 1024 : index
    %86 = vector.load %arg15[%c0_61, %c1024] : memref<2x4096xf32, #tpu.memory_space<vmem>>, vector<1x128xf32>
    tpu.vector_store %arg15[%c0_61, %c1024], %85 {strides = array<i32>} : memref<2x4096xf32, #tpu.memory_space<vmem>>, vector<1x128xf32>,
    %c9 = arith.constant 9 : index
    %c0_62 = arith.constant 0 : index
    %87 = vector.load %arg14[%c9, %c0_62] : memref<32x128xf32, #tpu.memory_space<vmem>>, vector<1x128xf32>
    %c0_63 = arith.constant 0 : index
    %c1152 = arith.constant 1152 : index
    %88 = vector.load %arg15[%c0_63, %c1152] : memref<2x4096xf32, #tpu.memory_space<vmem>>, vector<1x128xf32>
    tpu.vector_store %arg15[%c0_63, %c1152], %87 {strides = array<i32>} : memref<2x4096xf32, #tpu.memory_space<vmem>>, vector<1x128xf32>,
    %c10 = arith.constant 10 : index
    %c0_64 = arith.constant 0 : index
    %89 = vector.load %arg14[%c10, %c0_64] : memref<32x128xf32, #tpu.memory_space<vmem>>, vector<1x128xf32>
    %c0_65 = arith.constant 0 : index
    %c1280 = arith.constant 1280 : index
    %90 = vector.load %arg15[%c0_65, %c1280] : memref<2x4096xf32, #tpu.memory_space<vmem>>, vector<1x128xf32>
    tpu.vector_store %arg15[%c0_65, %c1280], %89 {strides = array<i32>} : memref<2x4096xf32, #tpu.memory_space<vmem>>, vector<1x128xf32>,
    %c11 = arith.constant 11 : index
    %c0_66 = arith.constant 0 : index
    %91 = vector.load %arg14[%c11, %c0_66] : memref<32x128xf32, #tpu.memory_space<vmem>>, vector<1x128xf32>
    %c0_67 = arith.constant 0 : index
    %c1408 = arith.constant 1408 : index
    %92 = vector.load %arg15[%c0_67, %c1408] : memref<2x4096xf32, #tpu.memory_space<vmem>>, vector<1x128xf32>
    tpu.vector_store %arg15[%c0_67, %c1408], %91 {strides = array<i32>} : memref<2x4096xf32, #tpu.memory_space<vmem>>, vector<1x128xf32>,
    %c12 = arith.constant 12 : index
    %c0_68 = arith.constant 0 : index
    %93 = vector.load %arg14[%c12, %c0_68] : memref<32x128xf32, #tpu.memory_space<vmem>>, vector<1x128xf32>
    %c0_69 = arith.constant 0 : index
    %c1536 = arith.constant 1536 : index
    %94 = vector.load %arg15[%c0_69, %c1536] : memref<2x4096xf32, #tpu.memory_space<vmem>>, vector<1x128xf32>
    tpu.vector_store %arg15[%c0_69, %c1536], %93 {strides = array<i32>} : memref<2x4096xf32, #tpu.memory_space<vmem>>, vector<1x128xf32>,
    %c13 = arith.constant 13 : index
    %c0_70 = arith.constant 0 : index
    %95 = vector.load %arg14[%c13, %c0_70] : memref<32x128xf32, #tpu.memory_space<vmem>>, vector<1x128xf32>
    %c0_71 = arith.constant 0 : index
    %c1664 = arith.constant 1664 : index
    %96 = vector.load %arg15[%c0_71, %c1664] : memref<2x4096xf32, #tpu.memory_space<vmem>>, vector<1x128xf32>
    tpu.vector_store %arg15[%c0_71, %c1664], %95 {strides = array<i32>} : memref<2x4096xf32, #tpu.memory_space<vmem>>, vector<1x128xf32>,
    %c14 = arith.constant 14 : index
    %c0_72 = arith.constant 0 : index
    %97 = vector.load %arg14[%c14, %c0_72] : memref<32x128xf32, #tpu.memory_space<vmem>>, vector<1x128xf32>
    %c0_73 = arith.constant 0 : index
    %c1792 = arith.constant 1792 : index
    %98 = vector.load %arg15[%c0_73, %c1792] : memref<2x4096xf32, #tpu.memory_space<vmem>>, vector<1x128xf32>
    tpu.vector_store %arg15[%c0_73, %c1792], %97 {strides = array<i32>} : memref<2x4096xf32, #tpu.memory_space<vmem>>, vector<1x128xf32>,
    %c15 = arith.constant 15 : index
    %c0_74 = arith.constant 0 : index
    %99 = vector.load %arg14[%c15, %c0_74] : memref<32x128xf32, #tpu.memory_space<vmem>>, vector<1x128xf32>
    %c0_75 = arith.constant 0 : index
    %c1920 = arith.constant 1920 : index
    %100 = vector.load %arg15[%c0_75, %c1920] : memref<2x4096xf32, #tpu.memory_space<vmem>>, vector<1x128xf32>
    tpu.vector_store %arg15[%c0_75, %c1920], %99 {strides = array<i32>} : memref<2x4096xf32, #tpu.memory_space<vmem>>, vector<1x128xf32>,
    %c16 = arith.constant 16 : index
    %c0_76 = arith.constant 0 : index
    %101 = vector.load %arg14[%c16, %c0_76] : memref<32x128xf32, #tpu.memory_space<vmem>>, vector<1x128xf32>
    %c0_77 = arith.constant 0 : index
    %c2048 = arith.constant 2048 : index
    %102 = vector.load %arg15[%c0_77, %c2048] : memref<2x4096xf32, #tpu.memory_space<vmem>>, vector<1x128xf32>
    tpu.vector_store %arg15[%c0_77, %c2048], %101 {strides = array<i32>} : memref<2x4096xf32, #tpu.memory_space<vmem>>, vector<1x128xf32>,
    %c17 = arith.constant 17 : index
    %c0_78 = arith.constant 0 : index
    %103 = vector.load %arg14[%c17, %c0_78] : memref<32x128xf32, #tpu.memory_space<vmem>>, vector<1x128xf32>
    %c0_79 = arith.constant 0 : index
    %c2176 = arith.constant 2176 : index
    %104 = vector.load %arg15[%c0_79, %c2176] : memref<2x4096xf32, #tpu.memory_space<vmem>>, vector<1x128xf32>
    tpu.vector_store %arg15[%c0_79, %c2176], %103 {strides = array<i32>} : memref<2x4096xf32, #tpu.memory_space<vmem>>, vector<1x128xf32>,
    %c18 = arith.constant 18 : index
    %c0_80 = arith.constant 0 : index
    %105 = vector.load %arg14[%c18, %c0_80] : memref<32x128xf32, #tpu.memory_space<vmem>>, vector<1x128xf32>
    %c0_81 = arith.constant 0 : index
    %c2304 = arith.constant 2304 : index
    %106 = vector.load %arg15[%c0_81, %c2304] : memref<2x4096xf32, #tpu.memory_space<vmem>>, vector<1x128xf32>
    tpu.vector_store %arg15[%c0_81, %c2304], %105 {strides = array<i32>} : memref<2x4096xf32, #tpu.memory_space<vmem>>, vector<1x128xf32>,
    %c19 = arith.constant 19 : index
    %c0_82 = arith.constant 0 : index
    %107 = vector.load %arg14[%c19, %c0_82] : memref<32x128xf32, #tpu.memory_space<vmem>>, vector<1x128xf32>
    %c0_83 = arith.constant 0 : index
    %c2432 = arith.constant 2432 : index
    %108 = vector.load %arg15[%c0_83, %c2432] : memref<2x4096xf32, #tpu.memory_space<vmem>>, vector<1x128xf32>
    tpu.vector_store %arg15[%c0_83, %c2432], %107 {strides = array<i32>} : memref<2x4096xf32, #tpu.memory_space<vmem>>, vector<1x128xf32>,
    %c20 = arith.constant 20 : index
    %c0_84 = arith.constant 0 : index
    %109 = vector.load %arg14[%c20, %c0_84] : memref<32x128xf32, #tpu.memory_space<vmem>>, vector<1x128xf32>
    %c0_85 = arith.constant 0 : index
    %c2560 = arith.constant 2560 : index
    %110 = vector.load %arg15[%c0_85, %c2560] : memref<2x4096xf32, #tpu.memory_space<vmem>>, vector<1x128xf32>
    tpu.vector_store %arg15[%c0_85, %c2560], %109 {strides = array<i32>} : memref<2x4096xf32, #tpu.memory_space<vmem>>, vector<1x128xf32>,
    %c21 = arith.constant 21 : index
    %c0_86 = arith.constant 0 : index
    %111 = vector.load %arg14[%c21, %c0_86] : memref<32x128xf32, #tpu.memory_space<vmem>>, vector<1x128xf32>
    %c0_87 = arith.constant 0 : index
    %c2688 = arith.constant 2688 : index
    %112 = vector.load %arg15[%c0_87, %c2688] : memref<2x4096xf32, #tpu.memory_space<vmem>>, vector<1x128xf32>
    tpu.vector_store %arg15[%c0_87, %c2688], %111 {strides = array<i32>} : memref<2x4096xf32, #tpu.memory_space<vmem>>, vector<1x128xf32>,
    %c22 = arith.constant 22 : index
    %c0_88 = arith.constant 0 : index
    %113 = vector.load %arg14[%c22, %c0_88] : memref<32x128xf32, #tpu.memory_space<vmem>>, vector<1x128xf32>
    %c0_89 = arith.constant 0 : index
    %c2816 = arith.constant 2816 : index
    %114 = vector.load %arg15[%c0_89, %c2816] : memref<2x4096xf32, #tpu.memory_space<vmem>>, vector<1x128xf32>
    tpu.vector_store %arg15[%c0_89, %c2816], %113 {strides = array<i32>} : memref<2x4096xf32, #tpu.memory_space<vmem>>, vector<1x128xf32>,
    %c23 = arith.constant 23 : index
    %c0_90 = arith.constant 0 : index
    %115 = vector.load %arg14[%c23, %c0_90] : memref<32x128xf32, #tpu.memory_space<vmem>>, vector<1x128xf32>
    %c0_91 = arith.constant 0 : index
    %c2944 = arith.constant 2944 : index
    %116 = vector.load %arg15[%c0_91, %c2944] : memref<2x4096xf32, #tpu.memory_space<vmem>>, vector<1x128xf32>
    tpu.vector_store %arg15[%c0_91, %c2944], %115 {strides = array<i32>} : memref<2x4096xf32, #tpu.memory_space<vmem>>, vector<1x128xf32>,
    %c24 = arith.constant 24 : index
    %c0_92 = arith.constant 0 : index
    %117 = vector.load %arg14[%c24, %c0_92] : memref<32x128xf32, #tpu.memory_space<vmem>>, vector<1x128xf32>
    %c0_93 = arith.constant 0 : index
    %c3072 = arith.constant 3072 : index
    %118 = vector.load %arg15[%c0_93, %c3072] : memref<2x4096xf32, #tpu.memory_space<vmem>>, vector<1x128xf32>
    tpu.vector_store %arg15[%c0_93, %c3072], %117 {strides = array<i32>} : memref<2x4096xf32, #tpu.memory_space<vmem>>, vector<1x128xf32>,
    %c25 = arith.constant 25 : index
    %c0_94 = arith.constant 0 : index
    %119 = vector.load %arg14[%c25, %c0_94] : memref<32x128xf32, #tpu.memory_space<vmem>>, vector<1x128xf32>
    %c0_95 = arith.constant 0 : index
    %c3200 = arith.constant 3200 : index
    %120 = vector.load %arg15[%c0_95, %c3200] : memref<2x4096xf32, #tpu.memory_space<vmem>>, vector<1x128xf32>
    tpu.vector_store %arg15[%c0_95, %c3200], %119 {strides = array<i32>} : memref<2x4096xf32, #tpu.memory_space<vmem>>, vector<1x128xf32>,
    %c26 = arith.constant 26 : index
    %c0_96 = arith.constant 0 : index
    %121 = vector.load %arg14[%c26, %c0_96] : memref<32x128xf32, #tpu.memory_space<vmem>>, vector<1x128xf32>
    %c0_97 = arith.constant 0 : index
    %c3328 = arith.constant 3328 : index
    %122 = vector.load %arg15[%c0_97, %c3328] : memref<2x4096xf32, #tpu.memory_space<vmem>>, vector<1x128xf32>
    tpu.vector_store %arg15[%c0_97, %c3328], %121 {strides = array<i32>} : memref<2x4096xf32, #tpu.memory_space<vmem>>, vector<1x128xf32>,
    %c27 = arith.constant 27 : index
    %c0_98 = arith.constant 0 : index
    %123 = vector.load %arg14[%c27, %c0_98] : memref<32x128xf32, #tpu.memory_space<vmem>>, vector<1x128xf32>
    %c0_99 = arith.constant 0 : index
    %c3456 = arith.constant 3456 : index
    %124 = vector.load %arg15[%c0_99, %c3456] : memref<2x4096xf32, #tpu.memory_space<vmem>>, vector<1x128xf32>
    tpu.vector_store %arg15[%c0_99, %c3456], %123 {strides = array<i32>} : memref<2x4096xf32, #tpu.memory_space<vmem>>, vector<1x128xf32>,
    %c28 = arith.constant 28 : index
    %c0_100 = arith.constant 0 : index
    %125 = vector.load %arg14[%c28, %c0_100] : memref<32x128xf32, #tpu.memory_space<vmem>>, vector<1x128xf32>
    %c0_101 = arith.constant 0 : index
    %c3584 = arith.constant 3584 : index
    %126 = vector.load %arg15[%c0_101, %c3584] : memref<2x4096xf32, #tpu.memory_space<vmem>>, vector<1x128xf32>
    tpu.vector_store %arg15[%c0_101, %c3584], %125 {strides = array<i32>} : memref<2x4096xf32, #tpu.memory_space<vmem>>, vector<1x128xf32>,
    %c29 = arith.constant 29 : index
    %c0_102 = arith.constant 0 : index
    %127 = vector.load %arg14[%c29, %c0_102] : memref<32x128xf32, #tpu.memory_space<vmem>>, vector<1x128xf32>
    %c0_103 = arith.constant 0 : index
    %c3712 = arith.constant 3712 : index
    %128 = vector.load %arg15[%c0_103, %c3712] : memref<2x4096xf32, #tpu.memory_space<vmem>>, vector<1x128xf32>
    tpu.vector_store %arg15[%c0_103, %c3712], %127 {strides = array<i32>} : memref<2x4096xf32, #tpu.memory_space<vmem>>, vector<1x128xf32>,
    %c30 = arith.constant 30 : index
    %c0_104 = arith.constant 0 : index
    %129 = vector.load %arg14[%c30, %c0_104] : memref<32x128xf32, #tpu.memory_space<vmem>>, vector<1x128xf32>
    %c0_105 = arith.constant 0 : index
    %c3840 = arith.constant 3840 : index
    %130 = vector.load %arg15[%c0_105, %c3840] : memref<2x4096xf32, #tpu.memory_space<vmem>>, vector<1x128xf32>
    tpu.vector_store %arg15[%c0_105, %c3840], %129 {strides = array<i32>} : memref<2x4096xf32, #tpu.memory_space<vmem>>, vector<1x128xf32>,
    %c31 = arith.constant 31 : index
    %c0_106 = arith.constant 0 : index
    %131 = vector.load %arg14[%c31, %c0_106] : memref<32x128xf32, #tpu.memory_space<vmem>>, vector<1x128xf32>
    %c0_107 = arith.constant 0 : index
    %c3968 = arith.constant 3968 : index
    %132 = vector.load %arg15[%c0_107, %c3968] : memref<2x4096xf32, #tpu.memory_space<vmem>>, vector<1x128xf32>
    tpu.vector_store %arg15[%c0_107, %c3968], %131 {strides = array<i32>} : memref<2x4096xf32, #tpu.memory_space<vmem>>, vector<1x128xf32>,
    %c1_108 = arith.constant 1 : index
    %c0_109 = arith.constant 0 : index
    %c0_110 = arith.constant 0 : index
    %133 = vector.load %arg1[%c1_108, %c0_109, %c0_110] : memref<2x9x896xf32, #tpu.memory_space<vmem>>, vector<1x9x896xf32>
    %134 = vector.shape_cast %133 : vector<1x9x896xf32> to vector<9x896xf32>
    %c0_111 = arith.constant 0 : index
    %c0_112 = arith.constant 0 : index
    %135 = vector.load %arg2[%c0_111, %c0_112] : memref<16x9xf32, #tpu.memory_space<vmem>>, vector<16x9xf32>
    %cst_113 = arith.constant dense<0.000000e+00> : vector<16x896xf32>
    %136 = tpu.matmul %135, %134, %cst_113 {dimension_numbers = #tpu.dot_dimension_numbers<[1], [0], [0], [1], [0, 0, 1, 1], [], []>} : vector<16x9xf32>, vector<9x896xf32>, vector<16x896xf32> -> vector<16x896xf32>
    %c0_114 = arith.constant 0 : index
    %c0_115 = arith.constant 0 : index
    %137 = vector.load %arg3[%c0_114, %c0_115] : memref<16x1xf32, #tpu.memory_space<vmem>>, vector<16x1xf32>
    %138 = vector.broadcast %137 : vector<16x1xf32> to vector<16x896xf32>
    %139 = arith.addf %136, %138 : vector<16x896xf32>
    %cst_116 = arith.constant 0.000000e+00 : f32
    %140 = vector.broadcast %cst_116 : f32 to vector<16x896xf32>
    %141 = arith.maximumf %139, %140 : vector<16x896xf32>
    %c895_i32_117 = arith.constant 895 : i32
    %142 = tpu.dynamic_rotate %141 by %c895_i32_117 dim 1 : vector<16x896xf32>, i32 -> vector<16x896xf32>
    %143 = arith.maximumf %141, %142 : vector<16x896xf32>
    %c868_i32_118 = arith.constant 868 : i32
    %144 = tpu.dynamic_rotate %141 by %c868_i32_118 dim 1 : vector<16x896xf32>, i32 -> vector<16x896xf32>
    %145 = arith.maximumf %143, %144 : vector<16x896xf32>
    %c867_i32_119 = arith.constant 867 : i32
    %146 = tpu.dynamic_rotate %141 by %c867_i32_119 dim 1 : vector<16x896xf32>, i32 -> vector<16x896xf32>
    %147 = arith.maximumf %145, %146 : vector<16x896xf32>
    %c0_120 = arith.constant 0 : index
    %c0_121 = arith.constant 0 : index
    %148 = vector.load %arg4[%c0_120, %c0_121] : memref<896x256xf32, #tpu.memory_space<vmem>>, vector<896x256xf32>
    %cst_122 = arith.constant dense<0.000000e+00> : vector<16x256xf32>
    %149 = tpu.matmul %147, %148, %cst_122 {dimension_numbers = #tpu.dot_dimension_numbers<[1], [0], [0], [1], [0, 0, 1, 1], [], []>} : vector<16x896xf32>, vector<896x256xf32>, vector<16x256xf32> -> vector<16x256xf32>
    %c15_i32_123 = arith.constant 15 : i32
    %150 = tpu.dynamic_rotate %149 by %c15_i32_123 dim 1 : vector<16x256xf32>, i32 -> vector<16x256xf32>
    %c0_124 = arith.constant 0 : index
    %c0_125 = arith.constant 0 : index
    %151 = vector.load %arg6[%c0_124, %c0_125] : memref<9x256xf32, #tpu.memory_space<vmem>>, vector<1x256xf32>
    %152 = vector.broadcast %151 : vector<1x256xf32> to vector<16x256xf32>
    %153 = arith.mulf %150, %152 : vector<16x256xf32>
    %c14_i32_126 = arith.constant 14 : i32
    %154 = tpu.dynamic_rotate %149 by %c14_i32_126 dim 1 : vector<16x256xf32>, i32 -> vector<16x256xf32>
    %c1_127 = arith.constant 1 : index
    %c0_128 = arith.constant 0 : index
    %155 = vector.load %arg6[%c1_127, %c0_128] : memref<9x256xf32, #tpu.memory_space<vmem>>, vector<1x256xf32>
    %156 = vector.broadcast %155 : vector<1x256xf32> to vector<16x256xf32>
    %157 = arith.mulf %154, %156 : vector<16x256xf32>
    %c13_i32_129 = arith.constant 13 : i32
    %158 = tpu.dynamic_rotate %149 by %c13_i32_129 dim 1 : vector<16x256xf32>, i32 -> vector<16x256xf32>
    %c2_130 = arith.constant 2 : index
    %c0_131 = arith.constant 0 : index
    %159 = vector.load %arg6[%c2_130, %c0_131] : memref<9x256xf32, #tpu.memory_space<vmem>>, vector<1x256xf32>
    %160 = vector.broadcast %159 : vector<1x256xf32> to vector<16x256xf32>
    %161 = arith.mulf %158, %160 : vector<16x256xf32>
    %c1_i32_132 = arith.constant 1 : i32
    %162 = tpu.dynamic_rotate %149 by %c1_i32_132 dim 1 : vector<16x256xf32>, i32 -> vector<16x256xf32>
    %c3_133 = arith.constant 3 : index
    %c0_134 = arith.constant 0 : index
    %163 = vector.load %arg6[%c3_133, %c0_134] : memref<9x256xf32, #tpu.memory_space<vmem>>, vector<1x256xf32>
    %164 = vector.broadcast %163 : vector<1x256xf32> to vector<16x256xf32>
    %165 = arith.mulf %162, %164 : vector<16x256xf32>
    %c4_135 = arith.constant 4 : index
    %c0_136 = arith.constant 0 : index
    %166 = vector.load %arg6[%c4_135, %c0_136] : memref<9x256xf32, #tpu.memory_space<vmem>>, vector<1x256xf32>
    %167 = vector.broadcast %166 : vector<1x256xf32> to vector<16x256xf32>
    %168 = arith.mulf %149, %167 : vector<16x256xf32>
    %c255_i32_137 = arith.constant 255 : i32
    %169 = tpu.dynamic_rotate %149 by %c255_i32_137 dim 1 : vector<16x256xf32>, i32 -> vector<16x256xf32>
    %c5_138 = arith.constant 5 : index
    %c0_139 = arith.constant 0 : index
    %170 = vector.load %arg6[%c5_138, %c0_139] : memref<9x256xf32, #tpu.memory_space<vmem>>, vector<1x256xf32>
    %171 = vector.broadcast %170 : vector<1x256xf32> to vector<16x256xf32>
    %172 = arith.mulf %169, %171 : vector<16x256xf32>
    %c243_i32_140 = arith.constant 243 : i32
    %173 = tpu.dynamic_rotate %149 by %c243_i32_140 dim 1 : vector<16x256xf32>, i32 -> vector<16x256xf32>
    %c6_141 = arith.constant 6 : index
    %c0_142 = arith.constant 0 : index
    %174 = vector.load %arg6[%c6_141, %c0_142] : memref<9x256xf32, #tpu.memory_space<vmem>>, vector<1x256xf32>
    %175 = vector.broadcast %174 : vector<1x256xf32> to vector<16x256xf32>
    %176 = arith.mulf %173, %175 : vector<16x256xf32>
    %c242_i32_143 = arith.constant 242 : i32
    %177 = tpu.dynamic_rotate %149 by %c242_i32_143 dim 1 : vector<16x256xf32>, i32 -> vector<16x256xf32>
    %c7_144 = arith.constant 7 : index
    %c0_145 = arith.constant 0 : index
    %178 = vector.load %arg6[%c7_144, %c0_145] : memref<9x256xf32, #tpu.memory_space<vmem>>, vector<1x256xf32>
    %179 = vector.broadcast %178 : vector<1x256xf32> to vector<16x256xf32>
    %180 = arith.mulf %177, %179 : vector<16x256xf32>
    %c241_i32_146 = arith.constant 241 : i32
    %181 = tpu.dynamic_rotate %149 by %c241_i32_146 dim 1 : vector<16x256xf32>, i32 -> vector<16x256xf32>
    %c8_147 = arith.constant 8 : index
    %c0_148 = arith.constant 0 : index
    %182 = vector.load %arg6[%c8_147, %c0_148] : memref<9x256xf32, #tpu.memory_space<vmem>>, vector<1x256xf32>
    %183 = vector.broadcast %182 : vector<1x256xf32> to vector<16x256xf32>
    %184 = arith.mulf %181, %183 : vector<16x256xf32>
    %185 = tpu.concatenate %153, %157, %161, %165, %168, %172, %176, %180, %184 in 0 : vector<16x256xf32>, vector<16x256xf32>, vector<16x256xf32>, vector<16x256xf32>, vector<16x256xf32>, vector<16x256xf32>, vector<16x256xf32>, vector<16x256xf32>, vector<16x256xf32> -> vector<144x256xf32>
    %c0_149 = arith.constant 0 : index
    %c0_150 = arith.constant 0 : index
    %186 = vector.load %arg5[%c0_149, %c0_150] : memref<32x144xf32, #tpu.memory_space<vmem>>, vector<32x144xf32>
    %cst_151 = arith.constant dense<0.000000e+00> : vector<32x256xf32>
    %187 = tpu.matmul %186, %185, %cst_151 {dimension_numbers = #tpu.dot_dimension_numbers<[1], [0], [0], [1], [0, 0, 1, 1], [], []>} : vector<32x144xf32>, vector<144x256xf32>, vector<32x256xf32> -> vector<32x256xf32>
    %c0_152 = arith.constant 0 : index
    %c0_153 = arith.constant 0 : index
    %188 = vector.load %arg7[%c0_152, %c0_153] : memref<32x1xf32, #tpu.memory_space<vmem>>, vector<32x1xf32>
    %189 = vector.broadcast %188 : vector<32x1xf32> to vector<32x256xf32>
    %190 = arith.addf %187, %189 : vector<32x256xf32>
    %cst_154 = arith.constant 0.000000e+00 : f32
    %191 = vector.broadcast %cst_154 : f32 to vector<32x256xf32>
    %192 = arith.maximumf %190, %191 : vector<32x256xf32>
    %c255_i32_155 = arith.constant 255 : i32
    %193 = tpu.dynamic_rotate %192 by %c255_i32_155 dim 1 : vector<32x256xf32>, i32 -> vector<32x256xf32>
    %194 = arith.maximumf %192, %193 : vector<32x256xf32>
    %c242_i32_156 = arith.constant 242 : i32
    %195 = tpu.dynamic_rotate %192 by %c242_i32_156 dim 1 : vector<32x256xf32>, i32 -> vector<32x256xf32>
    %196 = arith.maximumf %194, %195 : vector<32x256xf32>
    %c241_i32_157 = arith.constant 241 : i32
    %197 = tpu.dynamic_rotate %192 by %c241_i32_157 dim 1 : vector<32x256xf32>, i32 -> vector<32x256xf32>
    %198 = arith.maximumf %196, %197 : vector<32x256xf32>
    %c0_158 = arith.constant 0 : index
    %c0_159 = arith.constant 0 : index
    %199 = vector.load %arg8[%c0_158, %c0_159] : memref<256x128xf32, #tpu.memory_space<vmem>>, vector<256x128xf32>
    %cst_160 = arith.constant dense<0.000000e+00> : vector<32x128xf32>
    %200 = tpu.matmul %198, %199, %cst_160 {dimension_numbers = #tpu.dot_dimension_numbers<[1], [0], [0], [1], [0, 0, 1, 1], [], []>} : vector<32x256xf32>, vector<256x128xf32>, vector<32x128xf32> -> vector<32x128xf32>
    %c0_161 = arith.constant 0 : index
    %c0_162 = arith.constant 0 : index
    %201 = vector.load %arg14[%c0_161, %c0_162] : memref<32x128xf32, #tpu.memory_space<vmem>>, vector<32x128xf32>
    tpu.vector_store %arg14[%c0_161, %c0_162], %200 {strides = array<i32>} : memref<32x128xf32, #tpu.memory_space<vmem>>, vector<32x128xf32>,
    %c0_163 = arith.constant 0 : index
    %c0_164 = arith.constant 0 : index
    %202 = vector.load %arg14[%c0_163, %c0_164] : memref<32x128xf32, #tpu.memory_space<vmem>>, vector<1x128xf32>
    %c1_165 = arith.constant 1 : index
    %c0_166 = arith.constant 0 : index
    %203 = vector.load %arg15[%c1_165, %c0_166] : memref<2x4096xf32, #tpu.memory_space<vmem>>, vector<1x128xf32>
    tpu.vector_store %arg15[%c1_165, %c0_166], %202 {strides = array<i32>} : memref<2x4096xf32, #tpu.memory_space<vmem>>, vector<1x128xf32>,
    %c1_167 = arith.constant 1 : index
    %c0_168 = arith.constant 0 : index
    %204 = vector.load %arg14[%c1_167, %c0_168] : memref<32x128xf32, #tpu.memory_space<vmem>>, vector<1x128xf32>
    %c1_169 = arith.constant 1 : index
    %c128_170 = arith.constant 128 : index
    %205 = vector.load %arg15[%c1_169, %c128_170] : memref<2x4096xf32, #tpu.memory_space<vmem>>, vector<1x128xf32>
    tpu.vector_store %arg15[%c1_169, %c128_170], %204 {strides = array<i32>} : memref<2x4096xf32, #tpu.memory_space<vmem>>, vector<1x128xf32>,
    %c2_171 = arith.constant 2 : index
    %c0_172 = arith.constant 0 : index
    %206 = vector.load %arg14[%c2_171, %c0_172] : memref<32x128xf32, #tpu.memory_space<vmem>>, vector<1x128xf32>
    %c1_173 = arith.constant 1 : index
    %c256_174 = arith.constant 256 : index
    %207 = vector.load %arg15[%c1_173, %c256_174] : memref<2x4096xf32, #tpu.memory_space<vmem>>, vector<1x128xf32>
    tpu.vector_store %arg15[%c1_173, %c256_174], %206 {strides = array<i32>} : memref<2x4096xf32, #tpu.memory_space<vmem>>, vector<1x128xf32>,
    %c3_175 = arith.constant 3 : index
    %c0_176 = arith.constant 0 : index
    %208 = vector.load %arg14[%c3_175, %c0_176] : memref<32x128xf32, #tpu.memory_space<vmem>>, vector<1x128xf32>
    %c1_177 = arith.constant 1 : index
    %c384_178 = arith.constant 384 : index
    %209 = vector.load %arg15[%c1_177, %c384_178] : memref<2x4096xf32, #tpu.memory_space<vmem>>, vector<1x128xf32>
    tpu.vector_store %arg15[%c1_177, %c384_178], %208 {strides = array<i32>} : memref<2x4096xf32, #tpu.memory_space<vmem>>, vector<1x128xf32>,
    %c4_179 = arith.constant 4 : index
    %c0_180 = arith.constant 0 : index
    %210 = vector.load %arg14[%c4_179, %c0_180] : memref<32x128xf32, #tpu.memory_space<vmem>>, vector<1x128xf32>
    %c1_181 = arith.constant 1 : index
    %c512_182 = arith.constant 512 : index
    %211 = vector.load %arg15[%c1_181, %c512_182] : memref<2x4096xf32, #tpu.memory_space<vmem>>, vector<1x128xf32>
    tpu.vector_store %arg15[%c1_181, %c512_182], %210 {strides = array<i32>} : memref<2x4096xf32, #tpu.memory_space<vmem>>, vector<1x128xf32>,
    %c5_183 = arith.constant 5 : index
    %c0_184 = arith.constant 0 : index
    %212 = vector.load %arg14[%c5_183, %c0_184] : memref<32x128xf32, #tpu.memory_space<vmem>>, vector<1x128xf32>
    %c1_185 = arith.constant 1 : index
    %c640_186 = arith.constant 640 : index
    %213 = vector.load %arg15[%c1_185, %c640_186] : memref<2x4096xf32, #tpu.memory_space<vmem>>, vector<1x128xf32>
    tpu.vector_store %arg15[%c1_185, %c640_186], %212 {strides = array<i32>} : memref<2x4096xf32, #tpu.memory_space<vmem>>, vector<1x128xf32>,
    %c6_187 = arith.constant 6 : index
    %c0_188 = arith.constant 0 : index
    %214 = vector.load %arg14[%c6_187, %c0_188] : memref<32x128xf32, #tpu.memory_space<vmem>>, vector<1x128xf32>
    %c1_189 = arith.constant 1 : index
    %c768_190 = arith.constant 768 : index
    %215 = vector.load %arg15[%c1_189, %c768_190] : memref<2x4096xf32, #tpu.memory_space<vmem>>, vector<1x128xf32>
    tpu.vector_store %arg15[%c1_189, %c768_190], %214 {strides = array<i32>} : memref<2x4096xf32, #tpu.memory_space<vmem>>, vector<1x128xf32>,
    %c7_191 = arith.constant 7 : index
    %c0_192 = arith.constant 0 : index
    %216 = vector.load %arg14[%c7_191, %c0_192] : memref<32x128xf32, #tpu.memory_space<vmem>>, vector<1x128xf32>
    %c1_193 = arith.constant 1 : index
    %c896_194 = arith.constant 896 : index
    %217 = vector.load %arg15[%c1_193, %c896_194] : memref<2x4096xf32, #tpu.memory_space<vmem>>, vector<1x128xf32>
    tpu.vector_store %arg15[%c1_193, %c896_194], %216 {strides = array<i32>} : memref<2x4096xf32, #tpu.memory_space<vmem>>, vector<1x128xf32>,
    %c8_195 = arith.constant 8 : index
    %c0_196 = arith.constant 0 : index
    %218 = vector.load %arg14[%c8_195, %c0_196] : memref<32x128xf32, #tpu.memory_space<vmem>>, vector<1x128xf32>
    %c1_197 = arith.constant 1 : index
    %c1024_198 = arith.constant 1024 : index
    %219 = vector.load %arg15[%c1_197, %c1024_198] : memref<2x4096xf32, #tpu.memory_space<vmem>>, vector<1x128xf32>
    tpu.vector_store %arg15[%c1_197, %c1024_198], %218 {strides = array<i32>} : memref<2x4096xf32, #tpu.memory_space<vmem>>, vector<1x128xf32>,
    %c9_199 = arith.constant 9 : index
    %c0_200 = arith.constant 0 : index
    %220 = vector.load %arg14[%c9_199, %c0_200] : memref<32x128xf32, #tpu.memory_space<vmem>>, vector<1x128xf32>
    %c1_201 = arith.constant 1 : index
    %c1152_202 = arith.constant 1152 : index
    %221 = vector.load %arg15[%c1_201, %c1152_202] : memref<2x4096xf32, #tpu.memory_space<vmem>>, vector<1x128xf32>
    tpu.vector_store %arg15[%c1_201, %c1152_202], %220 {strides = array<i32>} : memref<2x4096xf32, #tpu.memory_space<vmem>>, vector<1x128xf32>,
    %c10_203 = arith.constant 10 : index
    %c0_204 = arith.constant 0 : index
    %222 = vector.load %arg14[%c10_203, %c0_204] : memref<32x128xf32, #tpu.memory_space<vmem>>, vector<1x128xf32>
    %c1_205 = arith.constant 1 : index
    %c1280_206 = arith.constant 1280 : index
    %223 = vector.load %arg15[%c1_205, %c1280_206] : memref<2x4096xf32, #tpu.memory_space<vmem>>, vector<1x128xf32>
    tpu.vector_store %arg15[%c1_205, %c1280_206], %222 {strides = array<i32>} : memref<2x4096xf32, #tpu.memory_space<vmem>>, vector<1x128xf32>,
    %c11_207 = arith.constant 11 : index
    %c0_208 = arith.constant 0 : index
    %224 = vector.load %arg14[%c11_207, %c0_208] : memref<32x128xf32, #tpu.memory_space<vmem>>, vector<1x128xf32>
    %c1_209 = arith.constant 1 : index
    %c1408_210 = arith.constant 1408 : index
    %225 = vector.load %arg15[%c1_209, %c1408_210] : memref<2x4096xf32, #tpu.memory_space<vmem>>, vector<1x128xf32>
    tpu.vector_store %arg15[%c1_209, %c1408_210], %224 {strides = array<i32>} : memref<2x4096xf32, #tpu.memory_space<vmem>>, vector<1x128xf32>,
    %c12_211 = arith.constant 12 : index
    %c0_212 = arith.constant 0 : index
    %226 = vector.load %arg14[%c12_211, %c0_212] : memref<32x128xf32, #tpu.memory_space<vmem>>, vector<1x128xf32>
    %c1_213 = arith.constant 1 : index
    %c1536_214 = arith.constant 1536 : index
    %227 = vector.load %arg15[%c1_213, %c1536_214] : memref<2x4096xf32, #tpu.memory_space<vmem>>, vector<1x128xf32>
    tpu.vector_store %arg15[%c1_213, %c1536_214], %226 {strides = array<i32>} : memref<2x4096xf32, #tpu.memory_space<vmem>>, vector<1x128xf32>,
    %c13_215 = arith.constant 13 : index
    %c0_216 = arith.constant 0 : index
    %228 = vector.load %arg14[%c13_215, %c0_216] : memref<32x128xf32, #tpu.memory_space<vmem>>, vector<1x128xf32>
    %c1_217 = arith.constant 1 : index
    %c1664_218 = arith.constant 1664 : index
    %229 = vector.load %arg15[%c1_217, %c1664_218] : memref<2x4096xf32, #tpu.memory_space<vmem>>, vector<1x128xf32>
    tpu.vector_store %arg15[%c1_217, %c1664_218], %228 {strides = array<i32>} : memref<2x4096xf32, #tpu.memory_space<vmem>>, vector<1x128xf32>,
    %c14_219 = arith.constant 14 : index
    %c0_220 = arith.constant 0 : index
    %230 = vector.load %arg14[%c14_219, %c0_220] : memref<32x128xf32, #tpu.memory_space<vmem>>, vector<1x128xf32>
    %c1_221 = arith.constant 1 : index
    %c1792_222 = arith.constant 1792 : index
    %231 = vector.load %arg15[%c1_221, %c1792_222] : memref<2x4096xf32, #tpu.memory_space<vmem>>, vector<1x128xf32>
    tpu.vector_store %arg15[%c1_221, %c1792_222], %230 {strides = array<i32>} : memref<2x4096xf32, #tpu.memory_space<vmem>>, vector<1x128xf32>,
    %c15_223 = arith.constant 15 : index
    %c0_224 = arith.constant 0 : index
    %232 = vector.load %arg14[%c15_223, %c0_224] : memref<32x128xf32, #tpu.memory_space<vmem>>, vector<1x128xf32>
    %c1_225 = arith.constant 1 : index
    %c1920_226 = arith.constant 1920 : index
    %233 = vector.load %arg15[%c1_225, %c1920_226] : memref<2x4096xf32, #tpu.memory_space<vmem>>, vector<1x128xf32>
    tpu.vector_store %arg15[%c1_225, %c1920_226], %232 {strides = array<i32>} : memref<2x4096xf32, #tpu.memory_space<vmem>>, vector<1x128xf32>,
    %c16_227 = arith.constant 16 : index
    %c0_228 = arith.constant 0 : index
    %234 = vector.load %arg14[%c16_227, %c0_228] : memref<32x128xf32, #tpu.memory_space<vmem>>, vector<1x128xf32>
    %c1_229 = arith.constant 1 : index
    %c2048_230 = arith.constant 2048 : index
    %235 = vector.load %arg15[%c1_229, %c2048_230] : memref<2x4096xf32, #tpu.memory_space<vmem>>, vector<1x128xf32>
    tpu.vector_store %arg15[%c1_229, %c2048_230], %234 {strides = array<i32>} : memref<2x4096xf32, #tpu.memory_space<vmem>>, vector<1x128xf32>,
    %c17_231 = arith.constant 17 : index
    %c0_232 = arith.constant 0 : index
    %236 = vector.load %arg14[%c17_231, %c0_232] : memref<32x128xf32, #tpu.memory_space<vmem>>, vector<1x128xf32>
    %c1_233 = arith.constant 1 : index
    %c2176_234 = arith.constant 2176 : index
    %237 = vector.load %arg15[%c1_233, %c2176_234] : memref<2x4096xf32, #tpu.memory_space<vmem>>, vector<1x128xf32>
    tpu.vector_store %arg15[%c1_233, %c2176_234], %236 {strides = array<i32>} : memref<2x4096xf32, #tpu.memory_space<vmem>>, vector<1x128xf32>,
    %c18_235 = arith.constant 18 : index
    %c0_236 = arith.constant 0 : index
    %238 = vector.load %arg14[%c18_235, %c0_236] : memref<32x128xf32, #tpu.memory_space<vmem>>, vector<1x128xf32>
    %c1_237 = arith.constant 1 : index
    %c2304_238 = arith.constant 2304 : index
    %239 = vector.load %arg15[%c1_237, %c2304_238] : memref<2x4096xf32, #tpu.memory_space<vmem>>, vector<1x128xf32>
    tpu.vector_store %arg15[%c1_237, %c2304_238], %238 {strides = array<i32>} : memref<2x4096xf32, #tpu.memory_space<vmem>>, vector<1x128xf32>,
    %c19_239 = arith.constant 19 : index
    %c0_240 = arith.constant 0 : index
    %240 = vector.load %arg14[%c19_239, %c0_240] : memref<32x128xf32, #tpu.memory_space<vmem>>, vector<1x128xf32>
    %c1_241 = arith.constant 1 : index
    %c2432_242 = arith.constant 2432 : index
    %241 = vector.load %arg15[%c1_241, %c2432_242] : memref<2x4096xf32, #tpu.memory_space<vmem>>, vector<1x128xf32>
    tpu.vector_store %arg15[%c1_241, %c2432_242], %240 {strides = array<i32>} : memref<2x4096xf32, #tpu.memory_space<vmem>>, vector<1x128xf32>,
    %c20_243 = arith.constant 20 : index
    %c0_244 = arith.constant 0 : index
    %242 = vector.load %arg14[%c20_243, %c0_244] : memref<32x128xf32, #tpu.memory_space<vmem>>, vector<1x128xf32>
    %c1_245 = arith.constant 1 : index
    %c2560_246 = arith.constant 2560 : index
    %243 = vector.load %arg15[%c1_245, %c2560_246] : memref<2x4096xf32, #tpu.memory_space<vmem>>, vector<1x128xf32>
    tpu.vector_store %arg15[%c1_245, %c2560_246], %242 {strides = array<i32>} : memref<2x4096xf32, #tpu.memory_space<vmem>>, vector<1x128xf32>,
    %c21_247 = arith.constant 21 : index
    %c0_248 = arith.constant 0 : index
    %244 = vector.load %arg14[%c21_247, %c0_248] : memref<32x128xf32, #tpu.memory_space<vmem>>, vector<1x128xf32>
    %c1_249 = arith.constant 1 : index
    %c2688_250 = arith.constant 2688 : index
    %245 = vector.load %arg15[%c1_249, %c2688_250] : memref<2x4096xf32, #tpu.memory_space<vmem>>, vector<1x128xf32>
    tpu.vector_store %arg15[%c1_249, %c2688_250], %244 {strides = array<i32>} : memref<2x4096xf32, #tpu.memory_space<vmem>>, vector<1x128xf32>,
    %c22_251 = arith.constant 22 : index
    %c0_252 = arith.constant 0 : index
    %246 = vector.load %arg14[%c22_251, %c0_252] : memref<32x128xf32, #tpu.memory_space<vmem>>, vector<1x128xf32>
    %c1_253 = arith.constant 1 : index
    %c2816_254 = arith.constant 2816 : index
    %247 = vector.load %arg15[%c1_253, %c2816_254] : memref<2x4096xf32, #tpu.memory_space<vmem>>, vector<1x128xf32>
    tpu.vector_store %arg15[%c1_253, %c2816_254], %246 {strides = array<i32>} : memref<2x4096xf32, #tpu.memory_space<vmem>>, vector<1x128xf32>,
    %c23_255 = arith.constant 23 : index
    %c0_256 = arith.constant 0 : index
    %248 = vector.load %arg14[%c23_255, %c0_256] : memref<32x128xf32, #tpu.memory_space<vmem>>, vector<1x128xf32>
    %c1_257 = arith.constant 1 : index
    %c2944_258 = arith.constant 2944 : index
    %249 = vector.load %arg15[%c1_257, %c2944_258] : memref<2x4096xf32, #tpu.memory_space<vmem>>, vector<1x128xf32>
    tpu.vector_store %arg15[%c1_257, %c2944_258], %248 {strides = array<i32>} : memref<2x4096xf32, #tpu.memory_space<vmem>>, vector<1x128xf32>,
    %c24_259 = arith.constant 24 : index
    %c0_260 = arith.constant 0 : index
    %250 = vector.load %arg14[%c24_259, %c0_260] : memref<32x128xf32, #tpu.memory_space<vmem>>, vector<1x128xf32>
    %c1_261 = arith.constant 1 : index
    %c3072_262 = arith.constant 3072 : index
    %251 = vector.load %arg15[%c1_261, %c3072_262] : memref<2x4096xf32, #tpu.memory_space<vmem>>, vector<1x128xf32>
    tpu.vector_store %arg15[%c1_261, %c3072_262], %250 {strides = array<i32>} : memref<2x4096xf32, #tpu.memory_space<vmem>>, vector<1x128xf32>,
    %c25_263 = arith.constant 25 : index
    %c0_264 = arith.constant 0 : index
    %252 = vector.load %arg14[%c25_263, %c0_264] : memref<32x128xf32, #tpu.memory_space<vmem>>, vector<1x128xf32>
    %c1_265 = arith.constant 1 : index
    %c3200_266 = arith.constant 3200 : index
    %253 = vector.load %arg15[%c1_265, %c3200_266] : memref<2x4096xf32, #tpu.memory_space<vmem>>, vector<1x128xf32>
    tpu.vector_store %arg15[%c1_265, %c3200_266], %252 {strides = array<i32>} : memref<2x4096xf32, #tpu.memory_space<vmem>>, vector<1x128xf32>,
    %c26_267 = arith.constant 26 : index
    %c0_268 = arith.constant 0 : index
    %254 = vector.load %arg14[%c26_267, %c0_268] : memref<32x128xf32, #tpu.memory_space<vmem>>, vector<1x128xf32>
    %c1_269 = arith.constant 1 : index
    %c3328_270 = arith.constant 3328 : index
    %255 = vector.load %arg15[%c1_269, %c3328_270] : memref<2x4096xf32, #tpu.memory_space<vmem>>, vector<1x128xf32>
    tpu.vector_store %arg15[%c1_269, %c3328_270], %254 {strides = array<i32>} : memref<2x4096xf32, #tpu.memory_space<vmem>>, vector<1x128xf32>,
    %c27_271 = arith.constant 27 : index
    %c0_272 = arith.constant 0 : index
    %256 = vector.load %arg14[%c27_271, %c0_272] : memref<32x128xf32, #tpu.memory_space<vmem>>, vector<1x128xf32>
    %c1_273 = arith.constant 1 : index
    %c3456_274 = arith.constant 3456 : index
    %257 = vector.load %arg15[%c1_273, %c3456_274] : memref<2x4096xf32, #tpu.memory_space<vmem>>, vector<1x128xf32>
    tpu.vector_store %arg15[%c1_273, %c3456_274], %256 {strides = array<i32>} : memref<2x4096xf32, #tpu.memory_space<vmem>>, vector<1x128xf32>,
    %c28_275 = arith.constant 28 : index
    %c0_276 = arith.constant 0 : index
    %258 = vector.load %arg14[%c28_275, %c0_276] : memref<32x128xf32, #tpu.memory_space<vmem>>, vector<1x128xf32>
    %c1_277 = arith.constant 1 : index
    %c3584_278 = arith.constant 3584 : index
    %259 = vector.load %arg15[%c1_277, %c3584_278] : memref<2x4096xf32, #tpu.memory_space<vmem>>, vector<1x128xf32>
    tpu.vector_store %arg15[%c1_277, %c3584_278], %258 {strides = array<i32>} : memref<2x4096xf32, #tpu.memory_space<vmem>>, vector<1x128xf32>,
    %c29_279 = arith.constant 29 : index
    %c0_280 = arith.constant 0 : index
    %260 = vector.load %arg14[%c29_279, %c0_280] : memref<32x128xf32, #tpu.memory_space<vmem>>, vector<1x128xf32>
    %c1_281 = arith.constant 1 : index
    %c3712_282 = arith.constant 3712 : index
    %261 = vector.load %arg15[%c1_281, %c3712_282] : memref<2x4096xf32, #tpu.memory_space<vmem>>, vector<1x128xf32>
    tpu.vector_store %arg15[%c1_281, %c3712_282], %260 {strides = array<i32>} : memref<2x4096xf32, #tpu.memory_space<vmem>>, vector<1x128xf32>,
    %c30_283 = arith.constant 30 : index
    %c0_284 = arith.constant 0 : index
    %262 = vector.load %arg14[%c30_283, %c0_284] : memref<32x128xf32, #tpu.memory_space<vmem>>, vector<1x128xf32>
    %c1_285 = arith.constant 1 : index
    %c3840_286 = arith.constant 3840 : index
    %263 = vector.load %arg15[%c1_285, %c3840_286] : memref<2x4096xf32, #tpu.memory_space<vmem>>, vector<1x128xf32>
    tpu.vector_store %arg15[%c1_285, %c3840_286], %262 {strides = array<i32>} : memref<2x4096xf32, #tpu.memory_space<vmem>>, vector<1x128xf32>,
    %c31_287 = arith.constant 31 : index
    %c0_288 = arith.constant 0 : index
    %264 = vector.load %arg14[%c31_287, %c0_288] : memref<32x128xf32, #tpu.memory_space<vmem>>, vector<1x128xf32>
    %c1_289 = arith.constant 1 : index
    %c3968_290 = arith.constant 3968 : index
    %265 = vector.load %arg15[%c1_289, %c3968_290] : memref<2x4096xf32, #tpu.memory_space<vmem>>, vector<1x128xf32>
    tpu.vector_store %arg15[%c1_289, %c3968_290], %264 {strides = array<i32>} : memref<2x4096xf32, #tpu.memory_space<vmem>>, vector<1x128xf32>,
    %c0_291 = arith.constant 0 : index
    %c0_292 = arith.constant 0 : index
    %266 = vector.load %arg15[%c0_291, %c0_292] : memref<2x4096xf32, #tpu.memory_space<vmem>>, vector<2x4096xf32>
    %267 = arith.truncf %266 : vector<2x4096xf32> to vector<2x4096xbf16>
    %c0_293 = arith.constant 0 : index
    %c0_294 = arith.constant 0 : index
    %268 = vector.load %arg9[%c0_293, %c0_294] : memref<4096x128xbf16, #tpu.memory_space<vmem>>, vector<4096x128xbf16>
    %cst_295 = arith.constant dense<0.000000e+00> : vector<2x128xf32>
    %269 = tpu.matmul %267, %268, %cst_295 {dimension_numbers = #tpu.dot_dimension_numbers<[1], [0], [0], [1], [0, 0, 1, 1], [], []>} : vector<2x4096xbf16>, vector<4096x128xbf16>, vector<2x128xf32> -> vector<2x128xf32>
    %c0_296 = arith.constant 0 : index
    %c0_297 = arith.constant 0 : index
    %270 = vector.load %arg10[%c0_296, %c0_297] : memref<1x128xf32, #tpu.memory_space<vmem>>, vector<1x128xf32>
    %271 = vector.broadcast %270 : vector<1x128xf32> to vector<2x128xf32>
    %272 = arith.addf %269, %271 : vector<2x128xf32>
    %cst_298 = arith.constant 0.000000e+00 : f32
    %273 = vector.broadcast %cst_298 : f32 to vector<2x128xf32>
    %274 = arith.maximumf %272, %273 : vector<2x128xf32>
    %c0_299 = arith.constant 0 : index
    %c0_300 = arith.constant 0 : index
    %275 = vector.load %arg11[%c0_299, %c0_300] : memref<128x10xf32, #tpu.memory_space<vmem>>, vector<128x10xf32>
    %cst_301 = arith.constant dense<0.000000e+00> : vector<2x10xf32>
    %276 = tpu.matmul %274, %275, %cst_301 {dimension_numbers = #tpu.dot_dimension_numbers<[1], [0], [0], [1], [0, 0, 1, 1], [], []>} : vector<2x128xf32>, vector<128x10xf32>, vector<2x10xf32> -> vector<2x10xf32>
    %c0_302 = arith.constant 0 : index
    %c0_303 = arith.constant 0 : index
    %277 = vector.load %arg12[%c0_302, %c0_303] : memref<1x10xf32, #tpu.memory_space<vmem>>, vector<1x10xf32>
    %278 = vector.broadcast %277 : vector<1x10xf32> to vector<2x10xf32>
    %279 = arith.addf %276, %278 : vector<2x10xf32>
    %c0_304 = arith.constant 0 : index
    %c0_305 = arith.constant 0 : index
    %280 = vector.load %arg13[%c0_304, %c0_305] : memref<2x10xf32, #tpu.memory_space<vmem>>, vector<2x10xf32>
    tpu.vector_store %arg13[%c0_304, %c0_305], %279 {strides = array<i32>} : memref<2x10xf32, #tpu.memory_space<vmem>>, vector<2x10xf32>,
    return
  }
  func.func @transform_0(%arg0: i32) -> (i32, i32, i32) {
    %c0_i32 = arith.constant 0 : i32
    %c0_i32_0 = arith.constant 0 : i32
    %c0_i32_1 = arith.constant 0 : i32
    return %arg0, %c0_i32, %c0_i32_0 : i32, i32, i32
  }
  func.func @transform_1(%arg0: i32) -> (i32, i32) {
    %c0_i32 = arith.constant 0 : i32
    %c0_i32_0 = arith.constant 0 : i32
    %c0_i32_1 = arith.constant 0 : i32
    return %c0_i32, %c0_i32_0 : i32, i32
  }
  func.func @transform_2(%arg0: i32) -> (i32, i32) {
    %c0_i32 = arith.constant 0 : i32
    %c0_i32_0 = arith.constant 0 : i32
    %c0_i32_1 = arith.constant 0 : i32
    return %c0_i32, %c0_i32_0 : i32, i32
  }
  func.func @transform_3(%arg0: i32) -> (i32, i32) {
    %c0_i32 = arith.constant 0 : i32
    %c0_i32_0 = arith.constant 0 : i32
    %c0_i32_1 = arith.constant 0 : i32
    return %c0_i32, %c0_i32_0 : i32, i32
  }
  func.func @transform_4(%arg0: i32) -> (i32, i32) {
    %c0_i32 = arith.constant 0 : i32
    %c0_i32_0 = arith.constant 0 : i32
    %c0_i32_1 = arith.constant 0 : i32
    return %c0_i32, %c0_i32_0 : i32, i32
  }
  func.func @transform_5(%arg0: i32) -> (i32, i32) {
    %c0_i32 = arith.constant 0 : i32
    %c0_i32_0 = arith.constant 0 : i32
    %c0_i32_1 = arith.constant 0 : i32
    return %c0_i32, %c0_i32_0 : i32, i32
  }
  func.func @transform_6(%arg0: i32) -> (i32, i32) {
    %c0_i32 = arith.constant 0 : i32
    %c0_i32_0 = arith.constant 0 : i32
    %c0_i32_1 = arith.constant 0 : i32
    return %c0_i32, %c0_i32_0 : i32, i32
  }
  func.func @transform_7(%arg0: i32) -> (i32, i32) {
    %c0_i32 = arith.constant 0 : i32
    %c0_i32_0 = arith.constant 0 : i32
    %c0_i32_1 = arith.constant 0 : i32
    return %c0_i32, %c0_i32_0 : i32, i32
  }
  func.func @transform_8(%arg0: i32) -> (i32, i32) {
    %c0_i32 = arith.constant 0 : i32
    %c0_i32_0 = arith.constant 0 : i32
    %c0_i32_1 = arith.constant 0 : i32
    return %c0_i32, %c0_i32_0 : i32, i32
  }
  func.func @transform_9(%arg0: i32) -> (i32, i32) {
    %c0_i32 = arith.constant 0 : i32
    %c0_i32_0 = arith.constant 0 : i32
    %c0_i32_1 = arith.constant 0 : i32
    return %c0_i32, %c0_i32_0 : i32, i32
  }
  func.func @transform_10(%arg0: i32) -> (i32, i32) {
    %c0_i32 = arith.constant 0 : i32
    %c0_i32_0 = arith.constant 0 : i32
    %c0_i32_1 = arith.constant 0 : i32
    return %c0_i32, %c0_i32_0 : i32, i32
  }
  func.func @transform_11(%arg0: i32) -> (i32, i32) {
    %c0_i32 = arith.constant 0 : i32
    %c0_i32_0 = arith.constant 0 : i32
    %c0_i32_1 = arith.constant 0 : i32
    return %c0_i32, %c0_i32_0 : i32, i32
  }
  func.func @transform_12(%arg0: i32) -> (i32, i32) {
    %c0_i32 = arith.constant 0 : i32
    %c0_i32_0 = arith.constant 0 : i32
    return %arg0, %c0_i32 : i32, i32
  }
}

</mosaic_0001>

<bundles_post_ra>
// kernel: simple_cnn_forward.1
= control target key start
LH: loop header
LB: loop body
LE: loop exit
PB: predicated region body
PF: predicated region fallthrough
CT: control target
= control target key end

     0   :  { %vm77_vm0 = vcmask 1040384   ;;  %vm70_vm1 = vcmask 72704   ;;  %s11749_s0 = inlined_call_operand.vmem [shape: f32[2,9,896], index: 0, kind: input, shape index: {}]   ;;  %s11750_s1 = inlined_call_operand.vmem [shape: f32[16,9], index: 1, kind: input, shape index: {}]   ;;  %s11751_s2 = inlined_call_operand.vmem [shape: f32[16,1], index: 2, kind: input, shape index: {}]   ;;  %s11752_s3 = inlined_call_operand.vmem [shape: f32[896,256], index: 3, kind: input, shape index: {}]   ;;  %s11753_s4 = inlined_call_operand.vmem [shape: f32[32,144], index: 4, kind: input, shape index: {}]   ;;  %s11754_s5 = inlined_call_operand.vmem [shape: f32[9,256], index: 5, kind: input, shape index: {}]   ;;  %s11755_s6 = inlined_call_operand.vmem [shape: f32[32,1], index: 6, kind: input, shape index: {}]   ;;  %s11756_s7 = inlined_call_operand.vmem [shape: f32[256,128], index: 7, kind: input, shape index: {}]   ;;  %s11757_s8 = inlined_call_operand.vmem [shape: bf16[4096,128], index: 8, kind: input, shape index: {}]   ;;  %s11758_s9 = inlined_call_operand.vmem [shape: f32[1,128], index: 9, kind: input, shape index: {}]   ;;  %s11759_s10 = inlined_call_operand.vmem [shape: f32[128,10], index: 10, kind: input, shape index: {}]   ;;  %s11760_s11 = inlined_call_operand.vmem [shape: f32[1,10], index: 11, kind: input, shape index: {}]   ;;  %s11761_s12 = inlined_call_operand.hbm [shape: f32[2,10], index: 12, kind: output, shape index: {}]  }
   0x1   :  { %v49_v0 = vld [vmem:[%s11749_s0 + $0x38] sm:$0x1]  ;;  %v50_v1 = vld [vmem:[%s11749_s0 + $0x40] sm:$0x1]  ;;  %v51_v3 = vld [vmem:[%s11749_s0 + $0x48] sm:$0x1] }
   0x2   :  { %v42_v2 = vld [vmem:[%s11749_s0] sm:$0xff]  ;;  %5818 = vmatpush.msk.msra.mxu3 %vm77_vm0, %v49_v0  ;;  %5821 = vmatpush.msk.msra.mxu1 %vm77_vm0, %v50_v1  ;;  %v53_v4 = vld [vmem:[%s11749_s0 + $0x58] sm:$0x1]  ;;  %v43_v5 = vld [vmem:[%s11749_s0 + $0x8] sm:$0xff] }
   0x3   :  { %5824 = vmatpush.msk.msra.mxu2 %vm77_vm0, %v51_v3  ;;  %5830 = vmatpush.msk.msra.mxu0 %vm77_vm0, %v53_v4  ;;  %v44_v6 = vld [vmem:[%s11749_s0 + $0x10] sm:$0xff]  ;;  %v46_v7 = vld [vmem:[%s11749_s0 + $0x20] sm:$0xff]  ;;  %v55_v12 = vld [vmem:[%s11749_s0 + $0x68] sm:$0x1] }
   0x4   :  { %v56_v8 = vld [vmem:[%s11750_s1] sm:$0xff]  ;;  %114 = vmatpush.msra.mxu3 %v42_v2  ;;  %137 = vmatpush.msra.mxu1 %v43_v5  ;;  %v52_v10 = vld [vmem:[%s11749_s0 + $0x50] sm:$0x1]  ;;  %v45_v13 = vld [vmem:[%s11749_s0 + $0x18] sm:$0xff] }
   0x5   :  { %160 = vmatpush.msra.mxu2 %v44_v6  ;;  %206 = vmatpush.msra.mxu0 %v46_v7  ;;  %v58_v9 = vld [vmem:[%s11751_s2] sm:$0xff] }
   0x6   :  { %5819 = vmatmul.msk.f32.vlgmr.msra.gmra.mxu3 %vm70_vm1, %v56_v8  ;;  %5822 = vmatmul.msk.f32.vlgmr.msra.gmra.mxu1 %vm70_vm1, %v56_v8  ;;  %v54_v11 = vld [vmem:[%s11749_s0 + $0x60] sm:$0x1] }
   0x7   :  { %5825 = vmatmul.msk.f32.vlgmr.msra.gmra.mxu2 %vm70_vm1, %v56_v8  ;;  %5831 = vmatmul.msk.f32.vlgmr.msra.gmra.mxu0 %vm70_vm1, %v56_v8 }
   0x8   :  { %17 = vsyncpa [#allocation5], 0  ;;  %v7544_v14 = vmov 0   ;;  %5827 = vmatpush.msk.msrb.mxu3 %vm77_vm0, %v52_v10  ;;  %v47_v15 = vld [vmem:[%s11749_s0 + $0x28] sm:$0xff]  ;;  %5833 = vmatpush.msk.msrb.mxu1 %vm77_vm0, %v54_v11  ;;  %v48_v16 = vld [vmem:[%s11749_s0 + $0x30] sm:$0xff]  ;;  %s7545_s21 = smov 99  }
   0x9   :  { %7198 = vset.pattern.permute.xlu0 %v7544_v14  ;;  %5836 = vmatpush.msk.msrb.mxu2 %vm77_vm0, %v55_v12  ;;  %v57_v17 = vld [vmem:[%s11750_s1 + $0x8] sm:$0xff]  ;;  %s7546_s22 = smov 127   ;;  %s7547_s23 = smov 100   ;;  %v477_v0 = vld [vmem:[%s11752_s3 + $0xf0] sm:$0xff]  ;;  %v475_v1 = vld [vmem:[%s11752_s3 + $0xe0] sm:$0xff]  ;;  %vm1226_vm8 = vcmask 130048  }
   0xa   :  { %62 = vperm.xlu0 %7198, %v58_v9   ;;  %183 = vmatpush.msrb.mxu3 %v45_v13  ;;  %v59_v18 = vld [vmem:[%s11751_s2 + $0x8] sm:$0xff]  ;;  %v473_v3 = vld [vmem:[%s11752_s3 + $0xd0] sm:$0xff]  ;;  %v471_v6 = vld [vmem:[%s11752_s3 + $0xc0] sm:$0xff]  ;;  %s7548_s19 = smov 115   ;;  %s7549_s20 = smov 114   ;;  %vm5800_vm13 = vcmask 74752  }
   0xb   :  { %229 = vmatpush.msrb.mxu1 %v47_v15  ;;  %7289 = vset.pattern.permute.xlu1 %v7544_v14  ;;  %v509_v4 = vld [vmem:[%s11752_s3 + $0x1f0] sm:$0xff]  ;;  %v463_v10 = vld [vmem:[%s11752_s3 + $0x80] sm:$0xff]  ;;  %s7550_s24 = smov 113   ;;  %s7551_s25 = smov 1  }
   0xc   :  { %252 = vmatpush.msrb.mxu2 %v48_v16  ;;  %7290 = vset.pattern.permute.xlu2 %v7544_v14  ;;  %v469_v7 = vld [vmem:[%s11752_s3 + $0xb0] sm:$0xff]  ;;  %v507_v15 = vld [vmem:[%s11752_s3 + $0x1e0] sm:$0xff]  ;;  %s7552_s26 = smov 13   ;;  %s7553_s27 = smov 14  }
   0xd   :  { %671 = vmatpush.msra.mxu3 %v477_v0  ;;  %694 = vmatpush.msrb.mxu0 %v509_v4  ;;  %v465_v9 = vld [vmem:[%s11752_s3 + $0x90] sm:$0xff]  ;;  %v459_v16 = vld [vmem:[%s11752_s3 + $0x60] sm:$0xff]  ;;  %s11762_s28 = smov 15  }
   0xe   :  { %5820 = vmatmul.msk.f32.gmra.mxu3 %vm70_vm1, %v57_v17  ;;  %5823 = vmatmul.msk.f32.gmra.mxu1 %vm70_vm1, %v57_v17  ;;  %v461_v14 = vld [vmem:[%s11752_s3 + $0x70] sm:$0xff]  ;;  %v603_v4 = vld [vmem:[%s11752_s3 + $0x4e0] sm:$0xff] }
   0xf   :  { %5826 = vmatmul.msk.f32.gmra.mxu2 %vm70_vm1, %v57_v17  ;;  %5832 = vmatmul.msk.f32.gmra.mxu0 %vm70_vm1, %v57_v17  ;;  %v605_v0 = vld [vmem:[%s11752_s3 + $0x4f0] sm:$0xff] }
  0x10   :  { %672 = vmatpush.msra.mxu3 %v475_v1  ;;  %695 = vmatpush.msrb.mxu0 %v507_v15  ;;  %v491_v1 = vld [vmem:[%s11752_s3 + $0x160] sm:$0xff]  ;;  %v485_v15 = vld [vmem:[%s11752_s3 + $0x130] sm:$0xff] }
  0x12   :  { %67 = vperm.xlu0 %7198, %v59_v18   ;;  %673 = vmatpush.msra.mxu3 %v473_v3  ;;  %v457_v18 = vld [vmem:[%s11752_s3 + $0x50] sm:$0xff]  ;;  %v563_v3 = vld [vmem:[%s11752_s3 + $0x3a0] sm:$0xff] }
  0x14   :  { %674 = vmatpush.msra.mxu3 %v471_v6  ;;  %v489_v6 = vld [vmem:[%s11752_s3 + $0x150] sm:$0xff] }
  0x16   :  { %5828 = vmatmul.msk.f32.vlgmr.msrb.gmra.mxu3 %vm70_vm1, %v56_v8  ;;  %5834 = vmatmul.msk.f32.vlgmr.msrb.gmra.mxu1 %vm70_vm1, %v56_v8 }
  0x17   :  { %5837 = vmatmul.msk.f32.vlgmr.msrb.gmra.mxu2 %vm70_vm1, %v56_v8  ;;  %v467_v8 = vld [vmem:[%s11752_s3 + $0xa0] sm:$0xff]  ;;  %675 = vmatpush.msra.mxu3 %v469_v7  ;;  %v529_v7 = vld [vmem:[%s11752_s3 + $0x290] sm:$0xff] }
  0x19   :  { %676 = vmatpush.msra.mxu3 %v467_v8  ;;  %v561_v8 = vld [vmem:[%s11752_s3 + $0x390] sm:$0xff] }
  0x1b   :  { %677 = vmatpush.msra.mxu3 %v465_v9  ;;  %v601_v9 = vld [vmem:[%s11752_s3 + $0x4d0] sm:$0xff] }
  0x1d   :  { %678 = vmatpush.msra.mxu3 %v463_v10  ;;  %v487_v10 = vld [vmem:[%s11752_s3 + $0x140] sm:$0xff] }
  0x1e   :  { %5829 = vmatmul.msk.f32.gmra.mxu3 %vm70_vm1, %v57_v17  ;;  %5835 = vmatmul.msk.f32.gmra.mxu1 %vm70_vm1, %v57_v17 }
  0x1f   :  { %5838 = vmatmul.msk.f32.gmra.mxu2 %vm70_vm1, %v57_v17  ;;  %679 = vmatpush.msra.mxu3 %v461_v14  ;;  %v505_v17 = vld [vmem:[%s11752_s3 + $0x1d0] sm:$0xff]  ;;  %v599_v14 = vld [vmem:[%s11752_s3 + $0x4c0] sm:$0xff] }
  0x20   :  { %696 = vmatpush.msrb.mxu0 %v505_v17  ;;  %v557_v17 = vld [vmem:[%s11752_s3 + $0x370] sm:$0xff] }
  0x21   :  { %680 = vmatpush.msra.mxu3 %v459_v16  ;;  %v525_v16 = vld [vmem:[%s11752_s3 + $0x270] sm:$0xff] }
  0x23   :  { %681 = vmatpush.msra.mxu3 %v457_v18  ;;  %v597_v18 = vld [vmem:[%s11752_s3 + $0x4b0] sm:$0xff] }
  0x7c   :  { %v7696_v20 = vpop.permute.xlu0 %62 }
  0x83   :  { %v139_v19 = vpop.f32.mrf.mxu1 }
  0x84   :  { %v7699_v21 = vadd.f32 %v139_v19, %v7696_v20  ;;  %v7710_v29 = vpop.permute.xlu0 %67  ;;  %v208_v38 = vpop.f32.mrf.mxu0  ;;  %v503_v19 = vld [vmem:[%s11752_s3 + $0x1c0] sm:$0xff] }
  0x85   :  { %v7730_v39 = vadd.f32 %v208_v38, %v7696_v20  ;;  %697 = vmatpush.msrb.mxu0 %v503_v19  ;;  %v497_v38 = vld [vmem:[%s11752_s3 + $0x190] sm:$0xff]  ;;  %v483_v19 = vld [vmem:[%s11752_s3 + $0x120] sm:$0xff] }
  0x86   :  { %v261_v23 = vmax.f32 %v7699_v21, 0.0 }
  0x87   :  { %v264_v43 = vmax.f32 %v7730_v39, 0.0  ;;  %v532_v39 = vld [vmem:[%s11752_s3 + $0x2a8] sm:$0xff] }
  0x89   :  { %v116_v22 = vpop.f32.mrf.mxu3 }
  0x8a   :  { %v7703_v24 = vadd.f32 %v116_v22, %v7696_v20  ;;  %v162_v25 = vpop.f32.mrf.mxu2  ;;  %v501_v22 = vld [vmem:[%s11752_s3 + $0x1b0] sm:$0xff] }
  0x8b   :  { %v142_v27 = vpop.f32.mrf.mxu1  ;;  %v7745_v46 = vadd.f32 %v162_v25, %v7696_v20  ;;  %v541_v25 = vld [vmem:[%s11752_s3 + $0x2f0] sm:$0xff]  ;;  %698 = vmatpush.msrb.mxu0 %v501_v22  ;;  %v555_v22 = vld [vmem:[%s11752_s3 + $0x360] sm:$0xff] }
  0x8c   :  { %v260_v26 = vmax.f32 %v7703_v24, 0.0  ;;  %v7713_v30 = vadd.f32 %v142_v27, %v7710_v29  ;;  %v211_v51 = vpop.f32.mrf.mxu0  ;;  %v573_v27 = vld [vmem:[%s11752_s3 + $0x3f0] sm:$0xff]  ;;  %717 = vmatpush.msra.mxu1 %v541_v25  ;;  %v595_v25 = vld [vmem:[%s11752_s3 + $0x4a0] sm:$0xff]  ;;  %v450_v24 = vld [vmem:[%s11752_s3 + $0x18] sm:$0xff] }
  0x8d   :  { %v262_v50 = vmax.f32 %v7745_v46, 0.0  ;;  %v7763_v55 = vadd.f32 %v211_v51, %v7710_v29  ;;  %740 = vmatpush.msra.mxu2 %v573_v27  ;;  %v567_v51 = vld [vmem:[%s11752_s3 + $0x3c0] sm:$0xff]  ;;  %v481_v27 = vld [vmem:[%s11752_s3 + $0x110] sm:$0xff]  ;;  %v492_v46 = vld [vmem:[%s11752_s3 + $0x168] sm:$0xff] }
  0x8e   :  { %v7209_v28 = vpack.i.bf16 %v261_v23, %v260_v26  ;;  %v268_v34 = vmax.f32 %v7713_v30, 0.0  ;;  %v572_v30 = vld [vmem:[%s11752_s3 + $0x3e8] sm:$0xff] }
  0x8f   :  { %v271_v59 = vmax.f32 %v7763_v55, 0.0  ;;  %v558_v55 = vld [vmem:[%s11752_s3 + $0x378] sm:$0xff] }
  0x90   :  { %7210 = vrot.lane.b32.xlu2 %v7209_v28, %s7545_s21  ;;  %7200 = vrot.lane.b32.xlu1 %v7209_v28, %s7546_s22 }
  0x91   :  { %v119_v31 = vpop.f32.mrf.mxu3 }
  0x92   :  { %v7718_v32 = vadd.f32 %v119_v31, %v7710_v29  ;;  %v165_v33 = vpop.f32.mrf.mxu2  ;;  %v539_v31 = vld [vmem:[%s11752_s3 + $0x2e0] sm:$0xff] }
  0x93   :  { %v7723_v36 = vadd.f32 %v165_v33, %v7710_v29  ;;  %v231_v40 = vpop.f32.mrf.mxu1  ;;  %v571_v33 = vld [vmem:[%s11752_s3 + $0x3e0] sm:$0xff]  ;;  %718 = vmatpush.msra.mxu1 %v539_v31  ;;  %v593_v31 = vld [vmem:[%s11752_s3 + $0x490] sm:$0xff] }
  0x94   :  { %v267_v35 = vmax.f32 %v7718_v32, 0.0  ;;  %v7766_v56 = vadd.f32 %v231_v40, %v7696_v20  ;;  %v537_v40 = vld [vmem:[%s11752_s3 + $0x2d0] sm:$0xff]  ;;  %741 = vmatpush.msra.mxu2 %v571_v33  ;;  %v479_v33 = vld [vmem:[%s11752_s3 + $0x100] sm:$0xff] }
  0x95   :  { %v269_v42 = vmax.f32 %v7723_v36, 0.0  ;;  %719 = vmatpush.msra.mxu1 %v537_v40  ;;  %v591_v40 = vld [vmem:[%s11752_s3 + $0x480] sm:$0xff]  ;;  %v598_v36 = vld [vmem:[%s11752_s3 + $0x4b8] sm:$0xff] }
  0x96   :  { %v7224_v37 = vpack.i.bf16 %v268_v34, %v267_v35  ;;  %v265_v60 = vmax.f32 %v7766_v56, 0.0 }
  0x97   :  { %v7239_v45 = vpack.i.bf16 %v269_v42, %v264_v43 }
  0x98   :  { %7225 = vrot.lane.b32.xlu0 %v7224_v37, %s7545_s21  ;;  %7215 = vrot.lane.b32.xlu2 %v7224_v37, %s7546_s22 }
  0x99   :  { %7205 = vrot.lane.b32.xlu1 %v7209_v28, %s7547_s23  ;;  %v185_v41 = vpop.f32.mrf.mxu3  ;;  %v453_v28 = vld [vmem:[%s11752_s3 + $0x30] sm:$0xff] }
  0x9a   :  { %v7738_v44 = vadd.f32 %v185_v41, %v7696_v20  ;;  %v254_v63 = vpop.f32.mrf.mxu2  ;;  %v569_v41 = vld [vmem:[%s11752_s3 + $0x3d0] sm:$0xff] }
  0x9b   :  { %v234_v48 = vpop.f32.mrf.mxu1  ;;  %v255_v2 = vadd.f32 %v254_v63, %v7696_v20  ;;  %v455_v20 = vld [vmem:[%s11752_s3 + $0x40] sm:$0xff]  ;;  %742 = vmatpush.msra.mxu2 %v569_v41  ;;  %v565_v63 = vld [vmem:[%s11752_s3 + $0x3b0] sm:$0xff] }
  0x9c   :  { %v263_v47 = vmax.f32 %v7738_v44, 0.0  ;;  %v7753_v52 = vadd.f32 %v234_v48, %v7710_v29  ;;  %682 = vmatpush.msra.mxu3 %v455_v20  ;;  %v495_v48 = vld [vmem:[%s11752_s3 + $0x180] sm:$0xff]  ;;  %v637_v41 = vld [vmem:[%s11752_s3 + $0x5f0] sm:$0xff] }
  0x9d   :  { %v7799_v5 = vmax.f32 %v255_v2, 0.0  ;;  %743 = vmatpush.msra.mxu2 %v567_v51  ;;  %v531_v2 = vld [vmem:[%s11752_s3 + $0x2a0] sm:$0xff] }
  0x9e   :  { %v7244_v54 = vpack.i.bf16 %v263_v47, %v262_v50  ;;  %v272_v57 = vmax.f32 %v7753_v52, 0.0  ;;  %683 = vmatpush.msra.mxu3 %v453_v28  ;;  %v523_v20 = vld [vmem:[%s11752_s3 + $0x260] sm:$0xff]  ;;  %v521_v28 = vld [vmem:[%s11752_s3 + $0x250] sm:$0xff]  ;;  %v516_v52 = vld [vmem:[%s11752_s3 + $0x228] sm:$0xff] }
  0x9f   :  { %744 = vmatpush.msra.mxu2 %v565_v63  ;;  %v635_v51 = vld [vmem:[%s11752_s3 + $0x5e0] sm:$0xff]  ;;  %v633_v63 = vld [vmem:[%s11752_s3 + $0x5d0] sm:$0xff] }
  0xa0   :  { %7240 = vrot.lane.b32.xlu0 %v7239_v45, %s7545_s21  ;;  %7230 = vrot.lane.b32.xlu2 %v7239_v45, %s7546_s22  ;;  %v7259_v62 = vpack.i.bf16 %v272_v57, %v271_v59 }
  0xa1   :  { %7220 = vrot.lane.b32.xlu1 %v7224_v37, %s7547_s23  ;;  %v188_v49 = vpop.f32.mrf.mxu3  ;;  %v451_v37 = vld [vmem:[%s11752_s3 + $0x20] sm:$0xff]  ;;  %745 = vmatpush.msra.mxu2 %v563_v3 }
  0xa2   :  { %v7756_v53 = vadd.f32 %v188_v49, %v7710_v29  ;;  %v257_v11 = vpop.f32.mrf.mxu2  ;;  %684 = vmatpush.msra.mxu3 %v451_v37  ;;  %v535_v49 = vld [vmem:[%s11752_s3 + $0x2c0] sm:$0xff] }
  0xa3   :  { %v258_v12 = vadd.f32 %v257_v11, %v7710_v29  ;;  %v499_v29 = vld [vmem:[%s11752_s3 + $0x1a0] sm:$0xff]  ;;  %720 = vmatpush.msra.mxu1 %v535_v49  ;;  %746 = vmatpush.msra.mxu2 %v561_v8  ;;  %v589_v49 = vld [vmem:[%s11752_s3 + $0x470] sm:$0xff] }
  0xa4   :  { %v270_v58 = vmax.f32 %v7756_v53, 0.0  ;;  %699 = vmatpush.msrb.mxu0 %v499_v29  ;;  %v527_v11 = vld [vmem:[%s11752_s3 + $0x280] sm:$0xff]  ;;  %v553_v29 = vld [vmem:[%s11752_s3 + $0x350] sm:$0xff]  ;;  %v596_v53 = vld [vmem:[%s11752_s3 + $0x4a8] sm:$0xff] }
  0xa5   :  { %v7825_v13 = vmax.f32 %v258_v12, 0.0  ;;  %v559_v12 = vld [vmem:[%s11752_s3 + $0x380] sm:$0xff]  ;;  %v629_v8 = vld [vmem:[%s11752_s3 + $0x5b0] sm:$0xff] }
  0xa6   :  { %v7264_v61 = vpack.i.bf16 %v270_v58, %v265_v60  ;;  %700 = vmatpush.msrb.mxu0 %v497_v38  ;;  %747 = vmatpush.msra.mxu2 %v559_v12  ;;  %v519_v37 = vld [vmem:[%s11752_s3 + $0x240] sm:$0xff] }
  0xa7   :  { %v551_v38 = vld [vmem:[%s11752_s3 + $0x340] sm:$0xff] }
  0xa8   :  { %7245 = vrot.lane.b32.xlu0 %v7244_v54, %s7546_s22  ;;  %7250 = vrot.lane.b32.xlu2 %v7244_v54, %s7547_s23  ;;  %v631_v3 = vld [vmem:[%s11752_s3 + $0x5c0] sm:$0xff] }
  0xa9   :  { %7235 = vrot.lane.b32.xlu1 %v7239_v45, %s7547_s23  ;;  %v449_v45 = vld [vmem:[%s11752_s3 + $0x10] sm:$0xff]  ;;  %701 = vmatpush.msrb.mxu0 %v495_v48  ;;  %v627_v12 = vld [vmem:[%s11752_s3 + $0x5a0] sm:$0xff] }
  0xaa   :  { %685 = vmatpush.msra.mxu3 %v449_v45  ;;  %748 = vmatpush.msra.mxu2 %v557_v17  ;;  %v517_v45 = vld [vmem:[%s11752_s3 + $0x230] sm:$0xff] }
  0xab   :  { %v549_v48 = vld [vmem:[%s11752_s3 + $0x330] sm:$0xff] }
  0xac   :  { %749 = vmatpush.msra.mxu2 %v555_v22  ;;  %v577_v22 = vld [vmem:[%s11752_s3 + $0x410] sm:$0xff] }
  0xae   :  { %750 = vmatpush.msra.mxu2 %v553_v29  ;;  %v575_v29 = vld [vmem:[%s11752_s3 + $0x400] sm:$0xff] }
  0xb0   :  { %7265 = vrot.lane.b32.xlu0 %v7264_v61, %s7546_s22  ;;  %7260 = vrot.lane.b32.xlu2 %v7259_v62, %s7546_s22 }
  0xb1   :  { %7255 = vrot.lane.b32.xlu1 %v7244_v54, %s7545_s21  ;;  %v447_v54 = vld [vmem:[%s11752_s3] sm:$0xff]  ;;  %751 = vmatpush.msra.mxu2 %v551_v38 }
  0xb2   :  { %686 = vmatpush.msra.mxu3 %v447_v54  ;;  %v515_v54 = vld [vmem:[%s11752_s3 + $0x220] sm:$0xff] }
  0xb3   :  { %752 = vmatpush.msra.mxu2 %v549_v48  ;;  %v619_v38 = vld [vmem:[%s11752_s3 + $0x560] sm:$0xff] }
  0xb4   :  { %763 = vmatpush.msrb.mxu3 %v605_v0  ;;  %v513_v0 = vld [vmem:[%s11752_s3 + $0x210] sm:$0xff] }
  0xb6   :  { %764 = vmatpush.msrb.mxu3 %v603_v4  ;;  %v511_v4 = vld [vmem:[%s11752_s3 + $0x200] sm:$0xff] }
  0xb8   :  { %298 = vrot.lane.b32.xlu0 %v7799_v5, %s7546_s22  ;;  %7275 = vrot.lane.b32.xlu2 %v7264_v61, %s7547_s23 }
  0xb9   :  { %7270 = vrot.lane.b32.xlu1 %v7259_v62, %s7547_s23  ;;  %765 = vmatpush.msrb.mxu3 %v601_v9  ;;  %v669_v9 = vld [vmem:[%s11752_s3 + $0x6f0] sm:$0xff] }
  0xbb   :  { %766 = vmatpush.msrb.mxu3 %v599_v14  ;;  %v667_v14 = vld [vmem:[%s11752_s3 + $0x6e0] sm:$0xff] }
  0xbd   :  { %767 = vmatpush.msrb.mxu3 %v597_v18  ;;  %v625_v18 = vld [vmem:[%s11752_s3 + $0x590] sm:$0xff] }
  0xbf   :  { %768 = vmatpush.msrb.mxu3 %v595_v25  ;;  %v623_v25 = vld [vmem:[%s11752_s3 + $0x580] sm:$0xff] }
  0xc0   :  { %7280 = vrot.lane.b32.xlu0 %v7259_v62, %s7545_s21  ;;  %357 = vrot.lane.b32.xlu2 %v7799_v5, %s7547_s23  ;;  %v533_v62 = vld [vmem:[%s11752_s3 + $0x2b0] sm:$0xff] }
  0xc1   :  { %7285 = vrot.lane.b32.xlu1 %v7264_v61, %s7545_s21  ;;  %v493_v61 = vld [vmem:[%s11752_s3 + $0x170] sm:$0xff]  ;;  %721 = vmatpush.msra.mxu1 %v533_v62  ;;  %v587_v62 = vld [vmem:[%s11752_s3 + $0x460] sm:$0xff] }
  0xc2   :  { %702 = vmatpush.msrb.mxu0 %v493_v61  ;;  %769 = vmatpush.msrb.mxu3 %v593_v31  ;;  %v547_v61 = vld [vmem:[%s11752_s3 + $0x320] sm:$0xff]  ;;  %v621_v31 = vld [vmem:[%s11752_s3 + $0x570] sm:$0xff] }
  0xc3   :  { %722 = vmatpush.msra.mxu1 %v531_v2  ;;  %753 = vmatpush.msra.mxu2 %v547_v61  ;;  %v585_v2 = vld [vmem:[%s11752_s3 + $0x450] sm:$0xff]  ;;  %v655_v61 = vld [vmem:[%s11752_s3 + $0x680] sm:$0xff] }
  0xc4   :  { %703 = vmatpush.msrb.mxu0 %v491_v1  ;;  %770 = vmatpush.msrb.mxu3 %v591_v40  ;;  %v545_v1 = vld [vmem:[%s11752_s3 + $0x310] sm:$0xff]  ;;  %v659_v40 = vld [vmem:[%s11752_s3 + $0x6a0] sm:$0xff] }
  0xc5   :  { %723 = vmatpush.msra.mxu1 %v529_v7  ;;  %754 = vmatpush.msra.mxu2 %v545_v1  ;;  %v583_v7 = vld [vmem:[%s11752_s3 + $0x440] sm:$0xff] }
  0xc6   :  { %704 = vmatpush.msrb.mxu0 %v489_v6  ;;  %771 = vmatpush.msrb.mxu3 %v589_v49  ;;  %v543_v6 = vld [vmem:[%s11752_s3 + $0x300] sm:$0xff]  ;;  %v657_v49 = vld [vmem:[%s11752_s3 + $0x690] sm:$0xff] }
  0xc7   :  { %724 = vmatpush.msra.mxu1 %v527_v11  ;;  %755 = vmatpush.msra.mxu2 %v543_v6  ;;  %v581_v11 = vld [vmem:[%s11752_s3 + $0x430] sm:$0xff]  ;;  %v651_v6 = vld [vmem:[%s11752_s3 + $0x660] sm:$0xff] }
  0xc8   :  { %359 = vrot.lane.b32.xlu0 %v7825_v13, %s7547_s23  ;;  %300 = vrot.lane.b32.xlu2 %v7825_v13, %s7546_s22 }
  0xc9   :  { %414 = vrot.lane.b32.xlu1 %v7799_v5, %s7545_s21  ;;  %705 = vmatpush.msrb.mxu0 %v487_v10  ;;  %v478_v10 = vld [vmem:[%s11752_s3 + $0xf8] sm:$0xff] }
  0xca   :  { %725 = vmatpush.msra.mxu1 %v525_v16  ;;  %772 = vmatpush.msrb.mxu3 %v587_v62  ;;  %v579_v16 = vld [vmem:[%s11752_s3 + $0x420] sm:$0xff]  ;;  %v464_v62 = vld [vmem:[%s11752_s3 + $0x88] sm:$0xff] }
  0xcb   :  { %706 = vmatpush.msrb.mxu0 %v485_v15  ;;  %v476_v15 = vld [vmem:[%s11752_s3 + $0xe8] sm:$0xff]  ;;  %832 = vmatpush.msrb.mxu2 %v478_v10  ;;  %v609_v10 = vld [vmem:[%s11752_s3 + $0x510] sm:$0xff] }
  0xcc   :  { %726 = vmatpush.msra.mxu1 %v523_v20  ;;  %773 = vmatpush.msrb.mxu3 %v585_v2  ;;  %v474_v20 = vld [vmem:[%s11752_s3 + $0xd8] sm:$0xff] }
  0xcd   :  { %707 = vmatpush.msrb.mxu0 %v483_v19  ;;  %v665_v19 = vld [vmem:[%s11752_s3 + $0x6d0] sm:$0xff]  ;;  %833 = vmatpush.msrb.mxu2 %v476_v15  ;;  %v462_v2 = vld [vmem:[%s11752_s3 + $0x78] sm:$0xff]  ;;  %v607_v15 = vld [vmem:[%s11752_s3 + $0x500] sm:$0xff] }
  0xce   :  { %727 = vmatpush.msra.mxu1 %v521_v28  ;;  %774 = vmatpush.msrb.mxu3 %v583_v7  ;;  %v472_v28 = vld [vmem:[%s11752_s3 + $0xc8] sm:$0xff] }
  0xcf   :  { %708 = vmatpush.msrb.mxu0 %v481_v27  ;;  %v663_v27 = vld [vmem:[%s11752_s3 + $0x6c0] sm:$0xff]  ;;  %834 = vmatpush.msrb.mxu2 %v474_v20  ;;  %v460_v7 = vld [vmem:[%s11752_s3 + $0x68] sm:$0xff] }
  0xd0   :  { %728 = vmatpush.msra.mxu1 %v519_v37  ;;  %775 = vmatpush.msrb.mxu3 %v581_v11  ;;  %v470_v37 = vld [vmem:[%s11752_s3 + $0xb8] sm:$0xff] }
  0xd1   :  { %416 = vrot.lane.b32.xlu1 %v7825_v13, %s7545_s21  ;;  %709 = vmatpush.msrb.mxu0 %v479_v33  ;;  %v661_v33 = vld [vmem:[%s11752_s3 + $0x6b0] sm:$0xff] }
  0xd2   :  { %729 = vmatpush.msra.mxu1 %v517_v45  ;;  %776 = vmatpush.msrb.mxu3 %v579_v16  ;;  %v617_v45 = vld [vmem:[%s11752_s3 + $0x550] sm:$0xff] }
  0xd3   :  { %786 = vmatpush.msra.mxu0 %v637_v41  ;;  %835 = vmatpush.msrb.mxu2 %v472_v28  ;;  %v468_v41 = vld [vmem:[%s11752_s3 + $0xa8] sm:$0xff] }
  0xd4   :  { %730 = vmatpush.msra.mxu1 %v515_v54  ;;  %777 = vmatpush.msrb.mxu3 %v577_v22  ;;  %v615_v54 = vld [vmem:[%s11752_s3 + $0x540] sm:$0xff] }
  0xd5   :  { %787 = vmatpush.msra.mxu0 %v635_v51  ;;  %836 = vmatpush.msrb.mxu2 %v470_v37  ;;  %v466_v51 = vld [vmem:[%s11752_s3 + $0x98] sm:$0xff] }
  0xd6   :  { %731 = vmatpush.msra.mxu1 %v513_v0  ;;  %778 = vmatpush.msrb.mxu3 %v575_v29  ;;  %v653_v0 = vld [vmem:[%s11752_s3 + $0x670] sm:$0xff] }
  0xd7   :  { %788 = vmatpush.msra.mxu0 %v633_v63  ;;  %837 = vmatpush.msrb.mxu2 %v468_v41  ;;  %v613_v63 = vld [vmem:[%s11752_s3 + $0x530] sm:$0xff] }
  0xd8   :  { %732 = vmatpush.msra.mxu1 %v511_v4  ;;  %v611_v4 = vld [vmem:[%s11752_s3 + $0x520] sm:$0xff] }
  0xd9   :  { %789 = vmatpush.msra.mxu0 %v631_v3  ;;  %838 = vmatpush.msrb.mxu2 %v466_v51  ;;  %v302_v3 = vlaneseq }
  0xda   :  { %809 = vmatpush.msrb.mxu1 %v669_v9 }
  0xdb   :  { %790 = vmatpush.msra.mxu0 %v629_v8  ;;  %839 = vmatpush.msrb.mxu2 %v464_v62  ;;  %v8161_v11 = vand.u32 127, %v302_v3 }
  0xdc   :  { %810 = vmatpush.msrb.mxu1 %v667_v14  ;;  %v458_v14 = vld [vmem:[%s11752_s3 + $0x58] sm:$0xff] }
  0xdd   :  { %791 = vmatpush.msra.mxu0 %v627_v12  ;;  %840 = vmatpush.msrb.mxu2 %v462_v2  ;;  %v649_v12 = vld [vmem:[%s11752_s3 + $0x650] sm:$0xff]  ;;  %vm304_vm2 = vcmp.lt.s32.totalorder %v8161_v11, 127  ;;  %vm418_vm3 = vcmp.lt.s32.totalorder %v8161_v11, 99  ;;  %vm361_vm4 = vcmp.lt.s32.totalorder %v8161_v11, 100  ;;  %v448_v2 = vld [vmem:[%s11752_s3 + $0x8] sm:$0xff]  ;;  %vm1154_vm5 = vcmp.lt.s32.totalorder %v8161_v11, 114 }
  0xde   :  { %811 = vmatpush.msrb.mxu1 %v665_v19  ;;  %v456_v19 = vld [vmem:[%s11752_s3 + $0x48] sm:$0xff]  ;;  %vm1130_vm6 = vcmp.lt.s32.totalorder %v8161_v11, 115  ;;  %vm1178_vm7 = vcmp.lt.s32.totalorder %v8161_v11, 113  ;;  %vm1072_vm9 = vcmp.lt.s32.totalorder %v8161_v11, 1  ;;  %vm1048_vm10 = vcmp.lt.s32.totalorder %v8161_v11, 13 }
  0xdf   :  { %792 = vmatpush.msra.mxu0 %v625_v18  ;;  %841 = vmatpush.msrb.mxu2 %v460_v7  ;;  %v647_v18 = vld [vmem:[%s11752_s3 + $0x640] sm:$0xff]  ;;  %vm1024_vm11 = vcmp.lt.s32.totalorder %v8161_v11, 14  ;;  %vm1001_vm12 = vcmp.lt.s32.totalorder %v8161_v11, 15 }
  0xe0   :  { %812 = vmatpush.msrb.mxu1 %v663_v27  ;;  %v454_v27 = vld [vmem:[%s11752_s3 + $0x38] sm:$0xff] }
  0xe1   :  { %793 = vmatpush.msra.mxu0 %v623_v25  ;;  %842 = vmatpush.msrb.mxu2 %v458_v14  ;;  %v645_v25 = vld [vmem:[%s11752_s3 + $0x630] sm:$0xff] }
  0xe2   :  { %813 = vmatpush.msrb.mxu1 %v661_v33 }
  0xe3   :  { %794 = vmatpush.msra.mxu0 %v621_v31  ;;  %843 = vmatpush.msrb.mxu2 %v456_v19 }
  0xe4   :  { %814 = vmatpush.msrb.mxu1 %v659_v40  ;;  %v452_v40 = vld [vmem:[%s11752_s3 + $0x28] sm:$0xff] }
  0xe5   :  { %795 = vmatpush.msra.mxu0 %v619_v38  ;;  %v643_v38 = vld [vmem:[%s11752_s3 + $0x620] sm:$0xff]  ;;  %844 = vmatpush.msrb.mxu2 %v454_v27 }
  0xe6   :  { %815 = vmatpush.msrb.mxu1 %v657_v49 }
  0xe7   :  { %796 = vmatpush.msra.mxu0 %v617_v45  ;;  %845 = vmatpush.msrb.mxu2 %v452_v40  ;;  %v502_v40 = vld [vmem:[%s11752_s3 + $0x1b8] sm:$0xff] }
  0xe8   :  { %816 = vmatpush.msrb.mxu1 %v655_v61 }
  0xe9   :  { %797 = vmatpush.msra.mxu0 %v615_v54  ;;  %v641_v54 = vld [vmem:[%s11752_s3 + $0x610] sm:$0xff]  ;;  %846 = vmatpush.msrb.mxu2 %v450_v24 }
  0xea   :  { %v8072_v17 = vpop.permute.xlu2 %7210  ;;  %817 = vmatpush.msrb.mxu1 %v653_v0  ;;  %v639_v0 = vld [vmem:[%s11752_s3 + $0x600] sm:$0xff] }
  0xeb   :  { %798 = vmatpush.msra.mxu0 %v613_v63  ;;  %v7213_v29 = vunpack.i.h.bf16 %v8072_v17  ;;  %v7212_v31 = vunpack.i.l.bf16 %v8072_v17  ;;  %v510_v63 = vld [vmem:[%s11752_s3 + $0x1f8] sm:$0xff]  ;;  %847 = vmatpush.msrb.mxu2 %v448_v2  ;;  %v520_v17 = vld [vmem:[%s11752_s3 + $0x248] sm:$0xff] }
  0xec   :  { %818 = vmatpush.msrb.mxu1 %v651_v6 }
  0xed   :  { %799 = vmatpush.msra.mxu0 %v611_v4  ;;  %v429_v61 = vsel %vm418_vm3, %v7212_v31, %v7213_v29 }
  0xee   :  { %819 = vmatpush.msrb.mxu1 %v649_v12 }
  0xef   :  { %800 = vmatpush.msra.mxu0 %v609_v10  ;;  %v508_v10 = vld [vmem:[%s11752_s3 + $0x1e8] sm:$0xff] }
  0xf0   :  { %820 = vmatpush.msrb.mxu1 %v647_v18 }
  0xf1   :  { %801 = vmatpush.msra.mxu0 %v607_v15 }
  0xf2   :  { %v8119_v48 = vpop.permute.xlu2 %7215  ;;  %821 = vmatpush.msrb.mxu1 %v645_v25 }
  0xf3   :  { %v7218_v45 = vunpack.i.h.bf16 %v8119_v48  ;;  %v7217_v49 = vunpack.i.l.bf16 %v8119_v48  ;;  %v628_v48 = vld [vmem:[%s11752_s3 + $0x5a8] sm:$0xff] }
  0xf4   :  { %822 = vmatpush.msrb.mxu1 %v643_v38  ;;  %v504_v38 = vld [vmem:[%s11752_s3 + $0x1c8] sm:$0xff] }
  0xf5   :  { %v316_v3 = vsel %vm304_vm2, %v7217_v49, %v7218_v45 }
  0xf6   :  { %823 = vmatpush.msrb.mxu1 %v641_v54  ;;  %v326_v19 = vmax.f32 %v267_v35, %v316_v3 }
  0xf8   :  { %824 = vmatpush.msrb.mxu1 %v639_v0  ;;  %v498_v0 = vld [vmem:[%s11752_s3 + $0x198] sm:$0xff] }
  0xfa   :  { %v8173_v16 = vpop.permute.xlu2 %7230 }
 0x102   :  { %v8142_v1 = vpop.permute.xlu1 %7200  ;;  %v7251_v6 = vpop.permute.xlu2 %7250 }
 0x103   :  { %v7203_v8 = vunpack.i.h.bf16 %v8142_v1  ;;  %v7202_v9 = vunpack.i.l.bf16 %v8142_v1 }
 0x105   :  { %v315_v20 = vsel %vm304_vm2, %v7202_v9, %v7203_v8 }
 0x106   :  { %v319_v41 = vmax.f32 %v260_v26, %v315_v20  ;;  %v506_v20 = vld [vmem:[%s11752_s3 + $0x1d8] sm:$0xff] }
 0x10a   :  { %v8187_v22 = vpop.permute.xlu0 %7225 }
 0x10b   :  { %v8195_v28 = vpop.permute.xlu1 %7205  ;;  %v7228_v12 = vunpack.i.h.bf16 %v8187_v22  ;;  %v7227_v14 = vunpack.i.l.bf16 %v8187_v22  ;;  %v584_v22 = vld [vmem:[%s11752_s3 + $0x448] sm:$0xff] }
 0x10c   :  { %v7208_v33 = vunpack.i.h.bf16 %v8195_v28  ;;  %v7207_v37 = vunpack.i.l.bf16 %v8195_v28 }
 0x10d   :  { %v430_v32 = vsel %vm418_vm3, %v7227_v14, %v7228_v12 }
 0x10e   :  { %v372_v51 = vsel %vm361_vm4, %v7207_v37, %v7208_v33 }
 0x10f   :  { %v376_v26 = vmax.f32 %v319_v41, %v372_v51 }
 0x111   :  { %v8231_v62 = vmax.f32 %v376_v26, %v429_v61  ;;  %v500_v26 = vld [vmem:[%s11752_s3 + $0x1a8] sm:$0xff]  ;;  %v7232_v61 = vunpack.i.l.bf16 %v8173_v16 }
 0x112   :  { %v8248_v4 = vpop.permute.xlu0 %7240 }
 0x113   :  { %v8250_v7 = vpop.permute.xlu1 %7220  ;;  %687 = vmatmul.f32.vlgmr.msra.gmra.mxu3 %v8231_v62 }
 0x114   :  { %v7223_v15 = vunpack.i.h.bf16 %v8250_v7  ;;  %v7222_v18 = vunpack.i.l.bf16 %v8250_v7  ;;  %855 = vmatpush.msra.mxu3 %v510_v63  ;;  %v8292_v63 = vpop.permute.xlu2 %7260 }
 0x116   :  { %v373_v25 = vsel %vm361_vm4, %v7222_v18, %v7223_v15  ;;  %856 = vmatpush.msra.mxu3 %v508_v10 }
 0x117   :  { %v383_v27 = vmax.f32 %v326_v19, %v373_v25  ;;  %v7253_v19 = vunpack.i.h.bf16 %v7251_v6  ;;  %v496_v25 = vld [vmem:[%s11752_s3 + $0x188] sm:$0xff] }
 0x118   :  { %857 = vmatpush.msra.mxu3 %v506_v20  ;;  %v7252_v20 = vunpack.i.l.bf16 %v7251_v6  ;;  %v7233_v6 = vunpack.i.h.bf16 %v8173_v16 }
 0x119   :  { %v8280_v35 = vmax.f32 %v383_v27, %v430_v32 }
 0x11a   :  { %v7246_v41 = vpop.permute.xlu0 %7245  ;;  %858 = vmatpush.msra.mxu3 %v504_v38  ;;  %v370_v21 = vsel %vm361_vm4, %v7208_v33, %v7252_v20 }
 0x11b   :  { %v7248_v51 = vunpack.i.h.bf16 %v7246_v41  ;;  %v7247_v54 = vunpack.i.l.bf16 %v7246_v41  ;;  %v8285_v24 = vpop.permute.xlu1 %7235  ;;  %690 = vmatmul.f32.gmra.mxu3 %v8280_v35 }
 0x11c   :  { %859 = vmatpush.msra.mxu3 %v502_v40  ;;  %v7237_v27 = vunpack.i.l.bf16 %v8285_v24 }
 0x11d   :  { %v309_v2 = vsel %vm304_vm2, %v7248_v51, %v7232_v61  ;;  %v311_v3 = vsel %vm304_vm2, %v7247_v54, %v7248_v51  ;;  %v313_v10 = vsel %vm304_vm2, %v7203_v8, %v7247_v54  ;;  %v494_v8 = vld [vmem:[%s11752_s3 + $0x178] sm:$0xff]  ;;  %v368_v51 = vsel %vm361_vm4, %v7252_v20, %v7253_v19 }
 0x11e   :  { %860 = vmatpush.msra.mxu3 %v500_v26  ;;  %v320_v38 = vmax.f32 %v261_v23, %v313_v10  ;;  %v321_v32 = vmax.f32 %v262_v50, %v311_v3  ;;  %v322_v40 = vmax.f32 %v263_v47, %v309_v2  ;;  %v7242_v23 = vunpack.i.l.bf16 %v8248_v4  ;;  %v490_v3 = vld [vmem:[%s11752_s3 + $0x158] sm:$0xff] }
 0x11f   :  { %v7238_v47 = vunpack.i.h.bf16 %v8285_v24  ;;  %v366_v50 = vsel %vm361_vm4, %v7253_v19, %v7237_v27  ;;  %v314_v10 = vsel %vm304_vm2, %v7218_v45, %v7233_v6  ;;  %v528_v24 = vld [vmem:[%s11752_s3 + $0x288] sm:$0xff] }
 0x120   :  { %861 = vmatpush.msra.mxu3 %v498_v0  ;;  %v379_v0 = vmax.f32 %v322_v40, %v366_v50  ;;  %v378_v2 = vmax.f32 %v321_v32, %v368_v51  ;;  %v377_v33 = vmax.f32 %v320_v38, %v370_v21  ;;  %v8355_v38 = vpop.permute.xlu2 %7275  ;;  %v488_v51 = vld [vmem:[%s11752_s3 + $0x148] sm:$0xff]  ;;  %v574_v21 = vld [vmem:[%s11752_s3 + $0x3f8] sm:$0xff] }
 0x121   :  { %v606_v50 = vld [vmem:[%s11752_s3 + $0x4f8] sm:$0xff] }
 0x122   :  { %v8321_v41 = vpop.permute.xlu0 %7265  ;;  %862 = vmatpush.msra.mxu3 %v496_v25 }
 0x123   :  { %v7256_v44 = vpop.permute.xlu1 %7255 }
 0x124   :  { %v7258_v54 = vunpack.i.h.bf16 %v7256_v44  ;;  %v7257_v26 = vunpack.i.l.bf16 %v7256_v44  ;;  %863 = vmatpush.msra.mxu3 %v494_v8  ;;  %v542_v8 = vld [vmem:[%s11752_s3 + $0x2f8] sm:$0xff]  ;;  %v7267_v44 = vunpack.i.l.bf16 %v8321_v41 }
 0x126   :  { %v423_v19 = vsel %vm418_vm3, %v7258_v54, %v7242_v23  ;;  %v425_v20 = vsel %vm418_vm3, %v7257_v26, %v7258_v54  ;;  %v427_v25 = vsel %vm418_vm3, %v7213_v29, %v7257_v26  ;;  %864 = vmatpush.msra.mxu3 %v492_v46  ;;  %v371_v29 = vsel %vm361_vm4, %v7223_v15, %v7238_v47  ;;  %v540_v46 = vld [vmem:[%s11752_s3 + $0x2e8] sm:$0xff] }
 0x127   :  { %v8357_v32 = vmax.f32 %v378_v2, %v425_v20  ;;  %v8359_v40 = vmax.f32 %v379_v0, %v423_v19  ;;  %v8361_v45 = vmax.f32 %v377_v33, %v427_v25  ;;  %v327_v15 = vmax.f32 %v268_v34, %v314_v10  ;;  %v486_v2 = vld [vmem:[%s11752_s3 + $0x138] sm:$0xff]  ;;  %v484_v10 = vld [vmem:[%s11752_s3 + $0x128] sm:$0xff] }
 0x128   :  { %865 = vmatpush.msra.mxu3 %v490_v3  ;;  %v7243_v54 = vunpack.i.h.bf16 %v8248_v4  ;;  %v7268_v26 = vunpack.i.h.bf16 %v8321_v41  ;;  %v538_v33 = vld [vmem:[%s11752_s3 + $0x2d8] sm:$0xff]  ;;  %v604_v3 = vld [vmem:[%s11752_s3 + $0x4e8] sm:$0xff]  ;;  %v307_v20 = vsel %vm304_vm2, %v7232_v61, %v7267_v44 }
 0x129   :  { %710 = vmatmul.f32.vlgmr.msrb.gmra.mxu0 %v8361_v45  ;;  %733 = vmatmul.f32.vlgmr.msra.gmra.mxu1 %v8357_v32  ;;  %v384_v41 = vmax.f32 %v327_v15, %v371_v29  ;;  %v570_v19 = vld [vmem:[%s11752_s3 + $0x3d8] sm:$0xff]  ;;  %v536_v25 = vld [vmem:[%s11752_s3 + $0x2c8] sm:$0xff]  ;;  %v7262_v29 = vunpack.i.l.bf16 %v8292_v63 }
 0x12a   :  { %756 = vmatmul.f32.vlgmr.msra.gmra.mxu2 %v8359_v40  ;;  %878 = vmatpush.msrb.mxu0 %v542_v8  ;;  %v8392_v0 = vpop.permute.xlu0 %298  ;;  %v602_v8 = vld [vmem:[%s11752_s3 + $0x4d8] sm:$0xff]  ;;  %v428_v61 = vsel %vm418_vm3, %v7228_v12, %v7243_v54  ;;  %v568_v15 = vld [vmem:[%s11752_s3 + $0x3c8] sm:$0xff] }
 0x12b   :  { %v8400_v34 = vpop.permute.xlu1 %7270  ;;  %866 = vmatpush.msra.mxu3 %v488_v51  ;;  %901 = vmatpush.msra.mxu1 %v574_v21  ;;  %v312_v51 = vsel %vm304_vm2, %v7233_v6, %v7268_v26  ;;  %v482_v21 = vld [vmem:[%s11752_s3 + $0x118] sm:$0xff]  ;;  %v310_v12 = vsel %vm304_vm2, %v7268_v26, %v7262_v29 }
 0x12c   :  { %879 = vmatpush.msrb.mxu0 %v540_v46  ;;  %924 = vmatpush.msra.mxu2 %v606_v50  ;;  %v7272_v16 = vunpack.i.l.bf16 %v8400_v34  ;;  %v8437_v46 = vmax.f32 %v384_v41, %v428_v61  ;;  %v534_v6 = vld [vmem:[%s11752_s3 + $0x2b8] sm:$0xff]  ;;  %v7278_v50 = vunpack.i.h.bf16 %v8355_v38  ;;  %v7277_v41 = vunpack.i.l.bf16 %v8355_v38  ;;  %v564_v61 = vld [vmem:[%s11752_s3 + $0x3a8] sm:$0xff] }
 0x12d   :  { %867 = vmatpush.msra.mxu3 %v486_v2  ;;  %902 = vmatpush.msra.mxu1 %v572_v30  ;;  %v323_v2 = vmax.f32 %v264_v43, %v307_v20  ;;  %v600_v30 = vld [vmem:[%s11752_s3 + $0x4c8] sm:$0xff]  ;;  %v328_v43 = vmax.f32 %v269_v42, %v312_v51  ;;  %v566_v26 = vld [vmem:[%s11752_s3 + $0x3b8] sm:$0xff]  ;;  %v305_v38 = vsel %vm304_vm2, %v7267_v44, %v8392_v0  ;;  %v7263_v42 = vunpack.i.h.bf16 %v8292_v63 }
 0x12e   :  { %880 = vmatpush.msrb.mxu0 %v538_v33  ;;  %925 = vmatpush.msra.mxu2 %v604_v3  ;;  %v480_v33 = vld [vmem:[%s11752_s3 + $0x108] sm:$0xff]  ;;  %v8459_v3 = vpop.permute.xlu2 %357  ;;  %v364_v44 = vsel %vm361_vm4, %v7237_v27, %v7277_v41  ;;  %v329_v51 = vmax.f32 %v270_v58, %v310_v12  ;;  %v369_v27 = vsel %vm361_vm4, %v7238_v47, %v7278_v50  ;;  %v526_v4 = vld [vmem:[%s11752_s3 + $0x278] sm:$0xff] }
 0x12f   :  { %868 = vmatpush.msra.mxu3 %v484_v10  ;;  %903 = vmatpush.msra.mxu1 %v570_v19  ;;  %v367_v19 = vsel %vm361_vm4, %v7278_v50, %v7272_v16  ;;  %v317_v58 = vsel %vm304_vm2, %v8392_v0, %v7202_v9  ;;  %v324_v12 = vmax.f32 %v265_v60, %v305_v38  ;;  %v562_v50 = vld [vmem:[%s11752_s3 + $0x398] sm:$0xff]  ;;  %v7273_v9 = vunpack.i.h.bf16 %v8400_v34  ;;  %v524_v38 = vld [vmem:[%s11752_s3 + $0x268] sm:$0xff] }
 0x130   :  { %881 = vmatpush.msrb.mxu0 %v536_v25  ;;  %926 = vmatpush.msra.mxu2 %v602_v8  ;;  %v530_v8 = vld [vmem:[%s11752_s3 + $0x298] sm:$0xff]  ;;  %v386_v47 = vmax.f32 %v329_v51, %v367_v19  ;;  %v362_v19 = vsel %vm361_vm4, %v7277_v41, %v8459_v3  ;;  %v592_v41 = vld [vmem:[%s11752_s3 + $0x488] sm:$0xff] }
 0x131   :  { %713 = vmatmul.f32.gmra.mxu0 %v8437_v46  ;;  %869 = vmatpush.msra.mxu3 %v482_v21  ;;  %v365_v51 = vsel %vm361_vm4, %v7272_v16, %v7273_v9  ;;  %v634_v34 = vld [vmem:[%s11752_s3 + $0x5d8] sm:$0xff] }
 0x132   :  { %882 = vmatpush.msrb.mxu0 %v534_v6  ;;  %v8473_v10 = vpop.permute.xlu0 %7280  ;;  %904 = vmatpush.msra.mxu1 %v568_v15  ;;  %v380_v15 = vmax.f32 %v323_v2, %v364_v44  ;;  %v385_v2 = vmax.f32 %v328_v43, %v369_v27  ;;  %v325_v43 = vmax.f32 %v7799_v5, %v317_v58  ;;  %v636_v5 = vld [vmem:[%s11752_s3 + $0x5e8] sm:$0xff]  ;;  %v590_v58 = vld [vmem:[%s11752_s3 + $0x478] sm:$0xff] }
 0x133   :  { %v7282_v20 = vunpack.i.l.bf16 %v8473_v10  ;;  %v7286_v25 = vpop.permute.xlu1 %7285  ;;  %927 = vmatpush.msra.mxu2 %v600_v30  ;;  %870 = vmatpush.msra.mxu3 %v480_v33  ;;  %v381_v44 = vmax.f32 %v324_v12, %v362_v19  ;;  %v622_v19 = vld [vmem:[%s11752_s3 + $0x578] sm:$0xff] }
 0x134   :  { %v7288_v21 = vunpack.i.h.bf16 %v7286_v25  ;;  %v7287_v6 = vunpack.i.l.bf16 %v7286_v25  ;;  %883 = vmatpush.msrb.mxu0 %v532_v39  ;;  %905 = vmatpush.msra.mxu1 %v566_v26  ;;  %v308_v39 = vsel %vm304_vm2, %v7262_v29, %v7263_v42  ;;  %v7283_v26 = vunpack.i.h.bf16 %v8473_v10  ;;  %v560_v29 = vld [vmem:[%s11752_s3 + $0x388] sm:$0xff] }
 0x135   :  { %928 = vmatpush.msra.mxu2 %v598_v36  ;;  %v330_v28 = vmax.f32 %v271_v59, %v308_v39  ;;  %v670_v39 = vld [vmem:[%s11752_s3 + $0x6f8] sm:$0xff] }
 0x136   :  { %v421_v1 = vsel %vm418_vm3, %v7242_v23, %v7287_v6  ;;  %884 = vmatpush.msrb.mxu0 %v530_v8  ;;  %v426_v56 = vsel %vm418_vm3, %v7243_v54, %v7288_v21  ;;  %v424_v60 = vsel %vm418_vm3, %v7288_v21, %v7282_v20  ;;  %906 = vmatpush.msra.mxu1 %v564_v61  ;;  %v638_v23 = vld [vmem:[%s11752_s3 + $0x5f8] sm:$0xff]  ;;  %v301_v36 = vpop.permute.xlu2 %300 }
 0x137   :  { %v8529_v0 = vmax.f32 %v380_v15, %v421_v1  ;;  %v8531_v30 = vmax.f32 %v385_v2, %v426_v56  ;;  %v8533_v33 = vmax.f32 %v386_v47, %v424_v60  ;;  %929 = vmatpush.msra.mxu2 %v596_v53  ;;  %v594_v54 = vld [vmem:[%s11752_s3 + $0x498] sm:$0xff]  ;;  %v374_v61 = vsel %vm361_vm4, %v8459_v3, %v7207_v37  ;;  %v632_v37 = vld [vmem:[%s11752_s3 + $0x5c8] sm:$0xff] }
 0x138   :  { %885 = vmatpush.msrb.mxu0 %v528_v24  ;;  %907 = vmatpush.msra.mxu1 %v562_v50  ;;  %v522_v8 = vld [vmem:[%s11752_s3 + $0x258] sm:$0xff]  ;;  %v382_v27 = vmax.f32 %v325_v43, %v374_v61  ;;  %v306_v59 = vsel %vm304_vm2, %v7263_v42, %v301_v36  ;;  %v387_v3 = vmax.f32 %v330_v28, %v365_v51  ;;  %v556_v2 = vld [vmem:[%s11752_s3 + $0x368] sm:$0xff] }
 0x139   :  { %736 = vmatmul.f32.gmra.mxu1 %v8531_v30  ;;  %759 = vmatmul.f32.gmra.mxu2 %v8533_v33  ;;  %v518_v42 = vld [vmem:[%s11752_s3 + $0x238] sm:$0xff]  ;;  %v331_v12 = vmax.f32 %v272_v57, %v306_v59  ;;  %v318_v47 = vsel %vm304_vm2, %v301_v36, %v7217_v49  ;;  %v588_v57 = vld [vmem:[%s11752_s3 + $0x468] sm:$0xff] }
 0x13a   :  { %779 = vmatmul.f32.vlgmr.msrb.gmra.mxu3 %v8529_v0  ;;  %886 = vmatpush.msrb.mxu0 %v526_v4  ;;  %v360_v16 = vpop.permute.xlu0 %359  ;;  %v630_v24 = vld [vmem:[%s11752_s3 + $0x5b8] sm:$0xff]  ;;  %v332_v7 = vmax.f32 %v7825_v13, %v318_v47  ;;  %v552_v13 = vld [vmem:[%s11752_s3 + $0x348] sm:$0xff] }
 0x13b   :  { %947 = vmatpush.msrb.mxu3 %v638_v23  ;;  %v415_v25 = vpop.permute.xlu1 %414  ;;  %930 = vmatpush.msra.mxu2 %v594_v54  ;;  %v554_v49 = vld [vmem:[%s11752_s3 + $0x358] sm:$0xff]  ;;  %v512_v23 = vld [vmem:[%s11752_s3 + $0x208] sm:$0xff] }
 0x13c   :  { %v419_v21 = vsel %vm418_vm3, %v7287_v6, %v415_v25  ;;  %v431_v15 = vsel %vm418_vm3, %v415_v25, %v7212_v31  ;;  %887 = vmatpush.msrb.mxu0 %v524_v38  ;;  %908 = vmatpush.msra.mxu1 %v560_v29  ;;  %v422_v31 = vsel %vm418_vm3, %v7282_v20, %v7283_v26  ;;  %v514_v60 = vld [vmem:[%s11752_s3 + $0x218] sm:$0xff]  ;;  %v548_v29 = vld [vmem:[%s11752_s3 + $0x328] sm:$0xff] }
 0x13d   :  { %v8593_v53 = vmax.f32 %v381_v44, %v419_v21  ;;  %948 = vmatpush.msrb.mxu3 %v636_v5  ;;  %931 = vmatpush.msra.mxu2 %v592_v41  ;;  %v8614_v6 = vmax.f32 %v382_v27, %v431_v15  ;;  %v363_v20 = vsel %vm361_vm4, %v7273_v9, %v360_v16  ;;  %v586_v9 = vld [vmem:[%s11752_s3 + $0x458] sm:$0xff]  ;;  %v668_v5 = vld [vmem:[%s11752_s3 + $0x6e8] sm:$0xff] }
 0x13e   :  { %888 = vmatpush.msrb.mxu0 %v522_v8  ;;  %v8619_v63 = vmax.f32 %v387_v3, %v422_v31  ;;  %909 = vmatpush.msra.mxu1 %v558_v55  ;;  %v388_v50 = vmax.f32 %v331_v12, %v363_v20  ;;  %v582_v38 = vld [vmem:[%s11752_s3 + $0x438] sm:$0xff]  ;;  %v580_v36 = vld [vmem:[%s11752_s3 + $0x428] sm:$0xff] }
 0x13f   :  { %949 = vmatpush.msrb.mxu3 %v634_v34  ;;  %802 = vmatmul.f32.vlgmr.msra.gmra.mxu0 %v8593_v53  ;;  %v620_v44 = vld [vmem:[%s11752_s3 + $0x568] sm:$0xff]  ;;  %v578_v25 = vld [vmem:[%s11752_s3 + $0x418] sm:$0xff] }
 0x140   :  { %889 = vmatpush.msrb.mxu0 %v520_v17  ;;  %932 = vmatpush.msra.mxu2 %v590_v58  ;;  %v618_v8 = vld [vmem:[%s11752_s3 + $0x558] sm:$0xff]  ;;  %v664_v41 = vld [vmem:[%s11752_s3 + $0x6c8] sm:$0xff] }
 0x141   :  { %950 = vmatpush.msrb.mxu3 %v632_v37  ;;  %825 = vmatmul.f32.vlgmr.msrb.gmra.mxu1 %v8614_v6  ;;  %v544_v51 = vld [vmem:[%s11752_s3 + $0x308] sm:$0xff]  ;;  %v662_v15 = vld [vmem:[%s11752_s3 + $0x6b8] sm:$0xff] }
 0x142   :  { %782 = vmatmul.f32.gmra.mxu3 %v8619_v63  ;;  %848 = vmatmul.f32.vlgmr.msrb.gmra.mxu2 %v8231_v62  ;;  %v375_v62 = vsel %vm361_vm4, %v360_v16, %v7222_v18  ;;  %v626_v18 = vld [vmem:[%s11752_s3 + $0x598] sm:$0xff]  ;;  %v576_v61 = vld [vmem:[%s11752_s3 + $0x408] sm:$0xff] }
 0x143   :  { %890 = vmatpush.msrb.mxu0 %v518_v42  ;;  %v417_v1 = vpop.permute.xlu1 %416  ;;  %951 = vmatpush.msrb.mxu3 %v630_v24  ;;  %v389_v54 = vmax.f32 %v332_v7, %v375_v62  ;;  %v616_v21 = vld [vmem:[%s11752_s3 + $0x548] sm:$0xff]  ;;  %v614_v34 = vld [vmem:[%s11752_s3 + $0x538] sm:$0xff] }
 0x144   :  { %v420_v56 = vsel %vm418_vm3, %v7283_v26, %v417_v1  ;;  %910 = vmatpush.msra.mxu1 %v556_v2  ;;  %933 = vmatpush.msra.mxu2 %v588_v57  ;;  %v432_v4 = vsel %vm418_vm3, %v417_v1, %v7227_v14  ;;  %v624_v14 = vld [vmem:[%s11752_s3 + $0x588] sm:$0xff]  ;;  %v550_v26 = vld [vmem:[%s11752_s3 + $0x338] sm:$0xff] }
 0x145   :  { %891 = vmatpush.msrb.mxu0 %v516_v52  ;;  %v8672_v10 = vmax.f32 %v388_v50, %v420_v56  ;;  %952 = vmatpush.msrb.mxu3 %v628_v48  ;;  %v8694_v43 = vmax.f32 %v389_v54, %v432_v4  ;;  %v660_v28 = vld [vmem:[%s11752_s3 + $0x6a8] sm:$0xff]  ;;  %v658_v16 = vld [vmem:[%s11752_s3 + $0x698] sm:$0xff] }
 0x146   :  { %911 = vmatpush.msra.mxu1 %v554_v49  ;;  %934 = vmatpush.msra.mxu2 %v586_v9  ;;  %v610_v27 = vld [vmem:[%s11752_s3 + $0x518] sm:$0xff]  ;;  %v652_v17 = vld [vmem:[%s11752_s3 + $0x668] sm:$0xff] }
 0x147   :  { %892 = vmatpush.msrb.mxu0 %v514_v60  ;;  %953 = vmatpush.msrb.mxu3 %v626_v18  ;;  %v650_v31 = vld [vmem:[%s11752_s3 + $0x658] sm:$0xff]  ;;  %v640_v59 = vld [vmem:[%s11752_s3 + $0x608] sm:$0xff] }
 0x148   :  { %805 = vmatmul.f32.gmra.mxu0 %v8672_v10  ;;  %912 = vmatpush.msra.mxu1 %v552_v13  ;;  %v646_v55 = vld [vmem:[%s11752_s3 + $0x638] sm:$0xff] }
 0x149   :  { %893 = vmatpush.msrb.mxu0 %v512_v23  ;;  %935 = vmatpush.msra.mxu2 %v584_v22 }
 0x14a   :  { %954 = vmatpush.msrb.mxu3 %v624_v14  ;;  %828 = vmatmul.f32.gmra.mxu1 %v8694_v43 }
 0x14b   :  { %970 = vmatpush.msra.mxu0 %v670_v39  ;;  %851 = vmatmul.f32.gmra.mxu2 %v8280_v35  ;;  %v666_v35 = vld [vmem:[%s11752_s3 + $0x6d8] sm:$0xff] }
 0x14c   :  { %871 = vmatmul.f32.vlgmr.msra.gmra.mxu3 %v8361_v45  ;;  %913 = vmatpush.msra.mxu1 %v550_v26  ;;  %v546_v45 = vld [vmem:[%s11752_s3 + $0x318] sm:$0xff] }
 0x14d   :  { %936 = vmatpush.msra.mxu2 %v582_v38  ;;  %955 = vmatpush.msrb.mxu3 %v622_v19 }
 0x14e   :  { %971 = vmatpush.msra.mxu0 %v668_v5  ;;  %914 = vmatpush.msra.mxu1 %v548_v29 }
 0x14f   :  { %937 = vmatpush.msra.mxu2 %v580_v36  ;;  %956 = vmatpush.msrb.mxu3 %v620_v44 }
 0x150   :  { %972 = vmatpush.msra.mxu0 %v666_v35  ;;  %915 = vmatpush.msra.mxu1 %v546_v45 }
 0x151   :  { %938 = vmatpush.msra.mxu2 %v578_v25  ;;  %957 = vmatpush.msrb.mxu3 %v618_v8 }
 0x152   :  { %973 = vmatpush.msra.mxu0 %v664_v41  ;;  %916 = vmatpush.msra.mxu1 %v544_v51 }
 0x153   :  { %894 = vmatmul.f32.vlgmr.msrb.gmra.mxu0 %v8357_v32  ;;  %939 = vmatpush.msra.mxu2 %v576_v61  ;;  %v612_v32 = vld [vmem:[%s11752_s3 + $0x528] sm:$0xff] }
 0x154   :  { %958 = vmatpush.msrb.mxu3 %v616_v21  ;;  %974 = vmatpush.msra.mxu0 %v662_v15 }
 0x155   :  { %874 = vmatmul.f32.gmra.mxu3 %v8437_v46  ;;  %917 = vmatmul.f32.vlgmr.msra.gmra.mxu1 %v8359_v40  ;;  %v656_v40 = vld [vmem:[%s11752_s3 + $0x688] sm:$0xff] }
 0x156   :  { %940 = vmatmul.f32.vlgmr.msra.gmra.mxu2 %v8529_v0  ;;  %959 = vmatpush.msrb.mxu3 %v614_v34  ;;  %v608_v46 = vld [vmem:[%s11752_s3 + $0x508] sm:$0xff]  ;;  %v654_v0 = vld [vmem:[%s11752_s3 + $0x678] sm:$0xff] }
 0x157   :  { %975 = vmatpush.msra.mxu0 %v660_v28 }
 0x158   :  { %960 = vmatpush.msrb.mxu3 %v612_v32 }
 0x159   :  { %976 = vmatpush.msra.mxu0 %v658_v16 }
 0x15a   :  { %961 = vmatpush.msrb.mxu3 %v610_v27  ;;  %v1204_v27 = vld [vmem:[%s11755_s6 + $0x10] sm:$0xff] }
 0x15b   :  { %977 = vmatpush.msra.mxu0 %v656_v40 }
 0x15c   :  { %897 = vmatmul.f32.gmra.mxu0 %v8531_v30  ;;  %962 = vmatpush.msrb.mxu3 %v608_v46  ;;  %v648_v30 = vld [vmem:[%s11752_s3 + $0x648] sm:$0xff] }
 0x15d   :  { %978 = vmatpush.msra.mxu0 %v654_v0  ;;  %920 = vmatmul.f32.gmra.mxu1 %v8533_v33  ;;  %v644_v33 = vld [vmem:[%s11752_s3 + $0x628] sm:$0xff] }
 0x15e   :  { %943 = vmatmul.f32.gmra.mxu2 %v8619_v63  ;;  %963 = vmatmul.f32.vlgmr.msrb.gmra.mxu3 %v8593_v53  ;;  %v642_v53 = vld [vmem:[%s11752_s3 + $0x618] sm:$0xff] }
 0x15f   :  { %979 = vmatpush.msra.mxu0 %v652_v17 }
 0x161   :  { %980 = vmatpush.msra.mxu0 %v650_v31 }
 0x163   :  { %981 = vmatpush.msra.mxu0 %v648_v30 }
 0x165   :  { %982 = vmatpush.msra.mxu0 %v646_v55 }
 0x166   :  { %966 = vmatmul.f32.gmra.mxu3 %v8672_v10 }
 0x167   :  { %983 = vmatpush.msra.mxu0 %v644_v33 }
 0x169   :  { %984 = vmatpush.msra.mxu0 %v642_v53 }
 0x16b   :  { %985 = vmatpush.msra.mxu0 %v640_v59 }
 0x16c   :  { %986 = vmatmul.f32.vlgmr.msra.gmra.mxu0 %v8614_v6 }
 0x174   :  { %989 = vmatmul.f32.gmra.mxu0 %v8694_v43 }
 0x196   :  { %v688_v37 = vpop.f32.mrf.mxu3 }
 0x19e   :  { %v691_v63 = vpop.f32.mrf.mxu3 }
 0x1a6   :  { %v711_v3 = vpop.f32.mrf.mxu0  ;;  %v734_v20 = vpop.f32.mrf.mxu1 }
 0x1a7   :  { %v712_v58 = vadd.f32 %v711_v3, %v688_v37 }
 0x1a9   :  { %v735_v2 = vadd.f32 %v734_v20, %v712_v58  ;;  %v5845_v58 = vld [vmem:[%s11754_s5 + $0x7] ss:$8 sm:$0x3] }
 0x1ad   :  { %v757_v24 = vpop.f32.mrf.mxu2 }
 0x1ae   :  { %v714_v42 = vpop.f32.mrf.mxu0  ;;  %v758_v47 = vadd.f32 %v757_v24, %v735_v2  ;;  %v1162_v2 = vperm.slane %v5845_v58, 0 }
 0x1af   :  { %v715_v48 = vadd.f32 %v714_v42, %v691_v63 }
 0x1b6   :  { %v737_v12 = vpop.f32.mrf.mxu1 }
 0x1b7   :  { %v738_v6 = vadd.f32 %v737_v12, %v715_v48  ;;  %v5844_v12 = vld [vmem:[%s11754_s5 + $0x6] ss:$8 sm:$0x3] }
 0x1bc   :  { %v803_v57 = vpop.f32.mrf.mxu0  ;;  %v760_v62 = vpop.f32.mrf.mxu2 }
 0x1bd   :  { %v780_v52 = vpop.f32.mrf.mxu3  ;;  %v761_v60 = vadd.f32 %v760_v62, %v738_v6  ;;  %v5846_v6 = vld [vmem:[%s11754_s5 + $0x10] ss:$8 sm:$0x3] }
 0x1be   :  { %v781_v50 = vadd.f32 %v780_v52, %v758_v47  ;;  %v826_v1 = vpop.f32.mrf.mxu1 }
 0x1c0   :  { %v804_v49 = vadd.f32 %v803_v57, %v781_v50 }
 0x1c2   :  { %v8803_v56 = vadd.f32 %v826_v1, %v804_v49  ;;  %v1138_v1 = vperm.slane %v5844_v12, 0 }
 0x1c4   :  { %1122 = vrot.lane.b32.xlu0 %v8803_v56, %s7548_s19  ;;  %1146 = vrot.lane.b32.xlu2 %v8803_v56, %s7549_s20 }
 0x1c5   :  { %1170 = vrot.lane.b32.xlu1 %v8803_v56, %s7550_s24  ;;  %v783_v9 = vpop.f32.mrf.mxu3  ;;  %v806_v18 = vpop.f32.mrf.mxu0 }
 0x1c6   :  { %v784_v7 = vadd.f32 %v783_v9, %v761_v60  ;;  %v849_v13 = vpop.f32.mrf.mxu2 }
 0x1c7   :  { %v829_v4 = vpop.f32.mrf.mxu1 }
 0x1c8   :  { %v807_v10 = vadd.f32 %v806_v18, %v784_v7  ;;  %v1186_v7 = vperm.slane %v5846_v6, 0  ;;  %v1187_v18 = vperm.slane %v5846_v6, 1 }
 0x1ca   :  { %v8811_v23 = vadd.f32 %v829_v4, %v807_v10 }
 0x1cc   :  { %1064 = vrot.lane.b32.xlu2 %v8803_v56, %s7551_s25  ;;  %1148 = vrot.lane.b32.xlu0 %v8811_v23, %s7549_s20 }
 0x1cd   :  { %1099 = vrot.lane.b32.xlu1 %v8803_v56, %s7546_s22 }
 0x1ce   :  { %v852_v22 = vpop.f32.mrf.mxu2 }
 0x1cf   :  { %v872_v54 = vpop.f32.mrf.mxu3 }
 0x1d0   :  { %v895_v14 = vpop.f32.mrf.mxu0  ;;  %v873_v43 = vadd.f32 %v872_v54, %v849_v13 }
 0x1d2   :  { %v896_v26 = vadd.f32 %v895_v14, %v873_v43  ;;  %v918_v38 = vpop.f32.mrf.mxu1 }
 0x1d4   :  { %1066 = vrot.lane.b32.xlu0 %v8811_v23, %s7551_s25  ;;  %1172 = vrot.lane.b32.xlu2 %v8811_v23, %s7550_s24  ;;  %v919_v36 = vadd.f32 %v918_v38, %v896_v26 }
 0x1d5   :  { %1124 = vrot.lane.b32.xlu1 %v8811_v23, %s7548_s19 }
 0x1d8   :  { %v875_v39 = vpop.f32.mrf.mxu3 }
 0x1d9   :  { %v898_v19 = vpop.f32.mrf.mxu0  ;;  %v941_v5 = vpop.f32.mrf.mxu2  ;;  %v876_v44 = vadd.f32 %v875_v39, %v852_v22 }
 0x1da   :  { %v942_v35 = vadd.f32 %v941_v5, %v919_v36  ;;  %v921_v51 = vpop.f32.mrf.mxu1 }
 0x1db   :  { %v899_v45 = vadd.f32 %v898_v19, %v876_v44  ;;  %v1163_v19 = vperm.slane %v5845_v58, 1  ;;  %v1139_v44 = vperm.slane %v5844_v12, 1 }
 0x1dc   :  { %1101 = vrot.lane.b32.xlu2 %v8811_v23, %s7546_s22 }
 0x1dd   :  { %1042 = vrot.lane.b32.xlu1 %v8811_v23, %s7552_s26  ;;  %v922_v21 = vadd.f32 %v921_v51, %v899_v45  ;;  %v1195_v45 = vld [vmem:[%s11753_s4 + $0x8] sm:$0xff] }
 0x1e1   :  { %v964_v29 = vpop.f32.mrf.mxu3  ;;  %v944_v61 = vpop.f32.mrf.mxu2 }
 0x1e2   :  { %v965_v25 = vadd.f32 %v964_v29, %v942_v35  ;;  %v945_v34 = vadd.f32 %v944_v61, %v922_v21 }
 0x1e9   :  { %v987_v8 = vpop.f32.mrf.mxu0  ;;  %v967_v15 = vpop.f32.mrf.mxu3 }
 0x1ea   :  { %v8829_v41 = vadd.f32 %v987_v8, %v965_v25  ;;  %v968_v28 = vadd.f32 %v967_v15, %v945_v34 }
 0x1ec   :  { %1126 = vrot.lane.b32.xlu1 %v8829_v41, %s7548_s19  ;;  %1150 = vrot.lane.b32.xlu0 %v8829_v41, %s7549_s20 }
 0x1ed   :  { %1174 = vrot.lane.b32.xlu2 %v8829_v41, %s7550_s24 }
 0x1f1   :  { %v990_v32 = vpop.f32.mrf.mxu0 }
 0x1f2   :  { %v8837_v16 = vadd.f32 %v990_v32, %v968_v28  ;;  %v5843_v32 = vld [vmem:[%s11754_s5 + $0x5] ss:$8 sm:$0x3] }
 0x1f4   :  { %1152 = vrot.lane.b32.xlu1 %v8837_v16, %s7549_s20  ;;  %1068 = vrot.lane.b32.xlu0 %v8829_v41, %s7551_s25 }
 0x1f5   :  { %1103 = vrot.lane.b32.xlu2 %v8829_v41, %s7546_s22 }
 0x1fc   :  { %1044 = vrot.lane.b32.xlu1 %v8829_v41, %s7552_s26  ;;  %1176 = vrot.lane.b32.xlu0 %v8837_v16, %s7550_s24 }
 0x1fd   :  { %1128 = vrot.lane.b32.xlu2 %v8837_v16, %s7548_s19 }
 0x204   :  { %1070 = vrot.lane.b32.xlu1 %v8837_v16, %s7551_s25  ;;  %1040 = vrot.lane.b32.xlu0 %v8803_v56, %s7552_s26 }
 0x205   :  { %1018 = vrot.lane.b32.xlu2 %v8811_v23, %s7553_s27 }
 0x20c   :  { %1016 = vrot.lane.b32.xlu1 %v8803_v56, %s7553_s27  ;;  %1105 = vrot.lane.b32.xlu0 %v8837_v16, %s7546_s22 }
 0x20d   :  { %1046 = vrot.lane.b32.xlu2 %v8837_v16, %s7552_s26 }
 0x214   :  { %999 = vrot.lane.b32.xlu1 %v8837_v16, %s11762_s28  ;;  %995 = vrot.lane.b32.xlu0 %v8811_v23, %s11762_s28 }
 0x215   :  { %1020 = vrot.lane.b32.xlu2 %v8829_v41, %s7553_s27 }
 0x21c   :  { %1022 = vrot.lane.b32.xlu0 %v8837_v16, %s7553_s27 }
 0x21d   :  { %993 = vrot.lane.b32.xlu2 %v8803_v56, %s11762_s28 }
 0x21e   :  { %v1147_v40 = vpop.permute.xlu2 %1146 }
 0x224   :  { %997 = vrot.lane.b32.xlu0 %v8829_v41, %s11762_s28 }
 0x226   :  { %v8878_v46 = vpop.permute.xlu2 %1064 }
 0x22c   :  { %1218 = vperm.xlu0 %7198, %v1204_v27   ;;  %v1197_v27 = vld [vmem:[%s11753_s4 + $0x18] sm:$0xff] }
 0x22e   :  { %v1173_v17 = vpop.permute.xlu2 %1172 }
 0x236   :  { %v1123_v31 = vpop.permute.xlu0 %1122  ;;  %v8882_v55 = vpop.permute.xlu2 %1101 }
 0x237   :  { %v1171_v0 = vpop.permute.xlu1 %1170 }
 0x23e   :  { %v1149_v33 = vpop.permute.xlu0 %1148 }
 0x23f   :  { %v8880_v30 = vpop.permute.xlu1 %1099 }
 0x246   :  { %v8884_v37 = vpop.permute.xlu0 %1066 }
 0x247   :  { %v1125_v53 = vpop.permute.xlu1 %1124  ;;  %v1175_v59 = vpop.permute.xlu2 %1174 }
 0x248   :  { %v1179_v13 = vsel %vm1178_vm7, %v1171_v0, %v1175_v59  ;;  %v1181_v54 = vsel %vm1178_vm7, %v1175_v59, %v1171_v0  ;;  %v1115_v0 = vperm.slane %v5843_v32, 1 }
 0x249   :  { %v1190_v5 = vmul.f32 %v1186_v7, %v1179_v13  ;;  %v1191_v29 = vmul.f32 %v1187_v18, %v1181_v54 }
 0x24f   :  { %v8886_v3 = vpop.permute.xlu1 %1042  ;;  %v8888_v20 = vpop.permute.xlu2 %1103 }
 0x257   :  { %v1129_v24 = vpop.permute.xlu2 %1128 }
 0x258   :  { %v1132_v49 = vsel %vm1130_vm6, %v1125_v53, %v1129_v24  ;;  %v1134_v25 = vsel %vm1130_vm6, %v1129_v24, %v1125_v53  ;;  %v1109_v53 = vsel %vm304_vm2, %v8888_v20, %v8880_v30 }
 0x259   :  { %v1144_v9 = vmul.f32 %v1138_v1, %v1132_v49  ;;  %v1145_v21 = vmul.f32 %v1139_v44, %v1134_v25  ;;  %v5840_v49 = vld [vmem:[%s11754_s5 + $0x2] ss:$8 sm:$0x3] }
 0x25e   :  { %v1127_v63 = vpop.permute.xlu1 %1126  ;;  %v1151_v42 = vpop.permute.xlu0 %1150 }
 0x25f   :  { %v1155_v57 = vsel %vm1154_vm5, %v1147_v40, %v1151_v42  ;;  %v1131_v60 = vsel %vm1130_vm6, %v1123_v31, %v1127_v63  ;;  %v1157_v36 = vsel %vm1154_vm5, %v1151_v42, %v1147_v40  ;;  %v1133_v51 = vsel %vm1130_vm6, %v1127_v63, %v1123_v31  ;;  %v8937_v15 = vpop.permute.xlu2 %1018  ;;  %v5842_v31 = vld [vmem:[%s11754_s5 + $0x4] ss:$8 sm:$0x3] }
 0x260   :  { %v1166_v62 = vmul.f32 %v1162_v2, %v1155_v57  ;;  %v1142_v10 = vmul.f32 %v1138_v1, %v1131_v60  ;;  %v1167_v8 = vmul.f32 %v1163_v19, %v1157_v36  ;;  %v1143_v34 = vmul.f32 %v1139_v44, %v1133_v51 }
 0x261   :  { %v1114_v40 = vperm.slane %v5843_v32, 0  ;;  %v1091_v12 = vperm.slane %v5842_v31, 0  ;;  %v1092_v57 = vperm.slane %v5842_v31, 1 }
 0x263   :  { %v1098_v1 = vmul.f32 %v1092_v57, %v8837_v16 }
 0x266   :  { %v1153_v47 = vpop.permute.xlu1 %1152  ;;  %v8898_v52 = vpop.permute.xlu0 %1068 }
 0x267   :  { %v1156_v50 = vsel %vm1154_vm5, %v1149_v33, %v1153_v47  ;;  %v1158_v39 = vsel %vm1154_vm5, %v1153_v47, %v1149_v33  ;;  %v1107_v33 = vsel %vm304_vm2, %v8880_v30, %v8888_v20  ;;  %v1047_v47 = vpop.permute.xlu2 %1046  ;;  %v5841_v30 = vld [vmem:[%s11754_s5 + $0x3] ss:$8 sm:$0x3] }
 0x268   :  { %v1168_v48 = vmul.f32 %v1162_v2, %v1156_v50  ;;  %v1169_v35 = vmul.f32 %v1163_v19, %v1158_v39  ;;  %v1118_v24 = vmul.f32 %v1114_v40, %v1107_v33  ;;  %v1119_v2 = vmul.f32 %v1115_v0, %v1109_v53  ;;  %v1202_v20 = vld [vmem:[%s11755_s6] sm:$0xff]  ;;  %v5862_v33 = vld [vmem:[%s11749_s0 + $0xa8] sm:$0x1] }
 0x269   :  { %v1097_v50 = vmul.f32 %v1091_v12, %v8811_v23  ;;  %v1095_v23 = vmul.f32 %v1091_v12, %v8803_v56  ;;  %1208 = vperm.xlu1 %7289, %v1202_v20   ;;  %v1080_v16 = vperm.slane %v5841_v30, 0  ;;  %v1081_v60 = vperm.slane %v5841_v30, 1  ;;  %v1196_v30 = vld [vmem:[%s11753_s4 + $0x10] sm:$0xff]  ;;  %v1198_v20 = vld [vmem:[%s11753_s4 + $0x20] sm:$0xff] }
 0x26a   :  { %1239 = vmatpush.msrb.mxu1 %v1168_v48  ;;  %v1199_v48 = vld [vmem:[%s11753_s4 + $0x28] sm:$0xff]  ;;  %v1075_v56 = vsel %vm1072_vm9, %v8898_v52, %v8878_v46  ;;  %v1052_v54 = vsel %vm1048_vm10, %v1047_v47, %v8886_v3 }
 0x26c   :  { %1240 = vmatpush.msrb.mxu1 %v1166_v62 }
 0x26e   :  { %v1177_v4 = vpop.permute.xlu0 %1176  ;;  %1241 = vmatpush.msrb.mxu1 %v1144_v9  ;;  %v8922_v43 = vpop.permute.xlu1 %1044 }
 0x26f   :  { %v1180_v22 = vsel %vm1178_vm7, %v1173_v17, %v1177_v4  ;;  %v1182_v14 = vsel %vm1178_vm7, %v1177_v4, %v1173_v17  ;;  %v1021_v19 = vpop.permute.xlu2 %1020 }
 0x270   :  { %v1192_v26 = vmul.f32 %v1186_v7, %v1180_v22  ;;  %v1193_v38 = vmul.f32 %v1187_v18, %v1182_v14  ;;  %1242 = vmatpush.msrb.mxu1 %v1142_v10  ;;  %v1096_v7 = vmul.f32 %v1092_v57, %v8829_v41  ;;  %v1073_v18 = vsel %vm1072_vm9, %v8878_v46, %v8898_v52  ;;  %v5839_v46 = vld [vmem:[%s11754_s5 + $0x1] ss:$8 sm:$0x3] }
 0x271   :  { %v1057_v10 = vperm.slane %v5840_v49, 1  ;;  %v1050_v41 = vsel %vm1048_vm10, %v8886_v3, %v1047_v47  ;;  %v1084_v22 = vmul.f32 %v1080_v16, %v1075_v56  ;;  %v1085_v14 = vmul.f32 %v1081_v60, %v1073_v18  ;;  %v1205_v3 = vld [vmem:[%s11755_s6 + $0x18] sm:$0xff]  ;;  %v1194_v57 = vld [vmem:[%s11753_s4] sm:$0xff] }
 0x272   :  { %1282 = vmatpush.msrb.mxu2 %v1192_v26  ;;  %1340 = vmatpush.msra.mxu3 %v1193_v38 }
 0x273   :  { %v1063_v38 = vmul.f32 %v1057_v10, %v1050_v41  ;;  %1223 = vperm.xlu1 %7289, %v1205_v3  }
 0x274   :  { %1283 = vmatpush.msrb.mxu2 %v1190_v5  ;;  %1341 = vmatpush.msra.mxu3 %v1191_v29  ;;  %v1201_v5 = vld [vmem:[%s11753_s4 + $0x38] sm:$0xff]  ;;  %v1032_v29 = vperm.slane %v5839_v46, 0 }
 0x275   :  { %5851 = vmatmul.msk.f32.vlgmr.msra.gmra.mxu3 %vm1226_vm8, %v1195_v45  ;;  %5847 = vmatmul.msk.f32.vlgmr.msrb.gmra.mxu2 %vm1226_vm8, %v1195_v45 }
 0x276   :  { %1297 = vmatpush.msra.mxu2 %v1169_v35  ;;  %v8934_v61 = vpop.permute.xlu0 %1040  ;;  %v1071_v28 = vpop.permute.xlu1 %1070  ;;  %v1033_v35 = vperm.slane %v5839_v46, 1  ;;  %5869 = vmatpush.msk.msrb.mxu3 %vm77_vm0, %v5862_v33 }
 0x277   :  { %v1074_v62 = vsel %vm1072_vm9, %v8884_v37, %v1071_v28  ;;  %v1076_v6 = vsel %vm1072_vm9, %v1071_v28, %v8884_v37  ;;  %v1056_v37 = vperm.slane %v5840_v49, 0  ;;  %v1049_v52 = vsel %vm1048_vm10, %v8934_v61, %v8922_v43  ;;  %v5864_v49 = vld [vmem:[%s11749_s0 + $0xb8] sm:$0x1] }
 0x278   :  { %1298 = vmatpush.msra.mxu2 %v1167_v8  ;;  %v1086_v4 = vmul.f32 %v1080_v16, %v1076_v6  ;;  %v1087_v13 = vmul.f32 %v1081_v60, %v1074_v62  ;;  %v1051_v39 = vsel %vm1048_vm10, %v8922_v43, %v8934_v61  ;;  %v1006_v43 = vld [vmem:[%s11754_s5] ss:$8 sm:$0x3]  ;;  %v1061_v44 = vmul.f32 %v1057_v10, %v1049_v52  ;;  %v5856_v62 = vld [vmem:[%s11749_s0 + $0x78] sm:$0xff]  ;;  %v5867_v16 = vld [vmem:[%s11749_s0 + $0xd0] sm:$0x1] }
 0x279   :  { %v1062_v26 = vmul.f32 %v1056_v37, %v1052_v54  ;;  %v1060_v36 = vmul.f32 %v1056_v37, %v1051_v39  ;;  %v1009_v28 = vperm.slane %v1006_v43, 1  ;;  %v5857_v6 = vld [vmem:[%s11749_s0 + $0x80] sm:$0xff]  ;;  %v5868_v60 = vld [vmem:[%s11749_s0 + $0xd8] sm:$0x1] }
 0x27a   :  { %1299 = vmatpush.msra.mxu2 %v1145_v21 }
 0x27c   :  { %1300 = vmatpush.msra.mxu2 %v1143_v34  ;;  %v1008_v34 = vperm.slane %v1006_v43, 0 }
 0x27d   :  { %5852 = vmatmul.msk.f32.gmra.mxu3 %vm1226_vm8, %v1197_v27  ;;  %5848 = vmatmul.msk.f32.gmra.mxu2 %vm1226_vm8, %v1197_v27 }
 0x27e   :  { %v1106_v17 = vpop.permute.xlu0 %1105 }
 0x27f   :  { %v1108_v59 = vsel %vm304_vm2, %v8882_v55, %v1106_v17  ;;  %v1110_v63 = vsel %vm304_vm2, %v1106_v17, %v8882_v55  ;;  %v1017_v55 = vpop.permute.xlu1 %1016 }
 0x280   :  { %v1120_v42 = vmul.f32 %v1114_v40, %v1108_v59  ;;  %v1121_v58 = vmul.f32 %v1115_v0, %v1110_v63  ;;  %v1025_v8 = vsel %vm1024_vm11, %v1017_v55, %v1021_v19  ;;  %v1027_v51 = vsel %vm1024_vm11, %v1021_v19, %v1017_v55  ;;  %v5855_v63 = vld [vmem:[%s11749_s0 + $0x70] sm:$0xff] }
 0x281   :  { %v1036_v17 = vmul.f32 %v1032_v29, %v1027_v51  ;;  %v1037_v31 = vmul.f32 %v1033_v35, %v1025_v8  ;;  %1688 = vmatpush.msrb.mxu3 %v5855_v63  ;;  %v1200_v55 = vld [vmem:[%s11753_s4 + $0x30] sm:$0xff] }
 0x282   :  { %1243 = vmatpush.msrb.mxu1 %v1120_v42  ;;  %1301 = vmatpush.msra.mxu2 %v1121_v58  ;;  %v994_v42 = vpop.permute.xlu2 %993 }
 0x283   :  { %5875 = vmatpush.msk.msra.mxu3 %vm77_vm0, %v5864_v49  ;;  %v1472_v49 = vld [vmem:[%s11756_s7 + $0x68] sm:$0xff] }
 0x284   :  { %1244 = vmatpush.msrb.mxu1 %v1118_v24  ;;  %1302 = vmatpush.msra.mxu2 %v1119_v2 }
 0x285   :  { %5853 = vmatmul.msk.f32.gmra.mxu3 %vm1226_vm8, %v1199_v48  ;;  %5849 = vmatmul.msk.f32.gmra.mxu2 %vm1226_vm8, %v1199_v48  ;;  %v5863_v48 = vld [vmem:[%s11749_s0 + $0xb0] sm:$0x1] }
 0x286   :  { %v996_v9 = vpop.permute.xlu0 %995  ;;  %1245 = vmatpush.msrb.mxu1 %v1097_v50  ;;  %1303 = vmatpush.msra.mxu2 %v1098_v1  ;;  %v9071_v50 = vld [vmem:[%s11750_s1] sm:$0xff]  ;;  %v9078_v1 = vld [vmem:[%s11750_s1 + $0x8] sm:$0xff] }
 0x287   :  { %v1000_v45 = vpop.permute.xlu1 %999  ;;  %1734 = vmatpush.msra.mxu3 %v5857_v6  ;;  %v1471_v6 = vld [vmem:[%s11756_s7 + $0x60] sm:$0xff] }
 0x288   :  { %1246 = vmatpush.msrb.mxu1 %v1095_v23  ;;  %1304 = vmatpush.msra.mxu2 %v1096_v7  ;;  %v1003_v40 = vsel %vm1001_vm12, %v996_v9, %v1000_v45  ;;  %v1005_v0 = vsel %vm1001_vm12, %v1000_v45, %v996_v9  ;;  %v5860_v9 = vld [vmem:[%s11749_s0 + $0x98] sm:$0xff]  ;;  %v5861_v7 = vld [vmem:[%s11749_s0 + $0xa0] sm:$0xff] }
 0x289   :  { %v1014_v53 = vmul.f32 %v1008_v34, %v1005_v0  ;;  %v1015_v59 = vmul.f32 %v1009_v28, %v1003_v40 }
 0x28a   :  { %1247 = vmatpush.msrb.mxu1 %v1086_v4  ;;  %1305 = vmatpush.msra.mxu2 %v1087_v13 }
 0x28c   :  { %1248 = vmatpush.msrb.mxu1 %v1084_v22  ;;  %1306 = vmatpush.msra.mxu2 %v1085_v14 }
 0x28d   :  { %5854 = vmatmul.msk.f32.gmra.mxu3 %vm1226_vm8, %v1201_v5  ;;  %5850 = vmatmul.msk.f32.gmra.mxu2 %vm1226_vm8, %v1201_v5 }
 0x28e   :  { %v1023_v25 = vpop.permute.xlu0 %1022  ;;  %1249 = vmatpush.msrb.mxu1 %v1062_v26  ;;  %1307 = vmatpush.msra.mxu2 %v1063_v38 }
 0x28f   :  { %v1026_v61 = vsel %vm1024_vm11, %v8937_v15, %v1023_v25  ;;  %v1028_v21 = vsel %vm1024_vm11, %v1023_v25, %v8937_v15  ;;  %v1203_v15 = vld [vmem:[%s11755_s6 + $0x8] sm:$0xff] }
 0x290   :  { %v1038_v32 = vmul.f32 %v1032_v29, %v1028_v21  ;;  %v1039_v27 = vmul.f32 %v1033_v35, %v1026_v61  ;;  %1250 = vmatpush.msrb.mxu1 %v1060_v36  ;;  %1308 = vmatpush.msra.mxu2 %v1061_v44 }
 0x291   :  { %1213 = vperm.xlu2 %7290, %v1203_v15  }
 0x292   :  { %1251 = vmatpush.msrb.mxu1 %v1038_v32  ;;  %1309 = vmatpush.msra.mxu2 %v1039_v27 }
 0x294   :  { %1252 = vmatpush.msrb.mxu1 %v1036_v17  ;;  %1310 = vmatpush.msra.mxu2 %v1037_v31 }
 0x295   :  { %5870 = vmatmul.msk.f32.vlgmr.msrb.gmra.mxu3 %vm70_vm1, %v9071_v50 }
 0x296   :  { %v998_v58 = vpop.permute.xlu0 %997  ;;  %1253 = vmatpush.msrb.mxu1 %v1014_v53  ;;  %1311 = vmatpush.msra.mxu2 %v1015_v59 }
 0x297   :  { %v1002_v12 = vsel %vm1001_vm12, %v994_v42, %v998_v58  ;;  %v1004_v24 = vsel %vm1001_vm12, %v998_v58, %v994_v42  ;;  %5887 = vmatpush.msk.msrb.mxu3 %vm77_vm0, %v5868_v60  ;;  %v1486_v60 = vld [vmem:[%s11756_s7 + $0xd8] sm:$0xff] }
 0x298   :  { %v1012_v2 = vmul.f32 %v1008_v34, %v1004_v24  ;;  %v1013_v47 = vmul.f32 %v1009_v28, %v1002_v12 }
 0x299   :  { %1826 = vmatpush.msrb.mxu3 %v5861_v7  ;;  %v1485_v7 = vld [vmem:[%s11756_s7 + $0xd0] sm:$0xff] }
 0x29a   :  { %1254 = vmatpush.msrb.mxu1 %v1012_v2  ;;  %1312 = vmatpush.msra.mxu2 %v1013_v47  ;;  %v1635_v47 = vld [vmem:[%s11751_s2 + $0x8] sm:$0xff] }
 0x29b   :  { %1255 = vmatmul.f32.vlgmr.msrb.gmra.mxu1 %v1194_v57  ;;  %1313 = vmatmul.f32.vlgmr.msra.gmra.mxu2 %v1194_v57  ;;  %v1634_v57 = vld [vmem:[%s11751_s2] sm:$0xff]  ;;  %s5809_s2 = sshll.u32 %s11761_s12, 4  ;;  %s5810_s2 = int_to_ptr.hbm [resolvable:$true] %s5809_s2 }
 0x29c   :  { %5872 = vmatpush.msk.msrb.mxu2 %vm77_vm0, %v5863_v48  ;;  %v1489_v48 = vld [vmem:[%s11756_s7 + $0xf0] sm:$0xff] }
 0x29d   :  { %5871 = vmatmul.msk.f32.gmra.mxu3 %vm70_vm1, %v9078_v1 }
 0x29e   :  { %1711 = vmatpush.msrb.mxu2 %v5856_v62  ;;  %v1219_v45 = vpop.permute.xlu0 %1218  ;;  %v1488_v62 = vld [vmem:[%s11756_s7 + $0xe8] sm:$0xff] }
 0x2a0   :  { %5884 = vmatpush.msk.msra.mxu2 %vm77_vm0, %v5867_v16  ;;  %v1470_v16 = vld [vmem:[%s11756_s7 + $0x58] sm:$0xff] }
 0x2a2   :  { %1803 = vmatpush.msra.mxu2 %v5860_v9  ;;  %v1469_v9 = vld [vmem:[%s11756_s7 + $0x50] sm:$0xff] }
 0x2a3   :  { %1258 = vmatmul.f32.gmra.mxu1 %v1196_v30  ;;  %1316 = vmatmul.f32.gmra.mxu2 %v1196_v30  ;;  %v1474_v30 = vld [vmem:[%s11756_s7 + $0x78] sm:$0xff] }
 0x2a4   :  { %1491 = vmatpush.msrb.mxu0 %v1474_v30 }
 0x2a5   :  { %5876 = vmatmul.msk.f32.vlgmr.msra.gmra.mxu3 %vm70_vm1, %v9071_v50 }
 0x2ab   :  { %1261 = vmatmul.f32.gmra.mxu1 %v1198_v20  ;;  %1319 = vmatmul.f32.gmra.mxu2 %v1198_v20  ;;  %v1490_v20 = vld [vmem:[%s11756_s7 + $0xf8] sm:$0xff] }
 0x2ac   :  { %1520 = vmatpush.msra.mxu1 %v1490_v20 }
 0x2ad   :  { %5877 = vmatmul.msk.f32.gmra.mxu3 %vm70_vm1, %v9078_v1 }
 0x2ae   :  { %1521 = vmatpush.msra.mxu1 %v1489_v48 }
 0x2b0   :  { %1522 = vmatpush.msra.mxu1 %v1488_v62  ;;  %v5858_v62 = vld [vmem:[%s11749_s0 + $0x88] sm:$0xff] }
 0x2b3   :  { %1264 = vmatmul.f32.gmra.mxu1 %v1200_v55  ;;  %1322 = vmatmul.f32.gmra.mxu2 %v1200_v55  ;;  %v1473_v55 = vld [vmem:[%s11756_s7 + $0x70] sm:$0xff] }
 0x2b4   :  { %1492 = vmatpush.msrb.mxu0 %v1473_v55 }
 0x2b5   :  { %5888 = vmatmul.msk.f32.vlgmr.msrb.gmra.mxu3 %vm70_vm1, %v9071_v50 }
 0x2b6   :  { %1493 = vmatpush.msrb.mxu0 %v1472_v49  ;;  %v5866_v49 = vld [vmem:[%s11749_s0 + $0xc8] sm:$0x1] }
 0x2b8   :  { %1494 = vmatpush.msrb.mxu0 %v1471_v6  ;;  %v5859_v6 = vld [vmem:[%s11749_s0 + $0x90] sm:$0xff] }
 0x2ba   :  { %1495 = vmatpush.msrb.mxu0 %v1470_v16 }
 0x2bb   :  { %5873 = vmatmul.msk.f32.vlgmr.msrb.gmra.mxu2 %vm70_vm1, %v9071_v50 }
 0x2bc   :  { %1496 = vmatpush.msrb.mxu0 %v1469_v9 }
 0x2bd   :  { %5889 = vmatmul.msk.f32.gmra.mxu3 %vm70_vm1, %v9078_v1 }
 0x2c3   :  { %5874 = vmatmul.msk.f32.gmra.mxu2 %vm70_vm1, %v9078_v1 }
 0x2cb   :  { %5885 = vmatmul.msk.f32.vlgmr.msra.gmra.mxu2 %vm70_vm1, %v9071_v50 }
 0x2d3   :  { %5886 = vmatmul.msk.f32.gmra.mxu2 %vm70_vm1, %v9078_v1 }
 0x2db   :  { %v1209_v13 = vpop.permute.xlu1 %1208 }
 0x2e5   :  { %v1224_v0 = vpop.permute.xlu1 %1223 }
 0x2eb   :  { %v1214_v46 = vpop.permute.xlu2 %1213 }
 0x2f8   :  { %v1285_v23 = vpop.f32.mrf.mxu2  ;;  %v1343_v4 = vpop.f32.mrf.mxu3 }
 0x300   :  { %v1288_v18 = vpop.f32.mrf.mxu2  ;;  %v1346_v3 = vpop.f32.mrf.mxu3 }
 0x308   :  { %v1291_v56 = vpop.f32.mrf.mxu2  ;;  %v1349_v61 = vpop.f32.mrf.mxu3 }
 0x310   :  { %v1294_v37 = vpop.f32.mrf.mxu2  ;;  %v1352_v59 = vpop.f32.mrf.mxu3 }
 0x318   :  { %v1256_v10 = vpop.f32.mrf.mxu1 }
 0x319   :  { %v1257_v41 = vadd.f32 %v1256_v10, %v1209_v13  ;;  %v1483_v10 = vld [vmem:[%s11756_s7 + $0xc0] sm:$0xff] }
 0x31b   :  { %v9126_v22 = vadd.f32 %v1285_v23, %v1257_v41  ;;  %v1487_v23 = vld [vmem:[%s11756_s7 + $0xe0] sm:$0xff]  ;;  %v1465_v41 = vld [vmem:[%s11756_s7 + $0x30] sm:$0xff] }
 0x31c   :  { %1523 = vmatpush.msra.mxu1 %v1487_v23 }
 0x31d   :  { %v1355_v26 = vmax.f32 %v9126_v22, 0.0 }
 0x31e   :  { %v1314_v54 = vpop.f32.mrf.mxu2  ;;  %1524 = vmatpush.msra.mxu1 %v1486_v60 }
 0x31f   :  { %v1315_v14 = vadd.f32 %v1314_v54, %v1209_v13  ;;  %v1482_v13 = vld [vmem:[%s11756_s7 + $0xb8] sm:$0xff]  ;;  %v1481_v54 = vld [vmem:[%s11756_s7 + $0xb0] sm:$0xff] }
 0x320   :  { %v1259_v52 = vpop.f32.mrf.mxu1  ;;  %1525 = vmatpush.msra.mxu1 %v1485_v7 }
 0x321   :  { %v9128_v39 = vadd.f32 %v1343_v4, %v1315_v14  ;;  %v1260_v19 = vadd.f32 %v1259_v52, %v1214_v46  ;;  %v1466_v4 = vld [vmem:[%s11756_s7 + $0x38] sm:$0xff]  ;;  %v1464_v14 = vld [vmem:[%s11756_s7 + $0x28] sm:$0xff]  ;;  %v1463_v52 = vld [vmem:[%s11756_s7 + $0x20] sm:$0xff] }
 0x323   :  { %v1356_v38 = vmax.f32 %v9128_v39, 0.0  ;;  %v9136_v43 = vadd.f32 %v1288_v18, %v1260_v19  ;;  %v1468_v18 = vld [vmem:[%s11756_s7 + $0x48] sm:$0xff]  ;;  %v1462_v19 = vld [vmem:[%s11756_s7 + $0x18] sm:$0xff] }
 0x324   :  { %1497 = vmatpush.msrb.mxu0 %v1468_v18 }
 0x325   :  { %v7301_v5 = vpack.i.bf16 %v1356_v38, %v1355_v26  ;;  %v1357_v25 = vmax.f32 %v9136_v43, 0.0 }
 0x326   :  { %v1317_v29 = vpop.f32.mrf.mxu2 }
 0x327   :  { %v1318_v36 = vadd.f32 %v1317_v29, %v1214_v46  ;;  %7302 = vrot.lane.b32.xlu1 %v7301_v5, %s7550_s24  ;;  %7297 = vrot.lane.b32.xlu0 %v7301_v5, %s7549_s20  ;;  %v1480_v46 = vld [vmem:[%s11756_s7 + $0xa8] sm:$0xff]  ;;  %v1461_v29 = vld [vmem:[%s11756_s7 + $0x10] sm:$0xff] }
 0x328   :  { %7292 = vrot.lane.b32.xlu2 %v7301_v5, %s7546_s22  ;;  %v1262_v44 = vpop.f32.mrf.mxu1  ;;  %v1478_v5 = vld [vmem:[%s11756_s7 + $0x98] sm:$0xff] }
 0x329   :  { %v9141_v35 = vadd.f32 %v1346_v3, %v1318_v36  ;;  %v1263_v8 = vadd.f32 %v1262_v44, %v1219_v45  ;;  %v1479_v3 = vld [vmem:[%s11756_s7 + $0xa0] sm:$0xff]  ;;  %v1477_v36 = vld [vmem:[%s11756_s7 + $0x90] sm:$0xff]  ;;  %v1460_v44 = vld [vmem:[%s11756_s7 + $0x8] sm:$0xff] }
 0x32b   :  { %v1358_v51 = vmax.f32 %v9141_v35, 0.0  ;;  %v9149_v28 = vadd.f32 %v1291_v56, %v1263_v8  ;;  %v1484_v56 = vld [vmem:[%s11756_s7 + $0xc8] sm:$0xff]  ;;  %v1459_v8 = vld [vmem:[%s11756_s7] sm:$0xff] }
 0x32c   :  { %1526 = vmatpush.msra.mxu1 %v1484_v56  ;;  %v1690_v56 = vpop.f32.mrf.mxu3 }
 0x32d   :  { %v7316_v21 = vpack.i.bf16 %v1358_v51, %v1357_v25  ;;  %v1359_v17 = vmax.f32 %v9149_v28, 0.0 }
 0x32e   :  { %v1320_v34 = vpop.f32.mrf.mxu2  ;;  %1527 = vmatpush.msra.mxu1 %v1483_v10 }
 0x32f   :  { %v1321_v32 = vadd.f32 %v1320_v34, %v1219_v45  ;;  %7317 = vrot.lane.b32.xlu1 %v7316_v21, %s7550_s24  ;;  %7312 = vrot.lane.b32.xlu0 %v7316_v21, %s7549_s20  ;;  %v1476_v45 = vld [vmem:[%s11756_s7 + $0x88] sm:$0xff] }
 0x330   :  { %7307 = vrot.lane.b32.xlu2 %v7316_v21, %s7546_s22  ;;  %v1265_v27 = vpop.f32.mrf.mxu1  ;;  %1528 = vmatpush.msra.mxu1 %v1482_v13 }
 0x331   :  { %v9154_v40 = vadd.f32 %v1349_v61, %v1321_v32  ;;  %v1266_v31 = vadd.f32 %v1265_v27, %v1224_v0  ;;  %v1475_v61 = vld [vmem:[%s11756_s7 + $0x80] sm:$0xff] }
 0x332   :  { %1529 = vmatpush.msra.mxu1 %v1481_v54  ;;  %v5865_v27 = vld [vmem:[%s11749_s0 + $0xc0] sm:$0x1] }
 0x333   :  { %v1360_v15 = vmax.f32 %v9154_v40, 0.0  ;;  %v9162_v63 = vadd.f32 %v1294_v37, %v1266_v31  ;;  %v1467_v37 = vld [vmem:[%s11756_s7 + $0x40] sm:$0xff] }
 0x334   :  { %1498 = vmatpush.msrb.mxu0 %v1467_v37  ;;  %1530 = vmatpush.msra.mxu1 %v1480_v46 }
 0x335   :  { %v7331_v33 = vpack.i.bf16 %v1360_v15, %v1359_v17  ;;  %v1361_v12 = vmax.f32 %v9162_v63, 0.0 }
 0x336   :  { %v1323_v53 = vpop.f32.mrf.mxu2  ;;  %1499 = vmatpush.msrb.mxu0 %v1466_v4  ;;  %1531 = vmatpush.msra.mxu1 %v1479_v3 }
 0x337   :  { %v1324_v42 = vadd.f32 %v1323_v53, %v1224_v0  ;;  %7332 = vrot.lane.b32.xlu1 %v7331_v33, %s7550_s24  ;;  %7327 = vrot.lane.b32.xlu0 %v7331_v33, %s7549_s20 }
 0x338   :  { %7322 = vrot.lane.b32.xlu2 %v7331_v33, %s7546_s22  ;;  %1500 = vmatpush.msrb.mxu0 %v1465_v41 }
 0x339   :  { %v9167_v58 = vadd.f32 %v1352_v59, %v1324_v42  ;;  %1532 = vmatpush.msra.mxu1 %v1478_v5 }
 0x33a   :  { %1501 = vmatpush.msrb.mxu0 %v1464_v14 }
 0x33b   :  { %v1362_v24 = vmax.f32 %v9167_v58, 0.0  ;;  %1533 = vmatpush.msra.mxu1 %v1477_v36 }
 0x33c   :  { %1502 = vmatpush.msrb.mxu0 %v1463_v52 }
 0x33d   :  { %v7346_v2 = vpack.i.bf16 %v1362_v24, %v1361_v12  ;;  %1534 = vmatpush.msra.mxu1 %v1476_v45 }
 0x33e   :  { %1503 = vmatpush.msrb.mxu0 %v1462_v19  ;;  %v1713_v41 = vpop.f32.mrf.mxu2 }
 0x33f   :  { %7347 = vrot.lane.b32.xlu1 %v7346_v2, %s7550_s24  ;;  %7342 = vrot.lane.b32.xlu0 %v7346_v2, %s7549_s20 }
 0x340   :  { %7337 = vrot.lane.b32.xlu2 %v7346_v2, %s7546_s22  ;;  %1504 = vmatpush.msrb.mxu0 %v1461_v29 }
 0x341   :  { %1535 = vmatpush.msra.mxu1 %v1475_v61 }
 0x342   :  { %1505 = vmatpush.msrb.mxu0 %v1460_v44 }
 0x343   :  { %5881 = vmatpush.msk.msrb.mxu1 %vm77_vm0, %v5866_v49 }
 0x344   :  { %1506 = vmatpush.msrb.mxu0 %v1459_v8 }
 0x345   :  { %1780 = vmatpush.msrb.mxu1 %v5859_v6 }
 0x346   :  { %5878 = vmatpush.msk.msra.mxu0 %vm77_vm0, %v5865_v27 }
 0x347   :  { %1643 = vperm.xlu0 %7198, %v1635_v47  }
 0x348   :  { %1638 = vperm.xlu2 %7290, %v1634_v57   ;;  %1757 = vmatpush.msra.mxu0 %v5858_v62 }
 0x382   :  { %v7293_v21 = vpop.permute.xlu2 %7292 }
 0x383   :  { %v7295_v0 = vunpack.i.h.bf16 %v7293_v21  ;;  %v7294_v31 = vunpack.i.l.bf16 %v7293_v21 }
 0x385   :  { %v1379_v33 = vsel %vm304_vm2, %v7294_v31, %v7295_v0  ;;  %v1383_v53 = vsel %vm304_vm2, %v7295_v0, %v7294_v31 }
 0x386   :  { %v1387_v55 = vmax.f32 %v1355_v26, %v1379_v33  ;;  %v1388_v48 = vmax.f32 %v1356_v38, %v1383_v53 }
 0x38a   :  { %v7308_v34 = vpop.permute.xlu2 %7307 }
 0x38b   :  { %v7310_v23 = vunpack.i.h.bf16 %v7308_v34  ;;  %v7309_v16 = vunpack.i.l.bf16 %v7308_v34 }
 0x38d   :  { %v1380_v37 = vsel %vm304_vm2, %v7309_v16, %v7310_v23  ;;  %v1384_v10 = vsel %vm304_vm2, %v7310_v23, %v7309_v16 }
 0x38e   :  { %v1389_v29 = vmax.f32 %v1357_v25, %v1380_v37  ;;  %v1390_v36 = vmax.f32 %v1358_v51, %v1384_v10 }
 0x392   :  { %v9280_v32 = vpop.permute.xlu2 %7322 }
 0x393   :  { %v7325_v44 = vunpack.i.h.bf16 %v9280_v32  ;;  %v7324_v45 = vunpack.i.l.bf16 %v9280_v32 }
 0x395   :  { %v1381_v0 = vsel %vm304_vm2, %v7324_v45, %v7325_v44  ;;  %v1385_v31 = vsel %vm304_vm2, %v7325_v44, %v7324_v45  ;;  %v2046_v45 = vld [vmem:[%s11752_s3 + $0xf0] sm:$0xff] }
 0x399   :  { %v7303_v59 = vpop.permute.xlu1 %7302  ;;  %v7298_v42 = vpop.permute.xlu0 %7297 }
 0x39a   :  { %v7305_v2 = vunpack.i.h.bf16 %v7303_v59  ;;  %v7304_v47 = vunpack.i.l.bf16 %v7303_v59  ;;  %v7300_v57 = vunpack.i.h.bf16 %v7298_v42  ;;  %v7299_v30 = vunpack.i.l.bf16 %v7298_v42  ;;  %v9290_v20 = vpop.permute.xlu2 %7337 }
 0x39b   :  { %v7339_v49 = vunpack.i.l.bf16 %v9290_v20 }
 0x39c   :  { %v1411_v22 = vsel %vm1154_vm5, %v7299_v30, %v7300_v57  ;;  %v1415_v39 = vsel %vm1154_vm5, %v7300_v57, %v7299_v30  ;;  %v1443_v60 = vsel %vm1178_vm7, %v7304_v47, %v7305_v2  ;;  %v1447_v9 = vsel %vm1178_vm7, %v7305_v2, %v7304_v47 }
 0x39d   :  { %v1419_v26 = vmax.f32 %v1387_v55, %v1411_v22  ;;  %v1420_v38 = vmax.f32 %v1388_v48, %v1415_v39  ;;  %v1391_v30 = vmax.f32 %v1359_v17, %v1381_v0  ;;  %v1392_v55 = vmax.f32 %v1360_v15, %v1385_v31  ;;  %v2024_v0 = vld [vmem:[%s11752_s3 + $0x40] sm:$0xff]  ;;  %v2022_v31 = vld [vmem:[%s11752_s3 + $0x30] sm:$0xff] }
 0x39e   :  { %v7340_v48 = vunpack.i.h.bf16 %v9290_v20 }
 0x39f   :  { %v1451_v7 = vmax.f32 %v1419_v26, %v1443_v60  ;;  %v1452_v18 = vmax.f32 %v1420_v38, %v1447_v9 }
 0x3a0   :  { %v1382_v15 = vsel %vm304_vm2, %v7339_v49, %v7340_v48  ;;  %v1386_v20 = vsel %vm304_vm2, %v7340_v48, %v7339_v49 }
 0x3a1   :  { %v7318_v4 = vpop.permute.xlu1 %7317  ;;  %v7313_v13 = vpop.permute.xlu0 %7312  ;;  %1507 = vmatmul.f32.vlgmr.msrb.gmra.mxu0 %v1451_v7  ;;  %1536 = vmatmul.f32.vlgmr.msra.gmra.mxu1 %v1452_v18  ;;  %v1393_v18 = vmax.f32 %v1361_v12, %v1382_v15 }
 0x3a2   :  { %v7320_v54 = vunpack.i.h.bf16 %v7318_v4  ;;  %v7319_v14 = vunpack.i.l.bf16 %v7318_v4  ;;  %v7315_v46 = vunpack.i.h.bf16 %v7313_v13  ;;  %v7314_v52 = vunpack.i.l.bf16 %v7313_v13  ;;  %v9318_v3 = vpop.permute.xlu2 %1638  ;;  %v1693_v12 = vpop.f32.mrf.mxu3  ;;  %2240 = vmatpush.msrb.mxu0 %v2046_v45 }
 0x3a3   :  { %v9321_v19 = vadd.f32 %v1690_v56, %v9318_v3  ;;  %v9324_v5 = vadd.f32 %v1713_v41, %v9318_v3  ;;  %v1394_v56 = vmax.f32 %v1362_v24, %v1386_v20 }
 0x3a4   :  { %v1412_v8 = vsel %vm1154_vm5, %v7314_v52, %v7315_v46  ;;  %v1416_v61 = vsel %vm1154_vm5, %v7315_v46, %v7314_v52  ;;  %v1444_v35 = vsel %vm1178_vm7, %v7319_v14, %v7320_v54  ;;  %v1448_v25 = vsel %vm1178_vm7, %v7320_v54, %v7319_v14  ;;  %v1716_v46 = vpop.f32.mrf.mxu2 }
 0x3a5   :  { %v1834_v21 = vmax.f32 %v9321_v19, 0.0  ;;  %v1835_v34 = vmax.f32 %v9324_v5, 0.0  ;;  %v1421_v27 = vmax.f32 %v1389_v29, %v1412_v8  ;;  %v1422_v43 = vmax.f32 %v1390_v36, %v1416_v61  ;;  %v2044_v8 = vld [vmem:[%s11752_s3 + $0xe0] sm:$0xff]  ;;  %v2042_v61 = vld [vmem:[%s11752_s3 + $0xd0] sm:$0xff] }
 0x3a6   :  { %2241 = vmatpush.msrb.mxu0 %v2044_v8 }
 0x3a7   :  { %v7361_v51 = vpack.i.bf16 %v1835_v34, %v1834_v21  ;;  %v1453_v32 = vmax.f32 %v1421_v27, %v1444_v35  ;;  %v1454_v33 = vmax.f32 %v1422_v43, %v1448_v25  ;;  %v2036_v27 = vld [vmem:[%s11752_s3 + $0xa0] sm:$0xff]  ;;  %v2034_v43 = vld [vmem:[%s11752_s3 + $0x90] sm:$0xff] }
 0x3a8   :  { %2242 = vmatpush.msrb.mxu0 %v2042_v61  ;;  %v2032_v35 = vld [vmem:[%s11752_s3 + $0x80] sm:$0xff]  ;;  %v2030_v25 = vld [vmem:[%s11752_s3 + $0x70] sm:$0xff] }
 0x3a9   :  { %7362 = vrot.lane.b32.xlu2 %v7361_v51, %s7545_s21  ;;  %7357 = vrot.lane.b32.xlu0 %v7361_v51, %s7547_s23  ;;  %v7333_v53 = vpop.permute.xlu1 %7332  ;;  %v7328_v59 = vpop.permute.xlu0 %7327 }
 0x3aa   :  { %7352 = vrot.lane.b32.xlu1 %v7361_v51, %s7546_s22  ;;  %v7335_v42 = vunpack.i.h.bf16 %v7333_v53  ;;  %v7334_v2 = vunpack.i.l.bf16 %v7333_v53  ;;  %v7330_v47 = vunpack.i.h.bf16 %v7328_v59  ;;  %v7329_v57 = vunpack.i.l.bf16 %v7328_v59  ;;  %1510 = vmatmul.f32.gmra.mxu0 %v1453_v32  ;;  %v2028_v51 = vld [vmem:[%s11752_s3 + $0x60] sm:$0xff]  ;;  %v2026_v32 = vld [vmem:[%s11752_s3 + $0x50] sm:$0xff] }
 0x3ab   :  { %1539 = vmatmul.f32.gmra.mxu1 %v1454_v33  ;;  %v2020_v33 = vld [vmem:[%s11752_s3 + $0x20] sm:$0xff]  ;;  %v2018_v53 = vld [vmem:[%s11752_s3 + $0x10] sm:$0xff] }
 0x3ac   :  { %v1413_v62 = vsel %vm1154_vm5, %v7329_v57, %v7330_v47  ;;  %v1417_v6 = vsel %vm1154_vm5, %v7330_v47, %v7329_v57  ;;  %v1445_v22 = vsel %vm1178_vm7, %v7334_v2, %v7335_v42  ;;  %v1449_v28 = vsel %vm1178_vm7, %v7335_v42, %v7334_v2  ;;  %v2016_v59 = vld [vmem:[%s11752_s3] sm:$0xff] }
 0x3ad   :  { %v1423_v23 = vmax.f32 %v1391_v30, %v1413_v62  ;;  %v1424_v16 = vmax.f32 %v1392_v55, %v1417_v6 }
 0x3af   :  { %v1455_v40 = vmax.f32 %v1423_v23, %v1445_v22  ;;  %v1456_v17 = vmax.f32 %v1424_v16, %v1449_v28 }
 0x3b1   :  { %v7348_v39 = vpop.permute.xlu1 %7347  ;;  %v7343_v26 = vpop.permute.xlu0 %7342 }
 0x3b2   :  { %v7350_v38 = vunpack.i.h.bf16 %v7348_v39  ;;  %v7349_v60 = vunpack.i.l.bf16 %v7348_v39  ;;  %v7345_v9 = vunpack.i.h.bf16 %v7343_v26  ;;  %v7344_v7 = vunpack.i.l.bf16 %v7343_v26  ;;  %1513 = vmatmul.f32.gmra.mxu0 %v1455_v40 }
 0x3b3   :  { %1542 = vmatmul.f32.gmra.mxu1 %v1456_v17 }
 0x3b4   :  { %v1414_v37 = vsel %vm1154_vm5, %v7344_v7, %v7345_v9  ;;  %v1418_v10 = vsel %vm1154_vm5, %v7345_v9, %v7344_v7  ;;  %v1446_v41 = vsel %vm1178_vm7, %v7349_v60, %v7350_v38  ;;  %v1450_v54 = vsel %vm1178_vm7, %v7350_v38, %v7349_v60 }
 0x3b5   :  { %v1425_v4 = vmax.f32 %v1393_v18, %v1414_v37  ;;  %v1426_v13 = vmax.f32 %v1394_v56, %v1418_v10 }
 0x3b7   :  { %v1457_v14 = vmax.f32 %v1425_v4, %v1446_v41  ;;  %v1458_v63 = vmax.f32 %v1426_v13, %v1450_v54  ;;  %v1736_v41 = vpop.f32.mrf.mxu3 }
 0x3b9   :  { %v9383_v58 = vpop.permute.xlu0 %1643 }
 0x3ba   :  { %1516 = vmatmul.f32.gmra.mxu0 %v1457_v14  ;;  %v9386_v24 = vadd.f32 %v1693_v12, %v9383_v58  ;;  %v9389_v52 = vadd.f32 %v1716_v46, %v9383_v58 }
 0x3bb   :  { %1545 = vmatmul.f32.gmra.mxu1 %v1458_v63 }
 0x3bc   :  { %v1841_v29 = vmax.f32 %v9386_v24, 0.0  ;;  %v1842_v36 = vmax.f32 %v9389_v52, 0.0  ;;  %v2105_v52 = vld [vmem:[%s11752_s3 + $0x2c8] sm:$0xff] }
 0x3be   :  { %v7376_v44 = vpack.i.bf16 %v1842_v36, %v1841_v29 }
 0x3c0   :  { %7377 = vrot.lane.b32.xlu2 %v7376_v44, %s7545_s21  ;;  %7372 = vrot.lane.b32.xlu0 %v7376_v44, %s7547_s23 }
 0x3c1   :  { %7367 = vrot.lane.b32.xlu1 %v7376_v44, %s7546_s22 }
 0x3c2   :  { %5879 = vmatmul.msk.f32.vlgmr.msra.gmra.mxu0 %vm70_vm1, %v9071_v50 }
 0x3c3   :  { %5882 = vmatmul.msk.f32.vlgmr.msrb.gmra.mxu1 %vm70_vm1, %v9071_v50  ;;  %v2040_v50 = vld [vmem:[%s11752_s3 + $0xc0] sm:$0xff] }
 0x3c4   :  { %2243 = vmatpush.msrb.mxu0 %v2040_v50 }
 0x3ca   :  { %5880 = vmatmul.msk.f32.gmra.mxu0 %vm70_vm1, %v9078_v1 }
 0x3cb   :  { %5883 = vmatmul.msk.f32.gmra.mxu1 %vm70_vm1, %v9078_v1  ;;  %v2038_v1 = vld [vmem:[%s11752_s3 + $0xb0] sm:$0xff] }
 0x3cc   :  { %2244 = vmatpush.msrb.mxu0 %v2038_v1 }
 0x3ce   :  { %2245 = vmatpush.msrb.mxu0 %v2036_v27 }
 0x3d0   :  { %2246 = vmatpush.msrb.mxu0 %v2034_v43 }
 0x3d2   :  { %2247 = vmatpush.msrb.mxu0 %v2032_v35 }
 0x3d4   :  { %2248 = vmatpush.msrb.mxu0 %v2030_v25 }
 0x3d6   :  { %2249 = vmatpush.msrb.mxu0 %v2028_v51 }
 0x3d8   :  { %2250 = vmatpush.msrb.mxu0 %v2026_v32 }
 0x3da   :  { %2251 = vmatpush.msrb.mxu0 %v2024_v0 }
 0x3dc   :  { %2252 = vmatpush.msrb.mxu0 %v2022_v31 }
 0x3de   :  { %2253 = vmatpush.msrb.mxu0 %v2020_v33 }
 0x3e0   :  { %2254 = vmatpush.msrb.mxu0 %v2018_v53 }
 0x3e2   :  { %2255 = vmatpush.msrb.mxu0 %v2016_v59 }
 0x403   :  { %v9458_v2 = vpop.permute.xlu2 %7362 }
 0x404   :  { %v7365_v6 = vunpack.i.h.bf16 %v9458_v2  ;;  %v7364_v23 = vunpack.i.l.bf16 %v9458_v2  ;;  %v2207_v2 = vld [vmem:[%s11752_s3 + $0x5f8] sm:$0xff] }
 0x406   :  { %v1998_v15 = vsel %vm418_vm3, %v7364_v23, %v7365_v6 }
 0x41a   :  { %v9493_v14 = vpop.permute.xlu2 %7377 }
 0x41b   :  { %v9456_v42 = vpop.permute.xlu0 %7357  ;;  %v7380_v8 = vunpack.i.h.bf16 %v9493_v14  ;;  %v11764_v61 = vunpack.i.l.bf16 %v9493_v14 }
 0x41c   :  { %v9460_v47 = vpop.permute.xlu1 %7352  ;;  %v7360_v57 = vunpack.i.h.bf16 %v9456_v42  ;;  %v7359_v30 = vunpack.i.l.bf16 %v9456_v42 }
 0x41d   :  { %v7355_v55 = vunpack.i.h.bf16 %v9460_v47  ;;  %v7354_v48 = vunpack.i.l.bf16 %v9460_v47  ;;  %v1999_v24 = vsel %vm418_vm3, %v11764_v61, %v7380_v8  ;;  %v2097_v61 = vld [vmem:[%s11752_s3 + $0x288] sm:$0xff] }
 0x41e   :  { %v1508_v49 = vpop.f32.mrf.mxu0  ;;  %v1537_v62 = vpop.f32.mrf.mxu1  ;;  %v1942_v40 = vsel %vm361_vm4, %v7359_v30, %v7360_v57 }
 0x41f   :  { %v1886_v16 = vsel %vm304_vm2, %v7354_v48, %v7355_v55  ;;  %v1538_v22 = vadd.f32 %v1537_v62, %v1508_v49  ;;  %v1739_v49 = vpop.f32.mrf.mxu3 }
 0x420   :  { %v1890_v28 = vmax.f32 %v1834_v21, %v1886_v16 }
 0x421   :  { %1549 = vst [vmem:[#allocation2] sm:$0xff] %v1538_v22  ;;  %v9527_v22 = vadd.f32 %v1736_v41, %v9318_v3  ;;  %v2078_v41 = vld [vmem:[%s11752_s3 + $0x1f0] sm:$0xff] }
 0x422   :  { %v1946_v17 = vmax.f32 %v1890_v28, %v1942_v40  ;;  %2263 = vmatpush.msra.mxu1 %v2078_v41  ;;  %v2134_v41 = vld [vmem:[%s11752_s3 + $0x3b0] sm:$0xff] }
 0x424   :  { %v9488_v20 = vmax.f32 %v1946_v17, %v1998_v15 }
 0x426   :  { %2256 = vmatmul.f32.vlgmr.msrb.gmra.mxu0 %v9488_v20 }
 0x427   :  { %v1511_v19 = vpop.f32.mrf.mxu0 }
 0x428   :  { %v1553_v21 = vld [vmem:[#allocation2] sm:$0x1]  ;;  %v1555_v39 = vld [vmem:[#allocation2 + $0x1] sm:$0x1]  ;;  %v1557_v26 = vld [vmem:[#allocation2 + $0x2] sm:$0x1]  ;;  %v1540_v38 = vpop.f32.mrf.mxu1 }
 0x429   :  { %1554 = vst [vmem:[#allocation3] sm:$0x1] %v1553_v21  ;;  %v1559_v60 = vld [vmem:[#allocation2 + $0x3] sm:$0x1]  ;;  %v1561_v9 = vld [vmem:[#allocation2 + $0x4] sm:$0x1]  ;;  %v1541_v37 = vadd.f32 %v1540_v38, %v1511_v19 }
 0x42a   :  { %1556 = vst [vmem:[#allocation3 + $0x2] sm:$0x1] %v1555_v39  ;;  %v1563_v7 = vld [vmem:[#allocation2 + $0x5] sm:$0x1]  ;;  %v1565_v18 = vld [vmem:[#allocation2 + $0x6] sm:$0x1] }
 0x42b   :  { %1558 = vst [vmem:[#allocation3 + $0x4] sm:$0x1] %v1557_v26  ;;  %v1567_v56 = vld [vmem:[#allocation2 + $0x7] sm:$0x1]  ;;  %v1836_v38 = vmax.f32 %v9527_v22, 0.0 }
 0x42c   :  { %1560 = vst [vmem:[#allocation3 + $0x6] sm:$0x1] %v1559_v60 }
 0x42d   :  { %1562 = vst [vmem:[#allocation3 + $0x8] sm:$0x1] %v1561_v9 }
 0x42e   :  { %1564 = vst [vmem:[#allocation3 + $0xa] sm:$0x1] %v1563_v7 }
 0x42f   :  { %1566 = vst [vmem:[#allocation3 + $0xc] sm:$0x1] %v1565_v18  ;;  %v1514_v10 = vpop.f32.mrf.mxu0 }
 0x430   :  { %1568 = vst [vmem:[#allocation3 + $0xe] sm:$0x1] %v1567_v56  ;;  %v1543_v4 = vpop.f32.mrf.mxu1 }
 0x431   :  { %1550 = vst [vmem:[#allocation2 + $0x8] sm:$0xff] %v1541_v37  ;;  %v1544_v13 = vadd.f32 %v1543_v4, %v1514_v10  ;;  %v9544_v10 = vadd.f32 %v1739_v49, %v9383_v58  ;;  %v1805_v4 = vpop.f32.mrf.mxu2 }
 0x432   :  { %v9491_v54 = vpop.permute.xlu0 %7372 }
 0x433   :  { %1551 = vst [vmem:[#allocation2 + $0x10] sm:$0xff] %v1544_v13  ;;  %v9495_v63 = vpop.permute.xlu1 %7367  ;;  %v7375_v12 = vunpack.i.h.bf16 %v9491_v54  ;;  %v11766_v46 = vunpack.i.l.bf16 %v9491_v54  ;;  %v1828_v13 = vpop.f32.mrf.mxu3 }
 0x434   :  { %v7370_v44 = vunpack.i.h.bf16 %v9495_v63  ;;  %v7369_v45 = vunpack.i.l.bf16 %v9495_v63  ;;  %v2157_v63 = vld [vmem:[%s11752_s3 + $0x468] sm:$0xff] }
 0x435   :  { %v1943_v32 = vsel %vm361_vm4, %v11766_v46, %v7375_v12 }
 0x436   :  { %v1887_v50 = vsel %vm304_vm2, %v7369_v45, %v7370_v44 }
 0x437   :  { %v1517_v1 = vpop.f32.mrf.mxu0  ;;  %v1897_v27 = vmax.f32 %v1841_v29, %v1887_v50  ;;  %v2076_v50 = vld [vmem:[%s11752_s3 + $0x1e0] sm:$0xff] }
 0x438   :  { %v1569_v43 = vld [vmem:[#allocation2 + $0x8] sm:$0x1]  ;;  %v1571_v35 = vld [vmem:[#allocation2 + $0x9] sm:$0x1]  ;;  %v1573_v25 = vld [vmem:[#allocation2 + $0xa] sm:$0x1]  ;;  %v1546_v51 = vpop.f32.mrf.mxu1  ;;  %2264 = vmatpush.msra.mxu1 %v2076_v50 }
 0x439   :  { %1570 = vst [vmem:[#allocation3 + $0x10] sm:$0x1] %v1569_v43  ;;  %v1575_v0 = vld [vmem:[#allocation2 + $0xb] sm:$0x1]  ;;  %v1953_v31 = vmax.f32 %v1897_v27, %v1943_v32  ;;  %v1577_v33 = vld [vmem:[#allocation2 + $0xc] sm:$0x1]  ;;  %v1547_v37 = vadd.f32 %v1546_v51, %v1517_v1 }
 0x43a   :  { %1572 = vst [vmem:[#allocation3 + $0x12] sm:$0x1] %v1571_v35  ;;  %v1579_v29 = vld [vmem:[#allocation2 + $0xd] sm:$0x1]  ;;  %v1581_v59 = vld [vmem:[#allocation2 + $0xe] sm:$0x1] }
 0x43b   :  { %1574 = vst [vmem:[#allocation3 + $0x14] sm:$0x1] %v1573_v25  ;;  %v9523_v53 = vmax.f32 %v1953_v31, %v1999_v24  ;;  %v1583_v62 = vld [vmem:[#allocation2 + $0xf] sm:$0x1]  ;;  %v1585_v16 = vld [vmem:[#allocation2 + $0x10] sm:$0x1] }
 0x43c   :  { %1576 = vst [vmem:[#allocation3 + $0x16] sm:$0x1] %v1575_v0  ;;  %v1587_v28 = vld [vmem:[#allocation2 + $0x11] sm:$0x1]  ;;  %v1589_v17 = vld [vmem:[#allocation2 + $0x12] sm:$0x1]  ;;  %v9565_v0 = vadd.f32 %v1805_v4, %v9318_v3 }
 0x43d   :  { %1578 = vst [vmem:[#allocation3 + $0x18] sm:$0x1] %v1577_v33  ;;  %2259 = vmatmul.f32.gmra.mxu0 %v9523_v53  ;;  %v1591_v21 = vld [vmem:[#allocation2 + $0x13] sm:$0x1]  ;;  %v1593_v39 = vld [vmem:[#allocation2 + $0x14] sm:$0x1] }
 0x43e   :  { %1580 = vst [vmem:[#allocation3 + $0x1a] sm:$0x1] %v1579_v29  ;;  %v1595_v60 = vld [vmem:[#allocation2 + $0x15] sm:$0x1]  ;;  %v1597_v9 = vld [vmem:[#allocation2 + $0x16] sm:$0x1] }
 0x43f   :  { %1582 = vst [vmem:[#allocation3 + $0x1c] sm:$0x1] %v1581_v59  ;;  %v1759_v40 = vpop.f32.mrf.mxu0  ;;  %v1599_v56 = vld [vmem:[#allocation2 + $0x17] sm:$0x1]  ;;  %v2074_v35 = vld [vmem:[%s11752_s3 + $0x1d0] sm:$0xff]  ;;  %v1843_v32 = vmax.f32 %v9544_v10, 0.0  ;;  %v9580_v59 = vadd.f32 %v1828_v13, %v9318_v3 }
 0x440   :  { %1584 = vst [vmem:[#allocation3 + $0x1e] sm:$0x1] %v1583_v62  ;;  %v9530_v15 = vadd.f32 %v1759_v40, %v9318_v3  ;;  %v1782_v19 = vpop.f32.mrf.mxu1  ;;  %v2110_v25 = vld [vmem:[%s11752_s3 + $0x2f0] sm:$0xff]  ;;  %v2108_v31 = vld [vmem:[%s11752_s3 + $0x2e0] sm:$0xff]  ;;  %2265 = vmatpush.msra.mxu1 %v2074_v35  ;;  %v2095_v10 = vld [vmem:[%s11752_s3 + $0x278] sm:$0xff] }
 0x441   :  { %1586 = vst [vmem:[#allocation3 + $0x20] sm:$0x1] %v1585_v16  ;;  %v9535_v7 = vadd.f32 %v1782_v19, %v9318_v3  ;;  %v2142_v51 = vld [vmem:[%s11752_s3 + $0x3f0] sm:$0xff]  ;;  %2286 = vmatpush.msrb.mxu2 %v2110_v25  ;;  %v2140_v33 = vld [vmem:[%s11752_s3 + $0x3e0] sm:$0xff] }
 0x442   :  { %1588 = vst [vmem:[#allocation3 + $0x22] sm:$0x1] %v1587_v28  ;;  %v1837_v26 = vmax.f32 %v9530_v15, 0.0  ;;  %2309 = vmatpush.msra.mxu3 %v2142_v51  ;;  %v2072_v62 = vld [vmem:[%s11752_s3 + $0x1c0] sm:$0xff]  ;;  %v2106_v16 = vld [vmem:[%s11752_s3 + $0x2d0] sm:$0xff]  ;;  %v1839_v28 = vmax.f32 %v9565_v0, 0.0 }
 0x443   :  { %1590 = vst [vmem:[#allocation3 + $0x24] sm:$0x1] %v1589_v17  ;;  %v1838_v1 = vmax.f32 %v9535_v7, 0.0  ;;  %2287 = vmatpush.msrb.mxu2 %v2108_v31  ;;  %v2138_v3 = vld [vmem:[%s11752_s3 + $0x3d0] sm:$0xff]  ;;  %2266 = vmatpush.msra.mxu1 %v2072_v62  ;;  %v2064_v51 = vld [vmem:[%s11752_s3 + $0x180] sm:$0xff] }
 0x444   :  { %1592 = vst [vmem:[#allocation3 + $0x26] sm:$0x1] %v1591_v21  ;;  %v7391_v18 = vpack.i.bf16 %v1837_v26, %v1836_v38  ;;  %2310 = vmatpush.msra.mxu3 %v2140_v33  ;;  %v2070_v40 = vld [vmem:[%s11752_s3 + $0x1b0] sm:$0xff]  ;;  %v1840_v21 = vmax.f32 %v9580_v59, 0.0  ;;  %v2132_v62 = vld [vmem:[%s11752_s3 + $0x3a0] sm:$0xff] }
 0x445   :  { %1594 = vst [vmem:[#allocation3 + $0x28] sm:$0x1] %v1593_v39  ;;  %v7411_v49 = vpack.i.bf16 %v1843_v32, %v1838_v1  ;;  %v2068_v39 = vld [vmem:[%s11752_s3 + $0x1a0] sm:$0xff]  ;;  %2288 = vmatpush.msrb.mxu2 %v2106_v16  ;;  %2267 = vmatpush.msra.mxu1 %v2070_v40  ;;  %v2102_v13 = vld [vmem:[%s11752_s3 + $0x2b0] sm:$0xff] }
 0x446   :  { %1596 = vst [vmem:[#allocation3 + $0x2a] sm:$0x1] %v1595_v60  ;;  %7392 = vrot.lane.b32.xlu0 %v7391_v18, %s7545_s21  ;;  %7387 = vrot.lane.b32.xlu1 %v7391_v18, %s7547_s23  ;;  %v2104_v60 = vld [vmem:[%s11752_s3 + $0x2c0] sm:$0xff]  ;;  %v7401_v33 = vpack.i.bf16 %v1840_v21, %v1839_v28  ;;  %v2062_v16 = vld [vmem:[%s11752_s3 + $0x170] sm:$0xff] }
 0x447   :  { %1598 = vst [vmem:[#allocation3 + $0x2c] sm:$0x1] %v1597_v9  ;;  %7382 = vrot.lane.b32.xlu2 %v7391_v18, %s7546_s22  ;;  %v1762_v27 = vpop.f32.mrf.mxu0  ;;  %v2136_v9 = vld [vmem:[%s11752_s3 + $0x3c0] sm:$0xff]  ;;  %2311 = vmatpush.msra.mxu3 %v2138_v3  ;;  %v2174_v3 = vld [vmem:[%s11752_s3 + $0x4f0] sm:$0xff] }
 0x448   :  { %1600 = vst [vmem:[#allocation3 + $0x2e] sm:$0x1] %v1599_v56  ;;  %v1785_v43 = vpop.f32.mrf.mxu1  ;;  %v9574_v24 = vadd.f32 %v1762_v27, %v9383_v58  ;;  %v2066_v27 = vld [vmem:[%s11752_s3 + $0x190] sm:$0xff]  ;;  %2289 = vmatpush.msrb.mxu2 %v2104_v60  ;;  %2268 = vmatpush.msra.mxu1 %v2068_v39  ;;  %v2060_v60 = vld [vmem:[%s11752_s3 + $0x160] sm:$0xff] }
 0x449   :  { %1552 = vst [vmem:[#allocation2 + $0x18] sm:$0xff] %v1547_v37  ;;  %v9577_v29 = vadd.f32 %v1785_v43, %v9383_v58  ;;  %2312 = vmatpush.msra.mxu3 %v2136_v9  ;;  %v2098_v40 = vld [vmem:[%s11752_s3 + $0x290] sm:$0xff]  ;;  %v2172_v9 = vld [vmem:[%s11752_s3 + $0x4e0] sm:$0xff]  ;;  %2332 = vmatpush.msra.mxu0 %v2174_v3 }
 0x44a   :  { %v1844_v17 = vmax.f32 %v9574_v24, 0.0  ;;  %2290 = vmatpush.msrb.mxu2 %v2102_v13  ;;  %2269 = vmatpush.msra.mxu1 %v2066_v27  ;;  %v2130_v39 = vld [vmem:[%s11752_s3 + $0x390] sm:$0xff]  ;;  %v2056_v27 = vld [vmem:[%s11752_s3 + $0x140] sm:$0xff] }
 0x44b   :  { %v1845_v19 = vmax.f32 %v9577_v29, 0.0  ;;  %2313 = vmatpush.msra.mxu3 %v2134_v41  ;;  %v2058_v13 = vld [vmem:[%s11752_s3 + $0x150] sm:$0xff]  ;;  %2333 = vmatpush.msra.mxu0 %v2172_v9  ;;  %v2048_v3 = vld [vmem:[%s11752_s3 + $0x100] sm:$0xff] }
 0x44c   :  { %2270 = vmatpush.msra.mxu1 %v2064_v51  ;;  %v2092_v51 = vld [vmem:[%s11752_s3 + $0x260] sm:$0xff]  ;;  %v2206_v9 = vld [vmem:[%s11752_s3 + $0x5f0] sm:$0xff] }
 0x44d   :  { %v7426_v25 = vpack.i.bf16 %v1845_v19, %v1844_v17  ;;  %2314 = vmatpush.msra.mxu3 %v2132_v62 }
 0x44e   :  { %7412 = vrot.lane.b32.xlu0 %v7411_v49, %s7545_s21  ;;  %7407 = vrot.lane.b32.xlu1 %v7411_v49, %s7547_s23 }
 0x44f   :  { %7397 = vrot.lane.b32.xlu2 %v7411_v49, %s7546_s22  ;;  %v2100_v49 = vld [vmem:[%s11752_s3 + $0x2a0] sm:$0xff]  ;;  %2271 = vmatpush.msra.mxu1 %v2062_v16 }
 0x450   :  { %v1601_v18 = vld [vmem:[#allocation2 + $0x18] sm:$0x1]  ;;  %v1603_v56 = vld [vmem:[#allocation2 + $0x19] sm:$0x1]  ;;  %v1605_v37 = vld [vmem:[#allocation2 + $0x1a] sm:$0x1]  ;;  %2291 = vmatpush.msrb.mxu2 %v2100_v49  ;;  %2315 = vmatpush.msra.mxu3 %v2130_v39 }
 0x451   :  { %1602 = vst [vmem:[#allocation3 + $0x30] sm:$0x1] %v1601_v18  ;;  %v1607_v4 = vld [vmem:[#allocation2 + $0x1b] sm:$0x1]  ;;  %v1609_v50 = vld [vmem:[#allocation2 + $0x1c] sm:$0x1]  ;;  %v1808_v18 = vpop.f32.mrf.mxu2  ;;  %2272 = vmatpush.msra.mxu1 %v2060_v60 }
 0x452   :  { %1604 = vst [vmem:[#allocation3 + $0x32] sm:$0x1] %v1603_v56  ;;  %v1611_v43 = vld [vmem:[#allocation2 + $0x1d] sm:$0x1]  ;;  %v1613_v35 = vld [vmem:[#allocation2 + $0x1e] sm:$0x1]  ;;  %v1831_v56 = vpop.f32.mrf.mxu3  ;;  %2292 = vmatpush.msrb.mxu2 %v2098_v40  ;;  %v9671_v41 = vadd.f32 %v1808_v18, %v9383_v58 }
 0x453   :  { %1606 = vst [vmem:[#allocation3 + $0x34] sm:$0x1] %v1605_v37  ;;  %v1615_v31 = vld [vmem:[#allocation2 + $0x1f] sm:$0x1]  ;;  %2273 = vmatpush.msra.mxu1 %v2058_v13  ;;  %v2090_v40 = vld [vmem:[%s11752_s3 + $0x250] sm:$0xff] }
 0x454   :  { %1608 = vst [vmem:[#allocation3 + $0x36] sm:$0x1] %v1607_v4  ;;  %v2096_v37 = vld [vmem:[%s11752_s3 + $0x280] sm:$0xff]  ;;  %v11765_v49 = vmax.f32 %v9671_v41, 0.0  ;;  %v2122_v39 = vld [vmem:[%s11752_s3 + $0x350] sm:$0xff] }
 0x455   :  { %1610 = vst [vmem:[#allocation3 + $0x38] sm:$0x1] %v1609_v50  ;;  %v2128_v4 = vld [vmem:[%s11752_s3 + $0x380] sm:$0xff]  ;;  %v9674_v50 = vadd.f32 %v1831_v56, %v9383_v58  ;;  %2293 = vmatpush.msrb.mxu2 %v2096_v37  ;;  %v2054_v58 = vld [vmem:[%s11752_s3 + $0x130] sm:$0xff]  ;;  %2274 = vmatpush.msra.mxu1 %v2056_v27 }
 0x456   :  { %1612 = vst [vmem:[#allocation3 + $0x3a] sm:$0x1] %v1611_v43  ;;  %7427 = vrot.lane.b32.xlu0 %v7426_v25, %s7547_s23  ;;  %7417 = vrot.lane.b32.xlu1 %v7426_v25, %s7546_s22  ;;  %v2094_v43 = vld [vmem:[%s11752_s3 + $0x270] sm:$0xff]  ;;  %v2088_v18 = vld [vmem:[%s11752_s3 + $0x240] sm:$0xff] }
 0x457   :  { %1614 = vst [vmem:[#allocation3 + $0x3c] sm:$0x1] %v1613_v35  ;;  %7402 = vrot.lane.b32.xlu2 %v7401_v33, %s7546_s22  ;;  %2316 = vmatpush.msra.mxu3 %v2128_v4  ;;  %v2126_v35 = vld [vmem:[%s11752_s3 + $0x370] sm:$0xff]  ;;  %v1847_v62 = vmax.f32 %v9674_v50, 0.0  ;;  %v2120_v56 = vld [vmem:[%s11752_s3 + $0x340] sm:$0xff]  ;;  %v2081_v50 = vld [vmem:[%s11752_s3 + $0x208] sm:$0xff] }
 0x458   :  { %1616 = vst [vmem:[#allocation3 + $0x3e] sm:$0x1] %v1615_v31  ;;  %v2124_v31 = vld [vmem:[%s11752_s3 + $0x360] sm:$0xff]  ;;  %2294 = vmatpush.msrb.mxu2 %v2094_v43  ;;  %2275 = vmatpush.msra.mxu1 %v2054_v58  ;;  %v2170_v60 = vld [vmem:[%s11752_s3 + $0x4d0] sm:$0xff] }
 0x459   :  { %2317 = vmatpush.msra.mxu3 %v2126_v35  ;;  %v7451_v16 = vpack.i.bf16 %v1847_v62, %v11765_v49  ;;  %2334 = vmatpush.msra.mxu0 %v2170_v60  ;;  %v2168_v37 = vld [vmem:[%s11752_s3 + $0x4c0] sm:$0xff]  ;;  %v2086_v13 = vld [vmem:[%s11752_s3 + $0x230] sm:$0xff]  ;;  %v2169_v49 = vld [vmem:[%s11752_s3 + $0x4c8] sm:$0xff] }
 0x45a   :  { %2295 = vmatpush.msrb.mxu2 %v2092_v51  ;;  %v2204_v4 = vld [vmem:[%s11752_s3 + $0x5e0] sm:$0xff]  ;;  %v2118_v27 = vld [vmem:[%s11752_s3 + $0x330] sm:$0xff] }
 0x45b   :  { %2318 = vmatpush.msra.mxu3 %v2124_v31  ;;  %v2166_v43 = vld [vmem:[%s11752_s3 + $0x4b0] sm:$0xff]  ;;  %2335 = vmatpush.msra.mxu0 %v2168_v37  ;;  %v2084_v58 = vld [vmem:[%s11752_s3 + $0x220] sm:$0xff]  ;;  %v2047_v37 = vld [vmem:[%s11752_s3 + $0xf8] sm:$0xff] }
 0x45c   :  { %2296 = vmatpush.msrb.mxu2 %v2090_v40  ;;  %v2202_v35 = vld [vmem:[%s11752_s3 + $0x5d0] sm:$0xff]  ;;  %v2116_v51 = vld [vmem:[%s11752_s3 + $0x320] sm:$0xff] }
 0x45d   :  { %2319 = vmatpush.msra.mxu3 %v2122_v39  ;;  %v2164_v31 = vld [vmem:[%s11752_s3 + $0x4a0] sm:$0xff]  ;;  %2336 = vmatpush.msra.mxu0 %v2166_v43  ;;  %v2198_v40 = vld [vmem:[%s11752_s3 + $0x5b0] sm:$0xff]  ;;  %v2045_v43 = vld [vmem:[%s11752_s3 + $0xe8] sm:$0xff] }
 0x45e   :  { %7432 = vrot.lane.b32.xlu0 %v7401_v33, %s7545_s21  ;;  %7422 = vrot.lane.b32.xlu1 %v7401_v33, %s7547_s23  ;;  %v2052_v33 = vld [vmem:[%s11752_s3 + $0x120] sm:$0xff] }
 0x45f   :  { %7442 = vrot.lane.b32.xlu2 %v7426_v25, %s7545_s21  ;;  %v2050_v25 = vld [vmem:[%s11752_s3 + $0x110] sm:$0xff]  ;;  %2276 = vmatpush.msra.mxu1 %v2052_v33  ;;  %v2200_v33 = vld [vmem:[%s11752_s3 + $0x5c0] sm:$0xff] }
 0x460   :  { %2297 = vmatpush.msrb.mxu2 %v2088_v18  ;;  %2320 = vmatpush.msra.mxu3 %v2120_v56  ;;  %v2080_v39 = vld [vmem:[%s11752_s3 + $0x200] sm:$0xff]  ;;  %v2238_v56 = vld [vmem:[%s11752_s3 + $0x6f0] sm:$0xff] }
 0x461   :  { %2277 = vmatpush.msra.mxu1 %v2050_v25  ;;  %2337 = vmatpush.msra.mxu0 %v2164_v31  ;;  %v2082_v25 = vld [vmem:[%s11752_s3 + $0x210] sm:$0xff]  ;;  %v2112_v60 = vld [vmem:[%s11752_s3 + $0x300] sm:$0xff]  ;;  %v2043_v31 = vld [vmem:[%s11752_s3 + $0xd8] sm:$0xff] }
 0x462   :  { %2298 = vmatpush.msrb.mxu2 %v2086_v13  ;;  %2321 = vmatpush.msra.mxu3 %v2118_v27  ;;  %v2196_v18 = vld [vmem:[%s11752_s3 + $0x5a0] sm:$0xff]  ;;  %v2194_v13 = vld [vmem:[%s11752_s3 + $0x590] sm:$0xff] }
 0x463   :  { %2278 = vmatpush.msra.mxu1 %v2048_v3  ;;  %v2162_v3 = vld [vmem:[%s11752_s3 + $0x490] sm:$0xff]  ;;  %v2236_v27 = vld [vmem:[%s11752_s3 + $0x6e0] sm:$0xff] }
 0x464   :  { %2299 = vmatpush.msrb.mxu2 %v2084_v58  ;;  %2322 = vmatpush.msra.mxu3 %v2116_v51  ;;  %v2192_v58 = vld [vmem:[%s11752_s3 + $0x580] sm:$0xff]  ;;  %v2234_v51 = vld [vmem:[%s11752_s3 + $0x6d0] sm:$0xff] }
 0x465   :  { %2355 = vmatpush.msrb.mxu1 %v2206_v9  ;;  %2338 = vmatpush.msra.mxu0 %v2162_v3  ;;  %v2160_v9 = vld [vmem:[%s11752_s3 + $0x480] sm:$0xff]  ;;  %v2041_v3 = vld [vmem:[%s11752_s3 + $0xc8] sm:$0xff] }
 0x466   :  { %7452 = vrot.lane.b32.xlu0 %v7451_v16, %s7545_s21  ;;  %7437 = vrot.lane.b32.xlu1 %v7451_v16, %s7546_s22 }
 0x467   :  { %7447 = vrot.lane.b32.xlu2 %v7451_v16, %s7547_s23  ;;  %2356 = vmatpush.msrb.mxu1 %v2204_v4  ;;  %v2114_v16 = vld [vmem:[%s11752_s3 + $0x310] sm:$0xff] }
 0x468   :  { %2300 = vmatpush.msrb.mxu2 %v2082_v25  ;;  %2323 = vmatpush.msra.mxu3 %v2114_v16  ;;  %v2158_v4 = vld [vmem:[%s11752_s3 + $0x470] sm:$0xff]  ;;  %v2232_v16 = vld [vmem:[%s11752_s3 + $0x6c0] sm:$0xff] }
 0x469   :  { %2357 = vmatpush.msrb.mxu1 %v2202_v35  ;;  %2339 = vmatpush.msra.mxu0 %v2160_v9  ;;  %v2156_v35 = vld [vmem:[%s11752_s3 + $0x460] sm:$0xff]  ;;  %v2190_v25 = vld [vmem:[%s11752_s3 + $0x570] sm:$0xff]  ;;  %v2039_v9 = vld [vmem:[%s11752_s3 + $0xb8] sm:$0xff] }
 0x46a   :  { %2301 = vmatpush.msrb.mxu2 %v2080_v39  ;;  %2324 = vmatpush.msra.mxu3 %v2112_v60  ;;  %v2188_v39 = vld [vmem:[%s11752_s3 + $0x560] sm:$0xff]  ;;  %v2230_v60 = vld [vmem:[%s11752_s3 + $0x6b0] sm:$0xff] }
 0x46b   :  { %2358 = vmatpush.msrb.mxu1 %v2200_v33  ;;  %2340 = vmatpush.msra.mxu0 %v2158_v4  ;;  %v2154_v33 = vld [vmem:[%s11752_s3 + $0x450] sm:$0xff]  ;;  %v2037_v4 = vld [vmem:[%s11752_s3 + $0xa8] sm:$0xff] }
 0x46c   :  { %2378 = vmatpush.msra.mxu2 %v2238_v56  ;;  %2401 = vmatpush.msrb.mxu3 %v2047_v37  ;;  %v2186_v56 = vld [vmem:[%s11752_s3 + $0x550] sm:$0xff]  ;;  %v2228_v37 = vld [vmem:[%s11752_s3 + $0x6a0] sm:$0xff] }
 0x46d   :  { %2359 = vmatpush.msrb.mxu1 %v2198_v40  ;;  %2341 = vmatpush.msra.mxu0 %v2156_v35  ;;  %v2152_v40 = vld [vmem:[%s11752_s3 + $0x440] sm:$0xff]  ;;  %v2035_v35 = vld [vmem:[%s11752_s3 + $0x98] sm:$0xff] }
 0x46e   :  { %2379 = vmatpush.msra.mxu2 %v2236_v27  ;;  %2402 = vmatpush.msrb.mxu3 %v2045_v43  ;;  %v2184_v27 = vld [vmem:[%s11752_s3 + $0x540] sm:$0xff]  ;;  %v2226_v43 = vld [vmem:[%s11752_s3 + $0x690] sm:$0xff] }
 0x46f   :  { %2360 = vmatpush.msrb.mxu1 %v2196_v18  ;;  %2342 = vmatpush.msra.mxu0 %v2154_v33  ;;  %v2150_v18 = vld [vmem:[%s11752_s3 + $0x430] sm:$0xff]  ;;  %v2033_v33 = vld [vmem:[%s11752_s3 + $0x88] sm:$0xff] }
 0x470   :  { %2380 = vmatpush.msra.mxu2 %v2234_v51  ;;  %2403 = vmatpush.msrb.mxu3 %v2043_v31  ;;  %v2182_v51 = vld [vmem:[%s11752_s3 + $0x530] sm:$0xff]  ;;  %v2224_v31 = vld [vmem:[%s11752_s3 + $0x680] sm:$0xff] }
 0x471   :  { %2361 = vmatpush.msrb.mxu1 %v2194_v13  ;;  %2343 = vmatpush.msra.mxu0 %v2152_v40  ;;  %v2148_v13 = vld [vmem:[%s11752_s3 + $0x420] sm:$0xff]  ;;  %v2031_v40 = vld [vmem:[%s11752_s3 + $0x78] sm:$0xff] }
 0x472   :  { %2381 = vmatpush.msra.mxu2 %v2232_v16  ;;  %2404 = vmatpush.msrb.mxu3 %v2041_v3  ;;  %v2180_v16 = vld [vmem:[%s11752_s3 + $0x520] sm:$0xff]  ;;  %v2222_v3 = vld [vmem:[%s11752_s3 + $0x670] sm:$0xff] }
 0x473   :  { %2362 = vmatpush.msrb.mxu1 %v2192_v58  ;;  %2344 = vmatpush.msra.mxu0 %v2150_v18  ;;  %v2146_v58 = vld [vmem:[%s11752_s3 + $0x410] sm:$0xff]  ;;  %v2029_v18 = vld [vmem:[%s11752_s3 + $0x68] sm:$0xff] }
 0x474   :  { %2382 = vmatpush.msra.mxu2 %v2230_v60  ;;  %2405 = vmatpush.msrb.mxu3 %v2039_v9  ;;  %v2178_v60 = vld [vmem:[%s11752_s3 + $0x510] sm:$0xff]  ;;  %v2220_v9 = vld [vmem:[%s11752_s3 + $0x660] sm:$0xff] }
 0x475   :  { %2363 = vmatpush.msrb.mxu1 %v2190_v25  ;;  %2345 = vmatpush.msra.mxu0 %v2148_v13  ;;  %v2144_v25 = vld [vmem:[%s11752_s3 + $0x400] sm:$0xff]  ;;  %v2027_v13 = vld [vmem:[%s11752_s3 + $0x58] sm:$0xff] }
 0x476   :  { %2383 = vmatpush.msra.mxu2 %v2228_v37  ;;  %2406 = vmatpush.msrb.mxu3 %v2037_v4  ;;  %v2176_v37 = vld [vmem:[%s11752_s3 + $0x500] sm:$0xff]  ;;  %v2218_v4 = vld [vmem:[%s11752_s3 + $0x650] sm:$0xff] }
 0x477   :  { %2364 = vmatpush.msrb.mxu1 %v2188_v39  ;;  %2346 = vmatpush.msra.mxu0 %v2146_v58  ;;  %v2079_v39 = vld [vmem:[%s11752_s3 + $0x1f8] sm:$0xff]  ;;  %v2073_v58 = vld [vmem:[%s11752_s3 + $0x1c8] sm:$0xff] }
 0x478   :  { %2384 = vmatpush.msra.mxu2 %v2226_v43  ;;  %2407 = vmatpush.msrb.mxu3 %v2035_v35  ;;  %v2216_v43 = vld [vmem:[%s11752_s3 + $0x640] sm:$0xff]  ;;  %v2025_v35 = vld [vmem:[%s11752_s3 + $0x48] sm:$0xff] }
 0x479   :  { %2365 = vmatpush.msrb.mxu1 %v2186_v56  ;;  %2347 = vmatpush.msra.mxu0 %v2144_v25  ;;  %v2077_v56 = vld [vmem:[%s11752_s3 + $0x1e8] sm:$0xff] }
 0x47a   :  { %2385 = vmatpush.msra.mxu2 %v2224_v31  ;;  %2408 = vmatpush.msrb.mxu3 %v2033_v33  ;;  %v2023_v31 = vld [vmem:[%s11752_s3 + $0x38] sm:$0xff] }
 0x47b   :  { %2366 = vmatpush.msrb.mxu1 %v2184_v27  ;;  %2424 = vmatpush.msrb.mxu0 %v2079_v39  ;;  %v2075_v27 = vld [vmem:[%s11752_s3 + $0x1d8] sm:$0xff]  ;;  %v2210_v39 = vld [vmem:[%s11752_s3 + $0x610] sm:$0xff] }
 0x47c   :  { %2386 = vmatpush.msra.mxu2 %v2222_v3  ;;  %2409 = vmatpush.msrb.mxu3 %v2031_v40  ;;  %v2071_v33 = vld [vmem:[%s11752_s3 + $0x1b8] sm:$0xff]  ;;  %v2021_v3 = vld [vmem:[%s11752_s3 + $0x28] sm:$0xff] }
 0x47d   :  { %2367 = vmatpush.msrb.mxu1 %v2182_v51  ;;  %2425 = vmatpush.msrb.mxu0 %v2077_v56  ;;  %v2214_v51 = vld [vmem:[%s11752_s3 + $0x630] sm:$0xff]  ;;  %v2069_v40 = vld [vmem:[%s11752_s3 + $0x1a8] sm:$0xff] }
 0x47e   :  { %2387 = vmatpush.msra.mxu2 %v2220_v9  ;;  %2410 = vmatpush.msrb.mxu3 %v2029_v18  ;;  %v2067_v9 = vld [vmem:[%s11752_s3 + $0x198] sm:$0xff]  ;;  %v2208_v18 = vld [vmem:[%s11752_s3 + $0x600] sm:$0xff]  ;;  %v2017_v56 = vld [vmem:[%s11752_s3 + $0x8] sm:$0xff] }
 0x47f   :  { %2368 = vmatpush.msrb.mxu1 %v2180_v16  ;;  %2426 = vmatpush.msrb.mxu0 %v2075_v27  ;;  %v2212_v16 = vld [vmem:[%s11752_s3 + $0x620] sm:$0xff] }
 0x480   :  { %2388 = vmatpush.msra.mxu2 %v2218_v4  ;;  %2411 = vmatpush.msrb.mxu3 %v2027_v13  ;;  %v2063_v4 = vld [vmem:[%s11752_s3 + $0x178] sm:$0xff]  ;;  %v2061_v13 = vld [vmem:[%s11752_s3 + $0x168] sm:$0xff] }
 0x481   :  { %2369 = vmatpush.msrb.mxu1 %v2178_v60  ;;  %2427 = vmatpush.msrb.mxu0 %v2073_v58  ;;  %v2019_v60 = vld [vmem:[%s11752_s3 + $0x18] sm:$0xff] }
 0x482   :  { %2389 = vmatpush.msra.mxu2 %v2216_v43  ;;  %2412 = vmatpush.msrb.mxu3 %v2025_v35  ;;  %v2059_v58 = vld [vmem:[%s11752_s3 + $0x158] sm:$0xff] }
 0x483   :  { %2370 = vmatpush.msrb.mxu1 %v2176_v37  ;;  %2428 = vmatpush.msrb.mxu0 %v2071_v33  ;;  %v2065_v37 = vld [vmem:[%s11752_s3 + $0x188] sm:$0xff] }
 0x484   :  { %2390 = vmatpush.msra.mxu2 %v2214_v51  ;;  %2413 = vmatpush.msrb.mxu3 %v2023_v31  ;;  %v2057_v33 = vld [vmem:[%s11752_s3 + $0x148] sm:$0xff] }
 0x485   :  { %2429 = vmatpush.msrb.mxu0 %v2069_v40 }
 0x486   :  { %2391 = vmatpush.msra.mxu2 %v2212_v16  ;;  %2414 = vmatpush.msrb.mxu3 %v2021_v3  ;;  %v2055_v3 = vld [vmem:[%s11752_s3 + $0x138] sm:$0xff] }
 0x487   :  { %2430 = vmatpush.msrb.mxu0 %v2067_v9 }
 0x488   :  { %2392 = vmatpush.msra.mxu2 %v2210_v39  ;;  %2415 = vmatpush.msrb.mxu3 %v2019_v60 }
 0x489   :  { %2431 = vmatpush.msrb.mxu0 %v2065_v37 }
 0x48a   :  { %2393 = vmatpush.msra.mxu2 %v2208_v18  ;;  %2416 = vmatpush.msrb.mxu3 %v2017_v56  ;;  %v2053_v56 = vld [vmem:[%s11752_s3 + $0x128] sm:$0xff] }
 0x48b   :  { %2432 = vmatpush.msrb.mxu0 %v2063_v4 }
 0x48d   :  { %2433 = vmatpush.msrb.mxu0 %v2061_v13 }
 0x48f   :  { %2434 = vmatpush.msrb.mxu0 %v2059_v58 }
 0x491   :  { %2435 = vmatpush.msrb.mxu0 %v2057_v33  ;;  %v2111_v33 = vld [vmem:[%s11752_s3 + $0x2f8] sm:$0xff] }
 0x493   :  { %2436 = vmatpush.msrb.mxu0 %v2055_v3  ;;  %v2049_v3 = vld [vmem:[%s11752_s3 + $0x108] sm:$0xff] }
 0x495   :  { %2437 = vmatpush.msrb.mxu0 %v2053_v56 }
 0x4a1   :  { %v9934_v25 = vpop.permute.xlu2 %7382 }
 0x4a2   :  { %v7385_v27 = vunpack.i.h.bf16 %v9934_v25  ;;  %v7384_v43 = vunpack.i.l.bf16 %v9934_v25 }
 0x4a4   :  { %v1882_v51 = vsel %vm304_vm2, %v7384_v43, %v7385_v27  ;;  %v1884_v31 = vsel %vm304_vm2, %v7355_v55, %v7384_v43 }
 0x4a5   :  { %v1891_v18 = vmax.f32 %v1835_v34, %v1884_v31  ;;  %v1892_v55 = vmax.f32 %v1836_v38, %v1882_v51  ;;  %v2051_v38 = vld [vmem:[%s11752_s3 + $0x118] sm:$0xff] }
 0x4a6   :  { %2438 = vmatpush.msrb.mxu0 %v2051_v38 }
 0x4a8   :  { %2439 = vmatpush.msrb.mxu0 %v2049_v3 }
 0x4a9   :  { %v9971_v35 = vpop.permute.xlu2 %7397 }
 0x4aa   :  { %v7400_v37 = vunpack.i.h.bf16 %v9971_v35  ;;  %v7399_v4 = vunpack.i.l.bf16 %v9971_v35  ;;  %v2165_v35 = vld [vmem:[%s11752_s3 + $0x4a8] sm:$0xff] }
 0x4b1   :  { %v10006_v43 = vpop.permute.xlu2 %7402 }
 0x4b8   :  { %v7393_v25 = vpop.permute.xlu0 %7392  ;;  %v7388_v16 = vpop.permute.xlu1 %7387 }
 0x4b9   :  { %v7395_v40 = vunpack.i.h.bf16 %v7393_v25  ;;  %v7394_v39 = vunpack.i.l.bf16 %v7393_v25  ;;  %v7390_v60 = vunpack.i.h.bf16 %v7388_v16  ;;  %v7389_v9 = vunpack.i.l.bf16 %v7388_v16  ;;  %v2143_v25 = vld [vmem:[%s11752_s3 + $0x3f8] sm:$0xff] }
 0x4ba   :  { %v1880_v16 = vsel %vm304_vm2, %v7385_v27, %v7399_v4 }
 0x4bb   :  { %v1938_v13 = vsel %vm361_vm4, %v7389_v9, %v7390_v60  ;;  %v1940_v5 = vsel %vm361_vm4, %v7360_v57, %v7389_v9  ;;  %v1994_v58 = vsel %vm418_vm3, %v7394_v39, %v7395_v40  ;;  %v1996_v51 = vsel %vm418_vm3, %v7365_v6, %v7394_v39 }
 0x4bc   :  { %v1947_v34 = vmax.f32 %v1891_v18, %v1940_v5  ;;  %v1948_v22 = vmax.f32 %v1892_v55, %v1938_v13  ;;  %v1885_v6 = vsel %vm304_vm2, %v7370_v44, %v7400_v37  ;;  %v2109_v44 = vld [vmem:[%s11752_s3 + $0x2e8] sm:$0xff]  ;;  %v1893_v5 = vmax.f32 %v1837_v26, %v1880_v16  ;;  %v2139_v26 = vld [vmem:[%s11752_s3 + $0x3d8] sm:$0xff] }
 0x4bd   :  { %v2141_v13 = vld [vmem:[%s11752_s3 + $0x3e8] sm:$0xff] }
 0x4be   :  { %v10014_v31 = vmax.f32 %v1947_v34, %v1996_v51  ;;  %v10016_v57 = vmax.f32 %v1948_v22, %v1994_v58  ;;  %v2107_v34 = vld [vmem:[%s11752_s3 + $0x2d8] sm:$0xff]  ;;  %v1898_v22 = vmax.f32 %v1842_v36, %v1885_v6  ;;  %v10094_v6 = vpop.permute.xlu2 %7442 }
 0x4c0   :  { %v10037_v39 = vpop.permute.xlu0 %7412  ;;  %v10039_v9 = vpop.permute.xlu1 %7407  ;;  %2279 = vmatmul.f32.vlgmr.msra.gmra.mxu1 %v10014_v31  ;;  %2302 = vmatmul.f32.vlgmr.msrb.gmra.mxu2 %v10016_v57 }
 0x4c1   :  { %v7415_v18 = vunpack.i.h.bf16 %v10037_v39  ;;  %v7414_v27 = vunpack.i.l.bf16 %v10037_v39  ;;  %v7410_v55 = vunpack.i.h.bf16 %v10039_v9  ;;  %v7409_v56 = vunpack.i.l.bf16 %v10039_v9  ;;  %2447 = vmatpush.msra.mxu1 %v2111_v33  ;;  %2470 = vmatpush.msrb.mxu2 %v2143_v25  ;;  %v2103_v25 = vld [vmem:[%s11752_s3 + $0x2b8] sm:$0xff]  ;;  %v2125_v9 = vld [vmem:[%s11752_s3 + $0x368] sm:$0xff] }
 0x4c3   :  { %v1936_v38 = vsel %vm361_vm4, %v7390_v60, %v7409_v56  ;;  %2448 = vmatpush.msra.mxu1 %v2109_v44  ;;  %v1941_v15 = vsel %vm361_vm4, %v7375_v12, %v7410_v55  ;;  %2471 = vmatpush.msrb.mxu2 %v2141_v13  ;;  %v1992_v60 = vsel %vm418_vm3, %v7395_v40, %v7414_v27  ;;  %v2175_v40 = vld [vmem:[%s11752_s3 + $0x4f8] sm:$0xff]  ;;  %v2101_v44 = vld [vmem:[%s11752_s3 + $0x2a8] sm:$0xff] }
 0x4c4   :  { %v1949_v58 = vmax.f32 %v1893_v5, %v1936_v38  ;;  %v1954_v36 = vmax.f32 %v1898_v22, %v1941_v15  ;;  %v1997_v12 = vsel %vm418_vm3, %v7380_v8, %v7415_v18  ;;  %v2137_v8 = vld [vmem:[%s11752_s3 + $0x3c8] sm:$0xff]  ;;  %v2135_v15 = vld [vmem:[%s11752_s3 + $0x3b8] sm:$0xff] }
 0x4c5   :  { %2449 = vmatpush.msra.mxu1 %v2107_v34  ;;  %2472 = vmatpush.msrb.mxu2 %v2139_v26  ;;  %v2173_v13 = vld [vmem:[%s11752_s3 + $0x4e8] sm:$0xff]  ;;  %v7405_v26 = vunpack.i.h.bf16 %v10006_v43 }
 0x4c6   :  { %v10084_v51 = vmax.f32 %v1954_v36, %v1997_v12  ;;  %v10086_v33 = vmax.f32 %v1949_v58, %v1992_v60  ;;  %v2099_v58 = vld [vmem:[%s11752_s3 + $0x298] sm:$0xff]  ;;  %v7445_v36 = vunpack.i.h.bf16 %v10094_v6  ;;  %v7444_v60 = vunpack.i.l.bf16 %v10094_v6 }
 0x4c7   :  { %2450 = vmatpush.msra.mxu1 %v2105_v52  ;;  %v2171_v52 = vld [vmem:[%s11752_s3 + $0x4d8] sm:$0xff]  ;;  %2473 = vmatpush.msrb.mxu2 %v2137_v8  ;;  %v7404_v8 = vunpack.i.l.bf16 %v10006_v43 }
 0x4c8   :  { %v10099_v16 = vpop.permute.xlu0 %7427  ;;  %v10101_v3 = vpop.permute.xlu1 %7417  ;;  %2282 = vmatmul.f32.gmra.mxu1 %v10084_v51  ;;  %2325 = vmatmul.f32.vlgmr.msra.gmra.mxu3 %v10086_v33 }
 0x4c9   :  { %v7430_v5 = vunpack.i.h.bf16 %v10099_v16  ;;  %v7429_v34 = vunpack.i.l.bf16 %v10099_v16  ;;  %v7420_v22 = vunpack.i.h.bf16 %v10101_v3  ;;  %v7419_v38 = vunpack.i.l.bf16 %v10101_v3  ;;  %2451 = vmatpush.msra.mxu1 %v2103_v25  ;;  %2493 = vmatpush.msra.mxu3 %v2175_v40  ;;  %v2133_v40 = vld [vmem:[%s11752_s3 + $0x3a8] sm:$0xff]  ;;  %v2203_v3 = vld [vmem:[%s11752_s3 + $0x5d8] sm:$0xff] }
 0x4ca   :  { %2474 = vmatpush.msrb.mxu2 %v2135_v15  ;;  %v1878_v47 = vsel %vm304_vm2, %v7399_v4, %v7404_v8  ;;  %v2129_v4 = vld [vmem:[%s11752_s3 + $0x388] sm:$0xff] }
 0x4cb   :  { %v1881_v12 = vsel %vm304_vm2, %v7419_v38, %v7420_v22  ;;  %v1883_v25 = vsel %vm304_vm2, %v7400_v37, %v7419_v38  ;;  %2452 = vmatpush.msra.mxu1 %v2101_v44  ;;  %2494 = vmatpush.msra.mxu3 %v2173_v13  ;;  %v1939_v43 = vsel %vm361_vm4, %v7410_v55, %v7429_v34  ;;  %v2131_v13 = vld [vmem:[%s11752_s3 + $0x398] sm:$0xff] }
 0x4cc   :  { %v1899_v46 = vmax.f32 %v1843_v32, %v1883_v25  ;;  %v1900_v37 = vmax.f32 %v1844_v17, %v1881_v12  ;;  %v1937_v44 = vsel %vm361_vm4, %v7429_v34, %v7430_v5  ;;  %v2167_v17 = vld [vmem:[%s11752_s3 + $0x4b8] sm:$0xff]  ;;  %2475 = vmatpush.msrb.mxu2 %v2133_v40  ;;  %v1888_v55 = vsel %vm304_vm2, %v7405_v26, %v7354_v48 }
 0x4cd   :  { %2453 = vmatpush.msra.mxu1 %v2099_v58  ;;  %2495 = vmatpush.msra.mxu3 %v2171_v52  ;;  %v1995_v34 = vsel %vm418_vm3, %v7415_v18, %v7444_v60  ;;  %v1876_v38 = vsel %vm304_vm2, %v7404_v8, %v7405_v26  ;;  %v2093_v18 = vld [vmem:[%s11752_s3 + $0x268] sm:$0xff]  ;;  %v1896_v26 = vmax.f32 %v1840_v21, %v1888_v55  ;;  %v2091_v25 = vld [vmem:[%s11752_s3 + $0x258] sm:$0xff] }
 0x4ce   :  { %v1955_v32 = vmax.f32 %v1899_v46, %v1939_v43  ;;  %v1956_v24 = vmax.f32 %v1900_v37, %v1937_v44  ;;  %v1993_v46 = vsel %vm418_vm3, %v7444_v60, %v7445_v36  ;;  %2476 = vmatpush.msrb.mxu2 %v2131_v13  ;;  %v1894_v40 = vmax.f32 %v1838_v1, %v1878_v47  ;;  %v2163_v21 = vld [vmem:[%s11752_s3 + $0x498] sm:$0xff]  ;;  %v2161_v43 = vld [vmem:[%s11752_s3 + $0x488] sm:$0xff]  ;;  %v7448_v44 = vpop.permute.xlu2 %7447 }
 0x4cf   :  { %2454 = vmatpush.msra.mxu1 %v2097_v61  ;;  %2496 = vmatpush.msra.mxu3 %v2169_v49  ;;  %v1895_v8 = vmax.f32 %v1839_v28, %v1876_v38  ;;  %v2127_v37 = vld [vmem:[%s11752_s3 + $0x378] sm:$0xff]  ;;  %v2085_v38 = vld [vmem:[%s11752_s3 + $0x228] sm:$0xff] }
 0x4d0   :  { %v7433_v48 = vpop.permute.xlu0 %7432  ;;  %v7423_v61 = vpop.permute.xlu1 %7422  ;;  %v10182_v49 = vmax.f32 %v1955_v32, %v1995_v34  ;;  %v10184_v15 = vmax.f32 %v1956_v24, %v1993_v46  ;;  %2477 = vmatpush.msrb.mxu2 %v2129_v4  ;;  %v2159_v47 = vld [vmem:[%s11752_s3 + $0x478] sm:$0xff] }
 0x4d1   :  { %v7425_v58 = vunpack.i.h.bf16 %v7423_v61  ;;  %v7424_v52 = vunpack.i.l.bf16 %v7423_v61  ;;  %2455 = vmatpush.msra.mxu1 %v2095_v10  ;;  %2497 = vmatpush.msra.mxu3 %v2167_v17  ;;  %v7435_v60 = vunpack.i.h.bf16 %v7433_v48  ;;  %v7434_v12 = vunpack.i.l.bf16 %v7433_v48  ;;  %v2087_v17 = vld [vmem:[%s11752_s3 + $0x238] sm:$0xff] }
 0x4d2   :  { %2305 = vmatmul.f32.gmra.mxu2 %v10182_v49  ;;  %2328 = vmatmul.f32.gmra.mxu3 %v10184_v15  ;;  %v7449_v48 = vunpack.i.l.bf16 %v7448_v44 }
 0x4d3   :  { %v1944_v59 = vsel %vm361_vm4, %v7425_v58, %v7359_v30  ;;  %2456 = vmatpush.msra.mxu1 %v2093_v18  ;;  %v1932_v7 = vsel %vm361_vm4, %v7424_v52, %v7425_v58  ;;  %v1934_v42 = vsel %vm361_vm4, %v7409_v56, %v7424_v52  ;;  %2498 = vmatpush.msra.mxu3 %v2165_v35  ;;  %v2089_v30 = vld [vmem:[%s11752_s3 + $0x248] sm:$0xff]  ;;  %v2123_v58 = vld [vmem:[%s11752_s3 + $0x358] sm:$0xff] }
 0x4d4   :  { %v1952_v1 = vmax.f32 %v1896_v26, %v1944_v59  ;;  %v1950_v0 = vmax.f32 %v1894_v40, %v1934_v42  ;;  %v1951_v28 = vmax.f32 %v1895_v8, %v1932_v7  ;;  %v1988_v56 = vsel %vm418_vm3, %v7434_v12, %v7435_v60  ;;  %2478 = vmatpush.msrb.mxu2 %v2127_v37  ;;  %v2205_v18 = vld [vmem:[%s11752_s3 + $0x5e8] sm:$0xff]  ;;  %v2239_v40 = vld [vmem:[%s11752_s3 + $0x6f8] sm:$0xff] }
 0x4d5   :  { %2457 = vmatpush.msra.mxu1 %v2091_v25  ;;  %v1990_v13 = vsel %vm418_vm3, %v7414_v27, %v7434_v12  ;;  %2499 = vmatpush.msra.mxu3 %v2163_v21  ;;  %v2000_v10 = vsel %vm418_vm3, %v7435_v60, %v7364_v23  ;;  %v7450_v23 = vunpack.i.h.bf16 %v7448_v44  ;;  %v2083_v60 = vld [vmem:[%s11752_s3 + $0x218] sm:$0xff]  ;;  %v11767_v12 = vunpack.i.l.bf16 %v9491_v54  ;;  %v2201_v8 = vld [vmem:[%s11752_s3 + $0x5c8] sm:$0xff] }
 0x4d6   :  { %v10241_v32 = vmax.f32 %v1950_v0, %v1990_v13  ;;  %v10243_v24 = vmax.f32 %v1951_v28, %v1988_v56  ;;  %v10248_v39 = vmax.f32 %v1952_v1, %v2000_v10  ;;  %2479 = vmatpush.msrb.mxu2 %v2125_v9  ;;  %v1935_v29 = vsel %vm361_vm4, %v7430_v5, %v7449_v48  ;;  %v2237_v1 = vld [vmem:[%s11752_s3 + $0x6e8] sm:$0xff]  ;;  %v2151_v28 = vld [vmem:[%s11752_s3 + $0x438] sm:$0xff] }
 0x4d7   :  { %2458 = vmatpush.msra.mxu1 %v2089_v30  ;;  %2500 = vmatpush.msra.mxu3 %v2161_v43  ;;  %v1945_v25 = vsel %vm361_vm4, %v7450_v23, %v11767_v12  ;;  %v11768_v54 = vmax.f32 %v9671_v41, 0.0  ;;  %v1933_v16 = vsel %vm361_vm4, %v7449_v48, %v7450_v23  ;;  %v2153_v41 = vld [vmem:[%s11752_s3 + $0x448] sm:$0xff]  ;;  %v11769_v7 = vunpack.i.l.bf16 %v9493_v14  ;;  %v2119_v14 = vld [vmem:[%s11752_s3 + $0x338] sm:$0xff] }
 0x4d8   :  { %v7453_v55 = vpop.permute.xlu0 %7452  ;;  %v7438_v27 = vpop.permute.xlu1 %7437  ;;  %2348 = vmatmul.f32.vlgmr.msra.gmra.mxu0 %v10241_v32  ;;  %2371 = vmatmul.f32.vlgmr.msrb.gmra.mxu1 %v10243_v24  ;;  %v2199_v43 = vld [vmem:[%s11752_s3 + $0x5b8] sm:$0xff]  ;;  %v2117_v44 = vld [vmem:[%s11752_s3 + $0x328] sm:$0xff] }
 0x4d9   :  { %v7440_v34 = vunpack.i.h.bf16 %v7438_v27  ;;  %v7439_v46 = vunpack.i.l.bf16 %v7438_v27  ;;  %v7455_v61 = vunpack.i.h.bf16 %v7453_v55  ;;  %2459 = vmatpush.msra.mxu1 %v2087_v17  ;;  %v7454_v52 = vunpack.i.l.bf16 %v7453_v55  ;;  %2516 = vmatpush.msra.mxu0 %v2207_v2  ;;  %v2235_v9 = vld [vmem:[%s11752_s3 + $0x6d8] sm:$0xff]  ;;  %v2149_v56 = vld [vmem:[%s11752_s3 + $0x428] sm:$0xff] }
 0x4da   :  { %2394 = vmatmul.f32.vlgmr.msra.gmra.mxu2 %v10248_v39  ;;  %2417 = vmatmul.f32.vlgmr.msrb.gmra.mxu3 %v9488_v20  ;;  %v2121_v20 = vld [vmem:[%s11752_s3 + $0x348] sm:$0xff]  ;;  %v2147_v17 = vld [vmem:[%s11752_s3 + $0x418] sm:$0xff] }
 0x4db   :  { %v1889_v35 = vsel %vm304_vm2, %v7440_v34, %v7369_v45  ;;  %v1877_v4 = vsel %vm304_vm2, %v7439_v46, %v7440_v34  ;;  %v1879_v26 = vsel %vm304_vm2, %v7420_v22, %v7439_v46  ;;  %2460 = vmatpush.msra.mxu1 %v2085_v38  ;;  %2501 = vmatpush.msra.mxu3 %v2159_v47  ;;  %v2197_v13 = vld [vmem:[%s11752_s3 + $0x5a8] sm:$0xff]  ;;  %v2195_v55 = vld [vmem:[%s11752_s3 + $0x598] sm:$0xff] }
 0x4dc   :  { %v1903_v45 = vmax.f32 %v1847_v62, %v1889_v35  ;;  %v1901_v22 = vmax.f32 %v1845_v19, %v1879_v26  ;;  %2517 = vmatpush.msra.mxu0 %v2205_v18  ;;  %2480 = vmatpush.msrb.mxu2 %v2123_v58  ;;  %v2155_v62 = vld [vmem:[%s11752_s3 + $0x458] sm:$0xff]  ;;  %v1902_v19 = vmax.f32 %v11768_v54, %v1877_v4  ;;  %v2233_v10 = vld [vmem:[%s11752_s3 + $0x6c8] sm:$0xff] }
 0x4dd   :  { %2461 = vmatpush.msra.mxu1 %v2083_v60  ;;  %2502 = vmatpush.msra.mxu3 %v2157_v63  ;;  %v1991_v5 = vsel %vm418_vm3, %v7445_v36, %v7454_v52  ;;  %v2001_v42 = vsel %vm418_vm3, %v7455_v61, %v11769_v7  ;;  %v1989_v6 = vsel %vm418_vm3, %v7454_v52, %v7455_v61  ;;  %v2231_v27 = vld [vmem:[%s11752_s3 + $0x6b8] sm:$0xff]  ;;  %v2113_v2 = vld [vmem:[%s11752_s3 + $0x308] sm:$0xff]  ;;  %v2257_v63 = vpop.f32.mrf.mxu0 }
 0x4de   :  { %v1957_v59 = vmax.f32 %v1901_v22, %v1935_v29  ;;  %v1959_v21 = vmax.f32 %v1903_v45, %v1945_v25  ;;  %2518 = vmatpush.msra.mxu0 %v2203_v3  ;;  %2481 = vmatpush.msrb.mxu2 %v2121_v20  ;;  %v1958_v37 = vmax.f32 %v1902_v19, %v1933_v16  ;;  %v2145_v23 = vld [vmem:[%s11752_s3 + $0x408] sm:$0xff]  ;;  %v2191_v38 = vld [vmem:[%s11752_s3 + $0x578] sm:$0xff] }
 0x4df   :  { %2462 = vmatpush.msra.mxu1 %v2081_v50  ;;  %2503 = vmatpush.msra.mxu3 %v2155_v62  ;;  %v2193_v34 = vld [vmem:[%s11752_s3 + $0x588] sm:$0xff]  ;;  %v2227_v47 = vld [vmem:[%s11752_s3 + $0x698] sm:$0xff] }
 0x4e0   :  { %v10333_v30 = vmax.f32 %v1957_v59, %v1991_v5  ;;  %v10337_v0 = vmax.f32 %v1959_v21, %v2001_v42  ;;  %2519 = vmatpush.msra.mxu0 %v2201_v8  ;;  %v10339_v36 = vmax.f32 %v1958_v37, %v1989_v6  ;;  %2482 = vmatpush.msrb.mxu2 %v2119_v14  ;;  %v2229_v46 = vld [vmem:[%s11752_s3 + $0x6a8] sm:$0xff]  ;;  %v2183_v18 = vld [vmem:[%s11752_s3 + $0x538] sm:$0xff] }
 0x4e1   :  { %2539 = vmatpush.msrb.mxu1 %v2239_v40  ;;  %2504 = vmatpush.msra.mxu3 %v2153_v41  ;;  %v2189_v48 = vld [vmem:[%s11752_s3 + $0x568] sm:$0xff]  ;;  %v2219_v58 = vld [vmem:[%s11752_s3 + $0x658] sm:$0xff] }
 0x4e2   :  { %2351 = vmatmul.f32.gmra.mxu0 %v10333_v30  ;;  %2397 = vmatmul.f32.gmra.mxu2 %v10337_v0  ;;  %v2225_v61 = vld [vmem:[%s11752_s3 + $0x688] sm:$0xff]  ;;  %v2211_v26 = vld [vmem:[%s11752_s3 + $0x618] sm:$0xff] }
 0x4e3   :  { %2540 = vmatpush.msrb.mxu1 %v2237_v1  ;;  %2420 = vmatmul.f32.gmra.mxu3 %v9523_v53  ;;  %v2115_v53 = vld [vmem:[%s11752_s3 + $0x318] sm:$0xff]  ;;  %v2181_v52 = vld [vmem:[%s11752_s3 + $0x528] sm:$0xff] }
 0x4e4   :  { %2374 = vmatmul.f32.gmra.mxu1 %v10339_v36  ;;  %2505 = vmatpush.msra.mxu3 %v2151_v28  ;;  %v2217_v35 = vld [vmem:[%s11752_s3 + $0x648] sm:$0xff] }
 0x4e5   :  { %2520 = vmatpush.msra.mxu0 %v2199_v43  ;;  %2541 = vmatpush.msrb.mxu1 %v2235_v9  ;;  %v2213_v4 = vld [vmem:[%s11752_s3 + $0x628] sm:$0xff]  ;;  %v2260_v20 = vpop.f32.mrf.mxu0 }
 0x4e6   :  { %2483 = vmatpush.msrb.mxu2 %v2117_v44  ;;  %2506 = vmatpush.msra.mxu3 %v2149_v56  ;;  %v2209_v60 = vld [vmem:[%s11752_s3 + $0x608] sm:$0xff] }
 0x4e7   :  { %2521 = vmatpush.msra.mxu0 %v2197_v13  ;;  %2542 = vmatpush.msrb.mxu1 %v2233_v10 }
 0x4e8   :  { %2484 = vmatpush.msrb.mxu2 %v2115_v53  ;;  %2507 = vmatpush.msra.mxu3 %v2147_v17 }
 0x4e9   :  { %2522 = vmatpush.msra.mxu0 %v2195_v55  ;;  %2543 = vmatpush.msrb.mxu1 %v2231_v27 }
 0x4ea   :  { %2485 = vmatpush.msrb.mxu2 %v2113_v2  ;;  %2508 = vmatpush.msra.mxu3 %v2145_v23 }
 0x4eb   :  { %2523 = vmatpush.msra.mxu0 %v2193_v34  ;;  %2544 = vmatpush.msrb.mxu1 %v2229_v46 }
 0x4ec   :  { %2440 = vmatmul.f32.vlgmr.msrb.gmra.mxu0 %v10014_v31  ;;  %2463 = vmatmul.f32.vlgmr.msra.gmra.mxu1 %v10016_v57  ;;  %v2187_v31 = vld [vmem:[%s11752_s3 + $0x558] sm:$0xff] }
 0x4ed   :  { %2486 = vmatmul.f32.vlgmr.msrb.gmra.mxu2 %v10086_v33  ;;  %2509 = vmatmul.f32.vlgmr.msra.gmra.mxu3 %v10241_v32  ;;  %v2223_v57 = vld [vmem:[%s11752_s3 + $0x678] sm:$0xff]  ;;  %v2185_v33 = vld [vmem:[%s11752_s3 + $0x548] sm:$0xff] }
 0x4ee   :  { %2524 = vmatpush.msra.mxu0 %v2191_v38  ;;  %2545 = vmatpush.msrb.mxu1 %v2227_v47  ;;  %v2221_v32 = vld [vmem:[%s11752_s3 + $0x668] sm:$0xff] }
 0x4f0   :  { %2525 = vmatpush.msra.mxu0 %v2189_v48  ;;  %2546 = vmatpush.msrb.mxu1 %v2225_v61 }
 0x4f2   :  { %2526 = vmatpush.msra.mxu0 %v2187_v31  ;;  %2547 = vmatpush.msrb.mxu1 %v2223_v57 }
 0x4f4   :  { %2527 = vmatpush.msra.mxu0 %v2185_v33  ;;  %2548 = vmatpush.msrb.mxu1 %v2221_v32  ;;  %v2756_v32 = vld [vmem:[%s11755_s6] sm:$0xff] }
 0x4f5   :  { %2443 = vmatmul.f32.gmra.mxu0 %v10084_v51  ;;  %2466 = vmatmul.f32.gmra.mxu1 %v10182_v49  ;;  %v2179_v51 = vld [vmem:[%s11752_s3 + $0x518] sm:$0xff] }
 0x4f6   :  { %2489 = vmatmul.f32.gmra.mxu2 %v10184_v15  ;;  %2512 = vmatmul.f32.gmra.mxu3 %v10333_v30  ;;  %v2215_v49 = vld [vmem:[%s11752_s3 + $0x638] sm:$0xff]  ;;  %v2177_v15 = vld [vmem:[%s11752_s3 + $0x508] sm:$0xff]  ;;  %s11770_s3 = smov 15  }
 0x4f7   :  { %2528 = vmatpush.msra.mxu0 %v2183_v18  ;;  %2549 = vmatpush.msrb.mxu1 %v2219_v58  ;;  %v2757_v18 = vld [vmem:[%s11755_s6 + $0x8] sm:$0xff] }
 0x4f9   :  { %2529 = vmatpush.msra.mxu0 %v2181_v52  ;;  %2550 = vmatpush.msrb.mxu1 %v2217_v35 }
 0x4fb   :  { %2530 = vmatpush.msra.mxu0 %v2179_v51  ;;  %2551 = vmatpush.msrb.mxu1 %v2215_v49 }
 0x4fd   :  { %2531 = vmatpush.msra.mxu0 %v2177_v15  ;;  %2552 = vmatpush.msrb.mxu1 %v2213_v4 }
 0x4fe   :  { %2532 = vmatmul.f32.vlgmr.msra.gmra.mxu0 %v10243_v24 }
 0x4ff   :  { %2553 = vmatpush.msrb.mxu1 %v2211_v26 }
 0x501   :  { %2554 = vmatpush.msrb.mxu1 %v2209_v60 }
 0x502   :  { %2555 = vmatmul.f32.vlgmr.msrb.gmra.mxu1 %v10248_v39 }
 0x506   :  { %2535 = vmatmul.f32.gmra.mxu0 %v10339_v36 }
 0x50a   :  { %2558 = vmatmul.f32.gmra.mxu1 %v10337_v0 }
 0x53d   :  { %v2280_v45 = vpop.f32.mrf.mxu1 }
 0x53e   :  { %v2281_v22 = vadd.f32 %v2280_v45, %v2257_v63 }
 0x543   :  { %v2303_v3 = vpop.f32.mrf.mxu2 }
 0x544   :  { %v2304_v24 = vadd.f32 %v2303_v3, %v2281_v22  ;;  %v5897_v3 = vld [vmem:[%s11754_s5 + $0x10] ss:$8 sm:$0x3] }
 0x545   :  { %v2283_v12 = vpop.f32.mrf.mxu1  ;;  %v2741_v22 = vperm.slane %v5897_v3, 1 }
 0x546   :  { %v2284_v19 = vadd.f32 %v2283_v12, %v2260_v20  ;;  %v2740_v20 = vperm.slane %v5897_v3, 0 }
 0x54b   :  { %v2326_v25 = vpop.f32.mrf.mxu3 }
 0x54c   :  { %v2327_v62 = vadd.f32 %v2326_v25, %v2304_v24 }
 0x555   :  { %v2306_v50 = vpop.f32.mrf.mxu2  ;;  %v2349_v29 = vpop.f32.mrf.mxu0 }
 0x556   :  { %v2350_v54 = vadd.f32 %v2349_v29, %v2327_v62  ;;  %v2307_v40 = vadd.f32 %v2306_v50, %v2284_v19  ;;  %v2372_v8 = vpop.f32.mrf.mxu1  ;;  %v2329_v59 = vpop.f32.mrf.mxu3 }
 0x558   :  { %v2373_v39 = vadd.f32 %v2372_v8, %v2350_v54  ;;  %v2330_v41 = vadd.f32 %v2329_v59, %v2307_v40 }
 0x55d   :  { %v2395_v16 = vpop.f32.mrf.mxu2 }
 0x55e   :  { %v10459_v21 = vadd.f32 %v2395_v16, %v2373_v39  ;;  %v2418_v30 = vpop.f32.mrf.mxu3 }
 0x55f   :  { %v2352_v5 = vpop.f32.mrf.mxu0 }
 0x560   :  { %2682 = vrot.lane.b32.xlu2 %v10459_v21, %s7548_s19  ;;  %2704 = vrot.lane.b32.xlu1 %v10459_v21, %s7549_s20  ;;  %v2353_v37 = vadd.f32 %v2352_v5, %v2330_v41  ;;  %v2749_v41 = vld [vmem:[%s11753_s4 + $0x8] sm:$0xff] }
 0x561   :  { %2726 = vrot.lane.b32.xlu0 %v10459_v21, %s7550_s24  ;;  %v2375_v7 = vpop.f32.mrf.mxu1 }
 0x562   :  { %v2376_v42 = vadd.f32 %v2375_v7, %v2353_v37  ;;  %v5896_v37 = vld [vmem:[%s11754_s5 + $0x7] ss:$8 sm:$0x3] }
 0x565   :  { %v2398_v1 = vpop.f32.mrf.mxu2 }
 0x566   :  { %v10467_v6 = vadd.f32 %v2398_v1, %v2376_v42  ;;  %v2421_v14 = vpop.f32.mrf.mxu3  ;;  %v2718_v1 = vperm.slane %v5896_v37, 0 }
 0x568   :  { %2628 = vrot.lane.b32.xlu1 %v10459_v21, %s7551_s25  ;;  %2706 = vrot.lane.b32.xlu2 %v10467_v6, %s7549_s20 }
 0x569   :  { %2660 = vrot.lane.b32.xlu0 %v10459_v21, %s7546_s22  ;;  %v2441_v0 = vpop.f32.mrf.mxu0  ;;  %v2464_v36 = vpop.f32.mrf.mxu1 }
 0x56a   :  { %v2442_v28 = vadd.f32 %v2441_v0, %v2418_v30  ;;  %v2719_v30 = vperm.slane %v5896_v37, 1  ;;  %v2751_v0 = vld [vmem:[%s11753_s4 + $0x18] sm:$0xff] }
 0x56c   :  { %v2465_v44 = vadd.f32 %v2464_v36, %v2442_v28 }
 0x570   :  { %2728 = vrot.lane.b32.xlu1 %v10467_v6, %s7550_s24  ;;  %2630 = vrot.lane.b32.xlu2 %v10467_v6, %s7551_s25  ;;  %v2487_v9 = vpop.f32.mrf.mxu2  ;;  %v2510_v10 = vpop.f32.mrf.mxu3 }
 0x571   :  { %2684 = vrot.lane.b32.xlu0 %v10467_v6, %s7548_s19  ;;  %v2488_v13 = vadd.f32 %v2487_v9, %v2465_v44 }
 0x572   :  { %v2444_v43 = vpop.f32.mrf.mxu0  ;;  %v2467_v56 = vpop.f32.mrf.mxu1 }
 0x573   :  { %v2445_v53 = vadd.f32 %v2444_v43, %v2421_v14  ;;  %v2511_v55 = vadd.f32 %v2510_v10, %v2488_v13 }
 0x575   :  { %v2468_v23 = vadd.f32 %v2467_v56, %v2445_v53  ;;  %v5895_v56 = vld [vmem:[%s11754_s5 + $0x6] ss:$8 sm:$0x3] }
 0x578   :  { %2662 = vrot.lane.b32.xlu1 %v10467_v6, %s7546_s22 }
 0x579   :  { %2608 = vrot.lane.b32.xlu0 %v10467_v6, %s7552_s26  ;;  %v2490_v27 = vpop.f32.mrf.mxu2  ;;  %v2513_v47 = vpop.f32.mrf.mxu3 }
 0x57a   :  { %v2491_v38 = vadd.f32 %v2490_v27, %v2468_v23  ;;  %v2697_v27 = vperm.slane %v5895_v56, 1 }
 0x57b   :  { %v2533_v17 = vpop.f32.mrf.mxu0 }
 0x57c   :  { %v2534_v2 = vadd.f32 %v2533_v17, %v2511_v55  ;;  %v2514_v61 = vadd.f32 %v2513_v47, %v2491_v38  ;;  %v5894_v17 = vld [vmem:[%s11754_s5 + $0x5] ss:$8 sm:$0x3]  ;;  %v2696_v55 = vperm.slane %v5895_v56, 0 }
 0x57f   :  { %v2556_v34 = vpop.f32.mrf.mxu1 }
 0x580   :  { %v10485_v46 = vadd.f32 %v2556_v34, %v2534_v2 }
 0x582   :  { %2708 = vrot.lane.b32.xlu2 %v10485_v46, %s7549_s20  ;;  %2730 = vrot.lane.b32.xlu1 %v10485_v46, %s7550_s24 }
 0x583   :  { %2686 = vrot.lane.b32.xlu0 %v10485_v46, %s7548_s19  ;;  %v2536_v48 = vpop.f32.mrf.mxu0 }
 0x584   :  { %v2537_v31 = vadd.f32 %v2536_v48, %v2514_v61  ;;  %v2674_v61 = vperm.slane %v5894_v17, 0 }
 0x587   :  { %v2559_v57 = vpop.f32.mrf.mxu1 }
 0x588   :  { %v10493_v33 = vadd.f32 %v2559_v57, %v2537_v31  ;;  %v2675_v31 = vperm.slane %v5894_v17, 1 }
 0x58a   :  { %2632 = vrot.lane.b32.xlu2 %v10485_v46, %s7551_s25  ;;  %2664 = vrot.lane.b32.xlu1 %v10485_v46, %s7546_s22 }
 0x58b   :  { %2710 = vrot.lane.b32.xlu0 %v10493_v33, %s7549_s20 }
 0x592   :  { %2732 = vrot.lane.b32.xlu2 %v10493_v33, %s7550_s24  ;;  %2688 = vrot.lane.b32.xlu1 %v10493_v33, %s7548_s19 }
 0x593   :  { %2610 = vrot.lane.b32.xlu0 %v10485_v46, %s7552_s26 }
 0x59a   :  { %2606 = vrot.lane.b32.xlu2 %v10459_v21, %s7552_s26  ;;  %2586 = vrot.lane.b32.xlu1 %v10467_v6, %s7553_s27 }
 0x59b   :  { %2634 = vrot.lane.b32.xlu0 %v10493_v33, %s7551_s25 }
 0x5a2   :  { %2666 = vrot.lane.b32.xlu2 %v10493_v33, %s7546_s22  ;;  %2612 = vrot.lane.b32.xlu1 %v10493_v33, %s7552_s26 }
 0x5a3   :  { %2584 = vrot.lane.b32.xlu0 %v10459_v21, %s7553_s27 }
 0x5aa   :  { %2564 = vrot.lane.b32.xlu2 %v10467_v6, %s11770_s3  ;;  %2588 = vrot.lane.b32.xlu1 %v10485_v46, %s7553_s27 }
 0x5ab   :  { %2568 = vrot.lane.b32.xlu0 %v10493_v33, %s11770_s3 }
 0x5b2   :  { %2590 = vrot.lane.b32.xlu2 %v10493_v33, %s7553_s27  ;;  %2562 = vrot.lane.b32.xlu1 %v10459_v21, %s11770_s3 }
 0x5b3   :  { %2762 = vperm.xlu0 %7198, %v2756_v32  }
 0x5ba   :  { %2566 = vrot.lane.b32.xlu2 %v10485_v46, %s11770_s3  ;;  %2767 = vperm.xlu1 %7289, %v2757_v18   ;;  %v10537_v58 = vpop.permute.xlu2 %2682  ;;  %v2753_v18 = vld [vmem:[%s11753_s4 + $0x28] sm:$0xff] }
 0x5c2   :  { %v2707_v52 = vpop.permute.xlu2 %2706 }
 0x5ca   :  { %v10539_v49 = vpop.permute.xlu2 %2630 }
 0x5d2   :  { %v2705_v35 = vpop.permute.xlu1 %2704 }
 0x5d3   :  { %v2727_v51 = vpop.permute.xlu0 %2726 }
 0x5da   :  { %v10541_v15 = vpop.permute.xlu1 %2628 }
 0x5db   :  { %v10543_v4 = vpop.permute.xlu0 %2660 }
 0x5dc   :  { %v2709_v26 = vpop.permute.xlu2 %2708 }
 0x5dd   :  { %v2712_v36 = vsel %vm1154_vm5, %v2705_v35, %v2709_v26  ;;  %v2714_v14 = vsel %vm1154_vm5, %v2709_v26, %v2705_v35 }
 0x5de   :  { %v2722_v13 = vmul.f32 %v2718_v1, %v2712_v36  ;;  %v2723_v10 = vmul.f32 %v2719_v30, %v2714_v14 }
 0x5e2   :  { %v2729_v60 = vpop.permute.xlu1 %2728 }
 0x5e3   :  { %v2685_v63 = vpop.permute.xlu0 %2684 }
 0x5e4   :  { %v10545_v45 = vpop.permute.xlu2 %2632 }
 0x5e5   :  { %v2638_v37 = vsel %vm1072_vm9, %v10545_v45, %v10541_v15 }
 0x5ea   :  { %v2663_v12 = vpop.permute.xlu1 %2662 }
 0x5eb   :  { %v10550_v25 = vpop.permute.xlu0 %2608 }
 0x5ec   :  { %v2733_v24 = vpop.permute.xlu2 %2732 }
 0x5ed   :  { %v2735_v50 = vsel %vm1178_vm7, %v2729_v60, %v2733_v24  ;;  %v2737_v62 = vsel %vm1178_vm7, %v2733_v24, %v2729_v60  ;;  %v5893_v60 = vld [vmem:[%s11754_s5 + $0x4] ss:$8 sm:$0x3] }
 0x5ee   :  { %v2746_v29 = vmul.f32 %v2740_v20, %v2735_v50  ;;  %v2747_v54 = vmul.f32 %v2741_v22, %v2737_v62  ;;  %v2652_v50 = vperm.slane %v5893_v60, 0  ;;  %v5892_v62 = vld [vmem:[%s11754_s5 + $0x3] ss:$8 sm:$0x3] }
 0x5f0   :  { %2835 = vmatpush.msrb.mxu3 %v2746_v29  ;;  %2893 = vmatpush.msrb.mxu0 %v2747_v54 }
 0x5f4   :  { %v2731_v19 = vpop.permute.xlu1 %2730  ;;  %v10563_v5 = vpop.permute.xlu2 %2606 }
 0x5f5   :  { %v2734_v40 = vsel %vm1178_vm7, %v2727_v51, %v2731_v19  ;;  %v2736_v8 = vsel %vm1178_vm7, %v2731_v19, %v2727_v51  ;;  %v2687_v39 = vpop.permute.xlu0 %2686  ;;  %v2653_v19 = vperm.slane %v5893_v60, 1 }
 0x5f6   :  { %v2744_v59 = vmul.f32 %v2740_v20, %v2734_v40  ;;  %v2745_v16 = vmul.f32 %v2741_v22, %v2736_v8  ;;  %v2690_v23 = vsel %vm1130_vm6, %v10537_v58, %v2687_v39  ;;  %v2692_v34 = vsel %vm1130_vm6, %v2687_v39, %v10537_v58  ;;  %v2755_v39 = vld [vmem:[%s11753_s4 + $0x38] sm:$0xff] }
 0x5f7   :  { %v2700_v35 = vmul.f32 %v2696_v55, %v2690_v23  ;;  %v2701_v51 = vmul.f32 %v2697_v27, %v2692_v34  ;;  %v2658_v40 = vmul.f32 %v2652_v50, %v10467_v6  ;;  %v2659_v8 = vmul.f32 %v2653_v19, %v10493_v33  ;;  %v5891_v33 = vld [vmem:[%s11754_s5 + $0x2] ss:$8 sm:$0x3] }
 0x5f8   :  { %2836 = vmatpush.msrb.mxu3 %v2744_v59  ;;  %2894 = vmatpush.msrb.mxu0 %v2745_v16  ;;  %v2642_v59 = vperm.slane %v5892_v62, 0  ;;  %v2643_v6 = vperm.slane %v5892_v62, 1 }
 0x5f9   :  { %5898 = vmatmul.msk.f32.vlgmr.msrb.gmra.mxu3 %vm1226_vm8, %v2749_v41  ;;  %5902 = vmatmul.msk.f32.vlgmr.msrb.gmra.mxu0 %vm1226_vm8, %v2749_v41  ;;  %v2656_v41 = vmul.f32 %v2652_v50, %v10459_v21  ;;  %v2636_v21 = vsel %vm1072_vm9, %v10541_v15, %v10545_v45 }
 0x5fa   :  { %v2647_v14 = vmul.f32 %v2643_v6, %v2636_v21 }
 0x5fc   :  { %v2665_v7 = vpop.permute.xlu1 %2664  ;;  %v2667_v53 = vpop.permute.xlu2 %2666 }
 0x5fd   :  { %v2711_v42 = vpop.permute.xlu0 %2710  ;;  %v2671_v58 = vsel %vm304_vm2, %v2667_v53, %v2663_v12  ;;  %v2668_v26 = vsel %vm304_vm2, %v10543_v4, %v2665_v7  ;;  %v2670_v20 = vsel %vm304_vm2, %v2665_v7, %v10543_v4  ;;  %v2657_v7 = vmul.f32 %v2653_v19, %v10485_v46 }
 0x5fe   :  { %v2713_v28 = vsel %vm1154_vm5, %v2707_v52, %v2711_v42  ;;  %v2715_v43 = vsel %vm1154_vm5, %v2711_v42, %v2707_v52  ;;  %v2669_v52 = vsel %vm304_vm2, %v2663_v12, %v2667_v53  ;;  %v2681_v3 = vmul.f32 %v2675_v31, %v2671_v58  ;;  %v5890_v42 = vld [vmem:[%s11754_s5 + $0x1] ss:$8 sm:$0x3] }
 0x5ff   :  { %v2724_v9 = vmul.f32 %v2718_v1, %v2713_v28  ;;  %v2725_v44 = vmul.f32 %v2719_v30, %v2715_v43  ;;  %v2678_v22 = vmul.f32 %v2674_v61, %v2668_v26  ;;  %v2679_v29 = vmul.f32 %v2675_v31, %v2670_v20 }
 0x600   :  { %v2646_v30 = vmul.f32 %v2642_v59, %v2638_v37  ;;  %v2621_v46 = vperm.slane %v5891_v33, 1  ;;  %v2598_v56 = vperm.slane %v5890_v42, 0  ;;  %v2599_v53 = vperm.slane %v5890_v42, 1 }
 0x601   :  { %5899 = vmatmul.msk.f32.gmra.mxu3 %vm1226_vm8, %v2751_v0  ;;  %5903 = vmatmul.msk.f32.gmra.mxu0 %vm1226_vm8, %v2751_v0  ;;  %v2620_v0 = vperm.slane %v5891_v33, 0 }
 0x602   :  { %2792 = vmatpush.msra.mxu2 %v2724_v9  ;;  %2850 = vmatpush.msra.mxu3 %v2725_v44 }
 0x604   :  { %2793 = vmatpush.msra.mxu2 %v2722_v13  ;;  %2851 = vmatpush.msra.mxu3 %v2723_v10  ;;  %v2689_v2 = vpop.permute.xlu1 %2688  ;;  %v10619_v12 = vpop.permute.xlu2 %2564 }
 0x605   :  { %v2691_v38 = vsel %vm1130_vm6, %v2685_v63, %v2689_v2  ;;  %v2693_v47 = vsel %vm1130_vm6, %v2689_v2, %v2685_v63  ;;  %v10599_v48 = vpop.permute.xlu0 %2610  ;;  %v2680_v63 = vmul.f32 %v2674_v61, %v2669_v52 }
 0x606   :  { %v2702_v57 = vmul.f32 %v2696_v55, %v2691_v38  ;;  %v2703_v32 = vmul.f32 %v2697_v27, %v2693_v47  ;;  %v2616_v15 = vsel %vm1048_vm10, %v10599_v48, %v10563_v5  ;;  %v2614_v9 = vsel %vm1048_vm10, %v10563_v5, %v10599_v48  ;;  %v2574_v5 = vld [vmem:[%s11754_s5] ss:$8 sm:$0x3] }
 0x607   :  { %v2624_v55 = vmul.f32 %v2620_v0, %v2616_v15  ;;  %v2625_v27 = vmul.f32 %v2621_v46, %v2614_v9  ;;  %v2576_v38 = vperm.slane %v2574_v5, 0  ;;  %v2577_v47 = vperm.slane %v2574_v5, 1  ;;  %v3027_v9 = vld [vmem:[%s11756_s7 + $0x78] sm:$0xff]  ;;  %v3022_v5 = vld [vmem:[%s11756_s7 + $0x50] sm:$0xff] }
 0x608   :  { %2794 = vmatpush.msra.mxu2 %v2702_v57  ;;  %2852 = vmatpush.msra.mxu3 %v2703_v32 }
 0x609   :  { %5900 = vmatmul.msk.f32.gmra.mxu3 %vm1226_vm8, %v2753_v18  ;;  %5904 = vmatmul.msk.f32.gmra.mxu0 %vm1226_vm8, %v2753_v18 }
 0x60a   :  { %2795 = vmatpush.msra.mxu2 %v2700_v35  ;;  %2853 = vmatpush.msra.mxu3 %v2701_v51 }
 0x60b   :  { %3044 = vmatpush.msra.mxu1 %v3027_v9 }
 0x60c   :  { %v2587_v24 = vpop.permute.xlu1 %2586  ;;  %2796 = vmatpush.msra.mxu2 %v2680_v63  ;;  %2854 = vmatpush.msra.mxu3 %v2681_v3  ;;  %v2591_v44 = vpop.permute.xlu2 %2590 }
 0x60d   :  { %v2635_v54 = vpop.permute.xlu0 %2634  ;;  %v2595_v17 = vsel %vm1024_vm11, %v2591_v44, %v2587_v24 }
 0x60e   :  { %2797 = vmatpush.msra.mxu2 %v2678_v22  ;;  %v2639_v4 = vsel %vm1072_vm9, %v2635_v54, %v10539_v49  ;;  %2855 = vmatpush.msra.mxu3 %v2679_v29  ;;  %v2637_v16 = vsel %vm1072_vm9, %v10539_v49, %v2635_v54  ;;  %v2604_v2 = vmul.f32 %v2598_v56, %v2595_v17  ;;  %v2748_v22 = vld [vmem:[%s11753_s4] sm:$0xff]  ;;  %v2754_v54 = vld [vmem:[%s11753_s4 + $0x30] sm:$0xff] }
 0x60f   :  { %v2648_v49 = vmul.f32 %v2642_v59, %v2639_v4  ;;  %v2649_v1 = vmul.f32 %v2643_v6, %v2637_v16  ;;  %v3024_v17 = vld [vmem:[%s11756_s7 + $0x60] sm:$0xff] }
 0x610   :  { %2798 = vmatpush.msra.mxu2 %v2658_v40  ;;  %2856 = vmatpush.msra.mxu3 %v2659_v8 }
 0x611   :  { %5905 = vmatmul.msk.f32.gmra.mxu0 %vm1226_vm8, %v2755_v39  ;;  %5901 = vmatmul.msk.f32.gmra.mxu3 %vm1226_vm8, %v2755_v39 }
 0x612   :  { %2799 = vmatpush.msra.mxu2 %v2656_v41  ;;  %2857 = vmatpush.msra.mxu3 %v2657_v7 }
 0x614   :  { %v2613_v36 = vpop.permute.xlu1 %2612  ;;  %2800 = vmatpush.msra.mxu2 %v2648_v49  ;;  %2858 = vmatpush.msra.mxu3 %v2649_v1  ;;  %v2567_v51 = vpop.permute.xlu2 %2566 }
 0x615   :  { %v2615_v45 = vsel %vm1048_vm10, %v10550_v25, %v2613_v36  ;;  %v2617_v28 = vsel %vm1048_vm10, %v2613_v36, %v10550_v25  ;;  %v2585_v43 = vpop.permute.xlu0 %2584  ;;  %v2593_v25 = vsel %vm1024_vm11, %v2587_v24, %v2591_v44  ;;  %v2752_v24 = vld [vmem:[%s11753_s4 + $0x20] sm:$0xff]  ;;  %v3043_v44 = vld [vmem:[%s11756_s7 + $0xf8] sm:$0xff] }
 0x616   :  { %v2626_v13 = vmul.f32 %v2620_v0, %v2617_v28  ;;  %v2627_v10 = vmul.f32 %v2621_v46, %v2615_v45  ;;  %2801 = vmatpush.msra.mxu2 %v2646_v30  ;;  %2859 = vmatpush.msra.mxu3 %v2647_v14  ;;  %v2605_v23 = vmul.f32 %v2599_v53, %v2593_v25  ;;  %v2758_v28 = vld [vmem:[%s11755_s6 + $0x10] sm:$0xff]  ;;  %v3023_v25 = vld [vmem:[%s11756_s7 + $0x58] sm:$0xff] }
 0x618   :  { %2802 = vmatpush.msra.mxu2 %v2626_v13  ;;  %2860 = vmatpush.msra.mxu3 %v2627_v10  ;;  %v3042_v13 = vld [vmem:[%s11756_s7 + $0xf0] sm:$0xff]  ;;  %v3025_v10 = vld [vmem:[%s11756_s7 + $0x68] sm:$0xff] }
 0x61a   :  { %2803 = vmatpush.msra.mxu2 %v2624_v55  ;;  %2861 = vmatpush.msra.mxu3 %v2625_v27  ;;  %v3040_v55 = vld [vmem:[%s11756_s7 + $0xe0] sm:$0xff]  ;;  %v3039_v27 = vld [vmem:[%s11756_s7 + $0xd8] sm:$0xff] }
 0x61c   :  { %v2589_v34 = vpop.permute.xlu1 %2588  ;;  %2804 = vmatpush.msra.mxu2 %v2604_v2  ;;  %2862 = vmatpush.msra.mxu3 %v2605_v23  ;;  %v3038_v2 = vld [vmem:[%s11756_s7 + $0xd0] sm:$0xff]  ;;  %v3021_v23 = vld [vmem:[%s11756_s7 + $0x48] sm:$0xff] }
 0x61d   :  { %v2592_v48 = vsel %vm1024_vm11, %v2585_v43, %v2589_v34  ;;  %v2594_v61 = vsel %vm1024_vm11, %v2589_v34, %v2585_v43  ;;  %v2569_v31 = vpop.permute.xlu0 %2568  ;;  %v2759_v43 = vld [vmem:[%s11755_s6 + $0x18] sm:$0xff]  ;;  %v3037_v34 = vld [vmem:[%s11756_s7 + $0xc8] sm:$0xff] }
 0x61e   :  { %v2602_v57 = vmul.f32 %v2598_v56, %v2594_v61  ;;  %v2603_v32 = vmul.f32 %v2599_v53, %v2592_v48  ;;  %v2571_v18 = vsel %vm1001_vm12, %v10619_v12, %v2569_v31  ;;  %v2573_v52 = vsel %vm1001_vm12, %v2569_v31, %v10619_v12  ;;  %v2750_v12 = vld [vmem:[%s11753_s4 + $0x10] sm:$0xff]  ;;  %v3041_v53 = vld [vmem:[%s11756_s7 + $0xe8] sm:$0xff]  ;;  %v3019_v48 = vld [vmem:[%s11756_s7 + $0x38] sm:$0xff] }
 0x61f   :  { %v2582_v58 = vmul.f32 %v2576_v38, %v2573_v52  ;;  %v2583_v35 = vmul.f32 %v2577_v47, %v2571_v18  ;;  %v3026_v56 = vld [vmem:[%s11756_s7 + $0x70] sm:$0xff]  ;;  %v3035_v61 = vld [vmem:[%s11756_s7 + $0xb8] sm:$0xff]  ;;  %v3033_v18 = vld [vmem:[%s11756_s7 + $0xa8] sm:$0xff] }
 0x620   :  { %2805 = vmatpush.msra.mxu2 %v2602_v57  ;;  %2863 = vmatpush.msra.mxu3 %v2603_v32  ;;  %v3018_v31 = vld [vmem:[%s11756_s7 + $0x30] sm:$0xff]  ;;  %v3017_v32 = vld [vmem:[%s11756_s7 + $0x28] sm:$0xff]  ;;  %v3016_v52 = vld [vmem:[%s11756_s7 + $0x20] sm:$0xff] }
 0x621   :  { %3045 = vmatpush.msra.mxu1 %v3026_v56  ;;  %v3034_v57 = vld [vmem:[%s11756_s7 + $0xb0] sm:$0xff] }
 0x622   :  { %2806 = vmatpush.msra.mxu2 %v2582_v58  ;;  %2864 = vmatpush.msra.mxu3 %v2583_v35  ;;  %v3032_v58 = vld [vmem:[%s11756_s7 + $0xa0] sm:$0xff]  ;;  %v3015_v35 = vld [vmem:[%s11756_s7 + $0x18] sm:$0xff] }
 0x623   :  { %3046 = vmatpush.msra.mxu1 %v3025_v10 }
 0x624   :  { %v2563_v26 = vpop.permute.xlu1 %2562 }
 0x625   :  { %v2570_v60 = vsel %vm1001_vm12, %v2563_v26, %v2567_v51  ;;  %v2572_v63 = vsel %vm1001_vm12, %v2567_v51, %v2563_v26  ;;  %v2763_v4 = vpop.permute.xlu0 %2762  ;;  %3047 = vmatpush.msra.mxu1 %v3024_v17  ;;  %v3031_v51 = vld [vmem:[%s11756_s7 + $0x98] sm:$0xff]  ;;  %v3014_v26 = vld [vmem:[%s11756_s7 + $0x10] sm:$0xff] }
 0x626   :  { %v2580_v3 = vmul.f32 %v2576_v38, %v2572_v63  ;;  %v2581_v20 = vmul.f32 %v2577_v47, %v2570_v60  ;;  %v3020_v38 = vld [vmem:[%s11756_s7 + $0x40] sm:$0xff]  ;;  %v3030_v60 = vld [vmem:[%s11756_s7 + $0x90] sm:$0xff]  ;;  %v3013_v63 = vld [vmem:[%s11756_s7 + $0x8] sm:$0xff] }
 0x627   :  { %3048 = vmatpush.msra.mxu1 %v3023_v25  ;;  %v3036_v47 = vld [vmem:[%s11756_s7 + $0xc0] sm:$0xff] }
 0x628   :  { %2807 = vmatpush.msra.mxu2 %v2580_v3  ;;  %2865 = vmatpush.msra.mxu3 %v2581_v20  ;;  %v3029_v3 = vld [vmem:[%s11756_s7 + $0x88] sm:$0xff] }
 0x629   :  { %2808 = vmatmul.f32.vlgmr.msra.gmra.mxu2 %v2748_v22  ;;  %2866 = vmatmul.f32.vlgmr.msra.gmra.mxu3 %v2748_v22  ;;  %v3012_v22 = vld [vmem:[%s11756_s7] sm:$0xff] }
 0x62a   :  { %3073 = vmatpush.msrb.mxu2 %v3043_v44  ;;  %3049 = vmatpush.msra.mxu1 %v3022_v5 }
 0x62c   :  { %v2768_v7 = vpop.permute.xlu1 %2767  ;;  %3074 = vmatpush.msrb.mxu2 %v3042_v13  ;;  %3050 = vmatpush.msra.mxu1 %v3021_v23 }
 0x62e   :  { %3075 = vmatpush.msrb.mxu2 %v3041_v53  ;;  %3051 = vmatpush.msra.mxu1 %v3020_v38 }
 0x630   :  { %3076 = vmatpush.msrb.mxu2 %v3040_v55  ;;  %3052 = vmatpush.msra.mxu1 %v3019_v48 }
 0x631   :  { %2811 = vmatmul.f32.gmra.mxu2 %v2750_v12  ;;  %2869 = vmatmul.f32.gmra.mxu3 %v2750_v12  ;;  %v3028_v12 = vld [vmem:[%s11756_s7 + $0x80] sm:$0xff] }
 0x632   :  { %3077 = vmatpush.msrb.mxu2 %v3039_v27  ;;  %3053 = vmatpush.msra.mxu1 %v3018_v31 }
 0x634   :  { %3078 = vmatpush.msrb.mxu2 %v3038_v2  ;;  %3054 = vmatpush.msra.mxu1 %v3017_v32 }
 0x636   :  { %3079 = vmatpush.msrb.mxu2 %v3037_v34  ;;  %3055 = vmatpush.msra.mxu1 %v3016_v52 }
 0x638   :  { %3080 = vmatpush.msrb.mxu2 %v3036_v47  ;;  %3056 = vmatpush.msra.mxu1 %v3015_v35 }
 0x639   :  { %2814 = vmatmul.f32.gmra.mxu2 %v2752_v24  ;;  %2872 = vmatmul.f32.gmra.mxu3 %v2752_v24 }
 0x63a   :  { %3081 = vmatpush.msrb.mxu2 %v3035_v61  ;;  %3057 = vmatpush.msra.mxu1 %v3014_v26 }
 0x63c   :  { %3082 = vmatpush.msrb.mxu2 %v3034_v57  ;;  %3058 = vmatpush.msra.mxu1 %v3013_v63 }
 0x63e   :  { %3083 = vmatpush.msrb.mxu2 %v3033_v18  ;;  %3059 = vmatpush.msra.mxu1 %v3012_v22 }
 0x640   :  { %3084 = vmatpush.msrb.mxu2 %v3032_v58 }
 0x641   :  { %2817 = vmatmul.f32.gmra.mxu2 %v2754_v54  ;;  %2875 = vmatmul.f32.gmra.mxu3 %v2754_v54 }
 0x642   :  { %3085 = vmatpush.msrb.mxu2 %v3031_v51 }
 0x644   :  { %3086 = vmatpush.msrb.mxu2 %v3030_v60 }
 0x646   :  { %3087 = vmatpush.msrb.mxu2 %v3029_v3 }
 0x648   :  { %3088 = vmatpush.msrb.mxu2 %v3028_v12 }
 0x676   :  { %v2896_v40 = vpop.f32.mrf.mxu0 }
 0x67c   :  { %v2838_v50 = vpop.f32.mrf.mxu3 }
 0x67e   :  { %v2899_v49 = vpop.f32.mrf.mxu0 }
 0x684   :  { %v2841_v62 = vpop.f32.mrf.mxu3 }
 0x686   :  { %v2902_v54 = vpop.f32.mrf.mxu0 }
 0x68c   :  { %v10697_v29 = vpop.f32.mrf.mxu3 }
 0x68e   :  { %v2905_v26 = vpop.f32.mrf.mxu0 }
 0x694   :  { %v10702_v19 = vpop.f32.mrf.mxu3 }
 0x6ac   :  { %v2809_v8 = vpop.f32.mrf.mxu2  ;;  %v2867_v39 = vpop.f32.mrf.mxu3 }
 0x6ad   :  { %v2810_v59 = vadd.f32 %v2809_v8, %v2763_v4  ;;  %v2868_v16 = vadd.f32 %v2867_v39, %v2763_v4 }
 0x6af   :  { %v10704_v41 = vadd.f32 %v2838_v50, %v2810_v59  ;;  %v10706_v6 = vadd.f32 %v2896_v40, %v2868_v16 }
 0x6b1   :  { %v2908_v37 = vmax.f32 %v10704_v41, 0.0  ;;  %v2909_v33 = vmax.f32 %v10706_v6, 0.0 }
 0x6b3   :  { %v7466_v21 = vpack.i.bf16 %v2909_v33, %v2908_v37 }
 0x6b4   :  { %v2812_v42 = vpop.f32.mrf.mxu2  ;;  %v2870_v1 = vpop.f32.mrf.mxu3 }
 0x6b5   :  { %v2813_v30 = vadd.f32 %v2812_v42, %v2768_v7  ;;  %v2871_v0 = vadd.f32 %v2870_v1, %v2768_v7  ;;  %7467 = vrot.lane.b32.xlu1 %v7466_v21, %s7550_s24  ;;  %7462 = vrot.lane.b32.xlu0 %v7466_v21, %s7549_s20 }
 0x6b6   :  { %7457 = vrot.lane.b32.xlu2 %v7466_v21, %s7546_s22 }
 0x6b7   :  { %v10717_v46 = vadd.f32 %v2841_v62, %v2813_v30  ;;  %v10719_v36 = vadd.f32 %v2899_v49, %v2871_v0 }
 0x6b9   :  { %v2910_v14 = vmax.f32 %v10717_v46, 0.0  ;;  %v2911_v15 = vmax.f32 %v10719_v36, 0.0 }
 0x6bb   :  { %v7476_v45 = vpack.i.bf16 %v2911_v15, %v2910_v14 }
 0x6bc   :  { %v2815_v24 = vpop.f32.mrf.mxu2  ;;  %v2873_v50 = vpop.f32.mrf.mxu3 }
 0x6bd   :  { %7477 = vrot.lane.b32.xlu1 %v7476_v45, %s7549_s20  ;;  %7472 = vrot.lane.b32.xlu0 %v7476_v45, %s7546_s22 }
 0x6be   :  { %2772 = vperm.xlu2 %7290, %v2758_v28  }
 0x6c4   :  { %v2818_v18 = vpop.f32.mrf.mxu2  ;;  %v2876_v52 = vpop.f32.mrf.mxu3 }
 0x6c5   :  { %2777 = vperm.xlu0 %7198, %v2759_v43  }
 0x6c6   :  { %7482 = vrot.lane.b32.xlu2 %v7476_v45, %s7550_s24 }
 0x710   :  { %v7458_v20 = vpop.permute.xlu2 %7457 }
 0x711   :  { %v7460_v21 = vunpack.i.h.bf16 %v7458_v20  ;;  %v7459_v49 = vunpack.i.l.bf16 %v7458_v20 }
 0x713   :  { %v2936_v42 = vsel %vm304_vm2, %v7460_v21, %v7459_v49 }
 0x714   :  { %v2941_v44 = vmax.f32 %v2909_v33, %v2936_v42  ;;  %v6951_v42 = vld [vmem:[%s11757_s8 + $0xa8] sm:$0xff] }
 0x718   :  { %v2773_v62 = vpop.permute.xlu2 %2772 }
 0x719   :  { %v2816_v40 = vadd.f32 %v2815_v24, %v2773_v62  ;;  %v2874_v4 = vadd.f32 %v2873_v50, %v2773_v62  ;;  %v6945_v50 = vld [vmem:[%s11757_s8 + $0x78] sm:$0xff] }
 0x71a   :  { %v6953_v62 = vld [vmem:[%s11757_s8 + $0xb8] sm:$0xff]  ;;  %5356 = vmatpush.bf16.msrb.mxu3 %v6945_v50 }
 0x71b   :  { %v10833_v8 = vadd.f32 %v10697_v29, %v2816_v40  ;;  %v10835_v39 = vadd.f32 %v2902_v54, %v2874_v4  ;;  %v2932_v29 = vsel %vm304_vm2, %v7459_v49, %v7460_v21  ;;  %v6961_v54 = vld [vmem:[%s11757_s8 + $0xf8] sm:$0xff]  ;;  %v6936_v40 = vld [vmem:[%s11757_s8 + $0x30] sm:$0xff]  ;;  %5369 = vmatpush.bf16.msrb.mxu1 %v6953_v62  ;;  %v6935_v49 = vld [vmem:[%s11757_s8 + $0x28] sm:$0xff] }
 0x71c   :  { %v2940_v9 = vmax.f32 %v2908_v37, %v2932_v29  ;;  %v6944_v4 = vld [vmem:[%s11757_s8 + $0x70] sm:$0xff]  ;;  %5382 = vmatpush.bf16.msra.mxu2 %v6961_v54  ;;  %v6943_v29 = vld [vmem:[%s11757_s8 + $0x68] sm:$0xff] }
 0x71d   :  { %v2912_v59 = vmax.f32 %v10833_v8, 0.0  ;;  %v2913_v16 = vmax.f32 %v10835_v39, 0.0  ;;  %v6960_v21 = vld [vmem:[%s11757_s8 + $0xf0] sm:$0xff]  ;;  %v6967_v62 = vld [vmem:[%s11757_s8 + $0x128] sm:$0xff] }
 0x71e   :  { %5357 = vmatpush.bf16.msrb.mxu3 %v6944_v4  ;;  %v6984_v39 = vld [vmem:[%s11757_s8 + $0x1b0] sm:$0xff]  ;;  %v6975_v54 = vld [vmem:[%s11757_s8 + $0x168] sm:$0xff] }
 0x71f   :  { %v7496_v7 = vpack.i.bf16 %v2913_v16, %v2912_v59  ;;  %v6991_v4 = vld [vmem:[%s11757_s8 + $0x1e8] sm:$0xff] }
 0x720   :  { %v7483_v37 = vpop.permute.xlu2 %7482  ;;  %5383 = vmatpush.bf16.msra.mxu2 %v6960_v21  ;;  %v6974_v21 = vld [vmem:[%s11757_s8 + $0x160] sm:$0xff] }
 0x721   :  { %7497 = vrot.lane.b32.xlu0 %v7496_v7, %s7550_s24  ;;  %7492 = vrot.lane.b32.xlu2 %v7496_v7, %s7549_s20  ;;  %v7485_v34 = vunpack.i.h.bf16 %v7483_v37  ;;  %v7484_v38 = vunpack.i.l.bf16 %v7483_v37  ;;  %v6955_v37 = vld [vmem:[%s11757_s8 + $0xc8] sm:$0xff] }
 0x722   :  { %7487 = vrot.lane.b32.xlu1 %v7496_v7, %s7546_s22  ;;  %v6952_v7 = vld [vmem:[%s11757_s8 + $0xb0] sm:$0xff]  ;;  %5358 = vmatpush.bf16.msrb.mxu3 %v6943_v29  ;;  %v6990_v29 = vld [vmem:[%s11757_s8 + $0x1e0] sm:$0xff] }
 0x723   :  { %v2997_v51 = vsel %vm1178_vm7, %v7484_v38, %v7485_v34  ;;  %v3001_v46 = vsel %vm1178_vm7, %v7485_v34, %v7484_v38  ;;  %5370 = vmatpush.bf16.msrb.mxu1 %v6952_v7  ;;  %v6969_v38 = vld [vmem:[%s11757_s8 + $0x138] sm:$0xff]  ;;  %v6966_v7 = vld [vmem:[%s11757_s8 + $0x120] sm:$0xff] }
 0x727   :  { %v7468_v1 = vpop.permute.xlu1 %7467  ;;  %v7463_v30 = vpop.permute.xlu0 %7462  ;;  %5371 = vmatpush.bf16.msrb.mxu1 %v6951_v42  ;;  %v6965_v42 = vld [vmem:[%s11757_s8 + $0x118] sm:$0xff] }
 0x728   :  { %v7470_v0 = vunpack.i.h.bf16 %v7468_v1  ;;  %v7469_v45 = vunpack.i.l.bf16 %v7468_v1  ;;  %v7465_v28 = vunpack.i.h.bf16 %v7463_v30  ;;  %v7464_v43 = vunpack.i.l.bf16 %v7463_v30  ;;  %v6959_v1 = vld [vmem:[%s11757_s8 + $0xe8] sm:$0xff]  ;;  %v6934_v30 = vld [vmem:[%s11757_s8 + $0x20] sm:$0xff] }
 0x729   :  { %5384 = vmatpush.bf16.msra.mxu2 %v6959_v1  ;;  %v6973_v1 = vld [vmem:[%s11757_s8 + $0x158] sm:$0xff] }
 0x72a   :  { %v2964_v56 = vsel %vm1154_vm5, %v7464_v43, %v7465_v28  ;;  %v2968_v13 = vsel %vm1154_vm5, %v7465_v28, %v7464_v43  ;;  %v2996_v17 = vsel %vm1178_vm7, %v7469_v45, %v7470_v0  ;;  %v3000_v55 = vsel %vm1178_vm7, %v7470_v0, %v7469_v45  ;;  %v6942_v0 = vld [vmem:[%s11757_s8 + $0x60] sm:$0xff]  ;;  %v6933_v43 = vld [vmem:[%s11757_s8 + $0x18] sm:$0xff] }
 0x72b   :  { %v2972_v10 = vmax.f32 %v2940_v9, %v2964_v56  ;;  %v2973_v53 = vmax.f32 %v2941_v44, %v2968_v13  ;;  %v6950_v45 = vld [vmem:[%s11757_s8 + $0xa0] sm:$0xff]  ;;  %5359 = vmatpush.bf16.msrb.mxu3 %v6942_v0  ;;  %v6941_v9 = vld [vmem:[%s11757_s8 + $0x58] sm:$0xff]  ;;  %v6932_v13 = vld [vmem:[%s11757_s8 + $0x10] sm:$0xff] }
 0x72c   :  { %v6958_v28 = vld [vmem:[%s11757_s8 + $0xe0] sm:$0xff]  ;;  %5372 = vmatpush.bf16.msrb.mxu1 %v6950_v45  ;;  %v6949_v44 = vld [vmem:[%s11757_s8 + $0x98] sm:$0xff]  ;;  %v6964_v45 = vld [vmem:[%s11757_s8 + $0x110] sm:$0xff] }
 0x72d   :  { %v3004_v25 = vmax.f32 %v2972_v10, %v2996_v17  ;;  %v3005_v41 = vmax.f32 %v2973_v53, %v3000_v55  ;;  %5385 = vmatpush.bf16.msra.mxu2 %v6958_v28  ;;  %v6957_v56 = vld [vmem:[%s11757_s8 + $0xd8] sm:$0xff]  ;;  %v6940_v10 = vld [vmem:[%s11757_s8 + $0x50] sm:$0xff]  ;;  %v6931_v55 = vld [vmem:[%s11757_s8 + $0x8] sm:$0xff] }
 0x72e   :  { %v6948_v53 = vld [vmem:[%s11757_s8 + $0x90] sm:$0xff]  ;;  %v6989_v0 = vld [vmem:[%s11757_s8 + $0x1d8] sm:$0xff] }
 0x72f   :  { %v7478_v27 = vpop.permute.xlu1 %7477  ;;  %v7473_v6 = vpop.permute.xlu0 %7472  ;;  %3060 = vmatmul.f32.vlgmr.msra.gmra.mxu1 %v3004_v25  ;;  %3089 = vmatmul.f32.vlgmr.msrb.gmra.mxu2 %v3005_v41  ;;  %v6956_v17 = vld [vmem:[%s11757_s8 + $0xd0] sm:$0xff]  ;;  %v6939_v25 = vld [vmem:[%s11757_s8 + $0x48] sm:$0xff] }
 0x730   :  { %v7480_v33 = vunpack.i.h.bf16 %v7478_v27  ;;  %v7479_v5 = vunpack.i.l.bf16 %v7478_v27  ;;  %v7475_v2 = vunpack.i.h.bf16 %v7473_v6  ;;  %v7474_v23 = vunpack.i.l.bf16 %v7473_v6  ;;  %5360 = vmatpush.bf16.msrb.mxu3 %v6941_v9  ;;  %5373 = vmatpush.bf16.msrb.mxu1 %v6949_v44  ;;  %v6947_v41 = vld [vmem:[%s11757_s8 + $0x88] sm:$0xff]  ;;  %v6930_v6 = vld [vmem:[%s11757_s8] sm:$0xff]  ;;  %v6972_v28 = vld [vmem:[%s11757_s8 + $0x150] sm:$0xff] }
 0x731   :  { %5386 = vmatpush.bf16.msra.mxu2 %v6957_v56  ;;  %v6988_v9 = vld [vmem:[%s11757_s8 + $0x1d0] sm:$0xff]  ;;  %v6963_v44 = vld [vmem:[%s11757_s8 + $0x108] sm:$0xff] }
 0x732   :  { %v2933_v47 = vsel %vm304_vm2, %v7474_v23, %v7475_v2  ;;  %v2937_v48 = vsel %vm304_vm2, %v7475_v2, %v7474_v23  ;;  %v2965_v57 = vsel %vm1154_vm5, %v7479_v5, %v7480_v33  ;;  %v2969_v32 = vsel %vm1154_vm5, %v7480_v33, %v7479_v5  ;;  %v6938_v33 = vld [vmem:[%s11757_s8 + $0x40] sm:$0xff]  ;;  %v6971_v56 = vld [vmem:[%s11757_s8 + $0x148] sm:$0xff] }
 0x733   :  { %v2942_v61 = vmax.f32 %v2910_v14, %v2933_v47  ;;  %v2943_v31 = vmax.f32 %v2911_v15, %v2937_v48  ;;  %v6946_v5 = vld [vmem:[%s11757_s8 + $0x80] sm:$0xff]  ;;  %v6977_v47 = vld [vmem:[%s11757_s8 + $0x178] sm:$0xff] }
 0x734   :  { %5361 = vmatpush.bf16.msrb.mxu3 %v6940_v10  ;;  %5374 = vmatpush.bf16.msrb.mxu1 %v6948_v53  ;;  %v6954_v2 = vld [vmem:[%s11757_s8 + $0xc0] sm:$0xff]  ;;  %v6987_v10 = vld [vmem:[%s11757_s8 + $0x1c8] sm:$0xff] }
 0x735   :  { %v2974_v58 = vmax.f32 %v2942_v61, %v2965_v57  ;;  %v2975_v35 = vmax.f32 %v2943_v31, %v2969_v32  ;;  %5387 = vmatpush.bf16.msra.mxu2 %v6956_v17  ;;  %v6962_v53 = vld [vmem:[%s11757_s8 + $0x100] sm:$0xff] }
 0x736   :  { %v6970_v17 = vld [vmem:[%s11757_s8 + $0x140] sm:$0xff] }
 0x737   :  { %v2778_v14 = vpop.permute.xlu0 %2777  ;;  %v3006_v36 = vmax.f32 %v2974_v58, %v2997_v51  ;;  %v3007_v15 = vmax.f32 %v2975_v35, %v3001_v46  ;;  %v6985_v35 = vld [vmem:[%s11757_s8 + $0x1b8] sm:$0xff] }
 0x738   :  { %v2819_v60 = vadd.f32 %v2818_v18, %v2778_v14  ;;  %v2877_v63 = vadd.f32 %v2876_v52, %v2778_v14  ;;  %5362 = vmatpush.bf16.msrb.mxu3 %v6939_v25  ;;  %5375 = vmatpush.bf16.msrb.mxu1 %v6947_v41  ;;  %v6993_v51 = vld [vmem:[%s11757_s8 + $0x1f8] sm:$0xff]  ;;  %v6978_v25 = vld [vmem:[%s11757_s8 + $0x180] sm:$0xff] }
 0x739   :  { %3063 = vmatmul.f32.gmra.mxu1 %v3006_v36  ;;  %3092 = vmatmul.f32.gmra.mxu2 %v3007_v15  ;;  %v6976_v36 = vld [vmem:[%s11757_s8 + $0x170] sm:$0xff]  ;;  %v6986_v41 = vld [vmem:[%s11757_s8 + $0x1c0] sm:$0xff] }
 0x73a   :  { %v10879_v3 = vadd.f32 %v10702_v19, %v2819_v60  ;;  %v10881_v20 = vadd.f32 %v2905_v26, %v2877_v63  ;;  %v6937_v19 = vld [vmem:[%s11757_s8 + $0x38] sm:$0xff]  ;;  %5388 = vmatpush.bf16.msra.mxu2 %v6955_v37  ;;  %v6968_v26 = vld [vmem:[%s11757_s8 + $0x130] sm:$0xff] }
 0x73b   :  { %5343 = vmatpush.bf16.msra.mxu0 %v6937_v19 }
 0x73c   :  { %v2914_v22 = vmax.f32 %v10879_v3, 0.0  ;;  %v2915_v12 = vmax.f32 %v10881_v20, 0.0  ;;  %5363 = vmatpush.bf16.msrb.mxu3 %v6938_v33  ;;  %5376 = vmatpush.bf16.msrb.mxu1 %v6946_v5 }
 0x73e   :  { %v7511_v24 = vpack.i.bf16 %v2915_v12, %v2914_v22  ;;  %5389 = vmatpush.bf16.msra.mxu2 %v6954_v2 }
 0x73f   :  { %5344 = vmatpush.bf16.msra.mxu0 %v6936_v40  ;;  %v6983_v40 = vld [vmem:[%s11757_s8 + $0x1a8] sm:$0xff] }
 0x740   :  { %7512 = vrot.lane.b32.xlu0 %v7511_v24, %s7550_s24  ;;  %7507 = vrot.lane.b32.xlu2 %v7511_v24, %s7549_s20 }
 0x741   :  { %7502 = vrot.lane.b32.xlu1 %v7511_v24, %s7546_s22  ;;  %5408 = vmatpush.bf16.msra.mxu3 %v6977_v47 }
 0x742   :  { %5421 = vmatpush.bf16.msra.mxu1 %v6985_v35  ;;  %5434 = vmatpush.bf16.msrb.mxu2 %v6993_v51 }
 0x743   :  { %5345 = vmatpush.bf16.msra.mxu0 %v6935_v49  ;;  %v6982_v49 = vld [vmem:[%s11757_s8 + $0x1a0] sm:$0xff] }
 0x745   :  { %5409 = vmatpush.bf16.msra.mxu3 %v6976_v36 }
 0x746   :  { %5422 = vmatpush.bf16.msra.mxu1 %v6984_v39 }
 0x747   :  { %5346 = vmatpush.bf16.msra.mxu0 %v6934_v30  ;;  %v6981_v30 = vld [vmem:[%s11757_s8 + $0x198] sm:$0xff] }
 0x749   :  { %5410 = vmatpush.bf16.msra.mxu3 %v6975_v54 }
 0x74a   :  { %5423 = vmatpush.bf16.msra.mxu1 %v6983_v40 }
 0x74b   :  { %5347 = vmatpush.bf16.msra.mxu0 %v6933_v43  ;;  %v6980_v43 = vld [vmem:[%s11757_s8 + $0x190] sm:$0xff] }
 0x74d   :  { %5411 = vmatpush.bf16.msra.mxu3 %v6974_v21  ;;  %v7009_v21 = vld [vmem:[%s11757_s8 + $0x278] sm:$0xff] }
 0x74e   :  { %5424 = vmatpush.bf16.msra.mxu1 %v6982_v49 }
 0x74f   :  { %5348 = vmatpush.bf16.msra.mxu0 %v6932_v13  ;;  %v6979_v13 = vld [vmem:[%s11757_s8 + $0x188] sm:$0xff] }
 0x751   :  { %5412 = vmatpush.bf16.msra.mxu3 %v6973_v1 }
 0x752   :  { %5425 = vmatpush.bf16.msra.mxu1 %v6981_v30 }
 0x753   :  { %5349 = vmatpush.bf16.msra.mxu0 %v6931_v55 }
 0x755   :  { %5413 = vmatpush.bf16.msra.mxu3 %v6972_v28 }
 0x756   :  { %5426 = vmatpush.bf16.msra.mxu1 %v6980_v43 }
 0x757   :  { %5350 = vmatpush.bf16.msra.mxu0 %v6930_v6 }
 0x759   :  { %5414 = vmatpush.bf16.msra.mxu3 %v6971_v56  ;;  %v7025_v56 = vld [vmem:[%s11757_s8 + $0x2f8] sm:$0xff] }
 0x75a   :  { %5427 = vmatpush.bf16.msra.mxu1 %v6979_v13  ;;  %v7000_v13 = vld [vmem:[%s11757_s8 + $0x230] sm:$0xff] }
 0x75b   :  { %5395 = vmatpush.bf16.msrb.mxu0 %v6969_v38 }
 0x75d   :  { %5415 = vmatpush.bf16.msra.mxu3 %v6970_v17  ;;  %v7024_v17 = vld [vmem:[%s11757_s8 + $0x2f0] sm:$0xff] }
 0x75e   :  { %5428 = vmatpush.bf16.msra.mxu1 %v6978_v25 }
 0x75f   :  { %5396 = vmatpush.bf16.msrb.mxu0 %v6968_v26 }
 0x763   :  { %5397 = vmatpush.bf16.msrb.mxu0 %v6967_v62 }
 0x767   :  { %5398 = vmatpush.bf16.msrb.mxu0 %v6966_v7  ;;  %v7001_v7 = vld [vmem:[%s11757_s8 + $0x238] sm:$0xff] }
 0x76b   :  { %5399 = vmatpush.bf16.msrb.mxu0 %v6965_v42 }
 0x76f   :  { %5400 = vmatpush.bf16.msrb.mxu0 %v6964_v45 }
 0x773   :  { %5401 = vmatpush.bf16.msrb.mxu0 %v6963_v44  ;;  %v7017_v44 = vld [vmem:[%s11757_s8 + $0x2b8] sm:$0xff] }
 0x777   :  { %5402 = vmatpush.bf16.msrb.mxu0 %v6962_v53  ;;  %v7016_v53 = vld [vmem:[%s11757_s8 + $0x2b0] sm:$0xff] }
 0x77b   :  { %v7493_v27 = vpop.permute.xlu2 %7492 }
 0x77c   :  { %v7495_v48 = vunpack.i.h.bf16 %v7493_v27  ;;  %v7494_v61 = vunpack.i.l.bf16 %v7493_v27 }
 0x77e   :  { %v2966_v15 = vsel %vm1154_vm5, %v7494_v61, %v7495_v48  ;;  %v2970_v8 = vsel %vm1154_vm5, %v7495_v48, %v7494_v61 }
 0x793   :  { %v7498_v23 = vpop.permute.xlu0 %7497 }
 0x794   :  { %v7488_v34 = vpop.permute.xlu1 %7487  ;;  %v7500_v32 = vunpack.i.h.bf16 %v7498_v23  ;;  %v7499_v18 = vunpack.i.l.bf16 %v7498_v23 }
 0x795   :  { %v7490_v31 = vunpack.i.h.bf16 %v7488_v34  ;;  %v7489_v57 = vunpack.i.l.bf16 %v7488_v34 }
 0x796   :  { %v2998_v63 = vsel %vm1178_vm7, %v7499_v18, %v7500_v32  ;;  %v3002_v24 = vsel %vm1178_vm7, %v7500_v32, %v7499_v18 }
 0x797   :  { %v2934_v52 = vsel %vm304_vm2, %v7489_v57, %v7490_v31  ;;  %v2938_v58 = vsel %vm304_vm2, %v7490_v31, %v7489_v57 }
 0x798   :  { %v2944_v46 = vmax.f32 %v2912_v59, %v2934_v52  ;;  %v2945_v14 = vmax.f32 %v2913_v16, %v2938_v58  ;;  %v6992_v59 = vld [vmem:[%s11757_s8 + $0x1f0] sm:$0xff] }
 0x799   :  { %5435 = vmatpush.bf16.msrb.mxu2 %v6992_v59 }
 0x79a   :  { %v2976_v16 = vmax.f32 %v2944_v46, %v2966_v15  ;;  %v2977_v60 = vmax.f32 %v2945_v14, %v2970_v8  ;;  %v7508_v55 = vpop.permute.xlu2 %7507 }
 0x79b   :  { %v7510_v2 = vunpack.i.h.bf16 %v7508_v55  ;;  %v7509_v23 = vunpack.i.l.bf16 %v7508_v55  ;;  %v6999_v55 = vld [vmem:[%s11757_s8 + $0x228] sm:$0xff] }
 0x79c   :  { %v3008_v19 = vmax.f32 %v2976_v16, %v2998_v63  ;;  %v3009_v50 = vmax.f32 %v2977_v60, %v3002_v24 }
 0x79d   :  { %5436 = vmatpush.bf16.msrb.mxu2 %v6991_v4  ;;  %v2967_v18 = vsel %vm1154_vm5, %v7509_v23, %v7510_v2  ;;  %v2971_v52 = vsel %vm1154_vm5, %v7510_v2, %v7509_v23  ;;  %v7023_v2 = vld [vmem:[%s11757_s8 + $0x2e8] sm:$0xff]  ;;  %v6998_v23 = vld [vmem:[%s11757_s8 + $0x220] sm:$0xff] }
 0x79e   :  { %3066 = vmatmul.f32.gmra.mxu1 %v3008_v19  ;;  %3095 = vmatmul.f32.gmra.mxu2 %v3009_v50 }
 0x7a1   :  { %5437 = vmatpush.bf16.msrb.mxu2 %v6990_v29 }
 0x7a5   :  { %5438 = vmatpush.bf16.msrb.mxu2 %v6989_v0 }
 0x7a9   :  { %5439 = vmatpush.bf16.msrb.mxu2 %v6988_v9 }
 0x7ac   :  { %v3061_v37 = vpop.f32.mrf.mxu1 }
 0x7ad   :  { %5440 = vmatpush.bf16.msrb.mxu2 %v6987_v10  ;;  %v7008_v10 = vld [vmem:[%s11757_s8 + $0x270] sm:$0xff] }
 0x7b1   :  { %5441 = vmatpush.bf16.msrb.mxu2 %v6986_v41 }
 0x7b2   :  { %v3090_v27 = vpop.f32.mrf.mxu2  ;;  %v7513_v6 = vpop.permute.xlu0 %7512 }
 0x7b3   :  { %v7503_v33 = vpop.permute.xlu1 %7502  ;;  %v3091_v5 = vadd.f32 %v3090_v27, %v3061_v37  ;;  %v7515_v47 = vunpack.i.h.bf16 %v7513_v6  ;;  %v7514_v48 = vunpack.i.l.bf16 %v7513_v6  ;;  %v7007_v27 = vld [vmem:[%s11757_s8 + $0x268] sm:$0xff] }
 0x7b4   :  { %v7505_v34 = vunpack.i.h.bf16 %v7503_v33  ;;  %v7504_v38 = vunpack.i.l.bf16 %v7503_v33 }
 0x7b5   :  { %3102 = vst [vmem:[#allocation2] sm:$0xff] %v3091_v5  ;;  %v2999_v51 = vsel %vm1178_vm7, %v7514_v48, %v7515_v47  ;;  %v3003_v46 = vsel %vm1178_vm7, %v7515_v47, %v7514_v48  ;;  %v7015_v5 = vld [vmem:[%s11757_s8 + $0x2a8] sm:$0xff]  ;;  %v7022_v47 = vld [vmem:[%s11757_s8 + $0x2e0] sm:$0xff] }
 0x7b6   :  { %v2935_v61 = vsel %vm304_vm2, %v7504_v38, %v7505_v34  ;;  %v2939_v31 = vsel %vm304_vm2, %v7505_v34, %v7504_v38  ;;  %v7006_v34 = vld [vmem:[%s11757_s8 + $0x260] sm:$0xff] }
 0x7b7   :  { %v2946_v57 = vmax.f32 %v2914_v22, %v2935_v61  ;;  %v2947_v32 = vmax.f32 %v2915_v12, %v2939_v31  ;;  %v3064_v22 = vpop.f32.mrf.mxu1  ;;  %v7014_v38 = vld [vmem:[%s11757_s8 + $0x2a0] sm:$0xff]  ;;  %v6997_v31 = vld [vmem:[%s11757_s8 + $0x218] sm:$0xff] }
 0x7b9   :  { %v2978_v58 = vmax.f32 %v2946_v57, %v2967_v18  ;;  %v2979_v35 = vmax.f32 %v2947_v32, %v2971_v52  ;;  %v7005_v57 = vld [vmem:[%s11757_s8 + $0x258] sm:$0xff] }
 0x7ba   :  { %v7013_v52 = vld [vmem:[%s11757_s8 + $0x298] sm:$0xff] }
 0x7bb   :  { %v3010_v14 = vmax.f32 %v2978_v58, %v2999_v51  ;;  %v3011_v3 = vmax.f32 %v2979_v35, %v3003_v46  ;;  %v7021_v58 = vld [vmem:[%s11757_s8 + $0x2d8] sm:$0xff]  ;;  %v6996_v35 = vld [vmem:[%s11757_s8 + $0x210] sm:$0xff] }
 0x7bc   :  { %v3093_v26 = vpop.f32.mrf.mxu2  ;;  %v3106_v20 = vld [vmem:[#allocation2] sm:$0x1]  ;;  %v3108_v12 = vld [vmem:[#allocation2 + $0x1] sm:$0x1]  ;;  %v3110_v15 = vld [vmem:[#allocation2 + $0x2] sm:$0x1] }
 0x7bd   :  { %3069 = vmatmul.f32.gmra.mxu1 %v3010_v14  ;;  %v3094_v36 = vadd.f32 %v3093_v26, %v3064_v22  ;;  %3098 = vmatmul.f32.gmra.mxu2 %v3011_v3  ;;  %3107 = vst [vmem:[#allocation3 + $0x1] sm:$0x1] %v3106_v20  ;;  %v3112_v8 = vld [vmem:[#allocation2 + $0x3] sm:$0x1]  ;;  %v3114_v39 = vld [vmem:[#allocation2 + $0x4] sm:$0x1] }
 0x7be   :  { %3109 = vst [vmem:[#allocation3 + $0x3] sm:$0x1] %v3108_v12  ;;  %v3116_v59 = vld [vmem:[#allocation2 + $0x5] sm:$0x1]  ;;  %v3118_v11 = vld [vmem:[#allocation2 + $0x6] sm:$0x1] }
 0x7bf   :  { %3103 = vst [vmem:[#allocation2 + $0x8] sm:$0xff] %v3094_v36  ;;  %v3120_v16 = vld [vmem:[#allocation2 + $0x7] sm:$0x1]  ;;  %v7004_v51 = vld [vmem:[%s11757_s8 + $0x250] sm:$0xff]  ;;  %v6994_v12 = vld [vmem:[%s11757_s8 + $0x200] sm:$0xff] }
 0x7c0   :  { %3111 = vst [vmem:[#allocation3 + $0x5] sm:$0x1] %v3110_v15  ;;  %v7012_v46 = vld [vmem:[%s11757_s8 + $0x290] sm:$0xff]  ;;  %v6995_v3 = vld [vmem:[%s11757_s8 + $0x208] sm:$0xff]  ;;  %v7002_v36 = vld [vmem:[%s11757_s8 + $0x240] sm:$0xff] }
 0x7c1   :  { %3113 = vst [vmem:[#allocation3 + $0x7] sm:$0x1] %v3112_v8  ;;  %v7020_v14 = vld [vmem:[%s11757_s8 + $0x2d0] sm:$0xff]  ;;  %v7003_v22 = vld [vmem:[%s11757_s8 + $0x248] sm:$0xff]  ;;  %v7010_v15 = vld [vmem:[%s11757_s8 + $0x280] sm:$0xff] }
 0x7c2   :  { %3115 = vst [vmem:[#allocation3 + $0x9] sm:$0x1] %v3114_v39  ;;  %v7011_v26 = vld [vmem:[%s11757_s8 + $0x288] sm:$0xff]  ;;  %v7018_v8 = vld [vmem:[%s11757_s8 + $0x2c0] sm:$0xff]  ;;  %v7033_v39 = vld [vmem:[%s11757_s8 + $0x338] sm:$0xff] }
 0x7c3   :  { %3117 = vst [vmem:[#allocation3 + $0xb] sm:$0x1] %v3116_v59  ;;  %v7019_v20 = vld [vmem:[%s11757_s8 + $0x2c8] sm:$0xff]  ;;  %v7041_v59 = vld [vmem:[%s11757_s8 + $0x378] sm:$0xff] }
 0x7c4   :  { %3119 = vst [vmem:[#allocation3 + $0xd] sm:$0x1] %v3118_v11  ;;  %v7049_v11 = vld [vmem:[%s11757_s8 + $0x3b8] sm:$0xff] }
 0x7c5   :  { %3121 = vst [vmem:[#allocation3 + $0xf] sm:$0x1] %v3120_v16  ;;  %v7057_v16 = vld [vmem:[%s11757_s8 + $0x3f8] sm:$0xff] }
 0x7c6   :  { %v3122_v60 = vld [vmem:[#allocation2 + $0x8] sm:$0x1]  ;;  %v3124_v63 = vld [vmem:[#allocation2 + $0x9] sm:$0x1]  ;;  %v3126_v24 = vld [vmem:[#allocation2 + $0xa] sm:$0x1] }
 0x7c7   :  { %3123 = vst [vmem:[#allocation3 + $0x11] sm:$0x1] %v3122_v60  ;;  %v3128_v50 = vld [vmem:[#allocation2 + $0xb] sm:$0x1]  ;;  %v3130_v62 = vld [vmem:[#allocation2 + $0xc] sm:$0x1] }
 0x7c8   :  { %v3170_v19 = vld [vmem:[#allocation3] sm:$0xff]  ;;  %3125 = vst [vmem:[#allocation3 + $0x13] sm:$0x1] %v3124_v63  ;;  %v3132_v54 = vld [vmem:[#allocation2 + $0xd] sm:$0x1] }
 0x7c9   :  { %3186 = vst [vmem:[#allocation1] ss:$4 sm:$0xff] %v3170_v19  ;;  %v3134_v4 = vld [vmem:[#allocation2 + $0xe] sm:$0x1]  ;;  %v3136_v49 = vld [vmem:[#allocation2 + $0xf] sm:$0x1] }
 0x7ca   :  { %3127 = vst [vmem:[#allocation3 + $0x15] sm:$0x1] %v3126_v24 }
 0x7cb   :  { %3129 = vst [vmem:[#allocation3 + $0x17] sm:$0x1] %v3128_v50 }
 0x7cc   :  { %v3171_v40 = vld [vmem:[#allocation3 + $0x8] sm:$0xff]  ;;  %3131 = vst [vmem:[#allocation3 + $0x19] sm:$0x1] %v3130_v62 }
 0x7cd   :  { %3188 = vst [vmem:[#allocation1 + $0x20] ss:$4 sm:$0xff] %v3171_v40  ;;  %v7040_v40 = vld [vmem:[%s11757_s8 + $0x370] sm:$0xff] }
 0x7ce   :  { %3133 = vst [vmem:[#allocation3 + $0x1b] sm:$0x1] %v3132_v54  ;;  %v7032_v54 = vld [vmem:[%s11757_s8 + $0x330] sm:$0xff] }
 0x7cf   :  { %3135 = vst [vmem:[#allocation3 + $0x1d] sm:$0x1] %v3134_v4 }
 0x7d0   :  { %v3189_v29 = vld.sshfl [vmem:[#allocation1] sm:$0xff pattern:$0x73625140]  ;;  %v3190_v42 = vld.sshfl [vmem:[#allocation1 + $0x8] sm:$0xff pattern:$0x73625140] }
 0x7d1   :  { %v3259_v1 = vpack.c.bf16 %v3189_v29, %v3189_v29  ;;  %v3260_v30 = vpack.c.bf16 %v3190_v42, %v3190_v42  ;;  %v3191_v0 = vld.sshfl [vmem:[#allocation1 + $0x10] sm:$0xff pattern:$0x73625140]  ;;  %v3192_v45 = vld.sshfl [vmem:[#allocation1 + $0x18] sm:$0xff pattern:$0x73625140] }
 0x7d2   :  { %v3261_v28 = vpack.c.bf16 %v3191_v0, %v3191_v0  ;;  %v3172_v43 = vld [vmem:[#allocation3 + $0x10] sm:$0xff]  ;;  %v3262_v9 = vpack.c.bf16 %v3192_v45, %v3192_v45  ;;  %3137 = vst [vmem:[#allocation3 + $0x1f] sm:$0x1] %v3136_v49  ;;  %v7056_v49 = vld [vmem:[%s11757_s8 + $0x3f0] sm:$0xff]  ;;  %v7031_v29 = vld [vmem:[%s11757_s8 + $0x328] sm:$0xff] }
 0x7d3   :  { %5351 = vmatmul.bf16.vlgmr.msra.gmra.mxu0 %v3259_v1  ;;  %5364 = vmatmul.bf16.vlgmr.msrb.gmra.mxu3 %v3260_v30  ;;  %3197 = vst [vmem:[#allocation1] ss:$4 sm:$0xff] %v3172_v43  ;;  %v7039_v42 = vld [vmem:[%s11757_s8 + $0x368] sm:$0xff]  ;;  %v7030_v0 = vld [vmem:[%s11757_s8 + $0x320] sm:$0xff] }
 0x7d4   :  { %5377 = vmatmul.bf16.vlgmr.msrb.gmra.mxu1 %v3261_v28  ;;  %5390 = vmatmul.bf16.vlgmr.msra.gmra.mxu2 %v3262_v9  ;;  %v3193_v25 = vld.sshfl [vmem:[#allocation1 + $0x20] sm:$0xff pattern:$0x73625140]  ;;  %v3194_v41 = vld.sshfl [vmem:[#allocation1 + $0x28] sm:$0xff pattern:$0x73625140] }
 0x7d5   :  { %5447 = vmatpush.bf16.msra.mxu0 %v7001_v7  ;;  %5460 = vmatpush.bf16.msrb.mxu3 %v7009_v21  ;;  %v3195_v37 = vld.sshfl [vmem:[#allocation1 + $0x30] sm:$0xff pattern:$0x73625140]  ;;  %v3196_v33 = vld.sshfl [vmem:[#allocation1 + $0x38] sm:$0xff pattern:$0x73625140]  ;;  %v3263_v48 = vpack.c.bf16 %v3193_v25, %v3193_v25  ;;  %v3264_v61 = vpack.c.bf16 %v3194_v41, %v3194_v41 }
 0x7d6   :  { %5473 = vmatpush.bf16.msrb.mxu1 %v7017_v44  ;;  %5486 = vmatpush.bf16.msra.mxu2 %v7025_v56  ;;  %v3265_v32 = vpack.c.bf16 %v3195_v37, %v3195_v37  ;;  %v3266_v18 = vpack.c.bf16 %v3196_v33, %v3196_v33  ;;  %v7048_v21 = vld [vmem:[%s11757_s8 + $0x3b0] sm:$0xff]  ;;  %v7047_v1 = vld [vmem:[%s11757_s8 + $0x3a8] sm:$0xff]  ;;  %v7038_v45 = vld [vmem:[%s11757_s8 + $0x360] sm:$0xff] }
 0x7d7   :  { %v7055_v30 = vld [vmem:[%s11757_s8 + $0x3e8] sm:$0xff]  ;;  %v7046_v28 = vld [vmem:[%s11757_s8 + $0x3a0] sm:$0xff]  ;;  %v7029_v9 = vld [vmem:[%s11757_s8 + $0x318] sm:$0xff] }
 0x7d8   :  { %v7054_v43 = vld [vmem:[%s11757_s8 + $0x3e0] sm:$0xff]  ;;  %v7037_v44 = vld [vmem:[%s11757_s8 + $0x358] sm:$0xff]  ;;  %v7027_v25 = vld [vmem:[%s11757_s8 + $0x308] sm:$0xff] }
 0x7d9   :  { %5448 = vmatpush.bf16.msra.mxu0 %v7000_v13  ;;  %5461 = vmatpush.bf16.msrb.mxu3 %v7008_v10  ;;  %v3173_v6 = vld [vmem:[#allocation3 + $0x18] sm:$0xff]  ;;  %v7045_v56 = vld [vmem:[%s11757_s8 + $0x398] sm:$0xff]  ;;  %v7028_v10 = vld [vmem:[%s11757_s8 + $0x310] sm:$0xff] }
 0x7da   :  { %5474 = vmatpush.bf16.msrb.mxu1 %v7016_v53  ;;  %5487 = vmatpush.bf16.msra.mxu2 %v7024_v17  ;;  %3198 = vst [vmem:[#allocation1 + $0x20] ss:$4 sm:$0xff] %v3173_v6  ;;  %v3199_v60 = vld.sshfl [vmem:[#allocation1] sm:$0xff pattern:$0x73625140]  ;;  %v7053_v13 = vld [vmem:[%s11757_s8 + $0x3d8] sm:$0xff] }
 0x7db   :  { %v3200_v63 = vld.sshfl [vmem:[#allocation1 + $0x8] sm:$0xff pattern:$0x73625140]  ;;  %v3201_v24 = vld.sshfl [vmem:[#allocation1 + $0x10] sm:$0xff pattern:$0x73625140]  ;;  %v3267_v50 = vpack.c.bf16 %v3199_v60, %v3199_v60 }
 0x7dc   :  { %v3202_v19 = vld.sshfl [vmem:[#allocation1 + $0x18] sm:$0xff pattern:$0x73625140]  ;;  %v3268_v62 = vpack.c.bf16 %v3200_v63, %v3200_v63  ;;  %v3269_v4 = vpack.c.bf16 %v3201_v24, %v3201_v24  ;;  %v7036_v53 = vld [vmem:[%s11757_s8 + $0x350] sm:$0xff]  ;;  %v7035_v41 = vld [vmem:[%s11757_s8 + $0x348] sm:$0xff] }
 0x7dd   :  { %5449 = vmatpush.bf16.msra.mxu0 %v6999_v55  ;;  %5462 = vmatpush.bf16.msrb.mxu3 %v7007_v27  ;;  %v3270_v7 = vpack.c.bf16 %v3202_v19, %v3202_v19  ;;  %v7044_v17 = vld [vmem:[%s11757_s8 + $0x390] sm:$0xff]  ;;  %v7043_v37 = vld [vmem:[%s11757_s8 + $0x388] sm:$0xff]  ;;  %v7026_v6 = vld [vmem:[%s11757_s8 + $0x300] sm:$0xff] }
 0x7de   :  { %5475 = vmatpush.bf16.msrb.mxu1 %v7015_v5  ;;  %5488 = vmatpush.bf16.msra.mxu2 %v7023_v2  ;;  %v7052_v55 = vld [vmem:[%s11757_s8 + $0x3d0] sm:$0xff]  ;;  %v7051_v27 = vld [vmem:[%s11757_s8 + $0x3c8] sm:$0xff]  ;;  %v7034_v33 = vld [vmem:[%s11757_s8 + $0x340] sm:$0xff] }
 0x7df   :  { %v7042_v5 = vld [vmem:[%s11757_s8 + $0x380] sm:$0xff]  ;;  %v7060_v63 = vld [vmem:[%s11757_s8 + $0x410] sm:$0xff] }
 0x7e0   :  { %v7050_v2 = vld [vmem:[%s11757_s8 + $0x3c0] sm:$0xff]  ;;  %v7068_v24 = vld [vmem:[%s11757_s8 + $0x450] sm:$0xff] }
 0x7e1   :  { %5450 = vmatpush.bf16.msra.mxu0 %v6998_v23  ;;  %5463 = vmatpush.bf16.msrb.mxu3 %v7006_v34  ;;  %v7065_v23 = vld [vmem:[%s11757_s8 + $0x438] sm:$0xff] }
 0x7e2   :  { %5476 = vmatpush.bf16.msrb.mxu1 %v7014_v38  ;;  %5489 = vmatpush.bf16.msra.mxu2 %v7022_v47  ;;  %v7073_v34 = vld [vmem:[%s11757_s8 + $0x478] sm:$0xff]  ;;  %v3203_v38 = vld.sshfl [vmem:[#allocation1 + $0x20] sm:$0xff pattern:$0x73625140] }
 0x7e3   :  { %5403 = vmatmul.bf16.vlgmr.msrb.gmra.mxu0 %v3263_v48  ;;  %5416 = vmatmul.bf16.vlgmr.msra.gmra.mxu3 %v3264_v61  ;;  %v7081_v47 = vld [vmem:[%s11757_s8 + $0x4b8] sm:$0xff]  ;;  %v3204_v61 = vld.sshfl [vmem:[#allocation1 + $0x28] sm:$0xff pattern:$0x73625140] }
 0x7e4   :  { %5429 = vmatmul.bf16.vlgmr.msra.gmra.mxu1 %v3265_v32  ;;  %5442 = vmatmul.bf16.vlgmr.msrb.gmra.mxu2 %v3266_v18  ;;  %v7089_v48 = vld [vmem:[%s11757_s8 + $0x4f8] sm:$0xff]  ;;  %v3271_v32 = vpack.c.bf16 %v3203_v38, %v3203_v38  ;;  %v3272_v18 = vpack.c.bf16 %v3204_v61, %v3204_v61  ;;  %v7110_v38 = vld [vmem:[%s11757_s8 + $0x5a0] sm:$0xff] }
 0x7e5   :  { %5451 = vmatpush.bf16.msra.mxu0 %v6997_v31  ;;  %5464 = vmatpush.bf16.msrb.mxu3 %v7005_v57  ;;  %v3205_v31 = vld.sshfl [vmem:[#allocation1 + $0x30] sm:$0xff pattern:$0x73625140]  ;;  %v3206_v57 = vld.sshfl [vmem:[#allocation1 + $0x38] sm:$0xff pattern:$0x73625140] }
 0x7e6   :  { %5477 = vmatpush.bf16.msrb.mxu1 %v7013_v52  ;;  %5490 = vmatpush.bf16.msra.mxu2 %v7021_v58  ;;  %v7064_v52 = vld [vmem:[%s11757_s8 + $0x430] sm:$0xff]  ;;  %v7093_v61 = vld [vmem:[%s11757_s8 + $0x518] sm:$0xff] }
 0x7e7   :  { %v7072_v58 = vld [vmem:[%s11757_s8 + $0x470] sm:$0xff] }
 0x7e9   :  { %5452 = vmatpush.bf16.msra.mxu0 %v6996_v35  ;;  %5465 = vmatpush.bf16.msrb.mxu3 %v7004_v51  ;;  %v3273_v35 = vpack.c.bf16 %v3205_v31, %v3205_v31  ;;  %v3274_v51 = vpack.c.bf16 %v3206_v57, %v3206_v57  ;;  %v7101_v31 = vld [vmem:[%s11757_s8 + $0x558] sm:$0xff] }
 0x7ea   :  { %5478 = vmatpush.bf16.msrb.mxu1 %v7012_v46  ;;  %5491 = vmatpush.bf16.msra.mxu2 %v7020_v14  ;;  %v7080_v46 = vld [vmem:[%s11757_s8 + $0x4b0] sm:$0xff]  ;;  %v7109_v57 = vld [vmem:[%s11757_s8 + $0x598] sm:$0xff] }
 0x7eb   :  { %v7088_v14 = vld [vmem:[%s11757_s8 + $0x4f0] sm:$0xff] }
 0x7ed   :  { %5453 = vmatpush.bf16.msra.mxu0 %v6995_v3  ;;  %5466 = vmatpush.bf16.msrb.mxu3 %v7003_v22  ;;  %v7063_v3 = vld [vmem:[%s11757_s8 + $0x428] sm:$0xff] }
 0x7ee   :  { %5479 = vmatpush.bf16.msrb.mxu1 %v7011_v26  ;;  %5492 = vmatpush.bf16.msra.mxu2 %v7019_v20  ;;  %v7071_v22 = vld [vmem:[%s11757_s8 + $0x468] sm:$0xff] }
 0x7ef   :  { %v7079_v26 = vld [vmem:[%s11757_s8 + $0x4a8] sm:$0xff] }
 0x7f0   :  { %v7087_v20 = vld [vmem:[%s11757_s8 + $0x4e8] sm:$0xff] }
 0x7f1   :  { %5454 = vmatpush.bf16.msra.mxu0 %v6994_v12  ;;  %5467 = vmatpush.bf16.msrb.mxu3 %v7002_v36  ;;  %v7062_v12 = vld [vmem:[%s11757_s8 + $0x420] sm:$0xff] }
 0x7f2   :  { %5480 = vmatpush.bf16.msrb.mxu1 %v7010_v15  ;;  %5493 = vmatpush.bf16.msra.mxu2 %v7018_v8  ;;  %v7070_v36 = vld [vmem:[%s11757_s8 + $0x460] sm:$0xff] }
 0x7f3   :  { %v7078_v15 = vld [vmem:[%s11757_s8 + $0x4a0] sm:$0xff] }
 0x7f4   :  { %5455 = vmatmul.bf16.vlgmr.msra.gmra.mxu0 %v3267_v50  ;;  %5468 = vmatmul.bf16.vlgmr.msrb.gmra.mxu3 %v3268_v62  ;;  %v7086_v8 = vld [vmem:[%s11757_s8 + $0x4e0] sm:$0xff]  ;;  %v7076_v50 = vld [vmem:[%s11757_s8 + $0x490] sm:$0xff] }
 0x7f5   :  { %5499 = vmatpush.bf16.msrb.mxu0 %v7033_v39  ;;  %5512 = vmatpush.bf16.msra.mxu3 %v7041_v59  ;;  %v7061_v39 = vld [vmem:[%s11757_s8 + $0x418] sm:$0xff]  ;;  %v7084_v62 = vld [vmem:[%s11757_s8 + $0x4d0] sm:$0xff] }
 0x7f6   :  { %5525 = vmatpush.bf16.msra.mxu1 %v7049_v11  ;;  %5538 = vmatpush.bf16.msrb.mxu2 %v7057_v16  ;;  %v7069_v59 = vld [vmem:[%s11757_s8 + $0x458] sm:$0xff] }
 0x7f7   :  { %5481 = vmatmul.bf16.vlgmr.msrb.gmra.mxu1 %v3269_v4  ;;  %5494 = vmatmul.bf16.vlgmr.msra.gmra.mxu2 %v3270_v7  ;;  %v7077_v11 = vld [vmem:[%s11757_s8 + $0x498] sm:$0xff]  ;;  %v7067_v4 = vld [vmem:[%s11757_s8 + $0x448] sm:$0xff] }
 0x7f8   :  { %v7085_v16 = vld [vmem:[%s11757_s8 + $0x4d8] sm:$0xff]  ;;  %v7075_v7 = vld [vmem:[%s11757_s8 + $0x488] sm:$0xff] }
 0x7f9   :  { %5500 = vmatpush.bf16.msrb.mxu0 %v7032_v54  ;;  %5513 = vmatpush.bf16.msra.mxu3 %v7040_v40  ;;  %v7059_v40 = vld [vmem:[%s11757_s8 + $0x408] sm:$0xff] }
 0x7fa   :  { %5526 = vmatpush.bf16.msra.mxu1 %v7048_v21  ;;  %5539 = vmatpush.bf16.msrb.mxu2 %v7056_v49  ;;  %v7083_v21 = vld [vmem:[%s11757_s8 + $0x4c8] sm:$0xff]  ;;  %v7058_v49 = vld [vmem:[%s11757_s8 + $0x400] sm:$0xff] }
 0x7fd   :  { %5501 = vmatpush.bf16.msrb.mxu0 %v7031_v29  ;;  %5514 = vmatpush.bf16.msra.mxu3 %v7039_v42  ;;  %v7066_v29 = vld [vmem:[%s11757_s8 + $0x440] sm:$0xff] }
 0x7fe   :  { %5527 = vmatpush.bf16.msra.mxu1 %v7047_v1  ;;  %5540 = vmatpush.bf16.msrb.mxu2 %v7055_v30  ;;  %v7074_v42 = vld [vmem:[%s11757_s8 + $0x480] sm:$0xff]  ;;  %v7097_v30 = vld [vmem:[%s11757_s8 + $0x538] sm:$0xff] }
 0x7ff   :  { %v7082_v1 = vld [vmem:[%s11757_s8 + $0x4c0] sm:$0xff] }
 0x801   :  { %5502 = vmatpush.bf16.msrb.mxu0 %v7030_v0  ;;  %5515 = vmatpush.bf16.msra.mxu3 %v7038_v45  ;;  %v7105_v0 = vld [vmem:[%s11757_s8 + $0x578] sm:$0xff] }
 0x802   :  { %5528 = vmatpush.bf16.msra.mxu1 %v7046_v28  ;;  %5541 = vmatpush.bf16.msrb.mxu2 %v7054_v43 }
 0x805   :  { %5503 = vmatpush.bf16.msrb.mxu0 %v7029_v9  ;;  %5516 = vmatpush.bf16.msra.mxu3 %v7037_v44  ;;  %v7113_v44 = vld [vmem:[%s11757_s8 + $0x5b8] sm:$0xff] }
 0x806   :  { %5529 = vmatpush.bf16.msra.mxu1 %v7045_v56  ;;  %5542 = vmatpush.bf16.msrb.mxu2 %v7053_v13  ;;  %v7121_v56 = vld [vmem:[%s11757_s8 + $0x5f8] sm:$0xff] }
 0x809   :  { %5504 = vmatpush.bf16.msrb.mxu0 %v7028_v10  ;;  %5517 = vmatpush.bf16.msra.mxu3 %v7036_v53 }
 0x80a   :  { %5530 = vmatpush.bf16.msra.mxu1 %v7044_v17  ;;  %5543 = vmatpush.bf16.msrb.mxu2 %v7052_v55  ;;  %v7096_v17 = vld [vmem:[%s11757_s8 + $0x530] sm:$0xff] }
 0x80b   :  { %v7104_v55 = vld [vmem:[%s11757_s8 + $0x570] sm:$0xff] }
 0x80d   :  { %5505 = vmatpush.bf16.msrb.mxu0 %v7027_v25  ;;  %5518 = vmatpush.bf16.msra.mxu3 %v7035_v41  ;;  %v7112_v41 = vld [vmem:[%s11757_s8 + $0x5b0] sm:$0xff] }
 0x80e   :  { %5531 = vmatpush.bf16.msra.mxu1 %v7043_v37  ;;  %5544 = vmatpush.bf16.msrb.mxu2 %v7051_v27  ;;  %v7120_v37 = vld [vmem:[%s11757_s8 + $0x5f0] sm:$0xff]  ;;  %v7095_v27 = vld [vmem:[%s11757_s8 + $0x528] sm:$0xff] }
 0x811   :  { %5506 = vmatpush.bf16.msrb.mxu0 %v7026_v6  ;;  %5519 = vmatpush.bf16.msra.mxu3 %v7034_v33  ;;  %v7103_v6 = vld [vmem:[%s11757_s8 + $0x568] sm:$0xff] }
 0x812   :  { %5532 = vmatpush.bf16.msra.mxu1 %v7042_v5  ;;  %5545 = vmatpush.bf16.msrb.mxu2 %v7050_v2  ;;  %v7111_v33 = vld [vmem:[%s11757_s8 + $0x5a8] sm:$0xff] }
 0x813   :  { %v7119_v5 = vld [vmem:[%s11757_s8 + $0x5e8] sm:$0xff] }
 0x814   :  { %5507 = vmatmul.bf16.vlgmr.msrb.gmra.mxu0 %v3271_v32  ;;  %5520 = vmatmul.bf16.vlgmr.msra.gmra.mxu3 %v3272_v18  ;;  %v7117_v32 = vld [vmem:[%s11757_s8 + $0x5d8] sm:$0xff]  ;;  %v7092_v18 = vld [vmem:[%s11757_s8 + $0x510] sm:$0xff] }
 0x815   :  { %5551 = vmatpush.bf16.msra.mxu0 %v7065_v23  ;;  %5564 = vmatpush.bf16.msrb.mxu3 %v7073_v34  ;;  %v7094_v23 = vld [vmem:[%s11757_s8 + $0x520] sm:$0xff] }
 0x816   :  { %5577 = vmatpush.bf16.msrb.mxu1 %v7081_v47  ;;  %5590 = vmatpush.bf16.msra.mxu2 %v7089_v48  ;;  %v7102_v34 = vld [vmem:[%s11757_s8 + $0x560] sm:$0xff] }
 0x817   :  { %5533 = vmatmul.bf16.vlgmr.msra.gmra.mxu1 %v3273_v35  ;;  %5546 = vmatmul.bf16.vlgmr.msrb.gmra.mxu2 %v3274_v51  ;;  %v7118_v47 = vld [vmem:[%s11757_s8 + $0x5e0] sm:$0xff] }
 0x819   :  { %5552 = vmatpush.bf16.msra.mxu0 %v7064_v52  ;;  %5565 = vmatpush.bf16.msrb.mxu3 %v7072_v58  ;;  %v7100_v52 = vld [vmem:[%s11757_s8 + $0x550] sm:$0xff] }
 0x81a   :  { %5578 = vmatpush.bf16.msrb.mxu1 %v7080_v46  ;;  %5591 = vmatpush.bf16.msra.mxu2 %v7088_v14 }
 0x81b   :  { %v3067_v60 = vpop.f32.mrf.mxu1 }
 0x81d   :  { %5553 = vmatpush.bf16.msra.mxu0 %v7063_v3  ;;  %5566 = vmatpush.bf16.msrb.mxu3 %v7071_v22 }
 0x81e   :  { %5579 = vmatpush.bf16.msrb.mxu1 %v7079_v26  ;;  %5592 = vmatpush.bf16.msra.mxu2 %v7087_v20  ;;  %v7108_v26 = vld [vmem:[%s11757_s8 + $0x590] sm:$0xff] }
 0x81f   :  { %v7116_v20 = vld [vmem:[%s11757_s8 + $0x5d0] sm:$0xff] }
 0x821   :  { %5554 = vmatpush.bf16.msra.mxu0 %v7062_v12  ;;  %5567 = vmatpush.bf16.msrb.mxu3 %v7070_v36  ;;  %v3096_v19 = vpop.f32.mrf.mxu2 }
 0x822   :  { %5580 = vmatpush.bf16.msrb.mxu1 %v7078_v15  ;;  %5593 = vmatpush.bf16.msra.mxu2 %v7086_v8  ;;  %v3097_v54 = vadd.f32 %v3096_v19, %v3067_v60  ;;  %v7090_v60 = vld [vmem:[%s11757_s8 + $0x500] sm:$0xff] }
 0x823   :  { %v7114_v19 = vld [vmem:[%s11757_s8 + $0x5c0] sm:$0xff] }
 0x824   :  { %3104 = vst [vmem:[#allocation2 + $0x10] sm:$0xff] %v3097_v54  ;;  %v7145_v54 = vld [vmem:[%s11757_s8 + $0x6b8] sm:$0xff] }
 0x825   :  { %5555 = vmatpush.bf16.msra.mxu0 %v7061_v39  ;;  %5568 = vmatpush.bf16.msrb.mxu3 %v7069_v59  ;;  %v7091_v39 = vld [vmem:[%s11757_s8 + $0x508] sm:$0xff] }
 0x826   :  { %5581 = vmatpush.bf16.msrb.mxu1 %v7077_v11  ;;  %5594 = vmatpush.bf16.msra.mxu2 %v7085_v16  ;;  %v7099_v59 = vld [vmem:[%s11757_s8 + $0x548] sm:$0xff] }
 0x827   :  { %v7107_v11 = vld [vmem:[%s11757_s8 + $0x588] sm:$0xff] }
 0x828   :  { %v7115_v16 = vld [vmem:[%s11757_s8 + $0x5c8] sm:$0xff] }
 0x829   :  { %5556 = vmatpush.bf16.msra.mxu0 %v7060_v63  ;;  %5569 = vmatpush.bf16.msrb.mxu3 %v7068_v24  ;;  %v7098_v63 = vld [vmem:[%s11757_s8 + $0x540] sm:$0xff] }
 0x82a   :  { %5582 = vmatpush.bf16.msrb.mxu1 %v7076_v50  ;;  %5595 = vmatpush.bf16.msra.mxu2 %v7084_v62  ;;  %v7106_v24 = vld [vmem:[%s11757_s8 + $0x580] sm:$0xff]  ;;  %v7129_v50 = vld [vmem:[%s11757_s8 + $0x638] sm:$0xff] }
 0x82b   :  { %v3138_v45 = vld [vmem:[#allocation2 + $0x10] sm:$0x1]  ;;  %v3140_v28 = vld [vmem:[#allocation2 + $0x11] sm:$0x1]  ;;  %v3142_v43 = vld [vmem:[#allocation2 + $0x12] sm:$0x1] }
 0x82c   :  { %3139 = vst [vmem:[#allocation3 + $0x21] sm:$0x1] %v3138_v45  ;;  %v3144_v9 = vld [vmem:[#allocation2 + $0x13] sm:$0x1]  ;;  %v3146_v13 = vld [vmem:[#allocation2 + $0x14] sm:$0x1] }
 0x82d   :  { %5557 = vmatpush.bf16.msra.mxu0 %v7059_v40  ;;  %5570 = vmatpush.bf16.msrb.mxu3 %v7067_v4  ;;  %3141 = vst [vmem:[#allocation3 + $0x23] sm:$0x1] %v3140_v28  ;;  %v3148_v10 = vld [vmem:[#allocation2 + $0x15] sm:$0x1]  ;;  %v3150_v53 = vld [vmem:[#allocation2 + $0x16] sm:$0x1] }
 0x82e   :  { %5583 = vmatpush.bf16.msrb.mxu1 %v7075_v7  ;;  %5596 = vmatpush.bf16.msra.mxu2 %v7083_v21  ;;  %3143 = vst [vmem:[#allocation3 + $0x25] sm:$0x1] %v3142_v43  ;;  %v3152_v25 = vld [vmem:[#allocation2 + $0x17] sm:$0x1]  ;;  %v7136_v45 = vld [vmem:[%s11757_s8 + $0x670] sm:$0xff] }
 0x82f   :  { %3145 = vst [vmem:[#allocation3 + $0x27] sm:$0x1] %v3144_v9  ;;  %v7137_v62 = vld [vmem:[%s11757_s8 + $0x678] sm:$0xff] }
 0x830   :  { %3147 = vst [vmem:[#allocation3 + $0x29] sm:$0x1] %v3146_v13  ;;  %v7153_v40 = vld [vmem:[%s11757_s8 + $0x6f8] sm:$0xff] }
 0x831   :  { %5558 = vmatpush.bf16.msra.mxu0 %v7058_v49  ;;  %5571 = vmatpush.bf16.msrb.mxu3 %v7066_v29  ;;  %3149 = vst [vmem:[#allocation3 + $0x2b] sm:$0x1] %v3148_v10 }
 0x832   :  { %5584 = vmatpush.bf16.msrb.mxu1 %v7074_v42  ;;  %5597 = vmatpush.bf16.msra.mxu2 %v7082_v1  ;;  %3151 = vst [vmem:[#allocation3 + $0x2d] sm:$0x1] %v3150_v53  ;;  %v7127_v53 = vld [vmem:[%s11757_s8 + $0x628] sm:$0xff] }
 0x833   :  { %3153 = vst [vmem:[#allocation3 + $0x2f] sm:$0x1] %v3152_v25 }
 0x835   :  { %5603 = vmatpush.bf16.msrb.mxu0 %v7097_v30  ;;  %5616 = vmatpush.bf16.msra.mxu3 %v7105_v0  ;;  %v7128_v0 = vld [vmem:[%s11757_s8 + $0x630] sm:$0xff] }
 0x836   :  { %5629 = vmatpush.bf16.msra.mxu1 %v7113_v44  ;;  %5642 = vmatpush.bf16.msrb.mxu2 %v7121_v56  ;;  %v3174_v2 = vld [vmem:[#allocation3 + $0x20] sm:$0xff]  ;;  %v7144_v44 = vld [vmem:[%s11757_s8 + $0x6b0] sm:$0xff] }
 0x837   :  { %3207 = vst [vmem:[#allocation1] ss:$4 sm:$0xff] %v3174_v2  ;;  %v7152_v56 = vld [vmem:[%s11757_s8 + $0x6f0] sm:$0xff] }
 0x839   :  { %5604 = vmatpush.bf16.msrb.mxu0 %v7096_v17  ;;  %5617 = vmatpush.bf16.msra.mxu3 %v7104_v55  ;;  %v7135_v17 = vld [vmem:[%s11757_s8 + $0x668] sm:$0xff]  ;;  %v7516_v55 = vld [vmem:[%s11758_s9] ss:$0 sm:$0xff]  ;;  %s7555_s9 = smov [#allocation4]  }
 0x83a   :  { %5630 = vmatpush.bf16.msra.mxu1 %v7112_v41  ;;  %5643 = vmatpush.bf16.msrb.mxu2 %v7120_v37  ;;  %v3175_v48 = vld [vmem:[#allocation3 + $0x28] sm:$0xff]  ;;  %v3070_v22 = vpop.f32.mrf.mxu1  ;;  %s5807_s0 = sshll.u32 %s7555_s9, 4  ;;  %s5808_s0 = int_to_ptr.vmem [resolvable:$true] %s5807_s0 }
 0x83b   :  { %3208 = vst [vmem:[#allocation1 + $0x20] ss:$4 sm:$0xff] %v3175_v48  ;;  %v7150_v48 = vld [vmem:[%s11757_s8 + $0x6e0] sm:$0xff] }
 0x83d   :  { %5605 = vmatpush.bf16.msrb.mxu0 %v7095_v27  ;;  %5618 = vmatpush.bf16.msra.mxu3 %v7103_v6  ;;  %v7143_v27 = vld [vmem:[%s11757_s8 + $0x6a8] sm:$0xff] }
 0x83e   :  { %5631 = vmatpush.bf16.msra.mxu1 %v7111_v33  ;;  %5644 = vmatpush.bf16.msrb.mxu2 %v7119_v5  ;;  %v3209_v58 = vld.sshfl [vmem:[#allocation1] sm:$0xff pattern:$0x73625140]  ;;  %v3210_v35 = vld.sshfl [vmem:[#allocation1 + $0x8] sm:$0xff pattern:$0x73625140] }
 0x83f   :  { %v3275_v51 = vpack.c.bf16 %v3209_v58, %v3209_v58  ;;  %v3276_v46 = vpack.c.bf16 %v3210_v35, %v3210_v35  ;;  %v3211_v14 = vld.sshfl [vmem:[#allocation1 + $0x10] sm:$0xff pattern:$0x73625140]  ;;  %v3212_v3 = vld.sshfl [vmem:[#allocation1 + $0x18] sm:$0xff pattern:$0x73625140] }
 0x840   :  { %v3277_v12 = vpack.c.bf16 %v3211_v14, %v3211_v14  ;;  %v3278_v36 = vpack.c.bf16 %v3212_v3, %v3212_v3  ;;  %v3099_v15 = vpop.f32.mrf.mxu2  ;;  %v7151_v6 = vld [vmem:[%s11757_s8 + $0x6e8] sm:$0xff]  ;;  %v7133_v58 = vld [vmem:[%s11757_s8 + $0x658] sm:$0xff] }
 0x841   :  { %5606 = vmatpush.bf16.msrb.mxu0 %v7094_v23  ;;  %5619 = vmatpush.bf16.msra.mxu3 %v7102_v34  ;;  %v3100_v8 = vadd.f32 %v3099_v15, %v3070_v22  ;;  %v7126_v23 = vld [vmem:[%s11757_s8 + $0x620] sm:$0xff]  ;;  %v7149_v14 = vld [vmem:[%s11757_s8 + $0x6d8] sm:$0xff]  ;;  %v7124_v22 = vld [vmem:[%s11757_s8 + $0x610] sm:$0xff] }
 0x842   :  { %5632 = vmatpush.bf16.msra.mxu1 %v7110_v38  ;;  %5645 = vmatpush.bf16.msrb.mxu2 %v7118_v47  ;;  %v3213_v42 = vld.sshfl [vmem:[#allocation1 + $0x20] sm:$0xff pattern:$0x73625140]  ;;  %v3214_v1 = vld.sshfl [vmem:[#allocation1 + $0x28] sm:$0xff pattern:$0x73625140] }
 0x843   :  { %5559 = vmatmul.bf16.vlgmr.msra.gmra.mxu0 %v3275_v51  ;;  %5572 = vmatmul.bf16.vlgmr.msrb.gmra.mxu3 %v3276_v46  ;;  %3105 = vst [vmem:[#allocation2 + $0x18] sm:$0xff] %v3100_v8  ;;  %v3215_v28 = vld.sshfl [vmem:[#allocation1 + $0x30] sm:$0xff pattern:$0x73625140]  ;;  %v3279_v41 = vpack.c.bf16 %v3213_v42, %v3213_v42  ;;  %v3280_v37 = vpack.c.bf16 %v3214_v1, %v3214_v1  ;;  %v7134_v34 = vld [vmem:[%s11757_s8 + $0x660] sm:$0xff]  ;;  %v7141_v46 = vld [vmem:[%s11757_s8 + $0x698] sm:$0xff] }
 0x844   :  { %5585 = vmatmul.bf16.vlgmr.msrb.gmra.mxu1 %v3277_v12  ;;  %5598 = vmatmul.bf16.vlgmr.msra.gmra.mxu2 %v3278_v36  ;;  %v3216_v43 = vld.sshfl [vmem:[#allocation1 + $0x38] sm:$0xff pattern:$0x73625140]  ;;  %v3281_v33 = vpack.c.bf16 %v3215_v28, %v3215_v28  ;;  %v7142_v47 = vld [vmem:[%s11757_s8 + $0x6a0] sm:$0xff]  ;;  %v7148_v12 = vld [vmem:[%s11757_s8 + $0x6d0] sm:$0xff] }
 0x845   :  { %5607 = vmatpush.bf16.msrb.mxu0 %v7093_v61  ;;  %5620 = vmatpush.bf16.msra.mxu3 %v7101_v31  ;;  %v3282_v5 = vpack.c.bf16 %v3216_v43, %v3216_v43 }
 0x846   :  { %5633 = vmatpush.bf16.msra.mxu1 %v7109_v57  ;;  %5646 = vmatpush.bf16.msrb.mxu2 %v7117_v32 }
 0x849   :  { %5608 = vmatpush.bf16.msrb.mxu0 %v7092_v18  ;;  %5621 = vmatpush.bf16.msra.mxu3 %v7100_v52  ;;  %v7125_v52 = vld [vmem:[%s11757_s8 + $0x618] sm:$0xff] }
 0x84a   :  { %5634 = vmatpush.bf16.msra.mxu1 %v7108_v26  ;;  %5647 = vmatpush.bf16.msrb.mxu2 %v7116_v20  ;;  %v3154_v4 = vld [vmem:[#allocation2 + $0x18] sm:$0x1]  ;;  %v3156_v7 = vld [vmem:[#allocation2 + $0x19] sm:$0x1]  ;;  %v3158_v21 = vld [vmem:[#allocation2 + $0x1a] sm:$0x1] }
 0x84b   :  { %3155 = vst [vmem:[#allocation3 + $0x31] sm:$0x1] %v3154_v4  ;;  %v3160_v49 = vld [vmem:[#allocation2 + $0x1b] sm:$0x1]  ;;  %v3162_v29 = vld [vmem:[#allocation2 + $0x1c] sm:$0x1] }
 0x84c   :  { %3157 = vst [vmem:[#allocation3 + $0x33] sm:$0x1] %v3156_v7  ;;  %v3164_v30 = vld [vmem:[#allocation2 + $0x1d] sm:$0x1]  ;;  %v3166_v9 = vld [vmem:[#allocation2 + $0x1e] sm:$0x1] }
 0x84d   :  { %5609 = vmatpush.bf16.msrb.mxu0 %v7091_v39  ;;  %5622 = vmatpush.bf16.msra.mxu3 %v7099_v59  ;;  %3159 = vst [vmem:[#allocation3 + $0x35] sm:$0x1] %v3158_v21  ;;  %v3168_v13 = vld [vmem:[#allocation2 + $0x1f] sm:$0x1]  ;;  %v7132_v26 = vld [vmem:[%s11757_s8 + $0x650] sm:$0xff]  ;;  %v7123_v39 = vld [vmem:[%s11757_s8 + $0x608] sm:$0xff] }
 0x84e   :  { %5635 = vmatpush.bf16.msra.mxu1 %v7107_v11  ;;  %5648 = vmatpush.bf16.msrb.mxu2 %v7115_v16  ;;  %3161 = vst [vmem:[#allocation3 + $0x37] sm:$0x1] %v3160_v49  ;;  %v7140_v20 = vld [vmem:[%s11757_s8 + $0x690] sm:$0xff]  ;;  %v7131_v59 = vld [vmem:[%s11757_s8 + $0x648] sm:$0xff]  ;;  %v7169_v4 = vld [vmem:[%s11757_s8 + $0x778] sm:$0xff] }
 0x84f   :  { %3163 = vst [vmem:[#allocation3 + $0x39] sm:$0x1] %v3162_v29  ;;  %v7177_v7 = vld [vmem:[%s11757_s8 + $0x7b8] sm:$0xff] }
 0x850   :  { %3165 = vst [vmem:[#allocation3 + $0x3b] sm:$0x1] %v3164_v30  ;;  %v5352_v10 = vpop.f32.mrf.mxu0  ;;  %v7185_v21 = vld [vmem:[%s11757_s8 + $0x7f8] sm:$0xff] }
 0x851   :  { %5610 = vmatpush.bf16.msrb.mxu0 %v7090_v60  ;;  %5623 = vmatpush.bf16.msra.mxu3 %v7098_v63  ;;  %3167 = vst [vmem:[#allocation3 + $0x3d] sm:$0x1] %v3166_v9  ;;  %v5378_v25 = vpop.f32.mrf.mxu1  ;;  %v5353_v2 = vadd.f32 %v7516_v55, %v5352_v10  ;;  %v7139_v60 = vld [vmem:[%s11757_s8 + $0x688] sm:$0xff]  ;;  %v7168_v10 = vld [vmem:[%s11757_s8 + $0x770] sm:$0xff] }
 0x852   :  { %5636 = vmatpush.bf16.msra.mxu1 %v7106_v24  ;;  %5649 = vmatpush.bf16.msrb.mxu2 %v7114_v19  ;;  %3169 = vst [vmem:[#allocation3 + $0x3f] sm:$0x1] %v3168_v13  ;;  %v7147_v63 = vld [vmem:[%s11757_s8 + $0x6c8] sm:$0xff]  ;;  %v7122_v24 = vld [vmem:[%s11757_s8 + $0x600] sm:$0xff]  ;;  %v7160_v13 = vld [vmem:[%s11757_s8 + $0x730] sm:$0xff] }
 0x853   :  { %v7130_v19 = vld [vmem:[%s11757_s8 + $0x640] sm:$0xff]  ;;  %v7176_v55 = vld [vmem:[%s11757_s8 + $0x7b0] sm:$0xff] }
 0x854   :  { %5611 = vmatmul.bf16.vlgmr.msrb.gmra.mxu0 %v3279_v41  ;;  %5624 = vmatmul.bf16.vlgmr.msra.gmra.mxu3 %v3280_v37  ;;  %v7159_v37 = vld [vmem:[%s11757_s8 + $0x728] sm:$0xff] }
 0x855   :  { %5655 = vmatpush.bf16.msra.mxu0 %v7129_v50  ;;  %5668 = vmatpush.bf16.msrb.mxu3 %v7137_v62  ;;  %v3176_v38 = vld [vmem:[#allocation3 + $0x30] sm:$0xff]  ;;  %v7138_v50 = vld [vmem:[%s11757_s8 + $0x680] sm:$0xff] }
 0x856   :  { %5681 = vmatpush.bf16.msrb.mxu1 %v7145_v54  ;;  %5694 = vmatpush.bf16.msra.mxu2 %v7153_v40  ;;  %v5365_v61 = vpop.f32.mrf.mxu3  ;;  %3217 = vst [vmem:[#allocation1] ss:$4 sm:$0xff] %v3176_v38  ;;  %v7146_v62 = vld [vmem:[%s11757_s8 + $0x6c0] sm:$0xff]  ;;  %v7161_v54 = vld [vmem:[%s11757_s8 + $0x738] sm:$0xff] }
 0x857   :  { %5637 = vmatmul.bf16.vlgmr.msra.gmra.mxu1 %v3281_v33  ;;  %5650 = vmatmul.bf16.vlgmr.msrb.gmra.mxu2 %v3282_v5  ;;  %v5366_v31 = vadd.f32 %v5365_v61, %v5353_v2  ;;  %v5391_v57 = vpop.f32.mrf.mxu2  ;;  %v7175_v33 = vld [vmem:[%s11757_s8 + $0x7a8] sm:$0xff]  ;;  %v7158_v38 = vld [vmem:[%s11757_s8 + $0x720] sm:$0xff] }
 0x858   :  { %v5354_v32 = vpop.f32.mrf.mxu0  ;;  %v7183_v5 = vld [vmem:[%s11757_s8 + $0x7e8] sm:$0xff]  ;;  %v7182_v61 = vld [vmem:[%s11757_s8 + $0x7e0] sm:$0xff] }
 0x859   :  { %5656 = vmatpush.bf16.msra.mxu0 %v7128_v0  ;;  %5669 = vmatpush.bf16.msrb.mxu3 %v7136_v45  ;;  %v5379_v18 = vadd.f32 %v5378_v25, %v5366_v31  ;;  %v5380_v35 = vpop.f32.mrf.mxu1  ;;  %v3177_v51 = vld [vmem:[#allocation3 + $0x38] sm:$0xff]  ;;  %v7184_v25 = vld [vmem:[%s11757_s8 + $0x7f0] sm:$0xff]  ;;  %v7157_v31 = vld [vmem:[%s11757_s8 + $0x718] sm:$0xff] }
 0x85a   :  { %5682 = vmatpush.bf16.msrb.mxu1 %v7144_v44  ;;  %5695 = vmatpush.bf16.msra.mxu2 %v7152_v56  ;;  %3218 = vst [vmem:[#allocation1 + $0x20] ss:$4 sm:$0xff] %v3177_v51  ;;  %v7173_v32 = vld [vmem:[%s11757_s8 + $0x798] sm:$0xff] }
 0x85b   :  { %v5392_v3 = vadd.f32 %v5391_v57, %v5379_v18  ;;  %v7165_v57 = vld [vmem:[%s11757_s8 + $0x758] sm:$0xff] }
 0x85c   :  { %v7181_v18 = vld [vmem:[%s11757_s8 + $0x7d8] sm:$0xff] }
 0x85d   :  { %5657 = vmatpush.bf16.msra.mxu0 %v7127_v53  ;;  %5670 = vmatpush.bf16.msrb.mxu3 %v7135_v17  ;;  %v3219_v42 = vld.sshfl [vmem:[#allocation1] sm:$0xff pattern:$0x73625140]  ;;  %v3220_v1 = vld.sshfl [vmem:[#allocation1 + $0x8] sm:$0xff pattern:$0x73625140] }
 0x85e   :  { %5683 = vmatpush.bf16.msrb.mxu1 %v7143_v27  ;;  %5696 = vmatpush.bf16.msra.mxu2 %v7151_v6  ;;  %v5367_v36 = vpop.f32.mrf.mxu3  ;;  %v3221_v45 = vld.sshfl [vmem:[#allocation1 + $0x10] sm:$0xff pattern:$0x73625140]  ;;  %v3222_v28 = vld.sshfl [vmem:[#allocation1 + $0x18] sm:$0xff pattern:$0x73625140]  ;;  %v3283_v44 = vpack.c.bf16 %v3219_v42, %v3219_v42  ;;  %v3284_v56 = vpack.c.bf16 %v3220_v1, %v3220_v1 }
 0x85f   :  { %v5393_v15 = vpop.f32.mrf.mxu2  ;;  %v3285_v53 = vpack.c.bf16 %v3221_v45, %v3221_v45  ;;  %v3286_v17 = vpack.c.bf16 %v3222_v28, %v3222_v28  ;;  %v7167_v27 = vld [vmem:[%s11757_s8 + $0x768] sm:$0xff] }
 0x860   :  { %v5404_v8 = vpop.f32.mrf.mxu0  ;;  %v7155_v36 = vld [vmem:[%s11757_s8 + $0x708] sm:$0xff] }
 0x861   :  { %5658 = vmatpush.bf16.msra.mxu0 %v7126_v23  ;;  %5671 = vmatpush.bf16.msrb.mxu3 %v7134_v34  ;;  %v5405_v11 = vadd.f32 %v5404_v8, %v5392_v3  ;;  %v5430_v16 = vpop.f32.mrf.mxu1  ;;  %v7156_v3 = vld [vmem:[%s11757_s8 + $0x710] sm:$0xff]  ;;  %v7163_v15 = vld [vmem:[%s11757_s8 + $0x748] sm:$0xff] }
 0x862   :  { %5684 = vmatpush.bf16.msrb.mxu1 %v7142_v47  ;;  %5697 = vmatpush.bf16.msra.mxu2 %v7150_v48  ;;  %v7166_v47 = vld [vmem:[%s11757_s8 + $0x760] sm:$0xff]  ;;  %v7171_v8 = vld [vmem:[%s11757_s8 + $0x788] sm:$0xff] }
 0x863   :  { %v7174_v48 = vld [vmem:[%s11757_s8 + $0x7a0] sm:$0xff] }
 0x865   :  { %5659 = vmatpush.bf16.msra.mxu0 %v7125_v52  ;;  %5672 = vmatpush.bf16.msrb.mxu3 %v7133_v58 }
 0x866   :  { %5685 = vmatpush.bf16.msrb.mxu1 %v7141_v46  ;;  %5698 = vmatpush.bf16.msra.mxu2 %v7149_v14  ;;  %v5417_v40 = vpop.f32.mrf.mxu3 }
 0x867   :  { %v5418_v49 = vadd.f32 %v5417_v40, %v5405_v11  ;;  %v5443_v29 = vpop.f32.mrf.mxu2 }
 0x868   :  { %v5406_v30 = vpop.f32.mrf.mxu0 }
 0x869   :  { %5660 = vmatpush.bf16.msra.mxu0 %v7124_v22  ;;  %5673 = vmatpush.bf16.msrb.mxu3 %v7132_v26  ;;  %v5431_v0 = vadd.f32 %v5430_v16, %v5418_v49  ;;  %v5432_v43 = vpop.f32.mrf.mxu1  ;;  %v7164_v22 = vld [vmem:[%s11757_s8 + $0x750] sm:$0xff]  ;;  %v7154_v16 = vld [vmem:[%s11757_s8 + $0x700] sm:$0xff] }
 0x86a   :  { %5686 = vmatpush.bf16.msrb.mxu1 %v7140_v20  ;;  %5699 = vmatpush.bf16.msra.mxu2 %v7148_v12  ;;  %v7172_v26 = vld [vmem:[%s11757_s8 + $0x790] sm:$0xff] }
 0x86b   :  { %v5444_v9 = vadd.f32 %v5443_v29, %v5431_v0  ;;  %v7180_v20 = vld [vmem:[%s11757_s8 + $0x7d0] sm:$0xff] }
 0x86d   :  { %5661 = vmatpush.bf16.msra.mxu0 %v7123_v39  ;;  %5674 = vmatpush.bf16.msrb.mxu3 %v7131_v59  ;;  %v7179_v39 = vld [vmem:[%s11757_s8 + $0x7c8] sm:$0xff] }
 0x86e   :  { %5687 = vmatpush.bf16.msrb.mxu1 %v7139_v60  ;;  %5700 = vmatpush.bf16.msra.mxu2 %v7147_v63  ;;  %v5419_v41 = vpop.f32.mrf.mxu3  ;;  %v7162_v60 = vld [vmem:[%s11757_s8 + $0x740] sm:$0xff] }
 0x86f   :  { %v5445_v6 = vpop.f32.mrf.mxu2  ;;  %v7170_v63 = vld [vmem:[%s11757_s8 + $0x780] sm:$0xff] }
 0x871   :  { %5662 = vmatpush.bf16.msra.mxu0 %v7122_v24  ;;  %5675 = vmatpush.bf16.msrb.mxu3 %v7130_v19  ;;  %v5456_v2 = vpop.f32.mrf.mxu0  ;;  %v7178_v24 = vld [vmem:[%s11757_s8 + $0x7c0] sm:$0xff] }
 0x872   :  { %5688 = vmatpush.bf16.msrb.mxu1 %v7138_v50  ;;  %5701 = vmatpush.bf16.msra.mxu2 %v7146_v62  ;;  %v5457_v23 = vadd.f32 %v5456_v2, %v5444_v9  ;;  %v3223_v19 = vld.sshfl [vmem:[#allocation1 + $0x20] sm:$0xff pattern:$0x73625140]  ;;  %v3224_v50 = vld.sshfl [vmem:[#allocation1 + $0x28] sm:$0xff pattern:$0x73625140] }
 0x873   :  { %v3225_v62 = vld.sshfl [vmem:[#allocation1 + $0x30] sm:$0xff pattern:$0x73625140]  ;;  %v3287_v40 = vpack.c.bf16 %v3223_v19, %v3223_v19 }
 0x874   :  { %5663 = vmatmul.bf16.vlgmr.msra.gmra.mxu0 %v3283_v44  ;;  %5676 = vmatmul.bf16.vlgmr.msrb.gmra.mxu3 %v3284_v56  ;;  %v5482_v34 = vpop.f32.mrf.mxu1 }
 0x875   :  { %5707 = vmatpush.bf16.msrb.mxu0 %v7161_v54  ;;  %5720 = vmatpush.bf16.msra.mxu3 %v7169_v4  ;;  %v3226_v54 = vld.sshfl [vmem:[#allocation1 + $0x38] sm:$0xff pattern:$0x73625140]  ;;  %v3288_v4 = vpack.c.bf16 %v3224_v50, %v3224_v50 }
 0x876   :  { %5733 = vmatpush.bf16.msra.mxu1 %v7177_v7  ;;  %5746 = vmatpush.bf16.msrb.mxu2 %v7185_v21  ;;  %v3289_v7 = vpack.c.bf16 %v3225_v62, %v3225_v62  ;;  %v3290_v21 = vpack.c.bf16 %v3226_v54, %v3226_v54  ;;  %v5760_v62 = vld [vmem:[%s11759_s10] sm:$0xff] }
 0x877   :  { %5689 = vmatmul.bf16.vlgmr.msrb.gmra.mxu1 %v3285_v53  ;;  %5702 = vmatmul.bf16.vlgmr.msra.gmra.mxu2 %v3286_v17  ;;  %v5469_v52 = vpop.f32.mrf.mxu3 }
 0x878   :  { %v5470_v58 = vadd.f32 %v5469_v52, %v5457_v23  ;;  %v5768_v52 = vld [vmem:[%s11759_s10 + $0x40] sm:$0xff] }
 0x879   :  { %5708 = vmatpush.bf16.msrb.mxu0 %v7160_v13  ;;  %5721 = vmatpush.bf16.msra.mxu3 %v7168_v10  ;;  %v5458_v51 = vpop.f32.mrf.mxu0 }
 0x87a   :  { %5734 = vmatpush.bf16.msra.mxu1 %v7176_v55  ;;  %5747 = vmatpush.bf16.msrb.mxu2 %v7184_v25  ;;  %v5495_v35 = vpop.f32.mrf.mxu2  ;;  %v5483_v46 = vadd.f32 %v5482_v34, %v5470_v58  ;;  %v5766_v51 = vld [vmem:[%s11759_s10 + $0x30] sm:$0xff] }
 0x87c   :  { %v5484_v14 = vpop.f32.mrf.mxu1  ;;  %v5496_v12 = vadd.f32 %v5495_v35, %v5483_v46  ;;  %v5767_v35 = vld [vmem:[%s11759_s10 + $0x38] sm:$0xff] }
 0x87d   :  { %5709 = vmatpush.bf16.msrb.mxu0 %v7159_v37  ;;  %5722 = vmatpush.bf16.msra.mxu3 %v7167_v27 }
 0x87e   :  { %5735 = vmatpush.bf16.msra.mxu1 %v7175_v33  ;;  %5748 = vmatpush.bf16.msrb.mxu2 %v7183_v5  ;;  %v5775_v33 = vld [vmem:[%s11759_s10 + $0x78] sm:$0xff] }
 0x87f   :  { %v5471_v59 = vpop.f32.mrf.mxu3 }
 0x880   :  { %v5764_v59 = vld [vmem:[%s11759_s10 + $0x20] sm:$0xff] }
 0x881   :  { %5710 = vmatpush.bf16.msrb.mxu0 %v7158_v38  ;;  %5723 = vmatpush.bf16.msra.mxu3 %v7166_v47  ;;  %v5774_v38 = vld [vmem:[%s11759_s10 + $0x70] sm:$0xff]  ;;  %v5773_v47 = vld [vmem:[%s11759_s10 + $0x68] sm:$0xff] }
 0x882   :  { %5736 = vmatpush.bf16.msra.mxu1 %v7174_v48  ;;  %5749 = vmatpush.bf16.msrb.mxu2 %v7182_v61  ;;  %v5497_v11 = vpop.f32.mrf.mxu2  ;;  %v5772_v48 = vld [vmem:[%s11759_s10 + $0x60] sm:$0xff]  ;;  %v5771_v61 = vld [vmem:[%s11759_s10 + $0x58] sm:$0xff] }
 0x883   :  { %v5763_v11 = vld [vmem:[%s11759_s10 + $0x18] sm:$0xff] }
 0x885   :  { %5711 = vmatpush.bf16.msrb.mxu0 %v7157_v31  ;;  %5724 = vmatpush.bf16.msra.mxu3 %v7165_v57 }
 0x886   :  { %5737 = vmatpush.bf16.msra.mxu1 %v7173_v32  ;;  %5750 = vmatpush.bf16.msrb.mxu2 %v7181_v18  ;;  %v5770_v32 = vld [vmem:[%s11759_s10 + $0x50] sm:$0xff]  ;;  %v5769_v18 = vld [vmem:[%s11759_s10 + $0x48] sm:$0xff] }
 0x889   :  { %5712 = vmatpush.bf16.msrb.mxu0 %v7156_v3  ;;  %5725 = vmatpush.bf16.msra.mxu3 %v7164_v22  ;;  %v5765_v3 = vld [vmem:[%s11759_s10 + $0x28] sm:$0xff] }
 0x88a   :  { %5738 = vmatpush.bf16.msra.mxu1 %v7172_v26  ;;  %5751 = vmatpush.bf16.msrb.mxu2 %v7180_v20 }
 0x88d   :  { %5713 = vmatpush.bf16.msrb.mxu0 %v7155_v36  ;;  %5726 = vmatpush.bf16.msra.mxu3 %v7163_v15 }
 0x88e   :  { %5739 = vmatpush.bf16.msra.mxu1 %v7171_v8  ;;  %5752 = vmatpush.bf16.msrb.mxu2 %v7179_v39 }
 0x891   :  { %5714 = vmatpush.bf16.msrb.mxu0 %v7154_v16  ;;  %5727 = vmatpush.bf16.msra.mxu3 %v7162_v60  ;;  %v5508_v49 = vpop.f32.mrf.mxu0  ;;  %v5762_v60 = vld [vmem:[%s11759_s10 + $0x10] sm:$0xff] }
 0x892   :  { %5740 = vmatpush.bf16.msra.mxu1 %v7170_v63  ;;  %5753 = vmatpush.bf16.msrb.mxu2 %v7178_v24  ;;  %v5509_v29 = vadd.f32 %v5508_v49, %v5496_v12  ;;  %v5761_v24 = vld [vmem:[%s11759_s10 + $0x8] sm:$0xff] }
 0x894   :  { %5715 = vmatmul.bf16.vlgmr.msrb.gmra.mxu0 %v3287_v40  ;;  %5728 = vmatmul.bf16.vlgmr.msra.gmra.mxu3 %v3288_v4  ;;  %v5534_v42 = vpop.f32.mrf.mxu1 }
 0x895   :  { %5741 = vmatmul.bf16.vlgmr.msra.gmra.mxu1 %v3289_v7  ;;  %5754 = vmatmul.bf16.vlgmr.msrb.gmra.mxu2 %v3290_v21 }
 0x896   :  { %5780 = vmatpush.msra.mxu0 %v5775_v33 }
 0x897   :  { %v5521_v1 = vpop.f32.mrf.mxu3 }
 0x898   :  { %v5522_v30 = vadd.f32 %v5521_v1, %v5509_v29  ;;  %5781 = vmatpush.msra.mxu0 %v5774_v38 }
 0x899   :  { %v5510_v45 = vpop.f32.mrf.mxu0 }
 0x89a   :  { %v5547_v0 = vpop.f32.mrf.mxu2  ;;  %v5535_v28 = vadd.f32 %v5534_v42, %v5522_v30  ;;  %5782 = vmatpush.msra.mxu0 %v5773_v47 }
 0x89c   :  { %v5536_v43 = vpop.f32.mrf.mxu1  ;;  %v5548_v9 = vadd.f32 %v5547_v0, %v5535_v28  ;;  %5783 = vmatpush.msra.mxu0 %v5772_v48 }
 0x89e   :  { %5784 = vmatpush.msra.mxu0 %v5771_v61 }
 0x89f   :  { %v5523_v44 = vpop.f32.mrf.mxu3 }
 0x8a0   :  { %5785 = vmatpush.msra.mxu0 %v5770_v32 }
 0x8a2   :  { %v5549_v56 = vpop.f32.mrf.mxu2  ;;  %5786 = vmatpush.msra.mxu0 %v5769_v18 }
 0x8a4   :  { %5787 = vmatpush.msra.mxu0 %v5768_v52 }
 0x8a6   :  { %5788 = vmatpush.msra.mxu0 %v5767_v35 }
 0x8a8   :  { %5789 = vmatpush.msra.mxu0 %v5766_v51 }
 0x8aa   :  { %5790 = vmatpush.msra.mxu0 %v5765_v3 }
 0x8ac   :  { %5791 = vmatpush.msra.mxu0 %v5764_v59 }
 0x8ae   :  { %5792 = vmatpush.msra.mxu0 %v5763_v11 }
 0x8b0   :  { %5793 = vmatpush.msra.mxu0 %v5762_v60 }
 0x8b2   :  { %5794 = vmatpush.msra.mxu0 %v5761_v24 }
 0x8b4   :  { %5795 = vmatpush.msra.mxu0 %v5760_v62 }
 0x8c0   :  { %v5560_v13 = vpop.f32.mrf.mxu0 }
 0x8c1   :  { %v5586_v10 = vpop.f32.mrf.mxu1  ;;  %v5561_v58 = vadd.f32 %v5560_v13, %v5548_v9 }
 0x8c6   :  { %v5573_v53 = vpop.f32.mrf.mxu3 }
 0x8c7   :  { %v5599_v17 = vpop.f32.mrf.mxu2  ;;  %v5574_v46 = vadd.f32 %v5573_v53, %v5561_v58 }
 0x8c8   :  { %v5562_v55 = vpop.f32.mrf.mxu0 }
 0x8c9   :  { %v5588_v25 = vpop.f32.mrf.mxu1  ;;  %v5587_v26 = vadd.f32 %v5586_v10, %v5574_v46  ;;  %v7517_v10 = vld [vmem:[%s11760_s11] ss:$0 sm:$0xff] }
 0x8cb   :  { %v5600_v36 = vadd.f32 %v5599_v17, %v5587_v26 }
 0x8ce   :  { %v5575_v41 = vpop.f32.mrf.mxu3 }
 0x8cf   :  { %v5601_v37 = vpop.f32.mrf.mxu2 }
 0x8d1   :  { %v5612_v27 = vpop.f32.mrf.mxu0 }
 0x8d2   :  { %v5613_v39 = vadd.f32 %v5612_v27, %v5600_v36 }
 0x8d4   :  { %v5638_v6 = vpop.f32.mrf.mxu1 }
 0x8d7   :  { %v5625_v5 = vpop.f32.mrf.mxu3 }
 0x8d8   :  { %v5626_v16 = vadd.f32 %v5625_v5, %v5613_v39 }
 0x8d9   :  { %v5614_v23 = vpop.f32.mrf.mxu0 }
 0x8da   :  { %v5651_v2 = vpop.f32.mrf.mxu2  ;;  %v5639_v50 = vadd.f32 %v5638_v6, %v5626_v16 }
 0x8dc   :  { %v5640_v34 = vpop.f32.mrf.mxu1  ;;  %v5652_v54 = vadd.f32 %v5651_v2, %v5639_v50 }
 0x8df   :  { %v5627_v31 = vpop.f32.mrf.mxu3 }
 0x8e2   :  { %v5653_v57 = vpop.f32.mrf.mxu2 }
 0x8f1   :  { %v5664_v14 = vpop.f32.mrf.mxu0 }
 0x8f2   :  { %v5665_v40 = vadd.f32 %v5664_v14, %v5652_v54 }
 0x8f4   :  { %v5690_v22 = vpop.f32.mrf.mxu1 }
 0x8f7   :  { %v5677_v20 = vpop.f32.mrf.mxu3 }
 0x8f8   :  { %v5678_v4 = vadd.f32 %v5677_v20, %v5665_v40 }
 0x8f9   :  { %v5666_v15 = vpop.f32.mrf.mxu0 }
 0x8fa   :  { %v5703_v12 = vpop.f32.mrf.mxu2  ;;  %v5691_v7 = vadd.f32 %v5690_v22, %v5678_v4 }
 0x8fc   :  { %v5692_v8 = vpop.f32.mrf.mxu1  ;;  %v5704_v29 = vadd.f32 %v5703_v12, %v5691_v7 }
 0x8ff   :  { %v5679_v63 = vpop.f32.mrf.mxu3 }
 0x902   :  { %v5705_v19 = vpop.f32.mrf.mxu2 }
 0x911   :  { %v5716_v21 = vpop.f32.mrf.mxu0 }
 0x912   :  { %v5742_v49 = vpop.f32.mrf.mxu1  ;;  %v5717_v42 = vadd.f32 %v5716_v21, %v5704_v29 }
 0x917   :  { %v5729_v1 = vpop.f32.mrf.mxu3 }
 0x918   :  { %v5730_v30 = vadd.f32 %v5729_v1, %v5717_v42  ;;  %v5755_v0 = vpop.f32.mrf.mxu2 }
 0x919   :  { %v5718_v45 = vpop.f32.mrf.mxu0 }
 0x91a   :  { %v5743_v28 = vadd.f32 %v5742_v49, %v5730_v30  ;;  %v5744_v43 = vpop.f32.mrf.mxu1 }
 0x91c   :  { %v5756_v9 = vadd.f32 %v5755_v0, %v5743_v28 }
 0x91e   :  { %v5759_v44 = vmax.f32 %v5756_v9, 0.0 }
 0x91f   :  { %v5731_v56 = vpop.f32.mrf.mxu3 }
 0x920   :  { %v5757_v13 = vpop.f32.mrf.mxu2  ;;  %5796 = vmatmul.f32.vlgmr.msra.gmra.mxu0 %v5759_v44 }
 0x99d   :  { %v5797_v53 = vpop.f32.mrf.mxu0 }
 0x99e   :  { %v5798_v17 = vadd.f32 %v7517_v10, %v5797_v53 }
 0x9a0   :  { %5801 = vst.msk [vmem:[#allocation4] sm:$0x3] %vm5800_vm13, %v5798_v17 }
 0x9a1   :  { %5812 = dma.vmem_to_hbm [thread:$0]  %s5808_s0, 32, %s5810_s2, [#allocation5]  }
 0x9a2   :  { %7542 = dma.done.wait [#allocation5], 32  }
 0x9a3   :  { %7543 = vsyncadd [#allocation5], 4294967264 }
 0x9a4   :  { %5817 = vsyncpa [#allocation5], 1 }

</bundles_post_ra>
